<compile_context>
chip_gen: v7x
topology: tpu7x:2x2x1
jax: 0.10.0
libtpu: 0.0.40
codegen_flags: <defaults>
</compile_context>

<pallas_src>
import functools

import jax
import jax.numpy as jnp
from jax import lax
from jax.experimental import pallas as pl
from jax.experimental.pallas import tpu as pltpu


# ------------------------------- tiling helpers -------------------------------

def _row_tile(m, cap=512):
    """Largest row tile (multiple of 128, <= cap) dividing m, preferring >=2
    grid steps (pipelining + megacore sharding)."""
    cands = [t for t in (cap, 384, 256, 128) if t <= m and m % t == 0]
    for t in cands:
        if m // t >= 2:
            return t
    return cands[0] if cands else m


def _lin_tile(lin_p, cap=2048):
    """Lin (value length) tile for the reduction grid axis."""
    for t in (cap, 1024, 512, 256, 128):
        if t <= lin_p and lin_p % t == 0:
            return t
    return lin_p


# ----------------------------- Pallas kernel 1 --------------------------------
# value = x@Wv*keep ; [offsets|attn_logits] = q@[Woff|Wa] ; per-head softmax.

def _proj_kernel(x_ref, pos_ref, keep_ref, wv_ref, bv_ref, wqa_ref, bqa_ref,
                 seg_ref, val_ref, off_ref, attn_ref, *, d_off):
    x = x_ref[...]
    q = x + pos_ref[...]                                 # with_pos_embed

    v = (jnp.dot(x.astype(jnp.bfloat16), wv_ref[...],
                 preferred_element_type=jnp.float32) + bv_ref[...])
    val_ref[...] = (v * keep_ref[...]).astype(jnp.bfloat16)   # fused pad mask

    qa = (jnp.dot(q.astype(jnp.bfloat16), wqa_ref[...],
                  preferred_element_type=jnp.float32) + bqa_ref[...])
    off_ref[...] = qa[:, :d_off]

    # lane-dense per-head softmax: global row max (exact, any constant shift),
    # segment sums via one block-diagonal ones matmul, EUP reciprocal.
    a = qa[:, d_off:]
    m = jnp.max(a, axis=-1, keepdims=True)
    e = jnp.exp(jnp.maximum(a - m, -30.0))               # clamp guards underflow
    denom = jnp.dot(e, seg_ref[...], preferred_element_type=jnp.float32)
    attn_ref[...] = e * pl.reciprocal(denom, approx=True)


def fused_projections(x2, pos2, keep2, params, n_heads, n_levels, n_points):
    M, C = x2.shape
    lp = n_levels * n_points
    d_off = n_heads * lp * 2
    d_attn = n_heads * lp
    wqa = jnp.concatenate([params["Woff"], params["Wa"]],
                          axis=1).astype(jnp.bfloat16)
    bqa = jnp.concatenate([params["boff"], params["ba"]],
                          axis=0).reshape(1, d_off + d_attn)
    seg = jnp.kron(jnp.eye(n_heads, dtype=jnp.float32),
                   jnp.ones((lp, lp), jnp.float32))       # block-diag segment sum
    tm = _row_tile(M)
    row = lambda i: (i, 0)
    rep = lambda i: (0, 0)
    flops = 2 * M * C * (C + d_off + d_attn) + 2 * M * d_attn * d_attn
    bytes_acc = int(M * (2 * C + 1) * 4 + C * (C + d_off + d_attn) * 2
                    + M * C * 2 + M * (d_off + d_attn) * 4)
    kern = functools.partial(_proj_kernel, d_off=d_off)
    return pl.pallas_call(
        kern,
        out_shape=(jax.ShapeDtypeStruct((M, C), jnp.bfloat16),
                   jax.ShapeDtypeStruct((M, d_off), jnp.float32),
                   jax.ShapeDtypeStruct((M, d_attn), jnp.float32)),
        grid=(M // tm,),
        in_specs=[
            pl.BlockSpec((tm, C), row), pl.BlockSpec((tm, C), row),
            pl.BlockSpec((tm, 1), row),
            pl.BlockSpec((C, C), rep), pl.BlockSpec((1, C), rep),
            pl.BlockSpec((C, d_off + d_attn), rep),
            pl.BlockSpec((1, d_off + d_attn), rep),
            pl.BlockSpec((d_attn, d_attn), rep),
        ],
        out_specs=(pl.BlockSpec((tm, C), row),
                   pl.BlockSpec((tm, d_off), row),
                   pl.BlockSpec((tm, d_attn), row)),
        compiler_params=pltpu.CompilerParams(dimension_semantics=("parallel",)),
        cost_estimate=pl.CostEstimate(flops=flops, transcendentals=M * d_attn,
                                      bytes_accessed=bytes_acc),
    )(x2, pos2, keep2,
      params["Wv"].astype(jnp.bfloat16), params["bv"].reshape(1, C),
      wqa, bqa, seg)


# ----------------------------- Pallas kernel 2 --------------------------------
# In-kernel Agg build + batched deform aggregation + Wo + LN1 + FFN + LN2.

def _layer_norm(y, g, b, eps=1e-5):
    mean = jnp.mean(y, axis=-1, keepdims=True)
    var = jnp.mean((y - mean) ** 2, axis=-1, keepdims=True)
    return (y - mean) * lax.rsqrt(var + eps) * g + b


def _deform_ffn_kernel(idx_ref, w_ref, val_ref, x_ref, wo_ref, bo_ref,
                       g1_ref, be1_ref, w1_ref, b1_ref, w2_ref, b2_ref,
                       g2_ref, be2_ref, o_ref, acc_ref,
                       *, n_heads, head_dim, n_corners, q_tile, lin_tile):
    kt = pl.program_id(2)

    @pl.when(kt == 0)
    def _init():
        acc_ref[...] = jnp.zeros_like(acc_ref)

    # ---- build per-head aggregation tile in VMEM (no HBM Agg tensor) ----
    # corner tables: idx_ref/w_ref blocks are (1, K, H, TQ); corners whose flat
    # index falls outside this Lin tile simply match no column (accumulation
    # over the Lin grid axis stays exact).
    rows = (lax.broadcasted_iota(jnp.int32, (lin_tile, q_tile), 0)
            + kt * lin_tile)
    heads = []
    for h in range(n_heads):                             # static head loop
        def body(k, acc):
            ci = idx_ref[0, k][h:h + 1, :]               # (1, TQ) int32
            wi = w_ref[0, k][h:h + 1, :]                 # (1, TQ) f32
            return acc + jnp.where(rows == ci, wi, 0.0)
        agg_t = lax.fori_loop(0, n_corners, body,
                              jnp.zeros((lin_tile, q_tile), jnp.float32))
        heads.append(agg_t.T)                            # (TQ, TL)
    agg = jnp.stack(heads, axis=0)                       # (H, TQ, TL) f32

    # ---- batched (over heads) aggregation matmul, f32 for fidelity ----
    vblk = val_ref[0].astype(jnp.float32)                # (H, TL, Dh)
    acc_ref[...] = acc_ref[...] + lax.dot_general(
        agg, vblk, (((2,), (1,)), ((0,), (0,))),
        preferred_element_type=jnp.float32)

    # ---- epilogue: Wo + residual + LN1 + FFN + residual + LN2 ----
    @pl.when(kt == pl.num_programs(2) - 1)
    def _finish():
        res = acc_ref[...]                               # (H, TQ, Dh) f32
        c_total = n_heads * head_dim
        attn_out = jnp.transpose(res, (1, 0, 2)).reshape(q_tile, c_total)
        y = x_ref[0] + (jnp.dot(attn_out.astype(jnp.bfloat16), wo_ref[...],
                                preferred_element_type=jnp.float32)
                        + bo_ref[...])
        y = _layer_norm(y, g1_ref[...], be1_ref[...])
        hdn = jnp.maximum(
            jnp.dot(y.astype(jnp.bfloat16), w1_ref[...],
                    preferred_element_type=jnp.float32) + b1_ref[...], 0.0)
        z = y + (jnp.dot(hdn.astype(jnp.bfloat16), w2_ref[...],
                         preferred_element_type=jnp.float32) + b2_ref[...])
        o_ref[0] = _layer_norm(z, g2_ref[...], be2_ref[...])


def deform_ffn_layer(idx, wgt, value_heads, xp, params):
    N, K, H, LqP = idx.shape
    _, _, LinP, Dh = value_heads.shape
    C = xp.shape[-1]
    F = params["W1"].shape[1]
    TQ = 128
    TL = _lin_tile(LinP)
    assert LqP % TQ == 0 and LinP % TL == 0
    w2d = lambda n, q, k: (0, 0)
    flops = 2 * N * (H * LqP * LinP * Dh + LqP * C * C + 2 * LqP * C * F)
    bytes_acc = int(idx.size * 4 + wgt.size * 4 + value_heads.size * 2
                    + 2 * N * LqP * C * 4 + (C * C + 2 * C * F) * 2 + 8 * C * 4)
    kern = functools.partial(_deform_ffn_kernel, n_heads=H, head_dim=Dh,
                             n_corners=K, q_tile=TQ, lin_tile=TL)
    return pl.pallas_call(
        kern,
        out_shape=jax.ShapeDtypeStruct((N, LqP, C), jnp.float32),
        grid=(N, LqP // TQ, LinP // TL),
        in_specs=[
            pl.BlockSpec((1, K, H, TQ), lambda n, q, k: (n, 0, 0, q)),   # idx
            pl.BlockSpec((1, K, H, TQ), lambda n, q, k: (n, 0, 0, q)),   # weights
            pl.BlockSpec((1, H, TL, Dh), lambda n, q, k: (n, 0, k, 0)),  # value
            pl.BlockSpec((1, TQ, C), lambda n, q, k: (n, q, 0)),         # residual
            pl.BlockSpec((C, C), w2d), pl.BlockSpec((1, C), w2d),        # Wo, bo
            pl.BlockSpec((1, C), w2d), pl.BlockSpec((1, C), w2d),        # g1, be1
            pl.BlockSpec((C, F), w2d), pl.BlockSpec((1, F), w2d),        # W1, b1
            pl.BlockSpec((F, C), w2d), pl.BlockSpec((1, C), w2d),        # W2, b2
            pl.BlockSpec((1, C), w2d), pl.BlockSpec((1, C), w2d),        # g2, be2
        ],
        out_specs=pl.BlockSpec((1, TQ, C), lambda n, q, k: (n, q, 0)),
        scratch_shapes=[pltpu.VMEM((H, TQ, Dh), jnp.float32)],
        compiler_params=pltpu.CompilerParams(
            dimension_semantics=("parallel", "parallel", "arbitrary"),
            vmem_limit_bytes=64 * 1024 * 1024),
        cost_estimate=pl.CostEstimate(flops=flops, transcendentals=4 * N * LqP,
                                      bytes_accessed=bytes_acc),
    )(idx, wgt, value_heads, xp,
      params["Wo"].astype(jnp.bfloat16), params["bo"].reshape(1, C),
      params["g1"].reshape(1, C), params["be1"].reshape(1, C),
      params["W1"].astype(jnp.bfloat16), params["b1"].reshape(1, F),
      params["W2"].astype(jnp.bfloat16), params["b2"].reshape(1, C),
      params["g2"].reshape(1, C), params["be2"].reshape(1, C))


# -------------------- corner tables (tiny XLA glue, no dense Agg) --------------

def build_corner_tables(sampling_locations, attention_weights, spatial_shapes):
    """grid_sample(bilinear, zero padding, align_corners=False) folded with
    attention weights into per-corner (flat index, weight) tables of shape
    (N, K, H, Lq) with K = 4*L*P; out-of-range corners get idx=-1 / weight=0.
    Total size is O(N*Lq*H*L*P) — orders of magnitude below a dense Agg."""
    N, Lq, H, L, P, _ = sampling_locations.shape
    idx_levels, w_levels = [], []
    start = 0
    for lvl, (hl, wl) in enumerate(spatial_shapes):
        loc = sampling_locations[:, :, :, lvl]            # (N, Lq, H, P, 2)
        a = attention_weights[:, :, :, lvl]               # (N, Lq, H, P)
        gx = loc[..., 0] * wl - 0.5                       # align_corners=False
        gy = loc[..., 1] * hl - 0.5
        x0 = jnp.floor(gx)
        y0 = jnp.floor(gy)
        fx = gx - x0
        fy = gy - y0
        x0i = x0.astype(jnp.int32)
        y0i = y0.astype(jnp.int32)
        idx_c, w_c = [], []
        for dy in (0, 1):
            for dx in (0, 1):
                xi = x0i + dx
                yi = y0i + dy
                wcorner = ((fx if dx else 1.0 - fx)
                           * (fy if dy else 1.0 - fy) * a)
                valid = (xi >= 0) & (xi < wl) & (yi >= 0) & (yi < hl)
                idx_c.append(jnp.where(valid, start + yi * wl + xi, -1))
                w_c.append(jnp.where(valid, wcorner, 0.0))
        idx_levels.append(jnp.stack(idx_c, axis=-1))       # (N, Lq, H, P, 4)
        w_levels.append(jnp.stack(w_c, axis=-1))
        start += hl * wl
    idx = jnp.stack(idx_levels, axis=3)                    # (N, Lq, H, L, P, 4)
    wgt = jnp.stack(w_levels, axis=3)
    K = L * P * 4
    perm = (0, 3, 4, 5, 2, 1)                              # -> (N, L, P, 4, H, Lq)
    idx = jnp.transpose(idx, perm).reshape(N, K, H, Lq)
    wgt = jnp.transpose(wgt, perm).reshape(N, K, H, Lq).astype(jnp.float32)
    return idx, wgt


# ------------------------------- full forward ---------------------------------

def encoder_layer_forward(params, x, pos, reference_points, spatial_shapes,
                          n_heads, n_levels, n_points, padding_mask=None):
    N, Lq, C = x.shape
    H, L, P = n_heads, n_levels, n_points
    Dh = C // H

    # pad token axis to a multiple of 128 -> every tile (8,128)-aligned
    Lq_pad = -(-Lq // 128) * 128
    pad = Lq_pad - Lq
    xp = jnp.pad(x, ((0, 0), (0, pad), (0, 0)))
    posp = jnp.pad(pos, ((0, 0), (0, pad), (0, 0)))
    refp = jnp.pad(reference_points, ((0, 0), (0, pad), (0, 0), (0, 0)),
                   constant_values=0.5)

    x2 = xp.reshape(N * Lq_pad, C)
    pos2 = posp.reshape(N * Lq_pad, C)
    if padding_mask is None:
        keep2 = jnp.ones((N * Lq_pad, 1), jnp.float32)
    else:
        maskp = jnp.pad(padding_mask, ((0, 0), (0, pad)), constant_values=True)
        keep2 = (~maskp).astype(jnp.float32).reshape(N * Lq_pad, 1)

    # ---- kernel 1: value / [offset|attn] projections + per-head softmax ----
    value2, offsets2, attn2 = fused_projections(x2, pos2, keep2, params, H, L, P)

    value_heads = jnp.transpose(value2.reshape(N, Lq_pad, H, Dh), (0, 2, 1, 3))
    offsets = offsets2.reshape(N, Lq_pad, H, L, P, 2)
    attn_w = attn2.reshape(N, Lq_pad, H, L, P)

    # offset normalizer: (W_l, H_l) per level, for (x, y) offsets
    normalizer = jnp.array([[wl, hl] for (hl, wl) in spatial_shapes], jnp.float32)
    sampling_locations = (refp[:, :, None, :, None, :]
                          + offsets / normalizer[None, None, None, :, None, :])

    Lin = sum(hl * wl for hl, wl in spatial_shapes)
    assert Lin == Lq, "encoder self-attention requires Len_in == Len_q"
    idx, wgt = build_corner_tables(sampling_locations, attn_w, spatial_shapes)

    # ---- kernel 2: in-kernel Agg + aggregation + Wo + LN1 + FFN + LN2 ----
    out = deform_ffn_layer(idx, wgt, value_heads, xp, params)
    return out[:, :Lq]


# -------------------------------- parameters ----------------------------------

def init_params(key, embed_dim, feedforward_dim, n_heads, n_levels, n_points):
    ks = jax.random.split(key, 6)
    s = 0.02
    C, F = embed_dim, feedforward_dim
    return {
        "Wv": jax.random.normal(ks[0], (C, C), jnp.float32) * s,
        "bv": jnp.zeros((C,), jnp.float32),
        "Woff": jax.random.normal(ks[1], (C, n_heads * n_levels * n_points * 2),
                                  jnp.float32) * s,
        "boff": jnp.zeros((n_heads * n_levels * n_points * 2,), jnp.float32),
        "Wa": jax.random.normal(ks[2], (C, n_heads * n_levels * n_points),
                                jnp.float32) * s,
        "ba": jnp.zeros((n_heads * n_levels * n_points,), jnp.float32),
        "Wo": jax.random.normal(ks[3], (C, C), jnp.float32) * s,
        "bo": jnp.zeros((C,), jnp.float32),
        "g1": jnp.ones((C,), jnp.float32),
        "be1": jnp.zeros((C,), jnp.float32),
        "W1": jax.random.normal(ks[4], (C, F), jnp.float32) * s,
        "b1": jnp.zeros((F,), jnp.float32),
        "W2": jax.random.normal(ks[5], (F, C), jnp.float32) * s,
        "b2": jnp.zeros((C,), jnp.float32),
        "g2": jnp.ones((C,), jnp.float32),
        "be2": jnp.zeros((C,), jnp.float32),
    }


# ----------------------------------- main --------------------------------------

if __name__ == "__main__":
    embed_dim = 32
    feedforward_dim = 64
    n_levels = 4
    n_heads = 8
    n_points = 4
    N = 2
    spatial_shapes = [(8, 8), (4, 4), (2, 2), (1, 1)]   # (H_l, W_l) per level
    Lq = sum(h * w for h, w in spatial_shapes)          # 85 tokens

    key = jax.random.PRNGKey(0)
    kx, kp, kr, kparam = jax.random.split(key, 4)

    x = jax.random.normal(kx, (N, Lq, embed_dim), jnp.float32)
    pos = jax.random.normal(kp, (N, Lq, embed_dim), jnp.float32)
    reference_points = jax.random.uniform(kr, (N, Lq, n_levels, 2), jnp.float32)
    # level_start_index is implicit in the static per-level concatenation.

    params = init_params(kparam, embed_dim, feedforward_dim,
                         n_heads, n_levels, n_points)

    fwd = jax.jit(
        functools.partial(
            encoder_layer_forward,
            spatial_shapes=spatial_shapes,
            n_heads=n_heads,
            n_levels=n_levels,
            n_points=n_points,
        )
    )
    out = jax.block_until_ready(fwd(params, x, pos, reference_points))

    assert out.shape == (N, Lq, embed_dim)
    assert bool(jnp.all(jnp.isfinite(out)))
    print("KERNEL_OK")
</pallas_src>

<mosaic_0001>
module attributes {stable_mosaic.version = 11 : i64} {
  func.func @_proj_kernel(%arg0: i32, %arg1: memref<128x32xf32, #tpu.memory_space<vmem>>, %arg2: memref<128x32xf32, #tpu.memory_space<vmem>>, %arg3: memref<128x1xf32, #tpu.memory_space<vmem>>, %arg4: memref<32x32xbf16, #tpu.memory_space<vmem>>, %arg5: memref<1x32xf32, #tpu.memory_space<vmem>>, %arg6: memref<32x384xbf16, #tpu.memory_space<vmem>>, %arg7: memref<1x384xf32, #tpu.memory_space<vmem>>, %arg8: memref<128x128xf32, #tpu.memory_space<vmem>>, %arg9: memref<128x32xbf16, #tpu.memory_space<vmem>>, %arg10: memref<128x256xf32, #tpu.memory_space<vmem>>, %arg11: memref<128x128xf32, #tpu.memory_space<vmem>>) attributes {dimension_semantics = [#tpu.dimension_semantics<parallel>], iteration_bounds = array<i64: 2>, scalar_prefetch = 0 : i64, scratch_operands = 0 : i64, tpu.core_type = #tpu.core_type<tc>, window_params = [{transform_indices = @transform_0, window_bounds = array<i64: 128, 32>}, {transform_indices = @transform_1, window_bounds = array<i64: 128, 32>}, {transform_indices = @transform_2, window_bounds = array<i64: 128, 1>}, {pipeline_mode = #tpu.pipeline_mode<synchronous>, transform_indices = @transform_3, window_bounds = array<i64: 32, 32>}, {pipeline_mode = #tpu.pipeline_mode<synchronous>, transform_indices = @transform_4, window_bounds = array<i64: 1, 32>}, {pipeline_mode = #tpu.pipeline_mode<synchronous>, transform_indices = @transform_5, window_bounds = array<i64: 32, 384>}, {pipeline_mode = #tpu.pipeline_mode<synchronous>, transform_indices = @transform_6, window_bounds = array<i64: 1, 384>}, {pipeline_mode = #tpu.pipeline_mode<synchronous>, transform_indices = @transform_7, window_bounds = array<i64: 128, 128>}, {transform_indices = @transform_8, window_bounds = array<i64: 128, 32>}, {transform_indices = @transform_9, window_bounds = array<i64: 128, 256>}, {transform_indices = @transform_10, window_bounds = array<i64: 128, 128>}]} {
    %c0 = arith.constant 0 : index
    %c0_0 = arith.constant 0 : index
    %0 = vector.load %arg1[%c0, %c0_0] : memref<128x32xf32, #tpu.memory_space<vmem>>, vector<128x32xf32>
    %c0_1 = arith.constant 0 : index
    %c0_2 = arith.constant 0 : index
    %1 = vector.load %arg2[%c0_1, %c0_2] : memref<128x32xf32, #tpu.memory_space<vmem>>, vector<128x32xf32>
    %2 = arith.addf %0, %1 : vector<128x32xf32>
    %3 = arith.truncf %0 : vector<128x32xf32> to vector<128x32xbf16>
    %c0_3 = arith.constant 0 : index
    %c0_4 = arith.constant 0 : index
    %4 = vector.load %arg4[%c0_3, %c0_4] : memref<32x32xbf16, #tpu.memory_space<vmem>>, vector<32x32xbf16>
    %cst = arith.constant dense<0.000000e+00> : vector<128x32xf32>
    %5 = tpu.matmul %3, %4, %cst {dimension_numbers = #tpu.dot_dimension_numbers<[1], [0], [0], [1], [0, 0, 1, 1], [], []>} : vector<128x32xbf16>, vector<32x32xbf16>, vector<128x32xf32> -> vector<128x32xf32>
    %c0_5 = arith.constant 0 : index
    %c0_6 = arith.constant 0 : index
    %6 = vector.load %arg5[%c0_5, %c0_6] : memref<1x32xf32, #tpu.memory_space<vmem>>, vector<1x32xf32>
    %7 = vector.broadcast %6 : vector<1x32xf32> to vector<128x32xf32>
    %8 = arith.addf %5, %7 : vector<128x32xf32>
    %c0_7 = arith.constant 0 : index
    %c0_8 = arith.constant 0 : index
    %9 = vector.load %arg3[%c0_7, %c0_8] : memref<128x1xf32, #tpu.memory_space<vmem>>, vector<128x1xf32>
    %10 = vector.broadcast %9 : vector<128x1xf32> to vector<128x32xf32>
    %11 = arith.mulf %8, %10 : vector<128x32xf32>
    %12 = arith.truncf %11 : vector<128x32xf32> to vector<128x32xbf16>
    %c0_9 = arith.constant 0 : index
    %c0_10 = arith.constant 0 : index
    %13 = vector.load %arg9[%c0_9, %c0_10] : memref<128x32xbf16, #tpu.memory_space<vmem>>, vector<128x32xbf16>
    tpu.vector_store %arg9[%c0_9, %c0_10], %12 {strides = array<i32>} : memref<128x32xbf16, #tpu.memory_space<vmem>>, vector<128x32xbf16>,
    %14 = arith.truncf %2 : vector<128x32xf32> to vector<128x32xbf16>
    %c0_11 = arith.constant 0 : index
    %c0_12 = arith.constant 0 : index
    %15 = vector.load %arg6[%c0_11, %c0_12] : memref<32x384xbf16, #tpu.memory_space<vmem>>, vector<32x384xbf16>
    %cst_13 = arith.constant dense<0.000000e+00> : vector<128x384xf32>
    %16 = tpu.matmul %14, %15, %cst_13 {dimension_numbers = #tpu.dot_dimension_numbers<[1], [0], [0], [1], [0, 0, 1, 1], [], []>} : vector<128x32xbf16>, vector<32x384xbf16>, vector<128x384xf32> -> vector<128x384xf32>
    %c0_14 = arith.constant 0 : index
    %c0_15 = arith.constant 0 : index
    %17 = vector.load %arg7[%c0_14, %c0_15] : memref<1x384xf32, #tpu.memory_space<vmem>>, vector<1x384xf32>
    %18 = vector.broadcast %17 : vector<1x384xf32> to vector<128x384xf32>
    %19 = arith.addf %16, %18 : vector<128x384xf32>
    %20 = vector.extract_strided_slice %19 {offsets = [0, 0], sizes = [128, 256], strides = [1, 1]} : vector<128x384xf32> to vector<128x256xf32>
    %c0_16 = arith.constant 0 : index
    %c0_17 = arith.constant 0 : index
    %21 = vector.load %arg10[%c0_16, %c0_17] : memref<128x256xf32, #tpu.memory_space<vmem>>, vector<128x256xf32>
    tpu.vector_store %arg10[%c0_16, %c0_17], %20 {strides = array<i32>} : memref<128x256xf32, #tpu.memory_space<vmem>>, vector<128x256xf32>,
    %22 = vector.extract_strided_slice %19 {offsets = [0, 256], sizes = [128, 128], strides = [1, 1]} : vector<128x384xf32> to vector<128x128xf32>
    %cst_18 = arith.constant dense<0xFF800000> : vector<128xf32>
    %23 = vector.multi_reduction <maximumf>, %22, %cst_18 [1] : vector<128x128xf32> to vector<128xf32>
    %24 = vector.shape_cast %23 : vector<128xf32> to vector<128x1xf32>
    %25 = vector.broadcast %24 : vector<128x1xf32> to vector<128x128xf32>
    %26 = arith.subf %22, %25 : vector<128x128xf32>
    %cst_19 = arith.constant -3.000000e+01 : f32
    %27 = vector.broadcast %cst_19 : f32 to vector<128x128xf32>
    %28 = arith.maximumf %26, %27 : vector<128x128xf32>
    %29 = math.exp %28 : vector<128x128xf32>
    %c0_20 = arith.constant 0 : index
    %c0_21 = arith.constant 0 : index
    %30 = vector.load %arg8[%c0_20, %c0_21] : memref<128x128xf32, #tpu.memory_space<vmem>>, vector<128x128xf32>
    %cst_22 = arith.constant dense<0.000000e+00> : vector<128x128xf32>
    %31 = tpu.matmul %29, %30, %cst_22 {dimension_numbers = #tpu.dot_dimension_numbers<[1], [0], [0], [1], [0, 0, 1, 1], [], []>} : vector<128x128xf32>, vector<128x128xf32>, vector<128x128xf32> -> vector<128x128xf32>
    %32 = tpu.reciprocal %31 {approx = true} : vector<128x128xf32> -> vector<128x128xf32>
    %33 = arith.mulf %29, %32 : vector<128x128xf32>
    %c0_23 = arith.constant 0 : index
    %c0_24 = arith.constant 0 : index
    %34 = vector.load %arg11[%c0_23, %c0_24] : memref<128x128xf32, #tpu.memory_space<vmem>>, vector<128x128xf32>
    tpu.vector_store %arg11[%c0_23, %c0_24], %33 {strides = array<i32>} : memref<128x128xf32, #tpu.memory_space<vmem>>, vector<128x128xf32>,
    return
  }
  func.func @transform_0(%arg0: i32) -> (i32, i32) {
    %c0_i32 = arith.constant 0 : i32
    %c0_i32_0 = arith.constant 0 : i32
    return %arg0, %c0_i32 : i32, i32
  }
  func.func @transform_1(%arg0: i32) -> (i32, i32) {
    %c0_i32 = arith.constant 0 : i32
    %c0_i32_0 = arith.constant 0 : i32
    return %arg0, %c0_i32 : i32, i32
  }
  func.func @transform_2(%arg0: i32) -> (i32, i32) {
    %c0_i32 = arith.constant 0 : i32
    %c0_i32_0 = arith.constant 0 : i32
    return %arg0, %c0_i32 : i32, i32
  }
  func.func @transform_3(%arg0: i32) -> (i32, i32) {
    %c0_i32 = arith.constant 0 : i32
    %c0_i32_0 = arith.constant 0 : i32
    %c0_i32_1 = arith.constant 0 : i32
    return %c0_i32, %c0_i32_0 : i32, i32
  }
  func.func @transform_4(%arg0: i32) -> (i32, i32) {
    %c0_i32 = arith.constant 0 : i32
    %c0_i32_0 = arith.constant 0 : i32
    %c0_i32_1 = arith.constant 0 : i32
    return %c0_i32, %c0_i32_0 : i32, i32
  }
  func.func @transform_5(%arg0: i32) -> (i32, i32) {
    %c0_i32 = arith.constant 0 : i32
    %c0_i32_0 = arith.constant 0 : i32
    %c0_i32_1 = arith.constant 0 : i32
    return %c0_i32, %c0_i32_0 : i32, i32
  }
  func.func @transform_6(%arg0: i32) -> (i32, i32) {
    %c0_i32 = arith.constant 0 : i32
    %c0_i32_0 = arith.constant 0 : i32
    %c0_i32_1 = arith.constant 0 : i32
    return %c0_i32, %c0_i32_0 : i32, i32
  }
  func.func @transform_7(%arg0: i32) -> (i32, i32) {
    %c0_i32 = arith.constant 0 : i32
    %c0_i32_0 = arith.constant 0 : i32
    %c0_i32_1 = arith.constant 0 : i32
    return %c0_i32, %c0_i32_0 : i32, i32
  }
  func.func @transform_8(%arg0: i32) -> (i32, i32) {
    %c0_i32 = arith.constant 0 : i32
    %c0_i32_0 = arith.constant 0 : i32
    return %arg0, %c0_i32 : i32, i32
  }
  func.func @transform_9(%arg0: i32) -> (i32, i32) {
    %c0_i32 = arith.constant 0 : i32
    %c0_i32_0 = arith.constant 0 : i32
    return %arg0, %c0_i32 : i32, i32
  }
  func.func @transform_10(%arg0: i32) -> (i32, i32) {
    %c0_i32 = arith.constant 0 : i32
    %c0_i32_0 = arith.constant 0 : i32
    return %arg0, %c0_i32 : i32, i32
  }
}

module attributes {stable_mosaic.version = 11 : i64} {
  func.func @_deform_ffn_kernel(%arg0: i32, %arg1: i32, %arg2: i32, %arg3: memref<1x64x8x128xi32, #tpu.memory_space<vmem>>, %arg4: memref<1x64x8x128xf32, #tpu.memory_space<vmem>>, %arg5: memref<1x8x128x4xbf16, #tpu.memory_space<vmem>>, %arg6: memref<1x128x32xf32, #tpu.memory_space<vmem>>, %arg7: memref<32x32xbf16, #tpu.memory_space<vmem>>, %arg8: memref<1x32xf32, #tpu.memory_space<vmem>>, %arg9: memref<1x32xf32, #tpu.memory_space<vmem>>, %arg10: memref<1x32xf32, #tpu.memory_space<vmem>>, %arg11: memref<32x64xbf16, #tpu.memory_space<vmem>>, %arg12: memref<1x64xf32, #tpu.memory_space<vmem>>, %arg13: memref<64x32xbf16, #tpu.memory_space<vmem>>, %arg14: memref<1x32xf32, #tpu.memory_space<vmem>>, %arg15: memref<1x32xf32, #tpu.memory_space<vmem>>, %arg16: memref<1x32xf32, #tpu.memory_space<vmem>>, %arg17: memref<1x128x32xf32, #tpu.memory_space<vmem>>, %arg18: memref<8x128x4xf32, #tpu.memory_space<vmem>>) attributes {dimension_semantics = [#tpu.dimension_semantics<parallel>, #tpu.dimension_semantics<parallel>, #tpu.dimension_semantics<arbitrary>], iteration_bounds = array<i64: 2, 1, 1>, scalar_prefetch = 0 : i64, scratch_operands = 1 : i64, tpu.core_type = #tpu.core_type<tc>, window_params = [{transform_indices = @transform_0, window_bounds = array<i64: 1, 64, 8, 128>}, {transform_indices = @transform_1, window_bounds = array<i64: 1, 64, 8, 128>}, {transform_indices = @transform_2, window_bounds = array<i64: 1, 8, 128, 4>}, {transform_indices = @transform_3, window_bounds = array<i64: 1, 128, 32>}, {pipeline_mode = #tpu.pipeline_mode<synchronous>, transform_indices = @transform_4, window_bounds = array<i64: 32, 32>}, {pipeline_mode = #tpu.pipeline_mode<synchronous>, transform_indices = @transform_5, window_bounds = array<i64: 1, 32>}, {pipeline_mode = #tpu.pipeline_mode<synchronous>, transform_indices = @transform_6, window_bounds = array<i64: 1, 32>}, {pipeline_mode = #tpu.pipeline_mode<synchronous>, transform_indices = @transform_7, window_bounds = array<i64: 1, 32>}, {pipeline_mode = #tpu.pipeline_mode<synchronous>, transform_indices = @transform_8, window_bounds = array<i64: 32, 64>}, {pipeline_mode = #tpu.pipeline_mode<synchronous>, transform_indices = @transform_9, window_bounds = array<i64: 1, 64>}, {pipeline_mode = #tpu.pipeline_mode<synchronous>, transform_indices = @transform_10, window_bounds = array<i64: 64, 32>}, {pipeline_mode = #tpu.pipeline_mode<synchronous>, transform_indices = @transform_11, window_bounds = array<i64: 1, 32>}, {pipeline_mode = #tpu.pipeline_mode<synchronous>, transform_indices = @transform_12, window_bounds = array<i64: 1, 32>}, {pipeline_mode = #tpu.pipeline_mode<synchronous>, transform_indices = @transform_13, window_bounds = array<i64: 1, 32>}, {transform_indices = @transform_14, window_bounds = array<i64: 1, 128, 32>}]} {
    %c0_i32 = arith.constant 0 : i32
    %0 = arith.cmpi eq, %arg2, %c0_i32 : i32
    %1 = arith.extui %0 : i1 to i32
    %c0_i32_0 = arith.constant 0 : i32
    %2 = arith.cmpi ne, %1, %c0_i32_0 : i32
    scf.if %2 {
      %cst_50 = arith.constant 0.000000e+00 : f32
      %58 = vector.broadcast %cst_50 : f32 to vector<8x128x4xf32>
      %c0_51 = arith.constant 0 : index
      %c0_52 = arith.constant 0 : index
      %c0_53 = arith.constant 0 : index
      %59 = vector.load %arg18[%c0_51, %c0_52, %c0_53] : memref<8x128x4xf32, #tpu.memory_space<vmem>>, vector<8x128x4xf32>
      tpu.vector_store %arg18[%c0_51, %c0_52, %c0_53], %58 {strides = array<i32>} : memref<8x128x4xf32, #tpu.memory_space<vmem>>, vector<8x128x4xf32>,
    } else {
    }
    %3 = tpu.iota {dimensions = array<i32: 0>} : vector<128x128xi32>
    %c128_i32 = arith.constant 128 : i32
    %4 = arith.muli %arg2, %c128_i32 : i32
    %5 = vector.broadcast %4 : i32 to vector<128x128xi32>
    %6 = arith.addi %3, %5 : vector<128x128xi32>
    %cst = arith.constant 0.000000e+00 : f32
    %7 = vector.broadcast %cst : f32 to vector<128x128xf32>
    %c0_i32_1 = arith.constant 0 : i32
    %c64_i32 = arith.constant 64 : i32
    %8 = arith.addi %c0_i32_1, %c64_i32 : i32
    %c1_i32 = arith.constant 1 : i32
    %9 = scf.for %arg19 = %c0_i32_1 to %8 step %c1_i32 iter_args(%arg20 = %7) -> (vector<128x128xf32>)  : i32 {
      %c0_50 = arith.constant 0 : index
      %58 = arith.index_cast %arg19 : i32 to index
      %c0_51 = arith.constant 0 : index
      %c0_52 = arith.constant 0 : index
      %59 = vector.load %arg3[%c0_50, %58, %c0_51, %c0_52] : memref<1x64x8x128xi32, #tpu.memory_space<vmem>>, vector<1x1x8x128xi32>
      %60 = vector.shape_cast %59 : vector<1x1x8x128xi32> to vector<8x128xi32>
      %61 = vector.extract_strided_slice %60 {offsets = [0, 0], sizes = [1, 128], strides = [1, 1]} : vector<8x128xi32> to vector<1x128xi32>
      %c0_53 = arith.constant 0 : index
      %62 = arith.index_cast %arg19 : i32 to index
      %c0_54 = arith.constant 0 : index
      %c0_55 = arith.constant 0 : index
      %63 = vector.load %arg4[%c0_53, %62, %c0_54, %c0_55] : memref<1x64x8x128xf32, #tpu.memory_space<vmem>>, vector<1x1x8x128xf32>
      %64 = vector.shape_cast %63 : vector<1x1x8x128xf32> to vector<8x128xf32>
      %65 = vector.extract_strided_slice %64 {offsets = [0, 0], sizes = [1, 128], strides = [1, 1]} : vector<8x128xf32> to vector<1x128xf32>
      %66 = vector.broadcast %61 : vector<1x128xi32> to vector<128x128xi32>
      %67 = arith.cmpi eq, %6, %66 : vector<128x128xi32>
      %cst_56 = arith.constant 0.000000e+00 : f32
      %68 = vector.shape_cast %65 : vector<1x128xf32> to vector<1x128xf32>
      %69 = vector.broadcast %68 : vector<1x128xf32> to vector<128x128xf32>
      %70 = vector.broadcast %cst_56 : f32 to vector<128x128xf32>
      %71 = arith.select %67, %69, %70 : vector<128x128xi1>, vector<128x128xf32>
      %72 = arith.addf %arg20, %71 : vector<128x128xf32>
      scf.yield %72 : vector<128x128xf32>
    }
    %c64_i32_2 = arith.constant 64 : i32
    %10 = tpu.transpose %9, [1, 0] : vector<128x128xf32> -> vector<128x128xf32>
    %cst_3 = arith.constant 0.000000e+00 : f32
    %11 = vector.broadcast %cst_3 : f32 to vector<128x128xf32>
    %c0_i32_4 = arith.constant 0 : i32
    %c64_i32_5 = arith.constant 64 : i32
    %12 = arith.addi %c0_i32_4, %c64_i32_5 : i32
    %c1_i32_6 = arith.constant 1 : i32
    %13 = scf.for %arg19 = %c0_i32_4 to %12 step %c1_i32_6 iter_args(%arg20 = %11) -> (vector<128x128xf32>)  : i32 {
      %c0_50 = arith.constant 0 : index
      %58 = arith.index_cast %arg19 : i32 to index
      %c0_51 = arith.constant 0 : index
      %c0_52 = arith.constant 0 : index
      %59 = vector.load %arg3[%c0_50, %58, %c0_51, %c0_52] : memref<1x64x8x128xi32, #tpu.memory_space<vmem>>, vector<1x1x8x128xi32>
      %60 = vector.shape_cast %59 : vector<1x1x8x128xi32> to vector<8x128xi32>
      %61 = vector.extract_strided_slice %60 {offsets = [1, 0], sizes = [1, 128], strides = [1, 1]} : vector<8x128xi32> to vector<1x128xi32>
      %c0_53 = arith.constant 0 : index
      %62 = arith.index_cast %arg19 : i32 to index
      %c0_54 = arith.constant 0 : index
      %c0_55 = arith.constant 0 : index
      %63 = vector.load %arg4[%c0_53, %62, %c0_54, %c0_55] : memref<1x64x8x128xf32, #tpu.memory_space<vmem>>, vector<1x1x8x128xf32>
      %64 = vector.shape_cast %63 : vector<1x1x8x128xf32> to vector<8x128xf32>
      %65 = vector.extract_strided_slice %64 {offsets = [1, 0], sizes = [1, 128], strides = [1, 1]} : vector<8x128xf32> to vector<1x128xf32>
      %66 = vector.broadcast %61 : vector<1x128xi32> to vector<128x128xi32>
      %67 = arith.cmpi eq, %6, %66 : vector<128x128xi32>
      %cst_56 = arith.constant 0.000000e+00 : f32
      %68 = vector.shape_cast %65 : vector<1x128xf32> to vector<1x128xf32>
      %69 = vector.broadcast %68 : vector<1x128xf32> to vector<128x128xf32>
      %70 = vector.broadcast %cst_56 : f32 to vector<128x128xf32>
      %71 = arith.select %67, %69, %70 : vector<128x128xi1>, vector<128x128xf32>
      %72 = arith.addf %arg20, %71 : vector<128x128xf32>
      scf.yield %72 : vector<128x128xf32>
    }
    %c64_i32_7 = arith.constant 64 : i32
    %14 = tpu.transpose %13, [1, 0] : vector<128x128xf32> -> vector<128x128xf32>
    %cst_8 = arith.constant 0.000000e+00 : f32
    %15 = vector.broadcast %cst_8 : f32 to vector<128x128xf32>
    %c0_i32_9 = arith.constant 0 : i32
    %c64_i32_10 = arith.constant 64 : i32
    %16 = arith.addi %c0_i32_9, %c64_i32_10 : i32
    %c1_i32_11 = arith.constant 1 : i32
    %17 = scf.for %arg19 = %c0_i32_9 to %16 step %c1_i32_11 iter_args(%arg20 = %15) -> (vector<128x128xf32>)  : i32 {
      %c0_50 = arith.constant 0 : index
      %58 = arith.index_cast %arg19 : i32 to index
      %c0_51 = arith.constant 0 : index
      %c0_52 = arith.constant 0 : index
      %59 = vector.load %arg3[%c0_50, %58, %c0_51, %c0_52] : memref<1x64x8x128xi32, #tpu.memory_space<vmem>>, vector<1x1x8x128xi32>
      %60 = vector.shape_cast %59 : vector<1x1x8x128xi32> to vector<8x128xi32>
      %61 = vector.extract_strided_slice %60 {offsets = [2, 0], sizes = [1, 128], strides = [1, 1]} : vector<8x128xi32> to vector<1x128xi32>
      %c0_53 = arith.constant 0 : index
      %62 = arith.index_cast %arg19 : i32 to index
      %c0_54 = arith.constant 0 : index
      %c0_55 = arith.constant 0 : index
      %63 = vector.load %arg4[%c0_53, %62, %c0_54, %c0_55] : memref<1x64x8x128xf32, #tpu.memory_space<vmem>>, vector<1x1x8x128xf32>
      %64 = vector.shape_cast %63 : vector<1x1x8x128xf32> to vector<8x128xf32>
      %65 = vector.extract_strided_slice %64 {offsets = [2, 0], sizes = [1, 128], strides = [1, 1]} : vector<8x128xf32> to vector<1x128xf32>
      %66 = vector.broadcast %61 : vector<1x128xi32> to vector<128x128xi32>
      %67 = arith.cmpi eq, %6, %66 : vector<128x128xi32>
      %cst_56 = arith.constant 0.000000e+00 : f32
      %68 = vector.shape_cast %65 : vector<1x128xf32> to vector<1x128xf32>
      %69 = vector.broadcast %68 : vector<1x128xf32> to vector<128x128xf32>
      %70 = vector.broadcast %cst_56 : f32 to vector<128x128xf32>
      %71 = arith.select %67, %69, %70 : vector<128x128xi1>, vector<128x128xf32>
      %72 = arith.addf %arg20, %71 : vector<128x128xf32>
      scf.yield %72 : vector<128x128xf32>
    }
    %c64_i32_12 = arith.constant 64 : i32
    %18 = tpu.transpose %17, [1, 0] : vector<128x128xf32> -> vector<128x128xf32>
    %cst_13 = arith.constant 0.000000e+00 : f32
    %19 = vector.broadcast %cst_13 : f32 to vector<128x128xf32>
    %c0_i32_14 = arith.constant 0 : i32
    %c64_i32_15 = arith.constant 64 : i32
    %20 = arith.addi %c0_i32_14, %c64_i32_15 : i32
    %c1_i32_16 = arith.constant 1 : i32
    %21 = scf.for %arg19 = %c0_i32_14 to %20 step %c1_i32_16 iter_args(%arg20 = %19) -> (vector<128x128xf32>)  : i32 {
      %c0_50 = arith.constant 0 : index
      %58 = arith.index_cast %arg19 : i32 to index
      %c0_51 = arith.constant 0 : index
      %c0_52 = arith.constant 0 : index
      %59 = vector.load %arg3[%c0_50, %58, %c0_51, %c0_52] : memref<1x64x8x128xi32, #tpu.memory_space<vmem>>, vector<1x1x8x128xi32>
      %60 = vector.shape_cast %59 : vector<1x1x8x128xi32> to vector<8x128xi32>
      %61 = vector.extract_strided_slice %60 {offsets = [3, 0], sizes = [1, 128], strides = [1, 1]} : vector<8x128xi32> to vector<1x128xi32>
      %c0_53 = arith.constant 0 : index
      %62 = arith.index_cast %arg19 : i32 to index
      %c0_54 = arith.constant 0 : index
      %c0_55 = arith.constant 0 : index
      %63 = vector.load %arg4[%c0_53, %62, %c0_54, %c0_55] : memref<1x64x8x128xf32, #tpu.memory_space<vmem>>, vector<1x1x8x128xf32>
      %64 = vector.shape_cast %63 : vector<1x1x8x128xf32> to vector<8x128xf32>
      %65 = vector.extract_strided_slice %64 {offsets = [3, 0], sizes = [1, 128], strides = [1, 1]} : vector<8x128xf32> to vector<1x128xf32>
      %66 = vector.broadcast %61 : vector<1x128xi32> to vector<128x128xi32>
      %67 = arith.cmpi eq, %6, %66 : vector<128x128xi32>
      %cst_56 = arith.constant 0.000000e+00 : f32
      %68 = vector.shape_cast %65 : vector<1x128xf32> to vector<1x128xf32>
      %69 = vector.broadcast %68 : vector<1x128xf32> to vector<128x128xf32>
      %70 = vector.broadcast %cst_56 : f32 to vector<128x128xf32>
      %71 = arith.select %67, %69, %70 : vector<128x128xi1>, vector<128x128xf32>
      %72 = arith.addf %arg20, %71 : vector<128x128xf32>
      scf.yield %72 : vector<128x128xf32>
    }
    %c64_i32_17 = arith.constant 64 : i32
    %22 = tpu.transpose %21, [1, 0] : vector<128x128xf32> -> vector<128x128xf32>
    %cst_18 = arith.constant 0.000000e+00 : f32
    %23 = vector.broadcast %cst_18 : f32 to vector<128x128xf32>
    %c0_i32_19 = arith.constant 0 : i32
    %c64_i32_20 = arith.constant 64 : i32
    %24 = arith.addi %c0_i32_19, %c64_i32_20 : i32
    %c1_i32_21 = arith.constant 1 : i32
    %25 = scf.for %arg19 = %c0_i32_19 to %24 step %c1_i32_21 iter_args(%arg20 = %23) -> (vector<128x128xf32>)  : i32 {
      %c0_50 = arith.constant 0 : index
      %58 = arith.index_cast %arg19 : i32 to index
      %c0_51 = arith.constant 0 : index
      %c0_52 = arith.constant 0 : index
      %59 = vector.load %arg3[%c0_50, %58, %c0_51, %c0_52] : memref<1x64x8x128xi32, #tpu.memory_space<vmem>>, vector<1x1x8x128xi32>
      %60 = vector.shape_cast %59 : vector<1x1x8x128xi32> to vector<8x128xi32>
      %61 = vector.extract_strided_slice %60 {offsets = [4, 0], sizes = [1, 128], strides = [1, 1]} : vector<8x128xi32> to vector<1x128xi32>
      %c0_53 = arith.constant 0 : index
      %62 = arith.index_cast %arg19 : i32 to index
      %c0_54 = arith.constant 0 : index
      %c0_55 = arith.constant 0 : index
      %63 = vector.load %arg4[%c0_53, %62, %c0_54, %c0_55] : memref<1x64x8x128xf32, #tpu.memory_space<vmem>>, vector<1x1x8x128xf32>
      %64 = vector.shape_cast %63 : vector<1x1x8x128xf32> to vector<8x128xf32>
      %65 = vector.extract_strided_slice %64 {offsets = [4, 0], sizes = [1, 128], strides = [1, 1]} : vector<8x128xf32> to vector<1x128xf32>
      %66 = vector.broadcast %61 : vector<1x128xi32> to vector<128x128xi32>
      %67 = arith.cmpi eq, %6, %66 : vector<128x128xi32>
      %cst_56 = arith.constant 0.000000e+00 : f32
      %68 = vector.shape_cast %65 : vector<1x128xf32> to vector<1x128xf32>
      %69 = vector.broadcast %68 : vector<1x128xf32> to vector<128x128xf32>
      %70 = vector.broadcast %cst_56 : f32 to vector<128x128xf32>
      %71 = arith.select %67, %69, %70 : vector<128x128xi1>, vector<128x128xf32>
      %72 = arith.addf %arg20, %71 : vector<128x128xf32>
      scf.yield %72 : vector<128x128xf32>
    }
    %c64_i32_22 = arith.constant 64 : i32
    %26 = tpu.transpose %25, [1, 0] : vector<128x128xf32> -> vector<128x128xf32>
    %cst_23 = arith.constant 0.000000e+00 : f32
    %27 = vector.broadcast %cst_23 : f32 to vector<128x128xf32>
    %c0_i32_24 = arith.constant 0 : i32
    %c64_i32_25 = arith.constant 64 : i32
    %28 = arith.addi %c0_i32_24, %c64_i32_25 : i32
    %c1_i32_26 = arith.constant 1 : i32
    %29 = scf.for %arg19 = %c0_i32_24 to %28 step %c1_i32_26 iter_args(%arg20 = %27) -> (vector<128x128xf32>)  : i32 {
      %c0_50 = arith.constant 0 : index
      %58 = arith.index_cast %arg19 : i32 to index
      %c0_51 = arith.constant 0 : index
      %c0_52 = arith.constant 0 : index
      %59 = vector.load %arg3[%c0_50, %58, %c0_51, %c0_52] : memref<1x64x8x128xi32, #tpu.memory_space<vmem>>, vector<1x1x8x128xi32>
      %60 = vector.shape_cast %59 : vector<1x1x8x128xi32> to vector<8x128xi32>
      %61 = vector.extract_strided_slice %60 {offsets = [5, 0], sizes = [1, 128], strides = [1, 1]} : vector<8x128xi32> to vector<1x128xi32>
      %c0_53 = arith.constant 0 : index
      %62 = arith.index_cast %arg19 : i32 to index
      %c0_54 = arith.constant 0 : index
      %c0_55 = arith.constant 0 : index
      %63 = vector.load %arg4[%c0_53, %62, %c0_54, %c0_55] : memref<1x64x8x128xf32, #tpu.memory_space<vmem>>, vector<1x1x8x128xf32>
      %64 = vector.shape_cast %63 : vector<1x1x8x128xf32> to vector<8x128xf32>
      %65 = vector.extract_strided_slice %64 {offsets = [5, 0], sizes = [1, 128], strides = [1, 1]} : vector<8x128xf32> to vector<1x128xf32>
      %66 = vector.broadcast %61 : vector<1x128xi32> to vector<128x128xi32>
      %67 = arith.cmpi eq, %6, %66 : vector<128x128xi32>
      %cst_56 = arith.constant 0.000000e+00 : f32
      %68 = vector.shape_cast %65 : vector<1x128xf32> to vector<1x128xf32>
      %69 = vector.broadcast %68 : vector<1x128xf32> to vector<128x128xf32>
      %70 = vector.broadcast %cst_56 : f32 to vector<128x128xf32>
      %71 = arith.select %67, %69, %70 : vector<128x128xi1>, vector<128x128xf32>
      %72 = arith.addf %arg20, %71 : vector<128x128xf32>
      scf.yield %72 : vector<128x128xf32>
    }
    %c64_i32_27 = arith.constant 64 : i32
    %30 = tpu.transpose %29, [1, 0] : vector<128x128xf32> -> vector<128x128xf32>
    %cst_28 = arith.constant 0.000000e+00 : f32
    %31 = vector.broadcast %cst_28 : f32 to vector<128x128xf32>
    %c0_i32_29 = arith.constant 0 : i32
    %c64_i32_30 = arith.constant 64 : i32
    %32 = arith.addi %c0_i32_29, %c64_i32_30 : i32
    %c1_i32_31 = arith.constant 1 : i32
    %33 = scf.for %arg19 = %c0_i32_29 to %32 step %c1_i32_31 iter_args(%arg20 = %31) -> (vector<128x128xf32>)  : i32 {
      %c0_50 = arith.constant 0 : index
      %58 = arith.index_cast %arg19 : i32 to index
      %c0_51 = arith.constant 0 : index
      %c0_52 = arith.constant 0 : index
      %59 = vector.load %arg3[%c0_50, %58, %c0_51, %c0_52] : memref<1x64x8x128xi32, #tpu.memory_space<vmem>>, vector<1x1x8x128xi32>
      %60 = vector.shape_cast %59 : vector<1x1x8x128xi32> to vector<8x128xi32>
      %61 = vector.extract_strided_slice %60 {offsets = [6, 0], sizes = [1, 128], strides = [1, 1]} : vector<8x128xi32> to vector<1x128xi32>
      %c0_53 = arith.constant 0 : index
      %62 = arith.index_cast %arg19 : i32 to index
      %c0_54 = arith.constant 0 : index
      %c0_55 = arith.constant 0 : index
      %63 = vector.load %arg4[%c0_53, %62, %c0_54, %c0_55] : memref<1x64x8x128xf32, #tpu.memory_space<vmem>>, vector<1x1x8x128xf32>
      %64 = vector.shape_cast %63 : vector<1x1x8x128xf32> to vector<8x128xf32>
      %65 = vector.extract_strided_slice %64 {offsets = [6, 0], sizes = [1, 128], strides = [1, 1]} : vector<8x128xf32> to vector<1x128xf32>
      %66 = vector.broadcast %61 : vector<1x128xi32> to vector<128x128xi32>
      %67 = arith.cmpi eq, %6, %66 : vector<128x128xi32>
      %cst_56 = arith.constant 0.000000e+00 : f32
      %68 = vector.shape_cast %65 : vector<1x128xf32> to vector<1x128xf32>
      %69 = vector.broadcast %68 : vector<1x128xf32> to vector<128x128xf32>
      %70 = vector.broadcast %cst_56 : f32 to vector<128x128xf32>
      %71 = arith.select %67, %69, %70 : vector<128x128xi1>, vector<128x128xf32>
      %72 = arith.addf %arg20, %71 : vector<128x128xf32>
      scf.yield %72 : vector<128x128xf32>
    }
    %c64_i32_32 = arith.constant 64 : i32
    %34 = tpu.transpose %33, [1, 0] : vector<128x128xf32> -> vector<128x128xf32>
    %cst_33 = arith.constant 0.000000e+00 : f32
    %35 = vector.broadcast %cst_33 : f32 to vector<128x128xf32>
    %c0_i32_34 = arith.constant 0 : i32
    %c64_i32_35 = arith.constant 64 : i32
    %36 = arith.addi %c0_i32_34, %c64_i32_35 : i32
    %c1_i32_36 = arith.constant 1 : i32
    %37 = scf.for %arg19 = %c0_i32_34 to %36 step %c1_i32_36 iter_args(%arg20 = %35) -> (vector<128x128xf32>)  : i32 {
      %c0_50 = arith.constant 0 : index
      %58 = arith.index_cast %arg19 : i32 to index
      %c0_51 = arith.constant 0 : index
      %c0_52 = arith.constant 0 : index
      %59 = vector.load %arg3[%c0_50, %58, %c0_51, %c0_52] : memref<1x64x8x128xi32, #tpu.memory_space<vmem>>, vector<1x1x8x128xi32>
      %60 = vector.shape_cast %59 : vector<1x1x8x128xi32> to vector<8x128xi32>
      %61 = vector.extract_strided_slice %60 {offsets = [7, 0], sizes = [1, 128], strides = [1, 1]} : vector<8x128xi32> to vector<1x128xi32>
      %c0_53 = arith.constant 0 : index
      %62 = arith.index_cast %arg19 : i32 to index
      %c0_54 = arith.constant 0 : index
      %c0_55 = arith.constant 0 : index
      %63 = vector.load %arg4[%c0_53, %62, %c0_54, %c0_55] : memref<1x64x8x128xf32, #tpu.memory_space<vmem>>, vector<1x1x8x128xf32>
      %64 = vector.shape_cast %63 : vector<1x1x8x128xf32> to vector<8x128xf32>
      %65 = vector.extract_strided_slice %64 {offsets = [7, 0], sizes = [1, 128], strides = [1, 1]} : vector<8x128xf32> to vector<1x128xf32>
      %66 = vector.broadcast %61 : vector<1x128xi32> to vector<128x128xi32>
      %67 = arith.cmpi eq, %6, %66 : vector<128x128xi32>
      %cst_56 = arith.constant 0.000000e+00 : f32
      %68 = vector.shape_cast %65 : vector<1x128xf32> to vector<1x128xf32>
      %69 = vector.broadcast %68 : vector<1x128xf32> to vector<128x128xf32>
      %70 = vector.broadcast %cst_56 : f32 to vector<128x128xf32>
      %71 = arith.select %67, %69, %70 : vector<128x128xi1>, vector<128x128xf32>
      %72 = arith.addf %arg20, %71 : vector<128x128xf32>
      scf.yield %72 : vector<128x128xf32>
    }
    %c64_i32_37 = arith.constant 64 : i32
    %38 = tpu.transpose %37, [1, 0] : vector<128x128xf32> -> vector<128x128xf32>
    %39 = vector.shape_cast %10 : vector<128x128xf32> to vector<1x128x128xf32>
    %40 = vector.shape_cast %14 : vector<128x128xf32> to vector<1x128x128xf32>
    %41 = vector.shape_cast %18 : vector<128x128xf32> to vector<1x128x128xf32>
    %42 = vector.shape_cast %22 : vector<128x128xf32> to vector<1x128x128xf32>
    %43 = vector.shape_cast %26 : vector<128x128xf32> to vector<1x128x128xf32>
    %44 = vector.shape_cast %30 : vector<128x128xf32> to vector<1x128x128xf32>
    %45 = vector.shape_cast %34 : vector<128x128xf32> to vector<1x128x128xf32>
    %46 = vector.shape_cast %38 : vector<128x128xf32> to vector<1x128x128xf32>
    %47 = tpu.concatenate %39, %40, %41, %42, %43, %44, %45, %46 in 0 : vector<1x128x128xf32>, vector<1x128x128xf32>, vector<1x128x128xf32>, vector<1x128x128xf32>, vector<1x128x128xf32>, vector<1x128x128xf32>, vector<1x128x128xf32>, vector<1x128x128xf32> -> vector<8x128x128xf32>
    %c0 = arith.constant 0 : index
    %c0_38 = arith.constant 0 : index
    %c0_39 = arith.constant 0 : index
    %c0_40 = arith.constant 0 : index
    %48 = vector.load %arg5[%c0, %c0_38, %c0_39, %c0_40] : memref<1x8x128x4xbf16, #tpu.memory_space<vmem>>, vector<1x8x128x4xbf16>
    %49 = vector.shape_cast %48 : vector<1x8x128x4xbf16> to vector<8x128x4xbf16>
    %50 = arith.extf %49 : vector<8x128x4xbf16> to vector<8x128x4xf32>
    %c0_41 = arith.constant 0 : index
    %c0_42 = arith.constant 0 : index
    %c0_43 = arith.constant 0 : index
    %51 = vector.load %arg18[%c0_41, %c0_42, %c0_43] : memref<8x128x4xf32, #tpu.memory_space<vmem>>, vector<8x128x4xf32>
    %cst_44 = arith.constant dense<0.000000e+00> : vector<8x128x4xf32>
    %52 = tpu.matmul %47, %50, %cst_44 {dimension_numbers = #tpu.dot_dimension_numbers<[2], [1], [1], [2], [0, 0, 0, 1, 1, 2], [0], [0]>} : vector<8x128x128xf32>, vector<8x128x4xf32>, vector<8x128x4xf32> -> vector<8x128x4xf32>
    %53 = arith.addf %51, %52 : vector<8x128x4xf32>
    %c0_45 = arith.constant 0 : index
    %c0_46 = arith.constant 0 : index
    %c0_47 = arith.constant 0 : index
    %54 = vector.load %arg18[%c0_45, %c0_46, %c0_47] : memref<8x128x4xf32, #tpu.memory_space<vmem>>, vector<8x128x4xf32>
    tpu.vector_store %arg18[%c0_45, %c0_46, %c0_47], %53 {strides = array<i32>} : memref<8x128x4xf32, #tpu.memory_space<vmem>>, vector<8x128x4xf32>,
    %c0_i32_48 = arith.constant 0 : i32
    %55 = arith.cmpi eq, %arg2, %c0_i32_48 : i32
    %56 = arith.extui %55 : i1 to i32
    %c0_i32_49 = arith.constant 0 : i32
    %57 = arith.cmpi ne, %56, %c0_i32_49 : i32
    scf.if %57 {
      %c0_50 = arith.constant 0 : index
      %c0_51 = arith.constant 0 : index
      %c0_52 = arith.constant 0 : index
      %58 = vector.load %arg18[%c0_50, %c0_51, %c0_52] : memref<8x128x4xf32, #tpu.memory_space<vmem>>, vector<8x128x4xf32>
      %59 = tpu.transpose %58, [1, 0, 2] : vector<8x128x4xf32> -> vector<128x8x4xf32>
      %60 = vector.shape_cast %59 : vector<128x8x4xf32> to vector<128x32xf32>
      %c0_53 = arith.constant 0 : index
      %c0_54 = arith.constant 0 : index
      %c0_55 = arith.constant 0 : index
      %61 = vector.load %arg6[%c0_53, %c0_54, %c0_55] : memref<1x128x32xf32, #tpu.memory_space<vmem>>, vector<1x128x32xf32>
      %62 = vector.shape_cast %61 : vector<1x128x32xf32> to vector<128x32xf32>
      %63 = arith.truncf %60 : vector<128x32xf32> to vector<128x32xbf16>
      %c0_56 = arith.constant 0 : index
      %c0_57 = arith.constant 0 : index
      %64 = vector.load %arg7[%c0_56, %c0_57] : memref<32x32xbf16, #tpu.memory_space<vmem>>, vector<32x32xbf16>
      %cst_58 = arith.constant dense<0.000000e+00> : vector<128x32xf32>
      %65 = tpu.matmul %63, %64, %cst_58 {dimension_numbers = #tpu.dot_dimension_numbers<[1], [0], [0], [1], [0, 0, 1, 1], [], []>} : vector<128x32xbf16>, vector<32x32xbf16>, vector<128x32xf32> -> vector<128x32xf32>
      %c0_59 = arith.constant 0 : index
      %c0_60 = arith.constant 0 : index
      %66 = vector.load %arg8[%c0_59, %c0_60] : memref<1x32xf32, #tpu.memory_space<vmem>>, vector<1x32xf32>
      %67 = vector.broadcast %66 : vector<1x32xf32> to vector<128x32xf32>
      %68 = arith.addf %65, %67 : vector<128x32xf32>
      %69 = arith.addf %62, %68 : vector<128x32xf32>
      %c0_61 = arith.constant 0 : index
      %c0_62 = arith.constant 0 : index
      %70 = vector.load %arg9[%c0_61, %c0_62] : memref<1x32xf32, #tpu.memory_space<vmem>>, vector<1x32xf32>
      %c0_63 = arith.constant 0 : index
      %c0_64 = arith.constant 0 : index
      %71 = vector.load %arg10[%c0_63, %c0_64] : memref<1x32xf32, #tpu.memory_space<vmem>>, vector<1x32xf32>
      %cst_65 = arith.constant dense<0.000000e+00> : vector<128xf32>
      %72 = vector.multi_reduction <add>, %69, %cst_65 [1] : vector<128x32xf32> to vector<128xf32>
      %73 = vector.shape_cast %72 : vector<128xf32> to vector<128x1xf32>
      %cst_66 = arith.constant 3.200000e+01 : f32
      %74 = vector.broadcast %cst_66 : f32 to vector<128x1xf32>
      %75 = arith.divf %73, %74 : vector<128x1xf32>
      %76 = vector.broadcast %75 : vector<128x1xf32> to vector<128x32xf32>
      %77 = arith.subf %69, %76 : vector<128x32xf32>
      %78 = arith.mulf %77, %77 : vector<128x32xf32>
      %cst_67 = arith.constant dense<0.000000e+00> : vector<128xf32>
      %79 = vector.multi_reduction <add>, %78, %cst_67 [1] : vector<128x32xf32> to vector<128xf32>
      %80 = vector.shape_cast %79 : vector<128xf32> to vector<128x1xf32>
      %cst_68 = arith.constant 3.200000e+01 : f32
      %81 = vector.broadcast %cst_68 : f32 to vector<128x1xf32>
      %82 = arith.divf %80, %81 : vector<128x1xf32>
      %83 = vector.broadcast %75 : vector<128x1xf32> to vector<128x32xf32>
      %84 = arith.subf %69, %83 : vector<128x32xf32>
      %cst_69 = arith.constant 9.99999974E-6 : f32
      %85 = vector.broadcast %cst_69 : f32 to vector<128x1xf32>
      %86 = arith.addf %82, %85 : vector<128x1xf32>
      %87 = math.rsqrt %86 : vector<128x1xf32>
      %88 = vector.broadcast %87 : vector<128x1xf32> to vector<128x32xf32>
      %89 = arith.mulf %84, %88 : vector<128x32xf32>
      %90 = vector.broadcast %70 : vector<1x32xf32> to vector<128x32xf32>
      %91 = arith.mulf %89, %90 : vector<128x32xf32>
      %92 = vector.broadcast %71 : vector<1x32xf32> to vector<128x32xf32>
      %93 = arith.addf %91, %92 : vector<128x32xf32>
      %94 = arith.truncf %93 : vector<128x32xf32> to vector<128x32xbf16>
      %c0_70 = arith.constant 0 : index
      %c0_71 = arith.constant 0 : index
      %95 = vector.load %arg11[%c0_70, %c0_71] : memref<32x64xbf16, #tpu.memory_space<vmem>>, vector<32x64xbf16>
      %cst_72 = arith.constant dense<0.000000e+00> : vector<128x64xf32>
      %96 = tpu.matmul %94, %95, %cst_72 {dimension_numbers = #tpu.dot_dimension_numbers<[1], [0], [0], [1], [0, 0, 1, 1], [], []>} : vector<128x32xbf16>, vector<32x64xbf16>, vector<128x64xf32> -> vector<128x64xf32>
      %c0_73 = arith.constant 0 : index
      %c0_74 = arith.constant 0 : index
      %97 = vector.load %arg12[%c0_73, %c0_74] : memref<1x64xf32, #tpu.memory_space<vmem>>, vector<1x64xf32>
      %98 = vector.broadcast %97 : vector<1x64xf32> to vector<128x64xf32>
      %99 = arith.addf %96, %98 : vector<128x64xf32>
      %cst_75 = arith.constant 0.000000e+00 : f32
      %100 = vector.broadcast %cst_75 : f32 to vector<128x64xf32>
      %101 = arith.maximumf %99, %100 : vector<128x64xf32>
      %102 = arith.truncf %101 : vector<128x64xf32> to vector<128x64xbf16>
      %c0_76 = arith.constant 0 : index
      %c0_77 = arith.constant 0 : index
      %103 = vector.load %arg13[%c0_76, %c0_77] : memref<64x32xbf16, #tpu.memory_space<vmem>>, vector<64x32xbf16>
      %cst_78 = arith.constant dense<0.000000e+00> : vector<128x32xf32>
      %104 = tpu.matmul %102, %103, %cst_78 {dimension_numbers = #tpu.dot_dimension_numbers<[1], [0], [0], [1], [0, 0, 1, 1], [], []>} : vector<128x64xbf16>, vector<64x32xbf16>, vector<128x32xf32> -> vector<128x32xf32>
      %c0_79 = arith.constant 0 : index
      %c0_80 = arith.constant 0 : index
      %105 = vector.load %arg14[%c0_79, %c0_80] : memref<1x32xf32, #tpu.memory_space<vmem>>, vector<1x32xf32>
      %106 = vector.broadcast %105 : vector<1x32xf32> to vector<128x32xf32>
      %107 = arith.addf %104, %106 : vector<128x32xf32>
      %108 = arith.addf %93, %107 : vector<128x32xf32>
      %c0_81 = arith.constant 0 : index
      %c0_82 = arith.constant 0 : index
      %109 = vector.load %arg15[%c0_81, %c0_82] : memref<1x32xf32, #tpu.memory_space<vmem>>, vector<1x32xf32>
      %c0_83 = arith.constant 0 : index
      %c0_84 = arith.constant 0 : index
      %110 = vector.load %arg16[%c0_83, %c0_84] : memref<1x32xf32, #tpu.memory_space<vmem>>, vector<1x32xf32>
      %cst_85 = arith.constant dense<0.000000e+00> : vector<128xf32>
      %111 = vector.multi_reduction <add>, %108, %cst_85 [1] : vector<128x32xf32> to vector<128xf32>
      %112 = vector.shape_cast %111 : vector<128xf32> to vector<128x1xf32>
      %cst_86 = arith.constant 3.200000e+01 : f32
      %113 = vector.broadcast %cst_86 : f32 to vector<128x1xf32>
      %114 = arith.divf %112, %113 : vector<128x1xf32>
      %115 = vector.broadcast %114 : vector<128x1xf32> to vector<128x32xf32>
      %116 = arith.subf %108, %115 : vector<128x32xf32>
      %117 = arith.mulf %116, %116 : vector<128x32xf32>
      %cst_87 = arith.constant dense<0.000000e+00> : vector<128xf32>
      %118 = vector.multi_reduction <add>, %117, %cst_87 [1] : vector<128x32xf32> to vector<128xf32>
      %119 = vector.shape_cast %118 : vector<128xf32> to vector<128x1xf32>
      %cst_88 = arith.constant 3.200000e+01 : f32
      %120 = vector.broadcast %cst_88 : f32 to vector<128x1xf32>
      %121 = arith.divf %119, %120 : vector<128x1xf32>
      %122 = vector.broadcast %114 : vector<128x1xf32> to vector<128x32xf32>
      %123 = arith.subf %108, %122 : vector<128x32xf32>
      %cst_89 = arith.constant 9.99999974E-6 : f32
      %124 = vector.broadcast %cst_89 : f32 to vector<128x1xf32>
      %125 = arith.addf %121, %124 : vector<128x1xf32>
      %126 = math.rsqrt %125 : vector<128x1xf32>
      %127 = vector.broadcast %126 : vector<128x1xf32> to vector<128x32xf32>
      %128 = arith.mulf %123, %127 : vector<128x32xf32>
      %129 = vector.broadcast %109 : vector<1x32xf32> to vector<128x32xf32>
      %130 = arith.mulf %128, %129 : vector<128x32xf32>
      %131 = vector.broadcast %110 : vector<1x32xf32> to vector<128x32xf32>
      %132 = arith.addf %130, %131 : vector<128x32xf32>
      %c0_90 = arith.constant 0 : index
      %c0_91 = arith.constant 0 : index
      %c0_92 = arith.constant 0 : index
      %133 = vector.load %arg17[%c0_90, %c0_91, %c0_92] : memref<1x128x32xf32, #tpu.memory_space<vmem>>, vector<1x128x32xf32>
      %134 = vector.shape_cast %133 : vector<1x128x32xf32> to vector<128x32xf32>
      %135 = vector.shape_cast %132 : vector<128x32xf32> to vector<1x128x32xf32>
      tpu.vector_store %arg17[%c0_90, %c0_91, %c0_92], %135 {strides = array<i32>} : memref<1x128x32xf32, #tpu.memory_space<vmem>>, vector<1x128x32xf32>,
    } else {
    }
    return
  }
  func.func @transform_0(%arg0: i32, %arg1: i32, %arg2: i32) -> (i32, i32, i32, i32) {
    %c0_i32 = arith.constant 0 : i32
    %c0_i32_0 = arith.constant 0 : i32
    %c0_i32_1 = arith.constant 0 : i32
    return %arg0, %c0_i32, %c0_i32_0, %arg1 : i32, i32, i32, i32
  }
  func.func @transform_1(%arg0: i32, %arg1: i32, %arg2: i32) -> (i32, i32, i32, i32) {
    %c0_i32 = arith.constant 0 : i32
    %c0_i32_0 = arith.constant 0 : i32
    %c0_i32_1 = arith.constant 0 : i32
    return %arg0, %c0_i32, %c0_i32_0, %arg1 : i32, i32, i32, i32
  }
  func.func @transform_2(%arg0: i32, %arg1: i32, %arg2: i32) -> (i32, i32, i32, i32) {
    %c0_i32 = arith.constant 0 : i32
    %c0_i32_0 = arith.constant 0 : i32
    %c0_i32_1 = arith.constant 0 : i32
    return %arg0, %c0_i32, %arg2, %c0_i32_0 : i32, i32, i32, i32
  }
  func.func @transform_3(%arg0: i32, %arg1: i32, %arg2: i32) -> (i32, i32, i32) {
    %c0_i32 = arith.constant 0 : i32
    %c0_i32_0 = arith.constant 0 : i32
    return %arg0, %arg1, %c0_i32 : i32, i32, i32
  }
  func.func @transform_4(%arg0: i32, %arg1: i32, %arg2: i32) -> (i32, i32) {
    %c0_i32 = arith.constant 0 : i32
    %c0_i32_0 = arith.constant 0 : i32
    %c0_i32_1 = arith.constant 0 : i32
    return %c0_i32, %c0_i32_0 : i32, i32
  }
  func.func @transform_5(%arg0: i32, %arg1: i32, %arg2: i32) -> (i32, i32) {
    %c0_i32 = arith.constant 0 : i32
    %c0_i32_0 = arith.constant 0 : i32
    %c0_i32_1 = arith.constant 0 : i32
    return %c0_i32, %c0_i32_0 : i32, i32
  }
  func.func @transform_6(%arg0: i32, %arg1: i32, %arg2: i32) -> (i32, i32) {
    %c0_i32 = arith.constant 0 : i32
    %c0_i32_0 = arith.constant 0 : i32
    %c0_i32_1 = arith.constant 0 : i32
    return %c0_i32, %c0_i32_0 : i32, i32
  }
  func.func @transform_7(%arg0: i32, %arg1: i32, %arg2: i32) -> (i32, i32) {
    %c0_i32 = arith.constant 0 : i32
    %c0_i32_0 = arith.constant 0 : i32
    %c0_i32_1 = arith.constant 0 : i32
    return %c0_i32, %c0_i32_0 : i32, i32
  }
  func.func @transform_8(%arg0: i32, %arg1: i32, %arg2: i32) -> (i32, i32) {
    %c0_i32 = arith.constant 0 : i32
    %c0_i32_0 = arith.constant 0 : i32
    %c0_i32_1 = arith.constant 0 : i32
    return %c0_i32, %c0_i32_0 : i32, i32
  }
  func.func @transform_9(%arg0: i32, %arg1: i32, %arg2: i32) -> (i32, i32) {
    %c0_i32 = arith.constant 0 : i32
    %c0_i32_0 = arith.constant 0 : i32
    %c0_i32_1 = arith.constant 0 : i32
    return %c0_i32, %c0_i32_0 : i32, i32
  }
  func.func @transform_10(%arg0: i32, %arg1: i32, %arg2: i32) -> (i32, i32) {
    %c0_i32 = arith.constant 0 : i32
    %c0_i32_0 = arith.constant 0 : i32
    %c0_i32_1 = arith.constant 0 : i32
    return %c0_i32, %c0_i32_0 : i32, i32
  }
  func.func @transform_11(%arg0: i32, %arg1: i32, %arg2: i32) -> (i32, i32) {
    %c0_i32 = arith.constant 0 : i32
    %c0_i32_0 = arith.constant 0 : i32
    %c0_i32_1 = arith.constant 0 : i32
    return %c0_i32, %c0_i32_0 : i32, i32
  }
  func.func @transform_12(%arg0: i32, %arg1: i32, %arg2: i32) -> (i32, i32) {
    %c0_i32 = arith.constant 0 : i32
    %c0_i32_0 = arith.constant 0 : i32
    %c0_i32_1 = arith.constant 0 : i32
    return %c0_i32, %c0_i32_0 : i32, i32
  }
  func.func @transform_13(%arg0: i32, %arg1: i32, %arg2: i32) -> (i32, i32) {
    %c0_i32 = arith.constant 0 : i32
    %c0_i32_0 = arith.constant 0 : i32
    %c0_i32_1 = arith.constant 0 : i32
    return %c0_i32, %c0_i32_0 : i32, i32
  }
  func.func @transform_14(%arg0: i32, %arg1: i32, %arg2: i32) -> (i32, i32, i32) {
    %c0_i32 = arith.constant 0 : i32
    %c0_i32_0 = arith.constant 0 : i32
    return %arg0, %arg1, %c0_i32 : i32, i32, i32
  }
}

</mosaic_0001>

<bundles_post_ra>
// kernel: encoder_layer_forward.2
= control target key start
LH: loop header
LB: loop body
LE: loop exit
PB: predicated region body
PF: predicated region fallthrough
CT: control target
= control target key end

     0   :  { %s2036_s13 = smov 0   ;;  %s2600_s0 = inlined_call_operand.vmem [shape: f32[256,32], index: 0, kind: input, shape index: {}]   ;;  %s2601_s1 = inlined_call_operand.vmem [shape: f32[256,32], index: 1, kind: input, shape index: {}]   ;;  %s2602_s2 = inlined_call_operand.vmem [shape: f32[256,1], index: 2, kind: input, shape index: {}]   ;;  %s2603_s3 = inlined_call_operand.vmem [shape: bf16[32,32], index: 3, kind: input, shape index: {}]   ;;  %s2604_s4 = inlined_call_operand.vmem [shape: f32[1,32], index: 4, kind: input, shape index: {}]   ;;  %s2605_s5 = inlined_call_operand.vmem [shape: bf16[32,384], index: 5, kind: input, shape index: {}]   ;;  %s2606_s6 = inlined_call_operand.vmem [shape: f32[1,384], index: 6, kind: input, shape index: {}]   ;;  %s2607_s7 = inlined_call_operand.vmem [shape: f32[128,128], index: 7, kind: input, shape index: {}]   ;;  %s2608_s8 = inlined_call_operand.vmem [shape: bf16[256,32], index: 8, kind: output, shape index: {0}]   ;;  %s2609_s9 = inlined_call_operand.vmem [shape: f32[256,256], index: 9, kind: output, shape index: {1}]   ;;  %s2610_s10 = inlined_call_operand.vmem [shape: f32[256,128], index: 10, kind: output, shape index: {2}]  }
   0x1 LB: > { %s1617_s14 = sadd.s32 4294967295, %s1978_s13   ;;  %p1621_p0 = scmp.ge.s32.totalorder %s1978_s13, 1  ;;  %s1978_s13 = sphi %s2036_s13, %s21_s13  }
   0x2   : > { %p340_p1 = scmp.lt.s32.totalorder %s1978_s13, 3 }
   0x4   : > { %p341_p2 = pnand %p1621_p0, %p340_p1 }
   0x5   : > { %v1898_v0 = vld [vmem:[%s2603_s3] sm:$0xff] (!%p341_p2)   ;;  %s1622_s17 = sshll.u32 (!%p341_p2), %s1617_s14, 4  ;;  %v1899_v1 = vld [vmem:[%s2603_s3 + $0x8] sm:$0xff] (!%p341_p2)   ;;  %vm516_vm0 = vcmask (!%p341_p2), 261120   ;;  %vm814_vm1 = vcmask (!%p341_p2), 257024  }
   0x6   : > { %344 = sbr.rel (%p341_p2) target bundleno = 669 (0x29d), region = 52  ;;  %p400_p3 = scmp.lt.s32.totalorder (!%p341_p2), %s1622_s17, 31  ;;  %1755 = vmatprep.subr.bf16.mxu0 (!%p341_p2), %v1898_v0  ;;  %1883 = vmatprep.subr.bf16.mxu1 (!%p341_p2), %v1898_v0  ;;  %v1900_v2 = vld [vmem:[%s2605_s5 + $0x8] ss:$12 sps:$4 sm:$0xff] (!%p341_p2)   ;;  %v1901_v8 = vld [vmem:[%s2605_s5 + $0x20] ss:$12 sps:$4 sm:$0xff] (!%p341_p2)  }
   0x7   : > { %1756 = vmatpush3.bf16.msra.mxu0 (!%p341_p2), %v1898_v0  ;;  %1885 = vmatpush3.bf16.msra.mxu1 (!%p341_p2), %v1898_v0  ;;  %v1980_v0 = vmov (!%p341_p2), 0  }
   0x8   : > { %1757 = vmatprep.subr.bf16.mxu0 (!%p341_p2), %v1899_v1  ;;  %1884 = vmatprep.subr.bf16.mxu1 (!%p341_p2), %v1899_v1 }
   0x9   : > { %1897 = vset.pattern.permute.xlu1 (!%p341_p2), %v1980_v0  ;;  %1896 = vset.pattern.permute.xlu0 (!%p341_p2), %v1980_v0 }
   0xb   : > { %1758 = vmatpush3.bf16.msra.mxu0 (!%p341_p2), %v1899_v1  ;;  %1886 = vmatpush3.bf16.msra.mxu1 (!%p341_p2), %v1899_v1 }
   0xc   : > { %1775 = vmatprep.subr.bf16.mxu0 (!%p341_p2), %v1900_v2 }
   0xd   : > { %s2612_s17 = smov (!%p400_p3, %s1622_s17), 31 }
   0xe   : > { %s2056_s22 = sshll.u32 %s2612_s17, 3  ;;  %s1629_s11 = sshll.u32 %s2612_s17, 2 }
   0xf   : > { %s2062_s25 = scalar_lea.vmem %s2600_s0, %s2056_s22  ;;  %s2068_s28 = scalar_lea.vmem %s2601_s1, %s2056_s22 }
  0x10   : > { %v437_v3 = vld [vmem:[%s2062_s25] sm:$0xff]  ;;  %v438_v4 = vld [vmem:[%s2062_s25 + $0x8] sm:$0xff]  ;;  %v439_v6 = vld [vmem:[%s2062_s25 + $0x10] sm:$0xff]  ;;  %s415_s24 = scalar_lea.vmem %s2602_s2, %s2056_s22  ;;  %s2418_s14 = scalar_lea.vmem %s2608_s8, %s1629_s11 }
  0x11   : > { %v485_v5 = vpack.c.bf16 %v438_v4, %v437_v3  ;;  %v440_v7 = vld [vmem:[%s2062_s25 + $0x18] sm:$0xff]  ;;  %v453_v9 = vld [vmem:[%s2068_s28] sm:$0xff]  ;;  %v454_v10 = vld [vmem:[%s2068_s28 + $0x8] sm:$0xff]  ;;  %s2563_s18 = scalar_lea.vmem %s2610_s10, %s2056_s22 }
  0x12   : > { %v486_v11 = vpack.c.bf16 %v440_v7, %v439_v6  ;;  %v441_v12 = vld [vmem:[%s2062_s25 + $0x20] sm:$0xff]  ;;  %v442_v13 = vld [vmem:[%s2062_s25 + $0x28] sm:$0xff]  ;;  %v469_v15 = vadd.f32 %v453_v9, %v437_v3  ;;  %v470_v16 = vadd.f32 %v454_v10, %v438_v4  ;;  %v443_v17 = vld [vmem:[%s2062_s25 + $0x30] sm:$0xff] }
  0x13   : > { %1759 = vmatprep.mubr.msk.bf16.mxu0 %vm516_vm0, %v485_v5  ;;  %v487_v14 = vpack.c.bf16 %v442_v13, %v441_v12  ;;  %v444_v18 = vld [vmem:[%s2062_s25 + $0x38] sm:$0xff]  ;;  %v455_v21 = vld [vmem:[%s2068_s28 + $0x10] sm:$0xff]  ;;  %v457_v23 = vld [vmem:[%s2068_s28 + $0x20] sm:$0xff] }
  0x14   : > { %1760 = vmatmul.mubr.msk.bf16.vlgmr.msra.gmra.mrb[0].mxu0 %vm516_vm0, %v486_v11  ;;  %v488_v19 = vpack.c.bf16 %v444_v18, %v443_v17  ;;  %v2086_v20 = vpack.c.bf16 %v470_v16, %v469_v15  ;;  %v456_v22 = vld [vmem:[%s2068_s28 + $0x18] sm:$0xff]  ;;  %v458_v24 = vld [vmem:[%s2068_s28 + $0x28] sm:$0xff]  ;;  %v471_v25 = vadd.f32 %v455_v21, %v439_v6  ;;  %v473_v27 = vadd.f32 %v457_v23, %v441_v12  ;;  %v459_v31 = vld [vmem:[%s2068_s28 + $0x30] sm:$0xff] }
  0x15   : > { %1776 = vmatpush3.bf16.msra.mxu0 %v1900_v2  ;;  %1763 = vmatprep.mubr.msk.bf16.mxu0 %vm516_vm0, %v487_v14  ;;  %v472_v26 = vadd.f32 %v456_v22, %v440_v7  ;;  %v474_v28 = vadd.f32 %v458_v24, %v442_v13  ;;  %v460_v32 = vld [vmem:[%s2068_s28 + $0x38] sm:$0xff]  ;;  %v445_v33 = vld [vmem:[%s2062_s25 + $0x40] sm:$0xff]  ;;  %v446_v34 = vld [vmem:[%s2062_s25 + $0x48] sm:$0xff]  ;;  %v475_v37 = vadd.f32 %v459_v31, %v443_v17  ;;  %v849_v21 = vlaneseq }
  0x16   : > { %1777 = vmatprep.subr.bf16.mxu0 %v1901_v8  ;;  %v461_v35 = vld [vmem:[%s2068_s28 + $0x40] sm:$0xff]  ;;  %v462_v36 = vld [vmem:[%s2068_s28 + $0x48] sm:$0xff]  ;;  %v476_v38 = vadd.f32 %v460_v32, %v444_v18  ;;  %v447_v42 = vld [vmem:[%s2062_s25 + $0x50] sm:$0xff]  ;;  %v489_v1 = vpack.c.bf16 %v446_v34, %v445_v33 }
  0x17   : > { %v2095_v29 = vpack.c.bf16 %v472_v26, %v471_v25  ;;  %v2097_v30 = vpack.c.bf16 %v474_v28, %v473_v27  ;;  %v477_v39 = vadd.f32 %v461_v35, %v445_v33  ;;  %v478_v40 = vadd.f32 %v462_v36, %v446_v34  ;;  %v448_v43 = vld [vmem:[%s2062_s25 + $0x58] sm:$0xff]  ;;  %v463_v45 = vld [vmem:[%s2068_s28 + $0x50] sm:$0xff]  ;;  %v449_v47 = vld [vmem:[%s2062_s25 + $0x60] sm:$0xff] }
  0x18   : > { %v2109_v41 = vpack.c.bf16 %v476_v38, %v475_v37  ;;  %v464_v46 = vld [vmem:[%s2068_s28 + $0x58] sm:$0xff]  ;;  %v450_v48 = vld [vmem:[%s2062_s25 + $0x68] sm:$0xff]  ;;  %v465_v49 = vld [vmem:[%s2068_s28 + $0x60] sm:$0xff]  ;;  %v479_v51 = vadd.f32 %v463_v45, %v447_v42  ;;  %v490_v2 = vpack.c.bf16 %v448_v43, %v447_v42  ;;  %1767 = vmatprep.mubr.msk.bf16.mxu1 %vm516_vm0, %v489_v1  ;;  %v2195_v23 = vshrl.u32 %v849_v21, 7 }
  0x19   : > { %1778 = vmatpush3.bf16.msra.mxu0 %v1901_v8  ;;  %v2113_v44 = vpack.c.bf16 %v478_v40, %v477_v39  ;;  %v466_v50 = vld [vmem:[%s2068_s28 + $0x68] sm:$0xff]  ;;  %v480_v52 = vadd.f32 %v464_v46, %v448_v43  ;;  %v481_v53 = vadd.f32 %v465_v49, %v449_v47  ;;  %v451_v56 = vld [vmem:[%s2062_s25 + $0x70] sm:$0xff]  ;;  %v452_v58 = vld [vmem:[%s2062_s25 + $0x78] sm:$0xff]  ;;  %v491_v7 = vpack.c.bf16 %v450_v48, %v449_v47  ;;  %s1686_s25 = sshll.u32 %s2612_s17, 4 }
  0x1a   : > { %v482_v54 = vadd.f32 %v466_v50, %v450_v48  ;;  %v467_v59 = vld [vmem:[%s2068_s28 + $0x70] sm:$0xff]  ;;  %v468_v60 = vld [vmem:[%s2068_s28 + $0x78] sm:$0xff]  ;;  %v1902_v3 = vld [vmem:[%s2605_s5] ss:$12 sps:$4 sm:$0xff]   ;;  %1768 = vmatmul.mubr.msk.bf16.vlgmr.msra.gmra.mrb[0].mxu1 %vm516_vm0, %v490_v2  ;;  %v492_v17 = vpack.c.bf16 %v452_v58, %v451_v56  ;;  %v859_v26 = vsub.s32 2, %v2195_v23  ;;  %s2398_s30 = scalar_lea.vmem %s2609_s9, %s1686_s25 }
  0x1b   : > { %v2125_v55 = vpack.c.bf16 %v480_v52, %v479_v51  ;;  %v483_v61 = vadd.f32 %v467_v59, %v451_v56  ;;  %v484_v62 = vadd.f32 %v468_v60, %v452_v58  ;;  %v1904_v4 = vld [vmem:[%s2605_s5 + $0x4] ss:$12 sps:$4 sm:$0xff]   ;;  %v1259_v6 = vld [vmem:[%s2607_s7 + $0x8] sm:$0xff]  ;;  %v1261_v9 = vld [vmem:[%s2607_s7 + $0x18] sm:$0xff]  ;;  %1771 = vmatprep.mubr.msk.bf16.mxu1 %vm516_vm0, %v491_v7 }
  0x1c   : > { %1764 = vmatmul.mubr.msk.bf16.gmra.mrb[4].mxu0 %vm516_vm0, %v488_v19  ;;  %v2128_v57 = vpack.c.bf16 %v482_v54, %v481_v53  ;;  %v1258_v5 = vld [vmem:[%s2607_s7] sm:$0xff]  ;;  %v1260_v8 = vld [vmem:[%s2607_s7 + $0x10] sm:$0xff]  ;;  %920 = vmatprep.subr.bf16.mxu1 %v1904_v4  ;;  %v1907_v12 = vld [vmem:[%s2605_s5 + $0x1c] ss:$12 sps:$4 sm:$0xff]  }
  0x1d   : > { %1779 = vmatprep.mubr.msk.bf16.mxu0 %vm516_vm0, %v2086_v20  ;;  %v2137_v63 = vpack.c.bf16 %v484_v62, %v483_v61  ;;  %v1851_v10 = vpack.c.bf16 %v1259_v6, %v1258_v5  ;;  %v1855_v11 = vpack.c.bf16 %v1261_v9, %v1260_v8  ;;  %v1262_v13 = vld [vmem:[%s2607_s7 + $0x20] sm:$0xff]  ;;  %v1263_v14 = vld [vmem:[%s2607_s7 + $0x28] sm:$0xff]  ;;  %921 = vmatpush1.bf16.msra.mxu1 %v1902_v3  ;;  %v1264_v48 = vld [vmem:[%s2607_s7 + $0x30] sm:$0xff] }
  0x1e   : > { %v1905_v15 = vld [vmem:[%s2605_s5 + $0x18] ss:$12 sps:$4 sm:$0xff]   ;;  %922 = vmatprep.subr.bf16.mxu1 %v1907_v12  ;;  %v1859_v16 = vpack.c.bf16 %v1263_v14, %v1262_v13  ;;  %v2210_v28 = vld [vmem:[%s2606_s6] sm:$0x7]  ;;  %v1268_v62 = vld [vmem:[%s2607_s7 + $0x50] sm:$0xff] }
  0x1f   : > { %1852 = vmatprep.subr.bf16.mxu0 %v1851_v10  ;;  %v1265_v49 = vld [vmem:[%s2607_s7 + $0x38] sm:$0xff]  ;;  %v1266_v56 = vld [vmem:[%s2607_s7 + $0x40] sm:$0xff]  ;;  %v1271_v7 = vld [vmem:[%s2607_s7 + $0x68] sm:$0xff] }
  0x20   : > { %v1863_v51 = vpack.c.bf16 %v1265_v49, %v1264_v48  ;;  %v1270_v6 = vld [vmem:[%s2607_s7 + $0x60] sm:$0xff]  ;;  %v1273_v12 = vld [vmem:[%s2607_s7 + $0x78] sm:$0xff]  ;;  %v639_v14 = vld [vmem:[%s415_s24 + $0x8] sm:$0xff] }
  0x21   : > { %923 = vmatpush1.bf16.msra.mxu1 %v1905_v15  ;;  %v1875_v8 = vpack.c.bf16 %v1271_v7, %v1270_v6  ;;  %v638_v15 = vld [vmem:[%s415_s24] sm:$0xff] }
  0x22   : > { %1772 = vmatmul.mubr.msk.bf16.gmra.mrb[4].mxu1 %vm516_vm0, %v492_v17  ;;  %v641_v17 = vld [vmem:[%s415_s24 + $0x18] sm:$0xff]  ;;  %v642_v21 = vld [vmem:[%s415_s24 + $0x20] sm:$0xff] }
  0x23   : > { %952 = vmatprep.mubr.bf16.mxu1 %v1980_v0 }
  0x24   : > { %1780 = vmatmul.mubr.msk.bf16.vlgmr.msra.gmra.mrb[8].mxu0 %vm516_vm0, %v2095_v29 }
  0x25   : > { %1783 = vmatprep.mubr.msk.bf16.mxu0 %vm516_vm0, %v2097_v30  ;;  %1854 = vmatpush3.bf16.msra.mxu0 %v1851_v10 }
  0x26   : > { %1856 = vmatprep.subr.bf16.mxu0 %v1855_v11 }
  0x29   : > { %1858 = vmatpush3.bf16.msra.mxu0 %v1855_v11  ;;  %v1272_v11 = vld [vmem:[%s2607_s7 + $0x70] sm:$0xff] }
  0x2a   : > { %1860 = vmatprep.subr.bf16.mxu0 %v1859_v16  ;;  %1668 = vmatmul.mubr.msk.bf16.vlgmr.msra.gmra.mrb[8].mxu1 %vm516_vm0, %v2086_v20  ;;  %v1879_v13 = vpack.c.bf16 %v1273_v12, %v1272_v11 }
  0x2b   : > { %962 = vmatprep.mubr.bf16.mxu1 %v1980_v0 }
  0x2c   : > { %1784 = vmatmul.mubr.msk.bf16.gmra.mrb[12].mxu0 %vm516_vm0, %v2109_v41 }
  0x2d   : > { %1787 = vmatprep.mubr.msk.bf16.mxu0 %vm516_vm0, %v2113_v44  ;;  %1862 = vmatpush3.bf16.msra.mxu0 %v1859_v16  ;;  %v640_v16 = vld [vmem:[%s415_s24 + $0x10] sm:$0xff] }
  0x2e   : > { %1864 = vmatprep.subr.bf16.mxu0 %v1863_v51 }
  0x31   : > { %1866 = vmatpush3.bf16.msra.mxu0 %v1863_v51 }
  0x32   : > { %1669 = vmatmul.mubr.msk.bf16.gmra.mrb[12].mxu1 %vm516_vm0, %v2095_v29 }
  0x33   : > { %972 = vmatprep.mubr.bf16.mxu1 %v1980_v0 }
  0x34   : > { %1788 = vmatmul.mubr.msk.bf16.gmra.mrb[16].mxu0 %vm516_vm0, %v2125_v55 }
  0x35   : > { %1791 = vmatprep.mubr.msk.bf16.mxu0 %vm516_vm0, %v2128_v57 }
  0x3a   : > { %1670 = vmatmul.mubr.msk.bf16.gmra.mrb[16].mxu1 %vm516_vm0, %v2097_v30  ;;  %v2215_v30 = vrot.slane %v2210_v28, %v859_v26  ;;  %v643_v26 = vld [vmem:[%s415_s24 + $0x28] sm:$0xff] }
  0x3b   : > { %982 = vmatprep.mubr.bf16.mxu1 %v1980_v0 }
  0x3c   : > { %1792 = vmatmul.mubr.msk.bf16.gmra.mrb[20].mxu0 %vm516_vm0, %v2137_v63 }
  0x42   : > { %1671 = vmatmul.mubr.msk.bf16.gmra.mrb[20].mxu1 %vm516_vm0, %v2109_v41 }
  0x43   : > { %992 = vmatprep.mubr.bf16.mxu1 %v1980_v0 }
  0x4a   : > { %1672 = vmatmul.mubr.msk.bf16.gmra.mrb[24].mxu1 %vm516_vm0, %v2113_v44 }
  0x4b   : > { %1002 = vmatprep.mubr.bf16.mxu1 %v1980_v0 }
  0x52   : > { %1673 = vmatmul.mubr.msk.bf16.gmra.mrb[28].mxu1 %vm516_vm0, %v2125_v55 }
  0x53   : > { %1012 = vmatprep.mubr.bf16.mxu1 %v1980_v0 }
  0x5a   : > { %1674 = vmatmul.mubr.msk.bf16.gmra.mrb[32].mxu1 %vm516_vm0, %v2128_v57  ;;  %v1267_v57 = vld [vmem:[%s2607_s7 + $0x48] sm:$0xff] }
  0x5b   : > { %1022 = vmatprep.mubr.bf16.mxu1 %v1980_v0  ;;  %v1867_v58 = vpack.c.bf16 %v1267_v57, %v1266_v56  ;;  %v1269_v0 = vld [vmem:[%s2607_s7 + $0x58] sm:$0xff] }
  0x5c   : > { %v1871_v2 = vpack.c.bf16 %v1269_v0, %v1268_v62 }
  0x5d   : > { %1868 = vmatprep.subr.bf16.mxu0 %v1867_v58 }
  0x5e   : > { %1870 = vmatpush3.bf16.msra.mxu0 %v1867_v58 }
  0x5f   : > { %1872 = vmatprep.subr.bf16.mxu0 %v1871_v2 }
  0x62   : > { %1675 = vmatmul.mubr.msk.bf16.gmra.mrb[36].mxu1 %vm516_vm0, %v2137_v63  ;;  %1874 = vmatpush3.bf16.msra.mxu0 %v1871_v2 }
  0x63   : > { %1876 = vmatprep.subr.bf16.mxu0 %v1875_v8 }
  0x66   : > { %1878 = vmatpush3.bf16.msra.mxu0 %v1875_v8 }
  0x67   : > { %1880 = vmatprep.subr.bf16.mxu0 %v1879_v13 }
  0x6a   : > { %1882 = vmatpush3.bf16.msra.mxu0 %v1879_v13 }
  0xe7   : > { %v2187_v18 = vpop.f32.mrb[0].mxu0 }
  0xe8   : > { %v2189_v19 = vpop.f32.mrb[1].mxu0 }
  0xe9   : > { %v2191_v22 = vpop.f32.mrb[2].mxu0 }
  0xea   : > { %v2193_v20 = vpop.f32.mrb[3].mxu0 }
  0xef   : > { %v2200_v24 = vpop.f32.mrb[4].mxu0 }
  0xf0   : > { %v2202_v25 = vpop.f32.mrb[5].mxu0 }
  0xf1   : > { %v2205_v27 = vpop.f32.mrb[6].mxu0 }
  0xf2   : > { %v2212_v29 = vpop.f32.mrb[7].mxu0 }
  0xf7   : > { %v1781_v31 = vpop.f32.mrb[8].mxu0 }
  0xf8   : > { %v2221_v32 = vadd.f32 %v1781_v31, %v2215_v30  ;;  %v1067_v33 = vpop.f32.mrb[9].mxu0  ;;  %v645_v31 = vld [vmem:[%s415_s24 + $0x38] sm:$0xff] }
  0xf9   : > { %v2224_v34 = vadd.f32 %v1067_v33, %v2215_v30  ;;  %v1782_v35 = vpop.f32.mrb[10].mxu0  ;;  %v646_v33 = vld [vmem:[%s415_s24 + $0x40] sm:$0xff] }
  0xfa   : > { %1166 = vmax.xlane.f32.xlu1 %v2221_v32  ;;  %v1070_v36 = vpop.f32.mrb[11].mxu0  ;;  %v2229_v37 = vadd.f32 %v1782_v35, %v2215_v30  ;;  %v647_v35 = vld [vmem:[%s415_s24 + $0x48] sm:$0xff] }
  0xfb   : > { %1162 = vmax.xlane.f32.xlu0 %v2224_v34  ;;  %v2232_v38 = vadd.f32 %v1070_v36, %v2215_v30  ;;  %v648_v36 = vld [vmem:[%s415_s24 + $0x50] sm:$0xff] }
  0xfe   : > { %1168 = vmax.xlane.f32.xlu1 %v2229_v37 }
  0xff   : > { %v1785_v39 = vpop.f32.mrb[12].mxu0  ;;  %1164 = vmax.xlane.f32.xlu0 %v2232_v38 }
 0x100   : > { %v1083_v40 = vpop.f32.mrb[13].mxu0  ;;  %v2247_v45 = vadd.f32 %v1785_v39, %v2215_v30  ;;  %v649_v39 = vld [vmem:[%s415_s24 + $0x58] sm:$0xff] }
 0x101   : > { %v2240_v41 = vadd.f32 %v1083_v40, %v2215_v30  ;;  %v1786_v42 = vpop.f32.mrb[14].mxu0  ;;  %v650_v40 = vld [vmem:[%s415_s24 + $0x60] sm:$0xff] }
 0x102   : > { %v1086_v43 = vpop.f32.mrb[15].mxu0  ;;  %v2254_v46 = vadd.f32 %v1786_v42, %v2215_v30  ;;  %v651_v42 = vld [vmem:[%s415_s24 + $0x68] sm:$0xff] }
 0x103   : > { %v2243_v44 = vadd.f32 %v1086_v43, %v2215_v30  ;;  %1170 = vmax.xlane.f32.xlu0 %v2240_v41  ;;  %v652_v43 = vld [vmem:[%s415_s24 + $0x70] sm:$0xff] }
 0x105   : > { %1172 = vmax.xlane.f32.xlu1 %v2243_v44 }
 0x107   : > { %v1789_v47 = vpop.f32.mrb[16].mxu0  ;;  %1174 = vmax.xlane.f32.xlu0 %v2247_v45 }
 0x108   : > { %v1099_v50 = vpop.f32.mrb[17].mxu0  ;;  %v2278_v59 = vadd.f32 %v1789_v47, %v2215_v30  ;;  %v653_v47 = vld [vmem:[%s415_s24 + $0x78] sm:$0xff] }
 0x109   : > { %v2264_v52 = vadd.f32 %v1099_v50, %v2215_v30  ;;  %v1790_v53 = vpop.f32.mrb[18].mxu0  ;;  %1176 = vmax.xlane.f32.xlu1 %v2254_v46 }
 0x10a   : > { %v1102_v54 = vpop.f32.mrb[19].mxu0  ;;  %v2284_v60 = vadd.f32 %v1790_v53, %v2215_v30 }
 0x10b   : > { %v2268_v55 = vadd.f32 %v1102_v54, %v2215_v30  ;;  %1178 = vmax.xlane.f32.xlu0 %v2264_v52 }
 0x10d   : > { %1180 = vmax.xlane.f32.xlu1 %v2268_v55 }
 0x10f   : > { %v1793_v61 = vpop.f32.mrb[20].mxu0  ;;  %1182 = vmax.xlane.f32.xlu0 %v2278_v59 }
 0x110   : > { %v1115_v1 = vpop.f32.mrb[21].mxu0  ;;  %v2308_v9 = vadd.f32 %v1793_v61, %v2215_v30 }
 0x111   : > { %v2294_v63 = vadd.f32 %v1115_v1, %v2215_v30  ;;  %v1794_v3 = vpop.f32.mrb[22].mxu0  ;;  %1184 = vmax.xlane.f32.xlu1 %v2284_v60 }
 0x112   : > { %v1118_v4 = vpop.f32.mrb[23].mxu0  ;;  %v2312_v10 = vadd.f32 %v1794_v3, %v2215_v30 }
 0x113   : > { %v2298_v5 = vadd.f32 %v1118_v4, %v2215_v30  ;;  %1186 = vmax.xlane.f32.xlu0 %v2294_v63  ;;  %v644_v30 = vld [vmem:[%s415_s24 + $0x30] sm:$0xff] }
 0x115   : > { %1188 = vmax.xlane.f32.xlu1 %v2298_v5 }
 0x117   : > { %1190 = vmax.xlane.f32.xlu0 %v2308_v9 }
 0x119   : > { %1192 = vmax.xlane.f32.xlu1 %v2312_v10 }
 0x12a   : > { %661 = vperm.xlu1 %1897, %v639_v14  }
 0x12d   : > { %656 = vperm.xlu0 %1896, %v638_v15  }
 0x12e   : > { %666 = vperm.xlu1 %1897, %v640_v16  }
 0x131   : > { %701 = vperm.xlu0 %1896, %v647_v35  }
 0x132   : > { %671 = vperm.xlu1 %1897, %v641_v17   ;;  %v2334_v17 = vpop.f32.mrb[0].mxu1 }
 0x135   : > { %711 = vperm.xlu0 %1896, %v649_v39  }
 0x136   : > { %676 = vperm.xlu1 %1897, %v642_v21  }
 0x139   : > { %721 = vperm.xlu0 %1896, %v651_v42  }
 0x13a   : > { %681 = vperm.xlu1 %1897, %v643_v26  }
 0x13d   : > { %731 = vperm.xlu0 %1896, %v653_v47  }
 0x13e   : > { %686 = vperm.xlu1 %1897, %v644_v30  }
 0x142   : > { %691 = vperm.xlu1 %1897, %v645_v31   ;;  %v2339_v31 = vpop.f32.mrb[1].mxu1 }
 0x146   : > { %696 = vperm.xlu1 %1897, %v646_v33   ;;  %v2342_v33 = vpop.f32.mrb[2].mxu1 }
 0x147   : > { %v2345_v39 = vpop.f32.mrb[3].mxu1 }
 0x14a   : > { %706 = vperm.xlu1 %1897, %v648_v36  }
 0x14e   : > { %716 = vperm.xlu1 %1897, %v650_v40  }
 0x152   : > { %726 = vperm.xlu1 %1897, %v652_v43  }
 0x187   : > { %v1167_v48 = vpop.xlane.xlu1 %1166 }
 0x188   : > { %v1196_v49 = vsub.f32 %v2221_v32, %v1167_v48  ;;  %v1163_v50 = vpop.xlane.xlu0 %1162 }
 0x189   : > { %v1194_v51 = vsub.f32 %v2224_v34, %v1163_v50 }
 0x18a   : > { %v1212_v56 = vmax.f32 %v1196_v49, -30.0 }
 0x18b   : > { %v1210_v53 = vmax.f32 %v1194_v51, -30.0  ;;  %v1169_v54 = vpop.xlane.xlu1 %1168 }
 0x18c   : > { %v1197_v57 = vsub.f32 %v2229_v37, %v1169_v54  ;;  %v1165_v58 = vpop.xlane.xlu0 %1164  ;;  %v1230_v2 = vmul.f32 1.442695, %v1212_v56  ;;  %v2357_v56 = vpop.f32.mrb[4].mxu1 }
 0x18d   : > { %v1226_v61 = vmul.f32 1.442695, %v1210_v53  ;;  %v1195_v62 = vsub.f32 %v2232_v38, %v1165_v58 }
 0x18e   : > { %v1213_v0 = vmax.f32 %v1197_v57, -30.0 }
 0x18f   : > { %1908 = vpow2.f32 %v1226_v61  ;;  %v1211_v1 = vmax.f32 %v1195_v62, -30.0  ;;  %v2362_v62 = vpop.f32.mrb[5].mxu1 }
 0x190   : > { %v1171_v3 = vpop.xlane.xlu0 %1170  ;;  %v1232_v6 = vmul.f32 1.442695, %v1213_v0  ;;  %v851_v0 = vsub.s32 0, %v2195_v23 }
 0x191   : > { %v1228_v4 = vmul.f32 1.442695, %v1211_v1  ;;  %v1198_v32 = vsub.f32 %v2240_v41, %v1171_v3 }
 0x192   : > { %v1173_v7 = vpop.xlane.xlu1 %1172 }
 0x193   : > { %1910 = vpow2.f32 %v1228_v4  ;;  %v1214_v34 = vmax.f32 %v1198_v32, -30.0  ;;  %v1199_v8 = vsub.f32 %v2243_v44, %v1173_v7 }
 0x194   : > { %1912 = vpow2.f32 %v1230_v2  ;;  %v1175_v37 = vpop.xlane.xlu0 %1174  ;;  %v855_v2 = vsub.s32 1, %v2195_v23  ;;  %v2380_v23 = vrot.slane %v2210_v28, %v851_v0 }
 0x195   : > { %v1234_v11 = vmul.f32 1.442695, %v1214_v34  ;;  %v1215_v12 = vmax.f32 %v1199_v8, -30.0  ;;  %v1200_v38 = vsub.f32 %v2247_v45, %v1175_v37  ;;  %1914 = vpow2.f32 %v1232_v6 }
 0x196   : > { %v1177_v13 = vpop.xlane.xlu1 %1176 }
 0x197   : > { %1916 = vpow2.f32 %v1234_v11  ;;  %v1236_v14 = vmul.f32 1.442695, %v1215_v12  ;;  %v1216_v15 = vmax.f32 %v1200_v38, -30.0  ;;  %v1201_v16 = vsub.f32 %v2254_v46, %v1177_v13  ;;  %v2389_v38 = vld [vmem:[%s2604_s4] ss:$0 sm:$0xff] }
 0x198   : > { %v1179_v41 = vpop.xlane.xlu0 %1178 }
 0x199   : > { %v2336_v21 = vpop.eup %1908  ;;  %v1238_v26 = vmul.f32 1.442695, %v1216_v15  ;;  %v1217_v44 = vmax.f32 %v1201_v16, -30.0  ;;  %v1202_v30 = vsub.f32 %v2264_v52, %v1179_v41  ;;  %1918 = vpow2.f32 %v1236_v14 }
 0x19a   : > { %v1181_v45 = vpop.xlane.xlu1 %1180  ;;  %1827 = vmatprep.mubr.f32.mxu0 %v2336_v21  ;;  %v579_v41 = vadd.f32 %v2389_v38, %v2193_v20 }
 0x19b   : > { %1920 = vpow2.f32 %v1238_v26  ;;  %v1240_v35 = vmul.f32 1.442695, %v1217_v44  ;;  %v1218_v46 = vmax.f32 %v1202_v30, -30.0  ;;  %v1203_v36 = vsub.f32 %v2268_v55, %v1181_v45 }
 0x19c   : > { %v1183_v40 = vpop.xlane.xlu0 %1182  ;;  %v576_v45 = vadd.f32 %v2389_v38, %v2189_v19 }
 0x19d   : > { %v2347_v42 = vpop.eup %1910  ;;  %v1242_v43 = vmul.f32 1.442695, %v1218_v46  ;;  %v1219_v52 = vmax.f32 %v1203_v36, -30.0  ;;  %v1204_v47 = vsub.f32 %v2278_v59, %v1183_v40  ;;  %1922 = vpow2.f32 %v1240_v35 }
 0x19e   : > { %v2350_v48 = vpop.eup %1912  ;;  %v1185_v49 = vpop.xlane.xlu1 %1184  ;;  %1828 = vmatmul.mubr.f32.vlgmr.msra.gmra.mrb[24].mxu0 %v2347_v42 }
 0x19f   : > { %1924 = vpow2.f32 %v1242_v43  ;;  %v1244_v50 = vmul.f32 1.442695, %v1219_v52  ;;  %v1220_v51 = vmax.f32 %v1204_v47, -30.0  ;;  %v1205_v55 = vsub.f32 %v2284_v60, %v1185_v49  ;;  %1830 = vmatprep.mubr.f32.mxu0 %v2350_v48  ;;  %v2355_v53 = vpop.eup %1914  ;;  %v2366_v60 = vpop.f32.mrb[6].mxu1 }
 0x1a0   : > { %v1187_v54 = vpop.xlane.xlu0 %1186 }
 0x1a1   : > { %v2359_v57 = vpop.eup %1916  ;;  %v1246_v59 = vmul.f32 1.442695, %v1220_v51  ;;  %v1221_v58 = vmax.f32 %v1205_v55, -30.0  ;;  %v1206_v61 = vsub.f32 %v2294_v63, %v1187_v54  ;;  %1926 = vpow2.f32 %v1244_v50  ;;  %v2371_v63 = vpop.f32.mrb[7].mxu1 }
 0x1a2   : > { %v1189_v1 = vpop.xlane.xlu1 %1188  ;;  %1831 = vmatmul.mubr.f32.gmra.mrb[26].mxu0 %v2355_v53  ;;  %v584_v51 = vadd.f32 %v2187_v18, %v2389_v38 }
 0x1a3   : > { %1928 = vpow2.f32 %v1246_v59  ;;  %v1248_v3 = vmul.f32 1.442695, %v1221_v58  ;;  %v1222_v4 = vmax.f32 %v1206_v61, -30.0  ;;  %v1207_v32 = vsub.f32 %v2298_v5, %v1189_v1  ;;  %1833 = vmatprep.mubr.f32.mxu0 %v2359_v57  ;;  %v2373_v6 = vpop.eup %1918 }
 0x1a4   : > { %v1191_v7 = vpop.xlane.xlu0 %1190  ;;  %v2384_v5 = vrot.slane %v2210_v28, %v855_v2  ;;  %v954_v28 = vpop.f32.mrb[8].mxu1  ;;  %v587_v2 = vadd.f32 %v2191_v22, %v2389_v38 }
 0x1a5   : > { %v2375_v34 = vpop.eup %1920  ;;  %v1250_v8 = vmul.f32 1.442695, %v1222_v4  ;;  %v1223_v37 = vmax.f32 %v1207_v32, -30.0  ;;  %v1208_v11 = vsub.f32 %v2308_v9, %v1191_v7  ;;  %1930 = vpow2.f32 %v1248_v3  ;;  %v956_v30 = vpop.f32.mrb[9].mxu1 }
 0x1a6   : > { %v1193_v12 = vpop.xlane.xlu1 %1192  ;;  %1834 = vmatmul.mubr.f32.gmra.mrb[28].mxu0 %v2373_v6  ;;  %v957_v46 = vadd.f32 %v956_v30, %v2384_v5  ;;  %v958_v36 = vpop.f32.mrb[10].mxu1 }
 0x1a7   : > { %1932 = vpow2.f32 %v1250_v8  ;;  %v1252_v13 = vmul.f32 1.442695, %v1223_v37  ;;  %v1224_v9 = vmax.f32 %v1208_v11, -30.0  ;;  %v1209_v14 = vsub.f32 %v2312_v10, %v1193_v12  ;;  %1836 = vmatprep.mubr.f32.mxu0 %v2375_v34  ;;  %v2393_v15 = vpop.eup %1922  ;;  %v960_v52 = vpop.f32.mrb[11].mxu1 }
 0x1a8   : > { %v955_v10 = vadd.f32 %v954_v28, %v2380_v23  ;;  %v959_v43 = vadd.f32 %v958_v36, %v2380_v23  ;;  %1131 = vst [vmem:[%s2398_s30 + $0x8] sm:$0xff] %v957_v46  ;;  %v961_v49 = vadd.f32 %v960_v52, %v2384_v5  ;;  %v964_v18 = vpop.f32.mrb[12].mxu1  ;;  %v592_v28 = vadd.f32 %v2389_v38, %v2202_v25 }
 0x1a9   : > { %v2400_v16 = vpop.eup %1924  ;;  %v1254_v26 = vmul.f32 1.442695, %v1224_v9  ;;  %v1225_v44 = vmax.f32 %v1209_v14, -30.0  ;;  %1934 = vpow2.f32 %v1252_v13  ;;  %v965_v4 = vadd.f32 %v964_v18, %v2380_v23  ;;  %v966_v32 = vpop.f32.mrb[13].mxu1 }
 0x1aa   : > { %v662_v35 = vpop.permute.xlu1 %661  ;;  %1837 = vmatmul.mubr.f32.gmra.mrb[30].mxu0 %v2393_v15  ;;  %1130 = vst [vmem:[%s2398_s30] sm:$0xff] %v955_v10  ;;  %1132 = vst [vmem:[%s2398_s30 + $0x10] sm:$0xff] %v959_v43  ;;  %v967_v8 = vadd.f32 %v966_v32, %v2384_v5  ;;  %v968_v37 = vpop.f32.mrb[14].mxu1  ;;  %v595_v25 = vadd.f32 %v2389_v38, %v2212_v29 }
 0x1ab   : > { %1936 = vpow2.f32 %v1254_v26  ;;  %v1256_v20 = vmul.f32 1.442695, %v1225_v44  ;;  %v735_v40 = vmul.f32 %v662_v35, %v579_v41  ;;  %1839 = vmatprep.mubr.f32.mxu0 %v2400_v16  ;;  %v2413_v19 = vpop.eup %1926  ;;  %1133 = vst [vmem:[%s2398_s30 + $0x18] sm:$0xff] %v961_v49  ;;  %1134 = vst [vmem:[%s2398_s30 + $0x20] sm:$0xff] %v965_v4  ;;  %v969_v22 = vadd.f32 %v968_v37, %v2380_v23  ;;  %v970_v12 = vpop.f32.mrb[15].mxu1 }
 0x1ac   : > { %v657_v47 = vpop.permute.xlu0 %656  ;;  %1135 = vst [vmem:[%s2398_s30 + $0x28] sm:$0xff] %v967_v8  ;;  %v971_v9 = vadd.f32 %v970_v12, %v2384_v5  ;;  %v974_v10 = vpop.f32.mrb[16].mxu1  ;;  %v600_v49 = vadd.f32 %v2200_v24, %v2389_v38  ;;  %v608_v24 = vadd.f32 %v2389_v38, %v2339_v31  ;;  %v619_v8 = vadd.f32 %v2342_v33, %v2389_v38 }
 0x1ad   : > { %v2422_v50 = vpop.eup %1928  ;;  %v1688_v55 = vpack.c.bf16 %v735_v40, %v735_v40  ;;  %v734_v54 = vmul.f32 %v657_v47, %v576_v45  ;;  %1938 = vpow2.f32 %v1256_v20  ;;  %1136 = vst [vmem:[%s2398_s30 + $0x30] sm:$0xff] %v969_v22  ;;  %v975_v35 = vadd.f32 %v974_v10, %v2380_v23  ;;  %v976_v46 = vpop.f32.mrb[17].mxu1 }
 0x1ae   : > { %v667_v59 = vpop.permute.xlu1 %666  ;;  %1840 = vmatmul.mubr.f32.gmra.mrb[32].mxu0 %v2413_v19  ;;  %1137 = vst [vmem:[%s2398_s30 + $0x38] sm:$0xff] %v971_v9  ;;  %v977_v20 = vadd.f32 %v976_v46, %v2384_v5  ;;  %v978_v40 = vpop.f32.mrb[18].mxu1  ;;  %v627_v33 = vadd.f32 %v2389_v38, %v2371_v63  ;;  %v632_v10 = vadd.f32 %v2357_v56, %v2389_v38 }
 0x1af   : > { %816 = vst.msk [vmem:[%s2418_s14 + $0x4] sm:$0xf] %vm814_vm1, %v1688_v55  ;;  %v1687_v58 = vpack.c.bf16 %v734_v54, %v734_v54  ;;  %v736_v61 = vmul.f32 %v667_v59, %v584_v51  ;;  %1842 = vmatprep.mubr.f32.mxu0 %v2422_v50  ;;  %v2432_v0 = vpop.eup %1930  ;;  %1138 = vst [vmem:[%s2398_s30 + $0x40] sm:$0xff] %v975_v35  ;;  %v979_v29 = vadd.f32 %v978_v40, %v2380_v23  ;;  %v980_v52 = vpop.f32.mrb[19].mxu1 }
 0x1b0   : > { %1139 = vst [vmem:[%s2398_s30 + $0x48] sm:$0xff] %v977_v20  ;;  %v981_v47 = vadd.f32 %v980_v52, %v2384_v5  ;;  %v603_v59 = vadd.f32 %v2205_v27, %v2389_v38  ;;  %v702_v32 = vpop.permute.xlu0 %701  ;;  %v616_v27 = vadd.f32 %v2334_v17, %v2389_v38  ;;  %v624_v17 = vadd.f32 %v2389_v38, %v2362_v62 }
 0x1b1   : > { %v2434_v1 = vpop.eup %1932  ;;  %815 = vst.msk [vmem:[%s2418_s14] sm:$0xf] %vm814_vm1, %v1687_v58  ;;  %v1689_v3 = vpack.c.bf16 %v736_v61, %v736_v61  ;;  %1140 = vst [vmem:[%s2398_s30 + $0x50] sm:$0xff] %v979_v29  ;;  %v635_v62 = vadd.f32 %v2366_v60, %v2389_v38  ;;  %v984_v60 = vpop.f32.mrb[20].mxu1 }
 0x1b2   : > { %v672_v7 = vpop.permute.xlu1 %671  ;;  %1843 = vmatmul.mubr.f32.gmra.mrb[34].mxu0 %v2432_v0  ;;  %1141 = vst [vmem:[%s2398_s30 + $0x58] sm:$0xff] %v981_v47  ;;  %v985_v47 = vadd.f32 %v984_v60, %v2380_v23 }
 0x1b3   : > { %817 = vst.msk [vmem:[%s2418_s14 + $0x8] sm:$0xf] %vm814_vm1, %v1689_v3  ;;  %v737_v11 = vmul.f32 %v672_v7, %v587_v2  ;;  %1845 = vmatprep.mubr.f32.mxu0 %v2434_v1  ;;  %v2448_v13 = vpop.eup %1934  ;;  %v611_v2 = vadd.f32 %v2389_v38, %v2345_v39  ;;  %v986_v38 = vpop.f32.mrb[21].mxu1 }
 0x1b4   : > { %v712_v12 = vpop.permute.xlu0 %711  ;;  %v988_v29 = vpop.f32.mrb[22].mxu1  ;;  %1142 = vst [vmem:[%s2398_s30 + $0x60] sm:$0xff] %v985_v47 }
 0x1b5   : > { %v2452_v14 = vpop.eup %1936  ;;  %v1690_v41 = vpack.c.bf16 %v737_v11, %v737_v11  ;;  %v743_v37 = vmul.f32 %v702_v32, %v611_v2  ;;  %v745_v9 = vmul.f32 %v712_v12, %v619_v8  ;;  %v990_v52 = vpop.f32.mrb[23].mxu1 }
 0x1b6   : > { %v677_v26 = vpop.permute.xlu1 %676  ;;  %1846 = vmatmul.mubr.f32.gmra.mrb[36].mxu0 %v2448_v13 }
 0x1b7   : > { %818 = vst.msk [vmem:[%s2418_s14 + $0xc] sm:$0xf] %vm814_vm1, %v1690_v41  ;;  %v738_v44 = vmul.f32 %v677_v26, %v592_v28  ;;  %1848 = vmatprep.mubr.f32.mxu0 %v2452_v14  ;;  %v2462_v30 = vpop.eup %1938  ;;  %v1696_v31 = vpack.c.bf16 %v743_v37, %v743_v37  ;;  %v1698_v41 = vpack.c.bf16 %v745_v9, %v745_v9 }
 0x1b9   : > { %v1691_v45 = vpack.c.bf16 %v738_v44, %v738_v44  ;;  %824 = vst.msk [vmem:[%s2418_s14 + $0x24] sm:$0xf] %vm814_vm1, %v1696_v31  ;;  %v722_v44 = vpop.permute.xlu0 %721  ;;  %826 = vst.msk [vmem:[%s2418_s14 + $0x2c] sm:$0xf] %vm814_vm1, %v1698_v41 }
 0x1ba   : > { %v682_v36 = vpop.permute.xlu1 %681  ;;  %1849 = vmatmul.mubr.f32.gmra.mrb[38].mxu0 %v2462_v30 }
 0x1bb   : > { %819 = vst.msk [vmem:[%s2418_s14 + $0x10] sm:$0xf] %vm814_vm1, %v1691_v45  ;;  %v739_v43 = vmul.f32 %v682_v36, %v595_v25  ;;  %v747_v45 = vmul.f32 %v722_v44, %v627_v33 }
 0x1bd   : > { %v1692_v51 = vpack.c.bf16 %v739_v43, %v739_v43  ;;  %v1700_v35 = vpack.c.bf16 %v747_v45, %v747_v45  ;;  %v732_v36 = vpop.permute.xlu0 %731 }
 0x1be   : > { %v687_v55 = vpop.permute.xlu1 %686  ;;  %v749_v40 = vmul.f32 %v732_v36, %v635_v62 }
 0x1bf   : > { %820 = vst.msk [vmem:[%s2418_s14 + $0x14] sm:$0xf] %vm814_vm1, %v1692_v51  ;;  %v740_v54 = vmul.f32 %v687_v55, %v600_v49  ;;  %828 = vst.msk [vmem:[%s2418_s14 + $0x34] sm:$0xf] %vm814_vm1, %v1700_v35  ;;  %v987_v49 = vadd.f32 %v986_v38, %v2384_v5  ;;  %v989_v51 = vadd.f32 %v988_v29, %v2380_v23 }
 0x1c0   : > { %v1702_v43 = vpack.c.bf16 %v749_v40, %v749_v40  ;;  %v991_v55 = vadd.f32 %v990_v52, %v2384_v5 }
 0x1c1   : > { %v1693_v58 = vpack.c.bf16 %v740_v54, %v740_v54  ;;  %1143 = vst [vmem:[%s2398_s30 + $0x68] sm:$0xff] %v987_v49  ;;  %1144 = vst [vmem:[%s2398_s30 + $0x70] sm:$0xff] %v989_v51  ;;  %v994_v54 = vpop.f32.mrb[24].mxu1 }
 0x1c2   : > { %v692_v61 = vpop.permute.xlu1 %691  ;;  %830 = vst.msk [vmem:[%s2418_s14 + $0x3c] sm:$0xf] %vm814_vm1, %v1702_v43  ;;  %1145 = vst [vmem:[%s2398_s30 + $0x78] sm:$0xff] %v991_v55 }
 0x1c3   : > { %821 = vst.msk [vmem:[%s2418_s14 + $0x18] sm:$0xf] %vm814_vm1, %v1693_v58  ;;  %v741_v18 = vmul.f32 %v692_v61, %v603_v59  ;;  %v996_v59 = vpop.f32.mrb[25].mxu1 }
 0x1c4   : > { %v998_v58 = vpop.f32.mrb[26].mxu1 }
 0x1c5   : > { %v1694_v3 = vpack.c.bf16 %v741_v18, %v741_v18  ;;  %v1000_v61 = vpop.f32.mrb[27].mxu1  ;;  %v995_v18 = vadd.f32 %v994_v54, %v2380_v23  ;;  %v999_v2 = vadd.f32 %v998_v58, %v2380_v23 }
 0x1c6   : > { %v697_v4 = vpop.permute.xlu1 %696 }
 0x1c7   : > { %822 = vst.msk [vmem:[%s2418_s14 + $0x1c] sm:$0xf] %vm814_vm1, %v1694_v3  ;;  %v742_v7 = vmul.f32 %v697_v4, %v608_v24  ;;  %v997_v24 = vadd.f32 %v996_v59, %v2384_v5  ;;  %v1001_v3 = vadd.f32 %v1000_v61, %v2384_v5  ;;  %1146 = vst [vmem:[%s2398_s30 + $0x80] sm:$0xff] %v995_v18  ;;  %v1004_v4 = vpop.f32.mrb[28].mxu1 }
 0x1c8   : > { %1148 = vst [vmem:[%s2398_s30 + $0x90] sm:$0xff] %v999_v2  ;;  %v1006_v32 = vpop.f32.mrb[29].mxu1  ;;  %v1005_v8 = vadd.f32 %v1004_v4, %v2380_v23 }
 0x1c9   : > { %v1695_v11 = vpack.c.bf16 %v742_v7, %v742_v7  ;;  %1147 = vst [vmem:[%s2398_s30 + $0x88] sm:$0xff] %v997_v24  ;;  %1149 = vst [vmem:[%s2398_s30 + $0x98] sm:$0xff] %v1001_v3  ;;  %v1007_v37 = vadd.f32 %v1006_v32, %v2384_v5 }
 0x1ca   : > { %v707_v22 = vpop.permute.xlu1 %706  ;;  %1150 = vst [vmem:[%s2398_s30 + $0xa0] sm:$0xff] %v1005_v8 }
 0x1cb   : > { %823 = vst.msk [vmem:[%s2418_s14 + $0x20] sm:$0xf] %vm814_vm1, %v1695_v11  ;;  %v744_v39 = vmul.f32 %v707_v22, %v616_v27  ;;  %v1008_v27 = vpop.f32.mrb[30].mxu1  ;;  %1151 = vst [vmem:[%s2398_s30 + $0xa8] sm:$0xff] %v1007_v37 }
 0x1cc   : > { %v1010_v7 = vpop.f32.mrb[31].mxu1  ;;  %v1009_v11 = vadd.f32 %v1008_v27, %v2380_v23 }
 0x1cd   : > { %v1697_v28 = vpack.c.bf16 %v744_v39, %v744_v39  ;;  %v1011_v31 = vadd.f32 %v1010_v7, %v2384_v5  ;;  %v1014_v22 = vpop.f32.mrb[32].mxu1 }
 0x1ce   : > { %v717_v26 = vpop.permute.xlu1 %716  ;;  %1152 = vst [vmem:[%s2398_s30 + $0xb0] sm:$0xff] %v1009_v11  ;;  %v1016_v12 = vpop.f32.mrb[33].mxu1 }
 0x1cf   : > { %825 = vst.msk [vmem:[%s2418_s14 + $0x28] sm:$0xf] %vm814_vm1, %v1697_v28  ;;  %v746_v25 = vmul.f32 %v717_v26, %v624_v17  ;;  %1153 = vst [vmem:[%s2398_s30 + $0xb8] sm:$0xff] %v1011_v31  ;;  %v1018_v39 = vpop.f32.mrb[34].mxu1  ;;  %v1015_v17 = vadd.f32 %v1014_v22, %v2380_v23  ;;  %v1017_v33 = vadd.f32 %v1016_v12, %v2384_v5 }
 0x1d0   : > { %v1020_v9 = vpop.f32.mrb[35].mxu1  ;;  %v1019_v28 = vadd.f32 %v1018_v39, %v2380_v23 }
 0x1d1   : > { %v1699_v63 = vpack.c.bf16 %v746_v25, %v746_v25  ;;  %v1021_v41 = vadd.f32 %v1020_v9, %v2384_v5  ;;  %1154 = vst [vmem:[%s2398_s30 + $0xc0] sm:$0xff] %v1015_v17  ;;  %1155 = vst [vmem:[%s2398_s30 + $0xc8] sm:$0xff] %v1017_v33  ;;  %v1024_v26 = vpop.f32.mrb[36].mxu1 }
 0x1d2   : > { %v727_v46 = vpop.permute.xlu1 %726  ;;  %1156 = vst [vmem:[%s2398_s30 + $0xd0] sm:$0xff] %v1019_v28  ;;  %v1026_v44 = vpop.f32.mrb[37].mxu1  ;;  %v1025_v62 = vadd.f32 %v1024_v26, %v2380_v23 }
 0x1d3   : > { %827 = vst.msk [vmem:[%s2418_s14 + $0x30] sm:$0xf] %vm814_vm1, %v1699_v63  ;;  %v748_v20 = vmul.f32 %v727_v46, %v632_v10  ;;  %1157 = vst [vmem:[%s2398_s30 + $0xd8] sm:$0xff] %v1021_v41  ;;  %v1028_v10 = vpop.f32.mrb[38].mxu1  ;;  %v1027_v45 = vadd.f32 %v1026_v44, %v2384_v5 }
 0x1d4   : > { %v1030_v25 = vpop.f32.mrb[39].mxu1  ;;  %v1029_v63 = vadd.f32 %v1028_v10, %v2380_v23  ;;  %1158 = vst [vmem:[%s2398_s30 + $0xe0] sm:$0xff] %v1025_v62 }
 0x1d5   : > { %v1701_v56 = vpack.c.bf16 %v748_v20, %v748_v20  ;;  %v1031_v35 = vadd.f32 %v1030_v25, %v2384_v5  ;;  %1159 = vst [vmem:[%s2398_s30 + $0xe8] sm:$0xff] %v1027_v45 }
 0x1d6   : > { %1160 = vst [vmem:[%s2398_s30 + $0xf0] sm:$0xff] %v1029_v63 }
 0x1d7   : > { %829 = vst.msk [vmem:[%s2418_s14 + $0x38] sm:$0xf] %vm814_vm1, %v1701_v56  ;;  %1161 = vst [vmem:[%s2398_s30 + $0xf8] sm:$0xff] %v1031_v35 }
 0x271   : > { %v1829_v46 = vpop.f32.mrb[24].mxu0 }
 0x272   : > { %1940 = vrcp.f32 %v1829_v46  ;;  %v1340_v36 = vpop.f32.mrb[25].mxu0 }
 0x273   : > { %1942 = vrcp.f32 %v1340_v36 }
 0x275   : > { %v1832_v20 = vpop.f32.mrb[26].mxu0 }
 0x276   : > { %1944 = vrcp.f32 %v1832_v20  ;;  %v1350_v40 = vpop.f32.mrb[27].mxu0 }
 0x277   : > { %1946 = vrcp.f32 %v1350_v40 }
 0x279   : > { %v1835_v56 = vpop.f32.mrb[28].mxu0 }
 0x27a   : > { %1948 = vrcp.f32 %v1835_v56  ;;  %v1360_v43 = vpop.f32.mrb[29].mxu0 }
 0x27b   : > { %1950 = vrcp.f32 %v1360_v43 }
 0x27c   : > { %v1941_v23 = vpop.eup %1940 }
 0x27d   : > { %v1943_v5 = vpop.eup %1942  ;;  %v1436_v60 = vmul.f32 %v1941_v23, %v2347_v42  ;;  %v1838_v38 = vpop.f32.mrb[30].mxu0 }
 0x27e   : > { %v1435_v29 = vmul.f32 %v1943_v5, %v2336_v21  ;;  %1952 = vrcp.f32 %v1838_v38  ;;  %v1370_v52 = vpop.f32.mrb[31].mxu0 }
 0x27f   : > { %1452 = vst [vmem:[%s2563_s18 + $0x8] sm:$0xff] %v1436_v60  ;;  %1954 = vrcp.f32 %v1370_v52 }
 0x280   : > { %v1945_v47 = vpop.eup %1944  ;;  %1451 = vst [vmem:[%s2563_s18] sm:$0xff] %v1435_v29 }
 0x281   : > { %v1947_v49 = vpop.eup %1946  ;;  %v1438_v51 = vmul.f32 %v1945_v47, %v2355_v53  ;;  %v1841_v55 = vpop.f32.mrb[32].mxu0 }
 0x282   : > { %v1437_v54 = vmul.f32 %v1947_v49, %v2350_v48  ;;  %1956 = vrcp.f32 %v1841_v55  ;;  %v1380_v42 = vpop.f32.mrb[33].mxu0 }
 0x283   : > { %1454 = vst [vmem:[%s2563_s18 + $0x18] sm:$0xff] %v1438_v51  ;;  %1958 = vrcp.f32 %v1380_v42 }
 0x284   : > { %v1949_v21 = vpop.eup %1948  ;;  %1453 = vst [vmem:[%s2563_s18 + $0x10] sm:$0xff] %v1437_v54 }
 0x285   : > { %v1951_v59 = vpop.eup %1950  ;;  %v1440_v58 = vmul.f32 %v1949_v21, %v2373_v6  ;;  %v1844_v61 = vpop.f32.mrb[34].mxu0 }
 0x286   : > { %v1439_v18 = vmul.f32 %v1951_v59, %v2359_v57  ;;  %1960 = vrcp.f32 %v1844_v61  ;;  %v1390_v53 = vpop.f32.mrb[35].mxu0 }
 0x287   : > { %1456 = vst [vmem:[%s2563_s18 + $0x28] sm:$0xff] %v1440_v58  ;;  %1962 = vrcp.f32 %v1390_v53 }
 0x288   : > { %v1953_v48 = vpop.eup %1952  ;;  %1455 = vst [vmem:[%s2563_s18 + $0x20] sm:$0xff] %v1439_v18 }
 0x289   : > { %v1955_v24 = vpop.eup %1954  ;;  %v1442_v2 = vmul.f32 %v1953_v48, %v2393_v15  ;;  %v1847_v3 = vpop.f32.mrb[36].mxu0 }
 0x28a   : > { %v1441_v4 = vmul.f32 %v1955_v24, %v2375_v34  ;;  %1964 = vrcp.f32 %v1847_v3  ;;  %v1400_v6 = vpop.f32.mrb[37].mxu0 }
 0x28b   : > { %1458 = vst [vmem:[%s2563_s18 + $0x38] sm:$0xff] %v1442_v2  ;;  %1966 = vrcp.f32 %v1400_v6 }
 0x28c   : > { %v1957_v57 = vpop.eup %1956  ;;  %1457 = vst [vmem:[%s2563_s18 + $0x30] sm:$0xff] %v1441_v4 }
 0x28d   : > { %v1959_v32 = vpop.eup %1958  ;;  %v1444_v27 = vmul.f32 %v1957_v57, %v2413_v19  ;;  %v1850_v7 = vpop.f32.mrb[38].mxu0 }
 0x28e   : > { %v1443_v8 = vmul.f32 %v1959_v32, %v2400_v16  ;;  %1968 = vrcp.f32 %v1850_v7  ;;  %v1410_v15 = vpop.f32.mrb[39].mxu0 }
 0x28f   : > { %1460 = vst [vmem:[%s2563_s18 + $0x48] sm:$0xff] %v1444_v27  ;;  %1970 = vrcp.f32 %v1410_v15 }
 0x290   : > { %v1961_v34 = vpop.eup %1960  ;;  %1459 = vst [vmem:[%s2563_s18 + $0x40] sm:$0xff] %v1443_v8 }
 0x291   : > { %v1963_v37 = vpop.eup %1962  ;;  %v1446_v11 = vmul.f32 %v1961_v34, %v2432_v0 }
 0x292   : > { %v1445_v31 = vmul.f32 %v1963_v37, %v2422_v50 }
 0x293   : > { %1462 = vst [vmem:[%s2563_s18 + $0x58] sm:$0xff] %v1446_v11 }
 0x294   : > { %v1965_v19 = vpop.eup %1964  ;;  %1461 = vst [vmem:[%s2563_s18 + $0x50] sm:$0xff] %v1445_v31 }
 0x295   : > { %v1967_v22 = vpop.eup %1966  ;;  %v1448_v16 = vmul.f32 %v1965_v19, %v2448_v13 }
 0x296   : > { %v1447_v12 = vmul.f32 %v1967_v22, %v2434_v1 }
 0x297   : > { %1464 = vst [vmem:[%s2563_s18 + $0x68] sm:$0xff] %v1448_v16 }
 0x298   : > { %v1969_v39 = vpop.eup %1968  ;;  %1463 = vst [vmem:[%s2563_s18 + $0x60] sm:$0xff] %v1447_v12 }
 0x299   : > { %v1971_v9 = vpop.eup %1970  ;;  %v1450_v17 = vmul.f32 %v1969_v39, %v2462_v30 }
 0x29a   : > { %v1449_v33 = vmul.f32 %v1971_v9, %v2452_v14 }
 0x29b   : > { %1466 = vst [vmem:[%s2563_s18 + $0x78] sm:$0xff] %v1450_v17 }
 0x29c   : > { %1465 = vst [vmem:[%s2563_s18 + $0x70] sm:$0xff] %v1449_v33 }
 0x29d PF: > { %s21_s13 = sadd.s32 1, %s1978_s13  }
 0x29e   : > { %p18_p4 = scmp.ge.s32.totalorder %s21_s13, 4  }
 0x2a0   :  { %20 = sbr.rel (!%p18_p4) target bundleno = 1 (0x1), region = 112 }

// kernel: encoder_layer_forward.3
= control target key start
LH: loop header
LB: loop body
LE: loop exit
PB: predicated region body
PF: predicated region fallthrough
CT: control target
= control target key end

     0   :  { %s20126_s0 = inlined_call_operand.hbm [shape: s32[2,64,8,128], index: 0, kind: input, shape index: {}]   ;;  %s20127_s1 = inlined_call_operand.hbm [shape: f32[2,64,8,128], index: 1, kind: input, shape index: {}]   ;;  %s20128_s2 = inlined_call_operand.hbm [shape: bf16[2,8,128,4], index: 2, kind: input, shape index: {}]   ;;  %s20129_s3 = inlined_call_operand.hbm [shape: f32[2,128,32], index: 3, kind: input, shape index: {}]   ;;  %s20130_s4 = inlined_call_operand.hbm [shape: bf16[32,32], index: 4, kind: input, shape index: {}]   ;;  %s20131_s5 = inlined_call_operand.hbm [shape: f32[1,32], index: 5, kind: input, shape index: {}]   ;;  %s20132_s6 = inlined_call_operand.hbm [shape: f32[1,32], index: 6, kind: input, shape index: {}]   ;;  %s20133_s7 = inlined_call_operand.hbm [shape: f32[1,32], index: 7, kind: input, shape index: {}]   ;;  %s20134_s8 = inlined_call_operand.hbm [shape: bf16[32,64], index: 8, kind: input, shape index: {}]   ;;  %s20135_s9 = inlined_call_operand.hbm [shape: f32[1,64], index: 9, kind: input, shape index: {}]   ;;  %s20136_s10 = inlined_call_operand.hbm [shape: bf16[64,32], index: 10, kind: input, shape index: {}]   ;;  %s20137_s11 = inlined_call_operand.hbm [shape: f32[1,32], index: 11, kind: input, shape index: {}]   ;;  %s20138_s12 = inlined_call_operand.hbm [shape: f32[1,32], index: 12, kind: input, shape index: {}]   ;;  %s20139_s13 = inlined_call_operand.hbm [shape: f32[1,32], index: 13, kind: input, shape index: {}]   ;;  %s20140_s14 = inlined_call_operand.hbm [shape: f32[2,128,32], index: 14, kind: output, shape index: {}]  }
   0x1   :  { %20226 = sst [smem:[#allocation154_spill]] %s20126_s0 }
   0x2   :  { %20227 = sst [smem:[#allocation155_spill]] %s20127_s1 }
   0x3   :  { %20228 = sst [smem:[#allocation156_spill]] %s20128_s2 }
   0x4   :  { %20229 = sst [smem:[#allocation157_spill]] %s20129_s3 }
   0x5   :  { %20230 = sst [smem:[#allocation158_spill]] %s20130_s4 }
   0x6   :  { %20231 = sst [smem:[#allocation159_spill]] %s20131_s5 }
   0x7   :  { %20232 = sst [smem:[#allocation160_spill]] %s20132_s6 }
   0x8   :  { %20233 = sst [smem:[#allocation161_spill]] %s20133_s7 }
   0x9   :  { %20234 = sst [smem:[#allocation162_spill]] %s20135_s9 }
   0xa   :  { %20235 = sst [smem:[#allocation163_spill]] %s20137_s11 }
   0xb   :  { %20236 = sst [smem:[#allocation164_spill]] %s20138_s12 }
   0xc   :  { %20237 = sst [smem:[#allocation165_spill]] %s20139_s13 }
   0xd   :  { %20238 = sst [smem:[#allocation166_spill]] %s20140_s14 }
   0xe   :  { %19 = vsyncpa [#allocation4], 0 }
   0xf   :  { %21 = vsyncpa [#allocation4 + $0x1], 0 }
  0x10   :  { %22 = vsyncpa [#allocation7], 0 }
  0x11   :  { %24 = vsyncpa [#allocation7 + $0x1], 0 }
  0x12   :  { %25 = vsyncpa [#allocation10], 0 }
  0x13   :  { %27 = vsyncpa [#allocation10 + $0x1], 0 }
  0x14   :  { %28 = vsyncpa [#allocation13], 0 }
  0x15   :  { %29 = vsyncpa [#allocation16], 0 }
  0x16   :  { %30 = vsyncpa [#allocation19], 0 }
  0x17   :  { %31 = vsyncpa [#allocation22], 0 }
  0x18   :  { %32 = vsyncpa [#allocation25], 0 }
  0x19   :  { %33 = vsyncpa [#allocation5], 0 }
  0x1a   :  { %35 = vsyncpa [#allocation5 + $0x1], 0  ;;  %s15452_s29 = smov 0   ;;  %s15454_s30 = smov 0  }
  0x1b   :  { %s15456_s15 = smov 0   ;;  %s15458_s16 = smov 0  }
  0x1c   :  { %s15460_s17 = smov 0   ;;  %s15462_s18 = smov 0  }
  0x1d LB: > { %20239 = sst [smem:[#allocation37_spill]] %s14781_s29  ;;  %s15483_s19 = sadd.s32 4294967295, %s14801_s18   ;;  %s14801_s18 = sphi %s15462_s18, %s41_s18   ;;  %s14797_s17 = sphi %s15460_s17, %s20875_s17   ;;  %s14793_s16 = sphi %s15458_s16, %s20874_s16   ;;  %s14789_s15 = sphi %s15456_s15, %s20870_s15   ;;  %s14785_s30 = sphi %s15454_s30, %s20873_s30   ;;  %s14781_s29 = sphi %s15452_s29, %s20872_s29  }
  0x1e   : > { %20240 = sst [smem:[#allocation38_spill]] %s14789_s15  ;;  %p10506_p0 = scmp.ge.s32.totalorder %s14801_s18, 1 }
  0x1f   : > { %20241 = sst [smem:[#allocation39_spill]] %s14793_s16  ;;  %p20148_p1 = scmp.eq.s32.totalorder %s15483_s19, 0 }
  0x20   : > { %p415_p2 = scmp.lt.s32.totalorder %s14801_s18, 3  ;;  %s15347_s21 = smov [#allocation11]  }
  0x21   : > { %s427_s22 = sshll.u32 %s15347_s21, 4  ;;  %s15348_s24 = smov [#allocation12]   ;;  %s15492_s22 = int_to_ptr.vmem [resolvable:$true] %s427_s22 }
  0x22   : > { %p15488_p3 = pnand %p10506_p0, %p415_p2  ;;  %s441_s25 = sshll.u32 %s15348_s24, 4  ;;  %s15503_s25 = int_to_ptr.vmem [resolvable:$true] %s441_s25 }
  0x23   : > { %s15349_s26 = smov [#allocation15]   ;;  %s20245_s4 = sld [smem:[#allocation158_spill]] }
  0x24   : > { %s20242_s20 = scalar_select %p15488_p3, 1, 0 }
  0x25   : > { %p12160_p4 = pneg %p15488_p3  ;;  %s15505_s27 = sshll.u32 %s15349_s26, 4  ;;  %s464_s27 = int_to_ptr.vmem [resolvable:$true] %s15505_s27 }
  0x26   : > { %20243 = sst [smem:[#allocation40_spill]] %s20242_s20 }
  0x27   : > { %p15499_p6 = pnand %p12160_p4, %p20148_p1 }
  0x29   : > { %s20244_s23 = scalar_select %p15499_p6, 1, 0 }
  0x2a   : > { %s13743_s14 = scalar_lea.hbm %s20245_s4, 256  ;;  %p15515_p8 = pneg %p15499_p6 }
  0x2b   : > { %p13744_p7 = scmp.ne.s32.totalorder %s20245_s4, %s13743_s14  ;;  %p13750_p11 = scmp.lt.u32.totalorder %s13743_s14, %s20245_s4 }
  0x2c   : > { %s20246_s3 = scalar_select %p15515_p8, 1, 0 }
  0x2d   : > { %p13746_p9 = pnand %p15515_p8, %p13744_p7 }
  0x2f   : > { %p13747_p10 = pneg %p13746_p9 }
  0x31   : > { %p13752_p12 = pnand %p13750_p11, %p13747_p10 }
  0x33   : > { %13755 = shalt.err (!%p13752_p12)
}
  0x34   : > { %s13756_s16 = scalar_lea.vmem %s15492_s22, 256  ;;  %p13764_p4 = scmp.lt.s32.totalorder %s15492_s22, %s15492_s22 }
  0x35   : > { %p13757_p13 = scmp.ne.s32.totalorder %s15492_s22, %s13756_s16  ;;  %p13765_p5 = scmp.lt.s32.totalorder %s13756_s16, %s13756_s16 }
  0x37   : > { %p13759_p0 = pnand %p13757_p13, %p15515_p8  ;;  %p13766_p7 = por %p13765_p5, %p13764_p4 }
  0x39   : > { %p13760_p2 = pneg %p13759_p0 }
  0x3b   : > { %p13767_p9 = pnand %p13766_p7, %p13760_p2 }
  0x3d   : > { %13770 = shalt.err (!%p13767_p9)
}
  0x3e   : > { %s20150_s20 = smov 64   ;;  %s20152_s14 = smov 4  }
  0x3f   : > { %12163 = dma.hbm_to_vmem [thread:$0]  (!%p15499_p6), %s20245_s4, 256, %s15492_s22, [#allocation10], %s20150_s20, %s20150_s20, %s20152_s14  }
  0x40   : > { %s20247_s5 = sld [smem:[#allocation159_spill]] }
  0x46   : > { %s13771_s16 = scalar_lea.hbm %s20247_s5, 16 }
  0x47   : > { %p13772_p5 = scmp.ne.s32.totalorder %s20247_s5, %s13771_s16  ;;  %p13778_p12 = scmp.lt.u32.totalorder %s13771_s16, %s20247_s5 }
  0x49   : > { %p13774_p10 = pnand %p13772_p5, %p15515_p8 }
  0x4b   : > { %p13775_p11 = pneg %p13774_p10 }
  0x4d   : > { %p13780_p13 = pnand %p13778_p12, %p13775_p11 }
  0x4f   : > { %13783 = shalt.err (!%p13780_p13)
}
  0x50   : > { %s13784_s22 = scalar_lea.vmem %s15503_s25, 16  ;;  %s13791_s0 = scalar_lea.vmem %s15503_s25, 32 }
  0x51   : > { %p13785_p0 = scmp.ne.s32.totalorder %s15503_s25, %s13784_s22  ;;  %p13792_p7 = scmp.lt.s32.totalorder %s15503_s25, %s15503_s25 }
  0x52   : > { %p13793_p9 = scmp.lt.s32.totalorder %s13791_s0, %s13784_s22 }
  0x53   : > { %p13787_p2 = pnand %p13785_p0, %p15515_p8 }
  0x54   : > { %p13794_p5 = por %p13793_p9, %p13792_p7 }
  0x55   : > { %p13788_p4 = pneg %p13787_p2 }
  0x57   : > { %p13795_p10 = pnand %p13794_p5, %p13788_p4 }
  0x59   : > { %13798 = shalt.err (!%p13795_p10)
}
  0x5a   : > { %12166 = dma.hbm_to_vmem [thread:$0]  (!%p15499_p6), %s20247_s5, 16, %s15503_s25, [#allocation13]  }
  0x5b   : > { %s20248_s7 = sld [smem:[#allocation161_spill]] }
  0x61   : > { %s13799_s21 = scalar_lea.hbm %s20248_s7, 16 }
  0x62   : > { %p13800_p11 = scmp.ne.s32.totalorder %s20248_s7, %s13799_s21  ;;  %p13806_p0 = scmp.lt.u32.totalorder %s13799_s21, %s20248_s7 }
  0x64   : > { %p13802_p12 = pnand %p13800_p11, %p15515_p8 }
  0x66   : > { %p13803_p13 = pneg %p13802_p12 }
  0x68   : > { %p13808_p2 = pnand %p13806_p0, %p13803_p13 }
  0x6a   : > { %13811 = shalt.err (!%p13808_p2)
}
  0x6b   : > { %s13812_s0 = scalar_lea.vmem %s464_s27, 16  ;;  %s13819_s25 = scalar_lea.vmem %s464_s27, 32 }
  0x6c   : > { %p13813_p4 = scmp.ne.s32.totalorder %s464_s27, %s13812_s0  ;;  %p13820_p5 = scmp.lt.s32.totalorder %s464_s27, %s464_s27 }
  0x6d   : > { %p13821_p10 = scmp.lt.s32.totalorder %s13819_s25, %s13812_s0 }
  0x6e   : > { %p13815_p7 = pnand %p13813_p4, %p15515_p8 }
  0x6f   : > { %p13822_p1 = por %p13821_p10, %p13820_p5 }
  0x70   : > { %p13816_p9 = pneg %p13815_p7 }
  0x72   : > { %p13823_p3 = pnand %p13822_p1, %p13816_p9 }
  0x74   : > { %13826 = shalt.err (!%p13823_p3)
}
  0x75   : > { %12172 = dma.hbm_to_vmem [thread:$0]  (!%p15499_p6), %s20248_s7, 16, %s464_s27, [#allocation16]  }
  0x76   : > { %s15352_s13 = smov [#allocation18]   ;;  %s15353_s21 = smov [#allocation21]  }
  0x77   : > { %s487_s28 = sshll.u32 %s15352_s13, 4  ;;  %s511_s24 = sshll.u32 %s15353_s21, 4  ;;  %s488_s28 = int_to_ptr.vmem [resolvable:$true] %s487_s28  ;;  %s512_s24 = int_to_ptr.vmem [resolvable:$true] %s511_s24 }
  0x78   : > { %s20249_s9 = sld [smem:[#allocation162_spill]] }
  0x7e   : > { %s13827_s22 = scalar_lea.hbm %s20249_s9, 16 }
  0x7f   : > { %p13828_p1 = scmp.ne.s32.totalorder %s20249_s9, %s13827_s22  ;;  %p13834_p12 = scmp.lt.u32.totalorder %s13827_s22, %s20249_s9 }
  0x81   : > { %p13830_p3 = pnand %p13828_p1, %p15515_p8 }
  0x83   : > { %p13831_p11 = pneg %p13830_p3 }
  0x85   : > { %p13836_p13 = pnand %p13834_p12, %p13831_p11 }
  0x87   : > { %13839 = shalt.err (!%p13836_p13)
}
  0x88   : > { %s13840_s27 = scalar_lea.vmem %s488_s28, 16  ;;  %s13847_s12 = scalar_lea.vmem %s488_s28, 32 }
  0x89   : > { %p13841_p0 = scmp.ne.s32.totalorder %s488_s28, %s13840_s27  ;;  %p13848_p7 = scmp.lt.s32.totalorder %s488_s28, %s488_s28 }
  0x8a   : > { %p13849_p9 = scmp.lt.s32.totalorder %s13847_s12, %s13840_s27 }
  0x8b   : > { %p13843_p2 = pnand %p13841_p0, %p15515_p8 }
  0x8c   : > { %p13850_p5 = por %p13849_p9, %p13848_p7 }
  0x8d   : > { %p13844_p4 = pneg %p13843_p2 }
  0x8f   : > { %p13851_p10 = pnand %p13850_p5, %p13844_p4 }
  0x91   : > { %13854 = shalt.err (!%p13851_p10)
}
  0x92   : > { %12178 = dma.hbm_to_vmem [thread:$0]  (!%p15499_p6), %s20249_s9, 16, %s488_s28, [#allocation19]  }
  0x93   : > { %s20250_s11 = sld [smem:[#allocation163_spill]] }
  0x99   : > { %s13855_s16 = scalar_lea.hbm %s20250_s11, 16 }
  0x9a   : > { %p13856_p1 = scmp.ne.s32.totalorder %s20250_s11, %s13855_s16  ;;  %p13862_p12 = scmp.lt.u32.totalorder %s13855_s16, %s20250_s11 }
  0x9c   : > { %p13858_p3 = pnand %p13856_p1, %p15515_p8 }
  0x9e   : > { %p13859_p11 = pneg %p13858_p3 }
  0xa0   : > { %p13864_p13 = pnand %p13862_p12, %p13859_p11 }
  0xa2   : > { %13867 = shalt.err (!%p13864_p13)
}
  0xa3   : > { %s13868_s27 = scalar_lea.vmem %s512_s24, 16  ;;  %s13875_s28 = scalar_lea.vmem %s512_s24, 32 }
  0xa4   : > { %p13869_p0 = scmp.ne.s32.totalorder %s512_s24, %s13868_s27  ;;  %p13876_p7 = scmp.lt.s32.totalorder %s512_s24, %s512_s24 }
  0xa5   : > { %p13877_p9 = scmp.lt.s32.totalorder %s13875_s28, %s13868_s27 }
  0xa6   : > { %p13871_p2 = pnand %p13869_p0, %p15515_p8 }
  0xa7   : > { %p13878_p5 = por %p13877_p9, %p13876_p7 }
  0xa8   : > { %p13872_p4 = pneg %p13871_p2 }
  0xaa   : > { %p13879_p10 = pnand %p13878_p5, %p13872_p4 }
  0xac   : > { %13882 = shalt.err (!%p13879_p10)
}
  0xad   : > { %12184 = dma.hbm_to_vmem [thread:$0]  (!%p15499_p6), %s20250_s11, 16, %s512_s24, [#allocation22]  }
  0xae   : > { %s10505_s21 = sadd.s32 4294967294, %s14801_s18   ;;  %s60_s20 = sadd.s32 1, %s14797_s17 }
  0xaf   : > { %s69_s26 = sadd.s32 1, %s14789_s15  ;;  %p62_p1 = scmp.ge.s32.totalorder %s60_s20, 2 }
  0xb0   : > { %p76_p3 = scmp.ne.s32.totalorder %s14789_s15, %s14785_s30  ;;  %p77_p11 = scmp.eq.s32.totalorder %s14801_s18, 0 }
  0xb1   : > { %p82_p12 = scmp.ne.s32.totalorder %s14785_s30, %s14781_s29  ;;  %s20877_s20 = smov (%p62_p1, %s60_s20), 0 }
  0xb2   : > { %20251 = sst [smem:[#allocation41_spill]] %s20877_s20  ;;  %p15628_p13 = por %p77_p11, %p76_p3 }
  0xb3   : > { %p20253_p0 = scmp.eq.s32.totalorder %s15483_s19, 0  ;;  %s64_s22 = ssub.s32 %s14797_s17, %s20877_s20 }
  0xb4   : > { %p402_p4 = scmp.eq.s32.totalorder %s15483_s19, 1  ;;  %p67_p7 = scmp.eq.s32.totalorder %s64_s22, 0 }
  0xb5   : > { %p15634_p2 = por %p20253_p0, %p82_p12  ;;  %p408_p9 = scmp.eq.s32.totalorder %s10505_s21, 1 }
  0xb6   : > { %p15641_p5 = por %p402_p4, %p76_p3  ;;  %p12218_p10 = scmp.lt.s32.totalorder %s14801_s18, 2 }
  0xb7   : > { %s20254_s24 = scalar_select %p15634_p2, 1, 0 }
  0xb8   : > { %s20255_s0 = scalar_select %p15641_p5, 1, 0 }
  0xb9   : > { %s15647_s25 = scalar_select %p67_p7, %s14789_s15, %s69_s26  }
  0xba   : > { %20256 = sst [smem:[#allocation42_spill]] %s20255_s0  ;;  %p15649_p1 = por %p408_p9, %p82_p12 }
  0xbb   : > { %20257 = sst [smem:[#allocation43_spill]] %s15647_s25  ;;  %s15654_s27 = sand.u32 1, %s14789_s15  }
  0xbc   : > { %s20258_s2 = scalar_select %p15649_p1, 1, 0 }
  0xbd   : > { %s15657_s28 = sshll.u32 %s15654_s27, 9  ;;  %s15660_s12 = sshll.u32 %s14797_s17, 13 }
  0xbe   : > { %20259 = sst [smem:[#allocation44_spill]] %s20258_s2  ;;  %p15664_p3 = pnand %p12218_p10, %p15628_p13 }
  0xbf   : > { %s20156_s21 = sand.u32 1, %s14801_s18   ;;  %s20261_s1 = sld [smem:[#allocation155_spill]] }
  0xc0   : > { %s20260_s13 = scalar_select %p15664_p3, 1, 0 }
  0xc1   : > { %s570_s4 = scalar_lea.vmem [#allocation6], %s15657_s28  ;;  %s15680_s16 = scalar_lea.sflag [#allocation7], %s20156_s21 }
  0xc2   : > { %s578_s5 = sshll.u32 %s570_s4, 4  ;;  %p15686_p12 = pneg %p15664_p3  ;;  %s15676_s5 = int_to_ptr.vmem [resolvable:$true] %s578_s5 }
  0xc4   : > { %s20262_s9 = scalar_select %p15686_p12, 1, 0 }
  0xc5   : > { %s15673_s14 = scalar_lea.hbm %s20261_s1, %s15660_s12  ;;  %s13888_s4 = scalar_lea.hbm %s20261_s1, 16384 }
  0xc6   : > { %s13883_s7 = scalar_lea.hbm %s15673_s14, 8192  ;;  %p13889_p4 = scmp.lt.u32.totalorder %s15673_s14, %s20261_s1 }
  0xc7   : > { %p13884_p11 = scmp.ne.s32.totalorder %s15673_s14, %s13883_s7  ;;  %p13890_p7 = scmp.lt.u32.totalorder %s13888_s4, %s13883_s7 }
  0xc8   : > { %p13892_p10 = scmp.lt.u32.totalorder %s13883_s7, %s15673_s14 }
  0xc9   : > { %p13886_p13 = pnand %p15686_p12, %p13884_p11  ;;  %p13891_p9 = por %p13890_p7, %p13889_p4 }
  0xcb   : > { %p13887_p0 = pneg %p13886_p13  ;;  %p13893_p1 = por %p13892_p10, %p13891_p9 }
  0xcd   : > { %p13894_p5 = pnand %p13893_p1, %p13887_p0 }
  0xcf   : > { %13897 = shalt.err (!%p13894_p5)
}
  0xd0   : > { %s13898_s21 = scalar_lea.vmem %s15676_s5, 8192  ;;  %s15354_s26 = smov [#allocation6]  }
  0xd1   : > { %p13899_p11 = scmp.ne.s32.totalorder %s15676_s5, %s13898_s21  ;;  %s13903_s22 = sshll.u32 %s15354_s26, 4  ;;  %s13904_s22 = int_to_ptr.vmem [resolvable:$false] %s13903_s22 }
  0xd2   : > { %s13905_s11 = scalar_lea.vmem %s13904_s22, 16384  ;;  %p13906_p6 = scmp.lt.s32.totalorder %s15676_s5, %s13904_s22 }
  0xd3   : > { %p13901_p13 = pnand %p13899_p11, %p15686_p12  ;;  %p13907_p8 = scmp.lt.s32.totalorder %s13905_s11, %s13898_s21 }
  0xd5   : > { %p13902_p2 = pneg %p13901_p13  ;;  %p13908_p4 = por %p13907_p8, %p13906_p6 }
  0xd7   : > { %p13909_p7 = pnand %p13908_p4, %p13902_p2 }
  0xd9   : > { %13912 = shalt.err (!%p13909_p7)
}
  0xda   : > { %s20171_s7 = smov 128   ;;  %s20173_s20 = smov 8  }
  0xdb   : > { %12197 = dma.hbm_to_vmem [thread:$0]  (!%p15664_p3), %s15673_s14, 8192, %s15676_s5, %s15680_s16, %s20171_s7, %s20171_s7, %s20173_s20  }
  0xdc   : > { %s15357_s4 = smov [#allocation14]   ;;  %s15358_s22 = smov [#allocation17]  }
  0xdd   : > { %s452_s26 = sshll.u32 %s15357_s4, 4  ;;  %s473_s21 = sshll.u32 %s15358_s22, 4  ;;  %s453_s26 = int_to_ptr.vmem [resolvable:$true] %s452_s26  ;;  %s474_s21 = int_to_ptr.vmem [resolvable:$true] %s473_s21 }
  0xde   : > { %s20263_s6 = sld [smem:[#allocation160_spill]]  ;;  %p20264_p8 = scmp.ne.s32.totalorder %s20246_s3, 0 }
  0xe4   : > { %s13913_s25 = scalar_lea.hbm %s20263_s6, 16 }
  0xe5   : > { %p13914_p6 = scmp.ne.s32.totalorder %s20263_s6, %s13913_s25  ;;  %p13920_p1 = scmp.lt.u32.totalorder %s13913_s25, %s20263_s6 }
  0xe7   : > { %p13916_p2 = pnand %p13914_p6, %p20264_p8 }
  0xe9   : > { %p13917_p5 = pneg %p13916_p2 }
  0xeb   : > { %p13922_p0 = pnand %p13920_p1, %p13917_p5 }
  0xed   : > { %13925 = shalt.err (!%p13922_p0)
}
  0xee   : > { %s13926_s5 = scalar_lea.vmem %s453_s26, 16  ;;  %s13933_s1 = scalar_lea.vmem %s453_s26, 32 }
  0xef   : > { %p13927_p9 = scmp.ne.s32.totalorder %s453_s26, %s13926_s5  ;;  %p13934_p13 = scmp.lt.s32.totalorder %s453_s26, %s453_s26 }
  0xf0   : > { %p13935_p4 = scmp.lt.s32.totalorder %s13933_s1, %s13926_s5 }
  0xf1   : > { %p13929_p10 = pnand %p13927_p9, %p20264_p8 }
  0xf2   : > { %p13936_p7 = por %p13935_p4, %p13934_p13 }
  0xf3   : > { %p13930_p11 = pneg %p13929_p10 }
  0xf5   : > { %p13937_p3 = pnand %p13936_p7, %p13930_p11 }
  0xf7   : > { %13940 = shalt.err (!%p13937_p3)
}
  0xf8   : > { %p20265_p6 = scmp.ne.s32.totalorder %s20244_s23, 0  ;;  %s13941_s25 = scalar_lea.hbm %s20134_s8, 256 }
  0xf9   : > { %p13942_p2 = scmp.ne.s32.totalorder %s20134_s8, %s13941_s25  ;;  %p13948_p3 = scmp.lt.u32.totalorder %s13941_s25, %s20134_s8 }
  0xfa   : > { %12169 = dma.hbm_to_vmem [thread:$0]  (!%p20265_p6), %s20263_s6, 16, %s453_s26, [#allocation13]  }
  0xfb   : > { %p13944_p5 = pnand %p13942_p2, %p20264_p8 }
  0xfd   : > { %p13945_p1 = pneg %p13944_p5 }
  0xff   : > { %p13950_p0 = pnand %p13948_p3, %p13945_p1 }
 0x101   : > { %13953 = shalt.err (!%p13950_p0)
}
 0x102   : > { %s13954_s5 = scalar_lea.vmem %s474_s21, 256  ;;  %p13962_p13 = scmp.lt.s32.totalorder %s474_s21, %s474_s21 }
 0x103   : > { %p13955_p9 = scmp.ne.s32.totalorder %s474_s21, %s13954_s5  ;;  %p13963_p4 = scmp.lt.s32.totalorder %s13954_s5, %s13954_s5 }
 0x105   : > { %p13957_p10 = pnand %p13955_p9, %p20264_p8  ;;  %p13964_p7 = por %p13963_p4, %p13962_p13 }
 0x107   : > { %p13958_p11 = pneg %p13957_p10 }
 0x109   : > { %p13965_p12 = pnand %p13964_p7, %p13958_p11 }
 0x10b   : > { %13968 = shalt.err (!%p13965_p12)
}
 0x10c   : > { %s20266_s26 = smov 4   ;;  %s20267_s1 = smov 64  }
 0x10d   : > { %12175 = dma.hbm_to_vmem [thread:$0]  (!%p20265_p6), %s20134_s8, 256, %s474_s21, [#allocation16], %s20267_s1, %s20267_s1, %s20266_s26  }
 0x10e   : > { %s15359_s29 = smov [#allocation20]   ;;  %s15360_s25 = smov [#allocation23]  }
 0x10f   : > { %s497_s0 = sshll.u32 %s15359_s29, 4  ;;  %s522_s2 = sshll.u32 %s15360_s25, 4  ;;  %s498_s0 = int_to_ptr.vmem [resolvable:$true] %s497_s0  ;;  %s523_s2 = int_to_ptr.vmem [resolvable:$true] %s522_s2 }
 0x110   : > { %s13969_s11 = scalar_lea.hbm %s20136_s10, 512 }
 0x111   : > { %p13970_p12 = scmp.ne.s32.totalorder %s20136_s10, %s13969_s11  ;;  %p13976_p1 = scmp.lt.u32.totalorder %s13969_s11, %s20136_s10 }
 0x113   : > { %p13972_p2 = pnand %p13970_p12, %p20264_p8 }
 0x115   : > { %p13973_p5 = pneg %p13972_p2 }
 0x117   : > { %p13978_p3 = pnand %p13976_p1, %p13973_p5 }
 0x119   : > { %13981 = shalt.err (!%p13978_p3)
}
 0x11a   : > { %s13982_s21 = scalar_lea.vmem %s498_s0, 512  ;;  %p13990_p11 = scmp.lt.s32.totalorder %s498_s0, %s498_s0 }
 0x11b   : > { %p13983_p0 = scmp.ne.s32.totalorder %s498_s0, %s13982_s21  ;;  %p13991_p13 = scmp.lt.s32.totalorder %s13982_s21, %s13982_s21 }
 0x11d   : > { %p13985_p9 = pnand %p13983_p0, %p20264_p8  ;;  %p13992_p4 = por %p13991_p13, %p13990_p11 }
 0x11f   : > { %p13986_p10 = pneg %p13985_p9 }
 0x121   : > { %p13993_p7 = pnand %p13992_p4, %p13986_p10 }
 0x123   : > { %13996 = shalt.err (!%p13993_p7)
}
 0x124   : > { %12181 = dma.hbm_to_vmem [thread:$0]  (!%p20265_p6), %s20136_s10, 512, %s498_s0, [#allocation19], %s20267_s1, %s20267_s1, %s20266_s26  }
 0x125   : > { %s20268_s25 = sld [smem:[#allocation164_spill]] }
 0x12b   : > { %s13997_s4 = scalar_lea.hbm %s20268_s25, 16 }
 0x12c   : > { %p13998_p12 = scmp.ne.s32.totalorder %s20268_s25, %s13997_s4  ;;  %p14004_p1 = scmp.lt.u32.totalorder %s13997_s4, %s20268_s25 }
 0x12e   : > { %p14000_p2 = pnand %p13998_p12, %p20264_p8 }
 0x130   : > { %p14001_p5 = pneg %p14000_p2 }
 0x132   : > { %p14006_p3 = pnand %p14004_p1, %p14001_p5 }
 0x134   : > { %14009 = shalt.err (!%p14006_p3)
}
 0x135   : > { %s14010_s21 = scalar_lea.vmem %s523_s2, 16  ;;  %s14017_s0 = scalar_lea.vmem %s523_s2, 32 }
 0x136   : > { %p14011_p0 = scmp.ne.s32.totalorder %s523_s2, %s14010_s21  ;;  %p14018_p11 = scmp.lt.s32.totalorder %s523_s2, %s523_s2 }
 0x137   : > { %p14019_p13 = scmp.lt.s32.totalorder %s14017_s0, %s14010_s21 }
 0x138   : > { %p14013_p9 = pnand %p14011_p0, %p20264_p8 }
 0x139   : > { %p14020_p4 = por %p14019_p13, %p14018_p11 }
 0x13a   : > { %p14014_p10 = pneg %p14013_p9 }
 0x13c   : > { %p14021_p7 = pnand %p14020_p4, %p14014_p10 }
 0x13e   : > { %14024 = shalt.err (!%p14021_p7)
}
 0x13f   : > { %12187 = dma.hbm_to_vmem [thread:$0]  (!%p20265_p6), %s20268_s25, 16, %s523_s2, [#allocation22]  }
 0x140   : > { %s15361_s14 = smov [#allocation24]   ;;  %s20269_s11 = sld [smem:[#allocation165_spill]] }
 0x141   : > { %s533_s29 = sshll.u32 %s15361_s14, 4  ;;  %s534_s29 = int_to_ptr.vmem [resolvable:$true] %s533_s29 }
 0x146   : > { %s14025_s5 = scalar_lea.hbm %s20269_s11, 16 }
 0x147   : > { %p14026_p12 = scmp.ne.s32.totalorder %s20269_s11, %s14025_s5  ;;  %p14032_p1 = scmp.lt.u32.totalorder %s14025_s5, %s20269_s11 }
 0x149   : > { %p14028_p2 = pnand %p14026_p12, %p20264_p8 }
 0x14b   : > { %p14029_p5 = pneg %p14028_p2 }
 0x14d   : > { %p14034_p3 = pnand %p14032_p1, %p14029_p5 }
 0x14f   : > { %14037 = shalt.err (!%p14034_p3)
}
 0x150   : > { %s14038_s2 = scalar_lea.vmem %s534_s29, 16  ;;  %s14045_s7 = scalar_lea.vmem %s534_s29, 32 }
 0x151   : > { %p14039_p0 = scmp.ne.s32.totalorder %s534_s29, %s14038_s2  ;;  %p14046_p11 = scmp.lt.s32.totalorder %s534_s29, %s534_s29 }
 0x152   : > { %p14047_p13 = scmp.lt.s32.totalorder %s14045_s7, %s14038_s2 }
 0x153   : > { %p14041_p9 = pnand %p14039_p0, %p20264_p8 }
 0x154   : > { %p14048_p4 = por %p14047_p13, %p14046_p11 }
 0x155   : > { %p14042_p10 = pneg %p14041_p9 }
 0x157   : > { %p14049_p7 = pnand %p14048_p4, %p14042_p10 }
 0x159   : > { %14052 = shalt.err (!%p14049_p7)
}
 0x15a   : > { %12190 = dma.hbm_to_vmem [thread:$0]  (!%p20265_p6), %s20269_s11, 16, %s534_s29, [#allocation25]  }
 0x15b   : > { %s20270_s4 = sld [smem:[#allocation154_spill]]  ;;  %s548_s5 = scalar_lea.vmem [#allocation3], %s15657_s28 }
 0x15c   : > { %s556_s15 = sshll.u32 %s548_s5, 4  ;;  %s545_s23 = scalar_lea.sflag [#allocation4], %s15654_s27  ;;  %s15816_s15 = int_to_ptr.vmem [resolvable:$true] %s556_s15 }
 0x15d   : > { %p20271_p12 = scmp.ne.s32.totalorder %s20262_s9, 0 }
 0x161   : > { %s15813_s22 = scalar_lea.hbm %s20270_s4, %s15660_s12  ;;  %s14058_s2 = scalar_lea.hbm %s20270_s4, 16384 }
 0x162   : > { %s14053_s21 = scalar_lea.hbm %s15813_s22, 8192  ;;  %p14059_p6 = scmp.lt.u32.totalorder %s15813_s22, %s20270_s4 }
 0x163   : > { %p14054_p8 = scmp.ne.s32.totalorder %s15813_s22, %s14053_s21  ;;  %p14060_p1 = scmp.lt.u32.totalorder %s14058_s2, %s14053_s21 }
 0x164   : > { %p14062_p0 = scmp.lt.u32.totalorder %s14053_s21, %s15813_s22 }
 0x165   : > { %p14056_p2 = pnand %p14054_p8, %p20271_p12  ;;  %p14061_p3 = por %p14060_p1, %p14059_p6 }
 0x167   : > { %p14057_p5 = pneg %p14056_p2  ;;  %p14063_p9 = por %p14062_p0, %p14061_p3 }
 0x169   : > { %p14064_p10 = pnand %p14063_p9, %p14057_p5 }
 0x16b   : > { %14067 = shalt.err (!%p14064_p10)
}
 0x16c   : > { %s14068_s20 = scalar_lea.vmem %s15816_s15, 8192  ;;  %s15362_s14 = smov [#allocation3]  }
 0x16d   : > { %p14069_p11 = scmp.ne.s32.totalorder %s15816_s15, %s14068_s20  ;;  %s14073_s3 = sshll.u32 %s15362_s14, 4  ;;  %s14074_s3 = int_to_ptr.vmem [resolvable:$false] %s14073_s3 }
 0x16e   : > { %s14075_s5 = scalar_lea.vmem %s14074_s3, 16384  ;;  %p14076_p7 = scmp.lt.s32.totalorder %s15816_s15, %s14074_s3 }
 0x16f   : > { %p14071_p13 = pnand %p14069_p11, %p20271_p12  ;;  %p14077_p8 = scmp.lt.s32.totalorder %s14075_s5, %s14068_s20 }
 0x171   : > { %p14072_p4 = pneg %p14071_p13  ;;  %p14078_p2 = por %p14077_p8, %p14076_p7 }
 0x173   : > { %p14079_p6 = pnand %p14078_p2, %p14072_p4 }
 0x175   : > { %14082 = shalt.err (!%p14079_p6)
}
 0x176   : > { %p20272_p5 = scmp.ne.s32.totalorder %s20260_s13, 0  ;;  %s20273_s21 = smov 8  }
 0x177   : > { %s20274_s29 = smov 128   ;;  %s20275_s7 = sld [smem:[#allocation156_spill]] }
 0x178   : > { %12194 = dma.hbm_to_vmem [thread:$0]  (!%p20272_p5), %s15813_s22, 8192, %s15816_s15, %s545_s23, %s20274_s29, %s20274_s29, %s20273_s21  }
 0x179   : > { %s592_s20 = scalar_lea.vmem [#allocation8], %s15657_s28  ;;  %s10527_s3 = sshll.u32 %s15654_s27, 7 }
 0x17a   : > { %s601_s14 = sshll.u32 %s592_s20, 4  ;;  %s15852_s14 = int_to_ptr.vmem [resolvable:$true] %s601_s14 }
 0x17d   : > { %s15849_s6 = scalar_lea.hbm %s20275_s7, %s15660_s12  ;;  %s14088_s23 = scalar_lea.hbm %s20275_s7, 16384 }
 0x17e   : > { %s14083_s5 = scalar_lea.hbm %s15849_s6, 8192  ;;  %p14089_p9 = scmp.lt.u32.totalorder %s15849_s6, %s20275_s7 }
 0x17f   : > { %p14084_p1 = scmp.ne.s32.totalorder %s15849_s6, %s14083_s5  ;;  %p14090_p10 = scmp.lt.u32.totalorder %s14088_s23, %s14083_s5 }
 0x180   : > { %p14092_p13 = scmp.lt.u32.totalorder %s14083_s5, %s15849_s6 }
 0x181   : > { %p14086_p3 = pnand %p14084_p1, %p20271_p12  ;;  %p14091_p11 = por %p14090_p10, %p14089_p9 }
 0x183   : > { %p14087_p0 = pneg %p14086_p3  ;;  %p14093_p4 = por %p14092_p13, %p14091_p11 }
 0x185   : > { %p14094_p7 = pnand %p14093_p4, %p14087_p0 }
 0x187   : > { %14097 = shalt.err (!%p14094_p7)
}
 0x188   : > { %s14098_s28 = scalar_lea.vmem %s15852_s14, 8192  ;;  %s15363_s2 = smov [#allocation8]  }
 0x189   : > { %p14099_p8 = scmp.ne.s32.totalorder %s15852_s14, %s14098_s28  ;;  %s14103_s20 = sshll.u32 %s15363_s2, 4  ;;  %s14104_s20 = int_to_ptr.vmem [resolvable:$false] %s14103_s20 }
 0x18a   : > { %s14105_s22 = scalar_lea.vmem %s14104_s20, 16384  ;;  %p14106_p1 = scmp.lt.s32.totalorder %s15852_s14, %s14104_s20 }
 0x18b   : > { %p14101_p2 = pnand %p14099_p8, %p20271_p12  ;;  %p14107_p3 = scmp.lt.s32.totalorder %s14105_s22, %s14098_s28 }
 0x18d   : > { %p14102_p6 = pneg %p14101_p2  ;;  %p14108_p9 = por %p14107_p3, %p14106_p1 }
 0x18f   : > { %p14109_p10 = pnand %p14108_p9, %p14102_p6 }
 0x191   : > { %14112 = shalt.err (!%p14109_p10)
}
 0x192   : > { %12200 = dma.hbm_to_vmem [thread:$0]  (!%p20272_p5), %s15849_s6, 8192, %s15852_s14, %s15680_s16, %s20267_s1, %s20267_s1, %s20266_s26  }
 0x193   : > { %s10729_s5 = sshll.u32 %s14797_s17, 11  ;;  %s20276_s12 = sld [smem:[#allocation157_spill]] }
 0x194   : > { %s615_s28 = scalar_lea.vmem [#allocation9], %s10527_s3  ;;  %s20277_s20 = sand.u32 1, %s14801_s18  }
 0x195   : > { %s624_s2 = sshll.u32 %s615_s28, 4  ;;  %s15892_s22 = scalar_lea.sflag [#allocation10], %s20277_s20  ;;  %s15888_s2 = int_to_ptr.vmem [resolvable:$true] %s624_s2 }
 0x199   : > { %s15884_s0 = scalar_lea.hbm %s20276_s12, %s10729_s5  ;;  %s14118_s27 = scalar_lea.hbm %s20276_s12, 4096 }
 0x19a   : > { %s14113_s4 = scalar_lea.hbm %s15884_s0, 2048  ;;  %p14119_p4 = scmp.lt.u32.totalorder %s15884_s0, %s20276_s12 }
 0x19b   : > { %p14114_p0 = scmp.ne.s32.totalorder %s15884_s0, %s14113_s4  ;;  %p14120_p7 = scmp.lt.u32.totalorder %s14118_s27, %s14113_s4 }
 0x19c   : > { %p14122_p2 = scmp.lt.u32.totalorder %s14113_s4, %s15884_s0 }
 0x19d   : > { %p14116_p11 = pnand %p14114_p0, %p20271_p12  ;;  %p14121_p8 = por %p14120_p7, %p14119_p4 }
 0x19f   : > { %p14117_p13 = pneg %p14116_p11  ;;  %p14123_p6 = por %p14122_p2, %p14121_p8 }
 0x1a1   : > { %p14124_p1 = pnand %p14123_p6, %p14117_p13 }
 0x1a3   : > { %14127 = shalt.err (!%p14124_p1)
}
 0x1a4   : > { %s14128_s14 = scalar_lea.vmem %s15888_s2, 2048  ;;  %s15364_s3 = smov [#allocation9]  }
 0x1a5   : > { %p14129_p3 = scmp.ne.s32.totalorder %s15888_s2, %s14128_s14  ;;  %s14133_s5 = sshll.u32 %s15364_s3, 4  ;;  %s14134_s5 = int_to_ptr.vmem [resolvable:$false] %s14133_s5 }
 0x1a6   : > { %s14135_s15 = scalar_lea.vmem %s14134_s5, 4096  ;;  %p14136_p0 = scmp.lt.s32.totalorder %s15888_s2, %s14134_s5 }
 0x1a7   : > { %p14131_p9 = pnand %p14129_p3, %p20271_p12  ;;  %p14137_p11 = scmp.lt.s32.totalorder %s14135_s15, %s14128_s14 }
 0x1a9   : > { %p14132_p10 = pneg %p14131_p9  ;;  %p14138_p4 = por %p14137_p11, %p14136_p0 }
 0x1ab   : > { %p14139_p7 = pnand %p14138_p4, %p14132_p10 }
 0x1ad   : > { %14142 = shalt.err (!%p14139_p7)
}
 0x1ae   : > { %12203 = dma.hbm_to_vmem [thread:$0]  (!%p20272_p5), %s15884_s0, 2048, %s15888_s2, %s15892_s22, %s20274_s29, %s20274_s29, %s20273_s21  }
 0x1af   : > { %s20278_s9 = sld [smem:[#allocation40_spill]] }
 0x1b5   : > { %p20279_p12 = scmp.ne.s32.totalorder %s20278_s9, 0 }
 0x1b7   : > { %636 = sbr.rel (%p20279_p12) target bundleno = 4071 (0xfe7), region = 76 }
 0x1be   : > { %s15922_s4 = sand.u32 1, %s14785_s30   ;;  %p20280_p13 = scmp.ne.s32.totalorder %s20254_s24, 0 }
 0x1bf   : > { %s10531_s23 = sshll.u32 %s15922_s4, 9  ;;  %s639_s28 = scalar_lea.sflag [#allocation4], %s15922_s4 }
 0x1c0   : > { %s15926_s20 = scalar_lea.vmem [#allocation3], %s10531_s23 }
 0x1c1   : > { %14740 = dma.done.wait (%p20280_p13), %s639_s28, 8192  }
 0x1c2   : > { %14742 = vsyncadd (%p20280_p13), %s639_s28, 4294959104  ;;  %s647_s13 = sand.u32 1, %s15483_s19   ;;  %s15933_s29 = scalar_lea.vmem [#allocation6], %s10531_s23 }
 0x1c3   : > { %s648_s21 = scalar_lea.sflag [#allocation7], %s647_s13 }
 0x1c4   : > { %14744 = dma.done.wait (%p20280_p13), %s648_s21, 16384  }
 0x1c5   : > { %14746 = vsyncadd (%p20280_p13), %s648_s21, 4294950912  ;;  %s10534_s0 = sshll.u32 %s15922_s4, 7  ;;  %s15940_s2 = scalar_lea.vmem [#allocation8], %s10531_s23 }
 0x1c6   : > { %s666_s22 = scalar_lea.sflag [#allocation10], %s647_s13  ;;  %s15944_s16 = scalar_lea.vmem [#allocation9], %s10534_s0 }
 0x1c7   : > { %14748 = dma.done.wait (%p20280_p13), %s666_s22, 2048  }
 0x1c8   : > { %14750 = vsyncadd (%p20280_p13), %s666_s22, 4294965248  ;;  %p20281_p5 = scmp.eq.s32.totalorder %s15483_s19, 0 }
 0x1ca   : > { %14752 = dma.done.wait (%p20281_p5), [#allocation10], 256   ;;  %p20282_p8 = pmov %p20281_p5 }
 0x1cb   : > { %p20283_p2 = pmov %p20281_p5 }
 0x1cc   : > { %14754 = vsyncadd (%p20282_p8), [#allocation10], 4294967040 }
 0x1cd   : > { %14756 = dma.done.wait (%p20283_p2), [#allocation13], 32   ;;  %p20284_p6 = pmov %p20283_p2 }
 0x1ce   : > { %p20285_p1 = pmov %p20283_p2 }
 0x1cf   : > { %14758 = vsyncadd (%p20284_p6), [#allocation13], 4294967264 }
 0x1d0   : > { %14760 = dma.done.wait (%p20285_p1), [#allocation16], 272   ;;  %p20286_p3 = pmov %p20285_p1 }
 0x1d1   : > { %p20287_p9 = pmov %p20285_p1 }
 0x1d2   : > { %14762 = vsyncadd (%p20286_p3), [#allocation16], 4294967024 }
 0x1d3   : > { %14764 = dma.done.wait (%p20287_p9), [#allocation19], 528   ;;  %p20288_p10 = pmov %p20285_p1 }
 0x1d4   : > { %p20289_p0 = pmov %p20285_p1 }
 0x1d5   : > { %14766 = vsyncadd (%p20288_p10), [#allocation19], 4294966768 }
 0x1d6   : > { %14768 = dma.done.wait (%p20289_p0), [#allocation22], 32   ;;  %p20290_p11 = pmov %p20289_p0 }
 0x1d7   : > { %p20291_p4 = pmov %p20289_p0 }
 0x1d8   : > { %14770 = vsyncadd (%p20290_p11), [#allocation22], 4294967264 }
 0x1d9   : > { %14772 = dma.done.wait (%p20291_p4), [#allocation25], 16   ;;  %p20292_p7 = pmov %p20289_p0 }
 0x1da   : > { %vm20176_vm0 = vcmask 31744   ;;  %v906_v0 = vlaneseq  ;;  %v15365_v1 = vmov 0.0   ;;  %s16280_s19 = scalar_lea.vmem [#allocation26], %s10534_s0  ;;  %v16282_v18 = vmov 0.0   ;;  %s16314_s24 = smov 0  }
 0x1db   : > { %14774 = vsyncadd (%p20292_p7), [#allocation25], 4294967280  ;;  %778 = vst.msk [vmem:[#allocation2] sm:$0xff] %vm20176_vm0, %v15365_v1  ;;  %v16284_v19 = vmov 0.0   ;;  %v16286_v20 = vmov 0.0   ;;  %v16288_v21 = vmov 0.0  }
 0x1dc   : > { %779 = vst.msk [vmem:[#allocation2 + $0x8] sm:$0xff] %vm20176_vm0, %v15365_v1  ;;  %780 = vst.msk [vmem:[#allocation2 + $0x10] sm:$0xff] %vm20176_vm0, %v15365_v1  ;;  %v16231_v2 = vshrl.u32 %v906_v0, 7  ;;  %v16290_v22 = vmov 0.0   ;;  %v16292_v23 = vmov 0.0   ;;  %v16294_v24 = vmov 0.0  }
 0x1dd   : > { %781 = vst.msk [vmem:[#allocation2 + $0x18] sm:$0xff] %vm20176_vm0, %v15365_v1  ;;  %782 = vst.msk [vmem:[#allocation2 + $0x20] sm:$0xff] %vm20176_vm0, %v15365_v1  ;;  %v16296_v25 = vmov 0.0   ;;  %v16298_v26 = vmov 0.0   ;;  %v16300_v27 = vmov 0.0   ;;  %v16302_v28 = vmov 0.0  }
 0x1de   : > { %783 = vst.msk [vmem:[#allocation2 + $0x28] sm:$0xff] %vm20176_vm0, %v15365_v1  ;;  %784 = vst.msk [vmem:[#allocation2 + $0x30] sm:$0xff] %vm20176_vm0, %v15365_v1  ;;  %v16234_v3 = vadd.s32 8, %v16231_v2  ;;  %v16237_v4 = vadd.s32 16, %v16231_v2  ;;  %v16240_v5 = vadd.s32 24, %v16231_v2  ;;  %v16243_v6 = vadd.s32 32, %v16231_v2 }
 0x1df   : > { %785 = vst.msk [vmem:[#allocation2 + $0x38] sm:$0xff] %vm20176_vm0, %v15365_v1  ;;  %786 = vst.msk [vmem:[#allocation2 + $0x40] sm:$0xff] %vm20176_vm0, %v15365_v1  ;;  %v16246_v7 = vadd.s32 40, %v16231_v2  ;;  %v16249_v8 = vadd.s32 48, %v16231_v2  ;;  %v16252_v9 = vadd.s32 56, %v16231_v2  ;;  %v16255_v10 = vadd.s32 64, %v16231_v2 }
 0x1e0   : > { %787 = vst.msk [vmem:[#allocation2 + $0x48] sm:$0xff] %vm20176_vm0, %v15365_v1  ;;  %788 = vst.msk [vmem:[#allocation2 + $0x50] sm:$0xff] %vm20176_vm0, %v15365_v1  ;;  %v16258_v11 = vadd.s32 72, %v16231_v2  ;;  %v16261_v12 = vadd.s32 80, %v16231_v2  ;;  %v16264_v13 = vadd.s32 88, %v16231_v2  ;;  %v16267_v14 = vadd.s32 96, %v16231_v2 }
 0x1e1   : > { %789 = vst.msk [vmem:[#allocation2 + $0x58] sm:$0xff] %vm20176_vm0, %v15365_v1  ;;  %790 = vst.msk [vmem:[#allocation2 + $0x60] sm:$0xff] %vm20176_vm0, %v15365_v1  ;;  %v16270_v15 = vadd.s32 104, %v16231_v2  ;;  %v16273_v16 = vadd.s32 112, %v16231_v2  ;;  %v16276_v17 = vadd.s32 120, %v16231_v2  ;;  %v16304_v29 = vmov 0.0  }
 0x1e2   : > { %791 = vst.msk [vmem:[#allocation2 + $0x68] sm:$0xff] %vm20176_vm0, %v15365_v1  ;;  %792 = vst.msk [vmem:[#allocation2 + $0x70] sm:$0xff] %vm20176_vm0, %v15365_v1  ;;  %v16306_v30 = vmov 0.0   ;;  %v16308_v31 = vmov 0.0   ;;  %v16310_v32 = vmov 0.0   ;;  %v16312_v33 = vmov 0.0  }
 0x1e3   : > { %793 = vst.msk [vmem:[#allocation2 + $0x78] sm:$0xff] %vm20176_vm0, %v15365_v1  ;;  %794 = vst.msk [vmem:[#allocation2 + $0x80] sm:$0xff] %vm20176_vm0, %v15365_v1 }
 0x1e4   : > { %795 = vst.msk [vmem:[#allocation2 + $0x88] sm:$0xff] %vm20176_vm0, %v15365_v1  ;;  %796 = vst.msk [vmem:[#allocation2 + $0x90] sm:$0xff] %vm20176_vm0, %v15365_v1 }
 0x1e5   : > { %797 = vst.msk [vmem:[#allocation2 + $0x98] sm:$0xff] %vm20176_vm0, %v15365_v1  ;;  %798 = vst.msk [vmem:[#allocation2 + $0xa0] sm:$0xff] %vm20176_vm0, %v15365_v1 }
 0x1e6   : > { %799 = vst.msk [vmem:[#allocation2 + $0xa8] sm:$0xff] %vm20176_vm0, %v15365_v1  ;;  %800 = vst.msk [vmem:[#allocation2 + $0xb0] sm:$0xff] %vm20176_vm0, %v15365_v1 }
 0x1e7   : > { %801 = vst.msk [vmem:[#allocation2 + $0xb8] sm:$0xff] %vm20176_vm0, %v15365_v1  ;;  %802 = vst.msk [vmem:[#allocation2 + $0xc0] sm:$0xff] %vm20176_vm0, %v15365_v1 }
 0x1e8   : > { %803 = vst.msk [vmem:[#allocation2 + $0xc8] sm:$0xff] %vm20176_vm0, %v15365_v1  ;;  %804 = vst.msk [vmem:[#allocation2 + $0xd0] sm:$0xff] %vm20176_vm0, %v15365_v1 }
 0x1e9   : > { %805 = vst.msk [vmem:[#allocation2 + $0xd8] sm:$0xff] %vm20176_vm0, %v15365_v1  ;;  %806 = vst.msk [vmem:[#allocation2 + $0xe0] sm:$0xff] %vm20176_vm0, %v15365_v1 }
 0x1ea   : > { %807 = vst.msk [vmem:[#allocation2 + $0xe8] sm:$0xff] %vm20176_vm0, %v15365_v1  ;;  %808 = vst.msk [vmem:[#allocation2 + $0xf0] sm:$0xff] %vm20176_vm0, %v15365_v1 }
 0x1eb   : > { %809 = vst.msk [vmem:[#allocation2 + $0xf8] sm:$0xff] %vm20176_vm0, %v15365_v1  ;;  %810 = vst.msk [vmem:[#allocation2 + $0x100] sm:$0xff] %vm20176_vm0, %v15365_v1 }
 0x1ec   : > { %811 = vst.msk [vmem:[#allocation2 + $0x108] sm:$0xff] %vm20176_vm0, %v15365_v1  ;;  %812 = vst.msk [vmem:[#allocation2 + $0x110] sm:$0xff] %vm20176_vm0, %v15365_v1 }
 0x1ed   : > { %813 = vst.msk [vmem:[#allocation2 + $0x118] sm:$0xff] %vm20176_vm0, %v15365_v1  ;;  %814 = vst.msk [vmem:[#allocation2 + $0x120] sm:$0xff] %vm20176_vm0, %v15365_v1 }
 0x1ee   : > { %815 = vst.msk [vmem:[#allocation2 + $0x128] sm:$0xff] %vm20176_vm0, %v15365_v1  ;;  %816 = vst.msk [vmem:[#allocation2 + $0x130] sm:$0xff] %vm20176_vm0, %v15365_v1 }
 0x1ef   : > { %817 = vst.msk [vmem:[#allocation2 + $0x138] sm:$0xff] %vm20176_vm0, %v15365_v1  ;;  %818 = vst.msk [vmem:[#allocation2 + $0x140] sm:$0xff] %vm20176_vm0, %v15365_v1 }
 0x1f0   : > { %819 = vst.msk [vmem:[#allocation2 + $0x148] sm:$0xff] %vm20176_vm0, %v15365_v1  ;;  %820 = vst.msk [vmem:[#allocation2 + $0x150] sm:$0xff] %vm20176_vm0, %v15365_v1 }
 0x1f1   : > { %821 = vst.msk [vmem:[#allocation2 + $0x158] sm:$0xff] %vm20176_vm0, %v15365_v1  ;;  %822 = vst.msk [vmem:[#allocation2 + $0x160] sm:$0xff] %vm20176_vm0, %v15365_v1 }
 0x1f2   : > { %823 = vst.msk [vmem:[#allocation2 + $0x168] sm:$0xff] %vm20176_vm0, %v15365_v1  ;;  %824 = vst.msk [vmem:[#allocation2 + $0x170] sm:$0xff] %vm20176_vm0, %v15365_v1 }
 0x1f3   : > { %825 = vst.msk [vmem:[#allocation2 + $0x178] sm:$0xff] %vm20176_vm0, %v15365_v1  ;;  %826 = vst.msk [vmem:[#allocation2 + $0x180] sm:$0xff] %vm20176_vm0, %v15365_v1 }
 0x1f4   : > { %827 = vst.msk [vmem:[#allocation2 + $0x188] sm:$0xff] %vm20176_vm0, %v15365_v1  ;;  %828 = vst.msk [vmem:[#allocation2 + $0x190] sm:$0xff] %vm20176_vm0, %v15365_v1 }
 0x1f5   : > { %829 = vst.msk [vmem:[#allocation2 + $0x198] sm:$0xff] %vm20176_vm0, %v15365_v1  ;;  %830 = vst.msk [vmem:[#allocation2 + $0x1a0] sm:$0xff] %vm20176_vm0, %v15365_v1 }
 0x1f6   : > { %831 = vst.msk [vmem:[#allocation2 + $0x1a8] sm:$0xff] %vm20176_vm0, %v15365_v1  ;;  %832 = vst.msk [vmem:[#allocation2 + $0x1b0] sm:$0xff] %vm20176_vm0, %v15365_v1 }
 0x1f7   : > { %833 = vst.msk [vmem:[#allocation2 + $0x1b8] sm:$0xff] %vm20176_vm0, %v15365_v1  ;;  %834 = vst.msk [vmem:[#allocation2 + $0x1c0] sm:$0xff] %vm20176_vm0, %v15365_v1 }
 0x1f8   : > { %835 = vst.msk [vmem:[#allocation2 + $0x1c8] sm:$0xff] %vm20176_vm0, %v15365_v1  ;;  %836 = vst.msk [vmem:[#allocation2 + $0x1d0] sm:$0xff] %vm20176_vm0, %v15365_v1 }
 0x1f9   : > { %837 = vst.msk [vmem:[#allocation2 + $0x1d8] sm:$0xff] %vm20176_vm0, %v15365_v1  ;;  %838 = vst.msk [vmem:[#allocation2 + $0x1e0] sm:$0xff] %vm20176_vm0, %v15365_v1 }
 0x1fa   : > { %839 = vst.msk [vmem:[#allocation2 + $0x1e8] sm:$0xff] %vm20176_vm0, %v15365_v1  ;;  %840 = vst.msk [vmem:[#allocation2 + $0x1f0] sm:$0xff] %vm20176_vm0, %v15365_v1 }
 0x1fb   : > { %841 = vst.msk [vmem:[#allocation2 + $0x1f8] sm:$0xff] %vm20176_vm0, %v15365_v1  ;;  %842 = vst.msk [vmem:[#allocation2 + $0x200] sm:$0xff] %vm20176_vm0, %v15365_v1 }
 0x1fc   : > { %843 = vst.msk [vmem:[#allocation2 + $0x208] sm:$0xff] %vm20176_vm0, %v15365_v1  ;;  %844 = vst.msk [vmem:[#allocation2 + $0x210] sm:$0xff] %vm20176_vm0, %v15365_v1 }
 0x1fd   : > { %845 = vst.msk [vmem:[#allocation2 + $0x218] sm:$0xff] %vm20176_vm0, %v15365_v1  ;;  %846 = vst.msk [vmem:[#allocation2 + $0x220] sm:$0xff] %vm20176_vm0, %v15365_v1 }
 0x1fe   : > { %847 = vst.msk [vmem:[#allocation2 + $0x228] sm:$0xff] %vm20176_vm0, %v15365_v1  ;;  %848 = vst.msk [vmem:[#allocation2 + $0x230] sm:$0xff] %vm20176_vm0, %v15365_v1 }
 0x1ff   : > { %849 = vst.msk [vmem:[#allocation2 + $0x238] sm:$0xff] %vm20176_vm0, %v15365_v1  ;;  %850 = vst.msk [vmem:[#allocation2 + $0x240] sm:$0xff] %vm20176_vm0, %v15365_v1 }
 0x200   : > { %851 = vst.msk [vmem:[#allocation2 + $0x248] sm:$0xff] %vm20176_vm0, %v15365_v1  ;;  %852 = vst.msk [vmem:[#allocation2 + $0x250] sm:$0xff] %vm20176_vm0, %v15365_v1 }
 0x201   : > { %853 = vst.msk [vmem:[#allocation2 + $0x258] sm:$0xff] %vm20176_vm0, %v15365_v1  ;;  %854 = vst.msk [vmem:[#allocation2 + $0x260] sm:$0xff] %vm20176_vm0, %v15365_v1 }
 0x202   : > { %855 = vst.msk [vmem:[#allocation2 + $0x268] sm:$0xff] %vm20176_vm0, %v15365_v1  ;;  %856 = vst.msk [vmem:[#allocation2 + $0x270] sm:$0xff] %vm20176_vm0, %v15365_v1 }
 0x203   : > { %857 = vst.msk [vmem:[#allocation2 + $0x278] sm:$0xff] %vm20176_vm0, %v15365_v1  ;;  %858 = vst.msk [vmem:[#allocation2 + $0x280] sm:$0xff] %vm20176_vm0, %v15365_v1 }
 0x204   : > { %859 = vst.msk [vmem:[#allocation2 + $0x288] sm:$0xff] %vm20176_vm0, %v15365_v1  ;;  %860 = vst.msk [vmem:[#allocation2 + $0x290] sm:$0xff] %vm20176_vm0, %v15365_v1 }
 0x205   : > { %861 = vst.msk [vmem:[#allocation2 + $0x298] sm:$0xff] %vm20176_vm0, %v15365_v1  ;;  %862 = vst.msk [vmem:[#allocation2 + $0x2a0] sm:$0xff] %vm20176_vm0, %v15365_v1 }
 0x206   : > { %863 = vst.msk [vmem:[#allocation2 + $0x2a8] sm:$0xff] %vm20176_vm0, %v15365_v1  ;;  %864 = vst.msk [vmem:[#allocation2 + $0x2b0] sm:$0xff] %vm20176_vm0, %v15365_v1 }
 0x207   : > { %865 = vst.msk [vmem:[#allocation2 + $0x2b8] sm:$0xff] %vm20176_vm0, %v15365_v1  ;;  %866 = vst.msk [vmem:[#allocation2 + $0x2c0] sm:$0xff] %vm20176_vm0, %v15365_v1 }
 0x208   : > { %867 = vst.msk [vmem:[#allocation2 + $0x2c8] sm:$0xff] %vm20176_vm0, %v15365_v1  ;;  %868 = vst.msk [vmem:[#allocation2 + $0x2d0] sm:$0xff] %vm20176_vm0, %v15365_v1 }
 0x209   : > { %869 = vst.msk [vmem:[#allocation2 + $0x2d8] sm:$0xff] %vm20176_vm0, %v15365_v1  ;;  %870 = vst.msk [vmem:[#allocation2 + $0x2e0] sm:$0xff] %vm20176_vm0, %v15365_v1 }
 0x20a   : > { %871 = vst.msk [vmem:[#allocation2 + $0x2e8] sm:$0xff] %vm20176_vm0, %v15365_v1  ;;  %872 = vst.msk [vmem:[#allocation2 + $0x2f0] sm:$0xff] %vm20176_vm0, %v15365_v1 }
 0x20b   : > { %873 = vst.msk [vmem:[#allocation2 + $0x2f8] sm:$0xff] %vm20176_vm0, %v15365_v1  ;;  %874 = vst.msk [vmem:[#allocation2 + $0x300] sm:$0xff] %vm20176_vm0, %v15365_v1 }
 0x20c   : > { %875 = vst.msk [vmem:[#allocation2 + $0x308] sm:$0xff] %vm20176_vm0, %v15365_v1  ;;  %876 = vst.msk [vmem:[#allocation2 + $0x310] sm:$0xff] %vm20176_vm0, %v15365_v1 }
 0x20d   : > { %877 = vst.msk [vmem:[#allocation2 + $0x318] sm:$0xff] %vm20176_vm0, %v15365_v1  ;;  %878 = vst.msk [vmem:[#allocation2 + $0x320] sm:$0xff] %vm20176_vm0, %v15365_v1 }
 0x20e   : > { %879 = vst.msk [vmem:[#allocation2 + $0x328] sm:$0xff] %vm20176_vm0, %v15365_v1  ;;  %880 = vst.msk [vmem:[#allocation2 + $0x330] sm:$0xff] %vm20176_vm0, %v15365_v1 }
 0x20f   : > { %881 = vst.msk [vmem:[#allocation2 + $0x338] sm:$0xff] %vm20176_vm0, %v15365_v1  ;;  %882 = vst.msk [vmem:[#allocation2 + $0x340] sm:$0xff] %vm20176_vm0, %v15365_v1 }
 0x210   : > { %883 = vst.msk [vmem:[#allocation2 + $0x348] sm:$0xff] %vm20176_vm0, %v15365_v1  ;;  %884 = vst.msk [vmem:[#allocation2 + $0x350] sm:$0xff] %vm20176_vm0, %v15365_v1 }
 0x211   : > { %885 = vst.msk [vmem:[#allocation2 + $0x358] sm:$0xff] %vm20176_vm0, %v15365_v1  ;;  %886 = vst.msk [vmem:[#allocation2 + $0x360] sm:$0xff] %vm20176_vm0, %v15365_v1 }
 0x212   : > { %887 = vst.msk [vmem:[#allocation2 + $0x368] sm:$0xff] %vm20176_vm0, %v15365_v1  ;;  %888 = vst.msk [vmem:[#allocation2 + $0x370] sm:$0xff] %vm20176_vm0, %v15365_v1 }
 0x213   : > { %889 = vst.msk [vmem:[#allocation2 + $0x378] sm:$0xff] %vm20176_vm0, %v15365_v1  ;;  %890 = vst.msk [vmem:[#allocation2 + $0x380] sm:$0xff] %vm20176_vm0, %v15365_v1 }
 0x214   : > { %891 = vst.msk [vmem:[#allocation2 + $0x388] sm:$0xff] %vm20176_vm0, %v15365_v1  ;;  %892 = vst.msk [vmem:[#allocation2 + $0x390] sm:$0xff] %vm20176_vm0, %v15365_v1 }
 0x215   : > { %893 = vst.msk [vmem:[#allocation2 + $0x398] sm:$0xff] %vm20176_vm0, %v15365_v1  ;;  %894 = vst.msk [vmem:[#allocation2 + $0x3a0] sm:$0xff] %vm20176_vm0, %v15365_v1 }
 0x216   : > { %895 = vst.msk [vmem:[#allocation2 + $0x3a8] sm:$0xff] %vm20176_vm0, %v15365_v1  ;;  %896 = vst.msk [vmem:[#allocation2 + $0x3b0] sm:$0xff] %vm20176_vm0, %v15365_v1 }
 0x217   : > { %897 = vst.msk [vmem:[#allocation2 + $0x3b8] sm:$0xff] %vm20176_vm0, %v15365_v1  ;;  %898 = vst.msk [vmem:[#allocation2 + $0x3c0] sm:$0xff] %vm20176_vm0, %v15365_v1 }
 0x218   : > { %899 = vst.msk [vmem:[#allocation2 + $0x3c8] sm:$0xff] %vm20176_vm0, %v15365_v1  ;;  %900 = vst.msk [vmem:[#allocation2 + $0x3d0] sm:$0xff] %vm20176_vm0, %v15365_v1 }
 0x219   : > { %901 = vst.msk [vmem:[#allocation2 + $0x3d8] sm:$0xff] %vm20176_vm0, %v15365_v1  ;;  %902 = vst.msk [vmem:[#allocation2 + $0x3e0] sm:$0xff] %vm20176_vm0, %v15365_v1 }
 0x21a   : > { %903 = vst.msk [vmem:[#allocation2 + $0x3e8] sm:$0xff] %vm20176_vm0, %v15365_v1  ;;  %904 = vst.msk [vmem:[#allocation2 + $0x3f0] sm:$0xff] %vm20176_vm0, %v15365_v1 }
 0x21b   : > { %905 = vst.msk [vmem:[#allocation2 + $0x3f8] sm:$0xff] %vm20176_vm0, %v15365_v1  ;;  %20293 = vst [vmem:[#allocation45_spill] sm:$0xff] %v16234_v3 }
 0x21c   : > { %20294 = vst [vmem:[#allocation46_spill] sm:$0xff] %v16237_v4  ;;  %20295 = vst [vmem:[#allocation47_spill] sm:$0xff] %v16240_v5 }
 0x21d   : > { %20296 = vst [vmem:[#allocation48_spill] sm:$0xff] %v16243_v6  ;;  %20297 = vst [vmem:[#allocation49_spill] sm:$0xff] %v16246_v7 }
 0x21e   : > { %20298 = vst [vmem:[#allocation50_spill] sm:$0xff] %v16249_v8  ;;  %20299 = vst [vmem:[#allocation51_spill] sm:$0xff] %v16252_v9 }
 0x21f   : > { %20300 = vst [vmem:[#allocation52_spill] sm:$0xff] %v16255_v10  ;;  %20301 = vst [vmem:[#allocation53_spill] sm:$0xff] %v16258_v11 }
 0x220   : > { %20302 = vst [vmem:[#allocation54_spill] sm:$0xff] %v16261_v12  ;;  %20303 = vst [vmem:[#allocation55_spill] sm:$0xff] %v16264_v13 }
 0x221   : > { %20304 = vst [vmem:[#allocation56_spill] sm:$0xff] %v16267_v14  ;;  %20305 = vst [vmem:[#allocation57_spill] sm:$0xff] %v16270_v15 }
 0x222 LB: >> { %s10546_s26 = sshll.u32 %s14869_s24, 3  ;;  %v970_v36 = vsub.s32 0, %v16231_v2  ;;  %s946_s24 = sadd.s32 1, %s14869_s24   ;;  %s14869_s24 = sphi %s16314_s24, %s946_s24   ;;  %v14865_v33 = vphi %v16312_v33, %v20322_v33   ;;  %v14861_v32 = vphi %v16310_v32, %v20321_v32   ;;  %v14857_v31 = vphi %v16308_v31, %v20320_v31   ;;  %v14853_v30 = vphi %v16306_v30, %v20319_v30   ;;  %v14849_v29 = vphi %v16304_v29, %v20318_v29   ;;  %v14845_v28 = vphi %v16302_v28, %v20317_v28   ;;  %v14841_v27 = vphi %v16300_v27, %v20316_v27   ;;  %v14837_v26 = vphi %v16298_v26, %v20315_v26   ;;  %v14833_v25 = vphi %v16296_v25, %v20314_v25   ;;  %v14829_v24 = vphi %v16294_v24, %v20313_v24   ;;  %v14825_v23 = vphi %v16292_v23, %v20312_v23   ;;  %v14821_v22 = vphi %v16290_v22, %v20311_v22   ;;  %v14817_v21 = vphi %v16288_v21, %v20310_v21   ;;  %v14813_v20 = vphi %v16286_v20, %v20309_v20   ;;  %v14809_v19 = vphi %v16284_v19, %v20308_v19   ;;  %v14805_v18 = vphi %v16282_v18, %v20307_v18  }
 0x223   : >> { %s964_s27 = scalar_lea.vmem %s15926_s20, %s10546_s26 [#allocation3]  ;;  %s966_s1 = scalar_lea.vmem %s15933_s29, %s10546_s26 [#allocation6] }
 0x224   : >> { %v965_v34 = vld [vmem:[%s964_s27] sm:$0xff]  ;;  %p16403_p12 = scmp.ge.s32.totalorder %s946_s24, 64  }
 0x225   : >> { %v967_v35 = vld [vmem:[%s966_s1] sm:$0xff]  ;;  %v971_v37 = vrot.slane %v965_v34, %v970_v36  ;;  %s16507_s14 = smov (%p16403_p12), 0  }
 0x226   : >> { %v991_v38 = vrot.slane %v967_v35, %v970_v36 }
 0x227   : >> { %vm972_vm1 = vcmp.eq.s32.totalorder %v16231_v2, %v971_v37  ;;  %vm973_vm2 = vcmp.eq.s32.totalorder %v16234_v3, %v971_v37  ;;  %vm974_vm3 = vcmp.eq.s32.totalorder %v16237_v4, %v971_v37  ;;  %vm975_vm4 = vcmp.eq.s32.totalorder %v16240_v5, %v971_v37 }
 0x228   : >> { %vm976_vm5 = vcmp.eq.s32.totalorder %v16243_v6, %v971_v37  ;;  %vm977_vm6 = vcmp.eq.s32.totalorder %v16246_v7, %v971_v37  ;;  %vm978_vm7 = vcmp.eq.s32.totalorder %v16249_v8, %v971_v37  ;;  %vm979_vm8 = vcmp.eq.s32.totalorder %v16252_v9, %v971_v37 }
 0x229   : >> { %vm980_vm9 = vcmp.eq.s32.totalorder %v16255_v10, %v971_v37  ;;  %vm981_vm10 = vcmp.eq.s32.totalorder %v16258_v11, %v971_v37  ;;  %vm982_vm11 = vcmp.eq.s32.totalorder %v16261_v12, %v971_v37  ;;  %vm983_vm12 = vcmp.eq.s32.totalorder %v16264_v13, %v971_v37 }
 0x22a   : >> { %vm984_vm13 = vcmp.eq.s32.totalorder %v16267_v14, %v971_v37  ;;  %vm985_vm14 = vcmp.eq.s32.totalorder %v16270_v15, %v971_v37  ;;  %vm986_vm15 = vcmp.eq.s32.totalorder %v16273_v16, %v971_v37  ;;  %vm987_vm0 = vcmp.eq.s32.totalorder %v16276_v17, %v971_v37 }
 0x22b   : >> { %v992_v39 = vsel %vm972_vm1, %v991_v38, 0.0  ;;  %v993_v40 = vsel %vm973_vm2, %v991_v38, 0.0  ;;  %v994_v41 = vsel %vm974_vm3, %v991_v38, 0.0  ;;  %v995_v42 = vsel %vm975_vm4, %v991_v38, 0.0 }
 0x22c   : >> { %v996_v43 = vsel %vm976_vm5, %v991_v38, 0.0  ;;  %v997_v44 = vsel %vm977_vm6, %v991_v38, 0.0  ;;  %v998_v45 = vsel %vm978_vm7, %v991_v38, 0.0  ;;  %v999_v46 = vsel %vm979_vm8, %v991_v38, 0.0 }
 0x22d   : >> { %v1000_v47 = vsel %vm980_vm9, %v991_v38, 0.0  ;;  %v1001_v48 = vsel %vm981_vm10, %v991_v38, 0.0  ;;  %v1002_v49 = vsel %vm982_vm11, %v991_v38, 0.0  ;;  %v1003_v50 = vsel %vm983_vm12, %v991_v38, 0.0 }
 0x22e   : >> { %v1004_v51 = vsel %vm984_vm13, %v991_v38, 0.0  ;;  %v1005_v52 = vsel %vm985_vm14, %v991_v38, 0.0  ;;  %v1006_v53 = vsel %vm986_vm15, %v991_v38, 0.0  ;;  %v1007_v54 = vsel %vm987_vm0, %v991_v38, 0.0 }
 0x22f   : >> { %v1008_v55 = vadd.f32 %v14865_v33, %v992_v39   ;;  %v1009_v56 = vadd.f32 %v14861_v32, %v993_v40   ;;  %v1010_v57 = vadd.f32 %v14857_v31, %v994_v41   ;;  %v1011_v58 = vadd.f32 %v14853_v30, %v995_v42  }
 0x230   : >> { %v1012_v59 = vadd.f32 %v14849_v29, %v996_v43   ;;  %v1013_v60 = vadd.f32 %v14845_v28, %v997_v44   ;;  %v1014_v61 = vadd.f32 %v14841_v27, %v998_v45   ;;  %v1015_v62 = vadd.f32 %v14837_v26, %v999_v46   ;;  %945 = sbr.rel (!%p16403_p12) target bundleno = 546 (0x222), region = 278 }
 0x231   : >> { %v1016_v63 = vadd.f32 %v14833_v25, %v1000_v47   ;;  %v1017_v0 = vadd.f32 %v14829_v24, %v1001_v48   ;;  %v1018_v1 = vadd.f32 %v14825_v23, %v1002_v49   ;;  %v1019_v34 = vadd.f32 %v14821_v22, %v1003_v50   ;;  %1024 = vxpose.xlu0.b32.start [1/16] (%p16403_p12), %v1008_v55, 128 }
 0x232   : >> { %v1020_v35 = vadd.f32 %v14817_v21, %v1004_v51   ;;  %v1021_v36 = vadd.f32 %v14813_v20, %v1005_v52   ;;  %v1022_v37 = vadd.f32 %v14809_v19, %v1006_v53   ;;  %v1023_v38 = vadd.f32 %v14805_v18, %v1007_v54  }
 0x233   : >> { %v20311_v22 = vmov %v1019_v34  ;;  %v20312_v23 = vmov %v1018_v1  ;;  %v20313_v24 = vmov %v1017_v0  ;;  %v20314_v25 = vmov %v1016_v63 }
 0x234   : >> { %v20307_v18 = vmov %v1023_v38  ;;  %v20308_v19 = vmov %v1022_v37  ;;  %v20309_v20 = vmov %v1021_v36  ;;  %v20310_v21 = vmov %v1020_v35 }
 0x235   : >> { %v20315_v26 = vmov %v1015_v62  ;;  %v20316_v27 = vmov %v1014_v61  ;;  %v20317_v28 = vmov %v1013_v60  ;;  %v20318_v29 = vmov %v1012_v59  ;;  %1025 = vxpose.xlu0.b32.cont [2/16] (%p16403_p12), %v1009_v56, 128 }
 0x236   : >> { %v20319_v30 = vmov %v1011_v58  ;;  %v20320_v31 = vmov %v1010_v57  ;;  %v20321_v32 = vmov %v1009_v56  ;;  %v20322_v33 = vmov %v1008_v55 }
 0x237   : > { %v16475_v32 = vmov 0.0   ;;  %v16477_v40 = vmov 0.0   ;;  %v16479_v41 = vmov 0.0   ;;  %v16481_v42 = vmov 0.0  }
 0x238   : > { %v16483_v43 = vmov 0.0   ;;  %v16485_v44 = vmov 0.0   ;;  %v16487_v45 = vmov 0.0   ;;  %v16489_v46 = vmov 0.0  }
 0x239   : > { %1026 = vxpose.xlu0.b32.cont [3/16] %v1010_v57, 128  ;;  %v16491_v47 = vmov 0.0   ;;  %v16493_v48 = vmov 0.0   ;;  %v16495_v49 = vmov 0.0   ;;  %v16497_v50 = vmov 0.0  }
 0x23a   : > { %v16499_v51 = vmov 0.0   ;;  %v16501_v52 = vmov 0.0   ;;  %v16503_v53 = vmov 0.0   ;;  %v16505_v54 = vmov 0.0  }
 0x23d   : > { %1027 = vxpose.xlu0.b32.cont [4/16] %v1011_v58, 128 }
 0x241   : > { %1028 = vxpose.xlu0.b32.cont [5/16] %v1012_v59, 128 }
 0x245   : > { %1029 = vxpose.xlu0.b32.cont [6/16] %v1013_v60, 128 }
 0x249   : > { %1030 = vxpose.xlu0.b32.cont [7/16] %v1014_v61, 128 }
 0x24d   : > { %1031 = vxpose.xlu0.b32.cont [8/16] %v1015_v62, 128 }
 0x251   : > { %1032 = vxpose.xlu0.b32.cont [9/16] %v1016_v63, 128 }
 0x255   : > { %1033 = vxpose.xlu0.b32.cont [10/16] %v1017_v0, 128 }
 0x259   : > { %1034 = vxpose.xlu0.b32.cont [11/16] %v1018_v1, 128 }
 0x25d   : > { %1035 = vxpose.xlu0.b32.cont [12/16] %v1019_v34, 128 }
 0x261   : > { %1036 = vxpose.xlu0.b32.cont [13/16] %v1020_v35, 128 }
 0x265   : > { %1037 = vxpose.xlu0.b32.cont [14/16] %v1021_v36, 128 }
 0x269   : > { %1038 = vxpose.xlu0.b32.cont [15/16] %v1022_v37, 128 }
 0x26d   : > { %1039 = vxpose.xlu0.b32.end [16/16] %v1023_v38, 128 }
 0x2b1   : > { %v16443_v33 = vpop.trf.xlu0 }
 0x2b2   : > { %20323 = vst [vmem:[#allocation58_spill] sm:$0xff] %v16443_v33 }
 0x2b5   : > { %v16445_v39 = vpop.trf.xlu0 }
 0x2b6   : > { %20324 = vst [vmem:[#allocation59_spill] sm:$0xff] %v16445_v39 }
 0x2b9   : > { %v16447_v18 = vpop.trf.xlu0 }
 0x2ba   : > { %20325 = vst [vmem:[#allocation60_spill] sm:$0xff] %v16447_v18 }
 0x2bd   : > { %v16449_v19 = vpop.trf.xlu0 }
 0x2be   : > { %20326 = vst [vmem:[#allocation61_spill] sm:$0xff] %v16449_v19 }
 0x2c1   : > { %v16451_v20 = vpop.trf.xlu0 }
 0x2c2   : > { %20327 = vst [vmem:[#allocation62_spill] sm:$0xff] %v16451_v20 }
 0x2c5   : > { %v16453_v21 = vpop.trf.xlu0 }
 0x2c6   : > { %20328 = vst [vmem:[#allocation63_spill] sm:$0xff] %v16453_v21 }
 0x2c9   : > { %v16455_v22 = vpop.trf.xlu0 }
 0x2ca   : > { %20329 = vst [vmem:[#allocation64_spill] sm:$0xff] %v16455_v22 }
 0x2cd   : > { %v16457_v23 = vpop.trf.xlu0 }
 0x2ce   : > { %20330 = vst [vmem:[#allocation65_spill] sm:$0xff] %v16457_v23 }
 0x2d1   : > { %v16459_v24 = vpop.trf.xlu0 }
 0x2d2   : > { %20331 = vst [vmem:[#allocation66_spill] sm:$0xff] %v16459_v24 }
 0x2d5   : > { %v16461_v25 = vpop.trf.xlu0 }
 0x2d6   : > { %20332 = vst [vmem:[#allocation67_spill] sm:$0xff] %v16461_v25 }
 0x2d9   : > { %v16463_v26 = vpop.trf.xlu0 }
 0x2da   : > { %20333 = vst [vmem:[#allocation68_spill] sm:$0xff] %v16463_v26 }
 0x2dd   : > { %v16465_v27 = vpop.trf.xlu0 }
 0x2de   : > { %20334 = vst [vmem:[#allocation69_spill] sm:$0xff] %v16465_v27 }
 0x2e1   : > { %v16467_v28 = vpop.trf.xlu0 }
 0x2e2   : > { %20335 = vst [vmem:[#allocation70_spill] sm:$0xff] %v16467_v28 }
 0x2e5   : > { %v16469_v29 = vpop.trf.xlu0 }
 0x2e6   : > { %20336 = vst [vmem:[#allocation71_spill] sm:$0xff] %v16469_v29 }
 0x2e9   : > { %v16471_v30 = vpop.trf.xlu0 }
 0x2ea   : > { %20337 = vst [vmem:[#allocation72_spill] sm:$0xff] %v16471_v30 }
 0x2ed   : > { %v16473_v31 = vpop.trf.xlu0 }
 0x2ee   : > { %20338 = vst [vmem:[#allocation73_spill] sm:$0xff] %v16473_v31 }
 0x2ef LB: >> { %s10547_s3 = sshll.u32 %s14937_s14, 3  ;;  %v1085_v57 = vsub.s32 1, %v16231_v2  ;;  %s1061_s14 = sadd.s32 1, %s14937_s14   ;;  %s14937_s14 = sphi %s16507_s14, %s1061_s14   ;;  %v14933_v54 = vphi %v16505_v54, %v20355_v54   ;;  %v14929_v53 = vphi %v16503_v53, %v20354_v53   ;;  %v14925_v52 = vphi %v16501_v52, %v20353_v52   ;;  %v14921_v51 = vphi %v16499_v51, %v20352_v51   ;;  %v14917_v50 = vphi %v16497_v50, %v20351_v50   ;;  %v14913_v49 = vphi %v16495_v49, %v20350_v49   ;;  %v14909_v48 = vphi %v16493_v48, %v20349_v48   ;;  %v14905_v47 = vphi %v16491_v47, %v20348_v47   ;;  %v14901_v46 = vphi %v16489_v46, %v20347_v46   ;;  %v14897_v45 = vphi %v16487_v45, %v20346_v45   ;;  %v14893_v44 = vphi %v16485_v44, %v20345_v44   ;;  %v14889_v43 = vphi %v16483_v43, %v20344_v43   ;;  %v14885_v42 = vphi %v16481_v42, %v20343_v42   ;;  %v14881_v41 = vphi %v16479_v41, %v20342_v41   ;;  %v14877_v40 = vphi %v16477_v40, %v20341_v40   ;;  %v14873_v32 = vphi %v16475_v32, %v20340_v32  }
 0x2f0   : >> { %s1079_s5 = scalar_lea.vmem %s15926_s20, %s10547_s3 [#allocation3]  ;;  %s1081_s15 = scalar_lea.vmem %s15933_s29, %s10547_s3 [#allocation6] }
 0x2f1   : >> { %v1080_v55 = vld [vmem:[%s1079_s5] sm:$0xff]  ;;  %p16596_p13 = scmp.ge.s32.totalorder %s1061_s14, 64  }
 0x2f2   : >> { %v1082_v56 = vld [vmem:[%s1081_s15] sm:$0xff]  ;;  %v1086_v58 = vrot.slane %v1080_v55, %v1085_v57  ;;  %s16700_s23 = smov (%p16596_p13), 0  }
 0x2f3   : >> { %v1106_v59 = vrot.slane %v1082_v56, %v1085_v57 }
 0x2f4   : >> { %vm1087_vm0 = vcmp.eq.s32.totalorder %v16231_v2, %v1086_v58  ;;  %vm1088_vm1 = vcmp.eq.s32.totalorder %v16234_v3, %v1086_v58  ;;  %vm1089_vm2 = vcmp.eq.s32.totalorder %v16237_v4, %v1086_v58  ;;  %vm1090_vm3 = vcmp.eq.s32.totalorder %v16240_v5, %v1086_v58 }
 0x2f5   : >> { %vm1091_vm4 = vcmp.eq.s32.totalorder %v16243_v6, %v1086_v58  ;;  %vm1092_vm5 = vcmp.eq.s32.totalorder %v16246_v7, %v1086_v58  ;;  %vm1093_vm6 = vcmp.eq.s32.totalorder %v16249_v8, %v1086_v58  ;;  %vm1094_vm7 = vcmp.eq.s32.totalorder %v16252_v9, %v1086_v58 }
 0x2f6   : >> { %vm1095_vm8 = vcmp.eq.s32.totalorder %v16255_v10, %v1086_v58  ;;  %vm1096_vm9 = vcmp.eq.s32.totalorder %v16258_v11, %v1086_v58  ;;  %vm1097_vm10 = vcmp.eq.s32.totalorder %v16261_v12, %v1086_v58  ;;  %vm1098_vm11 = vcmp.eq.s32.totalorder %v16264_v13, %v1086_v58 }
 0x2f7   : >> { %vm1099_vm12 = vcmp.eq.s32.totalorder %v16267_v14, %v1086_v58  ;;  %vm1100_vm13 = vcmp.eq.s32.totalorder %v16270_v15, %v1086_v58  ;;  %vm1101_vm14 = vcmp.eq.s32.totalorder %v16273_v16, %v1086_v58  ;;  %vm1102_vm15 = vcmp.eq.s32.totalorder %v16276_v17, %v1086_v58 }
 0x2f8   : >> { %v1107_v60 = vsel %vm1087_vm0, %v1106_v59, 0.0  ;;  %v1108_v61 = vsel %vm1088_vm1, %v1106_v59, 0.0  ;;  %v1109_v62 = vsel %vm1089_vm2, %v1106_v59, 0.0  ;;  %v1110_v63 = vsel %vm1090_vm3, %v1106_v59, 0.0 }
 0x2f9   : >> { %v1111_v0 = vsel %vm1091_vm4, %v1106_v59, 0.0  ;;  %v1112_v1 = vsel %vm1092_vm5, %v1106_v59, 0.0  ;;  %v1113_v34 = vsel %vm1093_vm6, %v1106_v59, 0.0  ;;  %v1114_v35 = vsel %vm1094_vm7, %v1106_v59, 0.0 }
 0x2fa   : >> { %v1115_v36 = vsel %vm1095_vm8, %v1106_v59, 0.0  ;;  %v1116_v37 = vsel %vm1096_vm9, %v1106_v59, 0.0  ;;  %v1117_v38 = vsel %vm1097_vm10, %v1106_v59, 0.0  ;;  %v1118_v55 = vsel %vm1098_vm11, %v1106_v59, 0.0 }
 0x2fb   : >> { %v1119_v56 = vsel %vm1099_vm12, %v1106_v59, 0.0  ;;  %v1120_v57 = vsel %vm1100_vm13, %v1106_v59, 0.0  ;;  %v1121_v31 = vsel %vm1101_vm14, %v1106_v59, 0.0  ;;  %v1122_v30 = vsel %vm1102_vm15, %v1106_v59, 0.0 }
 0x2fc   : >> { %v1123_v29 = vadd.f32 %v14933_v54, %v1107_v60   ;;  %v1124_v28 = vadd.f32 %v14929_v53, %v1108_v61   ;;  %v1125_v27 = vadd.f32 %v14925_v52, %v1109_v62   ;;  %v1126_v26 = vadd.f32 %v14921_v51, %v1110_v63  }
 0x2fd   : >> { %v1127_v25 = vadd.f32 %v14917_v50, %v1111_v0   ;;  %v1128_v24 = vadd.f32 %v14913_v49, %v1112_v1   ;;  %v1129_v23 = vadd.f32 %v14909_v48, %v1113_v34   ;;  %v1130_v22 = vadd.f32 %v14905_v47, %v1114_v35   ;;  %1060 = sbr.rel (!%p16596_p13) target bundleno = 751 (0x2ef), region = 289 }
 0x2fe   : >> { %v1131_v21 = vadd.f32 %v14901_v46, %v1115_v36   ;;  %v1132_v20 = vadd.f32 %v14897_v45, %v1116_v37   ;;  %v1133_v19 = vadd.f32 %v14893_v44, %v1117_v38   ;;  %v1134_v18 = vadd.f32 %v14889_v43, %v1118_v55   ;;  %1139 = vxpose.xlu0.b32.start [1/16] (%p16596_p13), %v1123_v29, 128 }
 0x2ff   : >> { %v1135_v39 = vadd.f32 %v14885_v42, %v1119_v56   ;;  %v1136_v33 = vadd.f32 %v14881_v41, %v1120_v57   ;;  %v1137_v58 = vadd.f32 %v14877_v40, %v1121_v31   ;;  %v1138_v59 = vadd.f32 %v14873_v32, %v1122_v30  }
 0x300   : >> { %v20344_v43 = vmov %v1134_v18  ;;  %v20345_v44 = vmov %v1133_v19  ;;  %v20346_v45 = vmov %v1132_v20  ;;  %v20347_v46 = vmov %v1131_v21 }
 0x301   : >> { %v20340_v32 = vmov %v1138_v59  ;;  %v20341_v40 = vmov %v1137_v58  ;;  %v20342_v41 = vmov %v1136_v33  ;;  %v20343_v42 = vmov %v1135_v39 }
 0x302   : >> { %v20348_v47 = vmov %v1130_v22  ;;  %v20349_v48 = vmov %v1129_v23  ;;  %v20350_v49 = vmov %v1128_v24  ;;  %v20351_v50 = vmov %v1127_v25  ;;  %1140 = vxpose.xlu0.b32.cont [2/16] (%p16596_p13), %v1124_v28, 128 }
 0x303   : >> { %v20352_v51 = vmov %v1126_v26  ;;  %v20353_v52 = vmov %v1125_v27  ;;  %v20354_v53 = vmov %v1124_v28  ;;  %v20355_v54 = vmov %v1123_v29 }
 0x304   : > { %v16668_v32 = vmov 0.0   ;;  %v16670_v40 = vmov 0.0   ;;  %v16672_v41 = vmov 0.0   ;;  %v16674_v42 = vmov 0.0  }
 0x305   : > { %v16676_v43 = vmov 0.0   ;;  %v16678_v44 = vmov 0.0   ;;  %v16680_v45 = vmov 0.0   ;;  %v16682_v46 = vmov 0.0  }
 0x306   : > { %1141 = vxpose.xlu0.b32.cont [3/16] %v1125_v27, 128  ;;  %v16684_v47 = vmov 0.0   ;;  %v16686_v48 = vmov 0.0   ;;  %v16688_v49 = vmov 0.0   ;;  %v16690_v50 = vmov 0.0  }
 0x307   : > { %v16692_v51 = vmov 0.0   ;;  %v16694_v52 = vmov 0.0   ;;  %v16696_v53 = vmov 0.0   ;;  %v16698_v54 = vmov 0.0  }
 0x30a   : > { %1142 = vxpose.xlu0.b32.cont [4/16] %v1126_v26, 128 }
 0x30e   : > { %1143 = vxpose.xlu0.b32.cont [5/16] %v1127_v25, 128 }
 0x312   : > { %1144 = vxpose.xlu0.b32.cont [6/16] %v1128_v24, 128 }
 0x316   : > { %1145 = vxpose.xlu0.b32.cont [7/16] %v1129_v23, 128 }
 0x31a   : > { %1146 = vxpose.xlu0.b32.cont [8/16] %v1130_v22, 128 }
 0x31e   : > { %1147 = vxpose.xlu0.b32.cont [9/16] %v1131_v21, 128 }
 0x322   : > { %1148 = vxpose.xlu0.b32.cont [10/16] %v1132_v20, 128 }
 0x326   : > { %1149 = vxpose.xlu0.b32.cont [11/16] %v1133_v19, 128 }
 0x32a   : > { %1150 = vxpose.xlu0.b32.cont [12/16] %v1134_v18, 128 }
 0x32e   : > { %1151 = vxpose.xlu0.b32.cont [13/16] %v1135_v39, 128 }
 0x332   : > { %1152 = vxpose.xlu0.b32.cont [14/16] %v1136_v33, 128 }
 0x336   : > { %1153 = vxpose.xlu0.b32.cont [15/16] %v1137_v58, 128 }
 0x33a   : > { %1154 = vxpose.xlu0.b32.end [16/16] %v1138_v59, 128 }
 0x37e   : > { %v16636_v30 = vpop.trf.xlu0 }
 0x37f   : > { %20356 = vst [vmem:[#allocation74_spill] sm:$0xff] %v16636_v30 }
 0x382   : > { %v16638_v31 = vpop.trf.xlu0 }
 0x383   : > { %20357 = vst [vmem:[#allocation75_spill] sm:$0xff] %v16638_v31 }
 0x386   : > { %v16640_v29 = vpop.trf.xlu0 }
 0x387   : > { %20358 = vst [vmem:[#allocation76_spill] sm:$0xff] %v16640_v29 }
 0x38a   : > { %v16642_v27 = vpop.trf.xlu0 }
 0x38b   : > { %20359 = vst [vmem:[#allocation77_spill] sm:$0xff] %v16642_v27 }
 0x38e   : > { %v16644_v25 = vpop.trf.xlu0 }
 0x38f   : > { %20360 = vst [vmem:[#allocation78_spill] sm:$0xff] %v16644_v25 }
 0x392   : > { %v16646_v23 = vpop.trf.xlu0 }
 0x393   : > { %20361 = vst [vmem:[#allocation79_spill] sm:$0xff] %v16646_v23 }
 0x396   : > { %v16648_v21 = vpop.trf.xlu0 }
 0x397   : > { %20362 = vst [vmem:[#allocation80_spill] sm:$0xff] %v16648_v21 }
 0x39a   : > { %v16650_v19 = vpop.trf.xlu0 }
 0x39b   : > { %20363 = vst [vmem:[#allocation81_spill] sm:$0xff] %v16650_v19 }
 0x39e   : > { %v16652_v39 = vpop.trf.xlu0 }
 0x39f   : > { %20364 = vst [vmem:[#allocation82_spill] sm:$0xff] %v16652_v39 }
 0x3a2   : > { %v16654_v33 = vpop.trf.xlu0 }
 0x3a3   : > { %20365 = vst [vmem:[#allocation83_spill] sm:$0xff] %v16654_v33 }
 0x3a6   : > { %v16656_v18 = vpop.trf.xlu0 }
 0x3a7   : > { %20366 = vst [vmem:[#allocation84_spill] sm:$0xff] %v16656_v18 }
 0x3aa   : > { %v16658_v20 = vpop.trf.xlu0 }
 0x3ab   : > { %20367 = vst [vmem:[#allocation85_spill] sm:$0xff] %v16658_v20 }
 0x3ae   : > { %v16660_v22 = vpop.trf.xlu0 }
 0x3af   : > { %20368 = vst [vmem:[#allocation86_spill] sm:$0xff] %v16660_v22 }
 0x3b2   : > { %v16662_v24 = vpop.trf.xlu0 }
 0x3b3   : > { %20369 = vst [vmem:[#allocation87_spill] sm:$0xff] %v16662_v24 }
 0x3b6   : > { %v16664_v26 = vpop.trf.xlu0 }
 0x3b7   : > { %20370 = vst [vmem:[#allocation88_spill] sm:$0xff] %v16664_v26 }
 0x3ba   : > { %v16666_v28 = vpop.trf.xlu0 }
 0x3bb   : > { %20371 = vst [vmem:[#allocation89_spill] sm:$0xff] %v16666_v28 }
 0x3bc LB: >> { %s10548_s28 = sshll.u32 %s15005_s23, 3  ;;  %v1200_v62 = vsub.s32 2, %v16231_v2  ;;  %s1176_s23 = sadd.s32 1, %s15005_s23   ;;  %s15005_s23 = sphi %s16700_s23, %s1176_s23   ;;  %v15001_v54 = vphi %v16698_v54, %v20388_v54   ;;  %v14997_v53 = vphi %v16696_v53, %v20387_v53   ;;  %v14993_v52 = vphi %v16694_v52, %v20386_v52   ;;  %v14989_v51 = vphi %v16692_v51, %v20385_v51   ;;  %v14985_v50 = vphi %v16690_v50, %v20384_v50   ;;  %v14981_v49 = vphi %v16688_v49, %v20383_v49   ;;  %v14977_v48 = vphi %v16686_v48, %v20382_v48   ;;  %v14973_v47 = vphi %v16684_v47, %v20381_v47   ;;  %v14969_v46 = vphi %v16682_v46, %v20380_v46   ;;  %v14965_v45 = vphi %v16680_v45, %v20379_v45   ;;  %v14961_v44 = vphi %v16678_v44, %v20378_v44   ;;  %v14957_v43 = vphi %v16676_v43, %v20377_v43   ;;  %v14953_v42 = vphi %v16674_v42, %v20376_v42   ;;  %v14949_v41 = vphi %v16672_v41, %v20375_v41   ;;  %v14945_v40 = vphi %v16670_v40, %v20374_v40   ;;  %v14941_v32 = vphi %v16668_v32, %v20373_v32  }
 0x3bd   : >> { %s1194_s13 = scalar_lea.vmem %s15926_s20, %s10548_s28 [#allocation3]  ;;  %s1196_s21 = scalar_lea.vmem %s15933_s29, %s10548_s28 [#allocation6] }
 0x3be   : >> { %v1195_v60 = vld [vmem:[%s1194_s13] sm:$0xff]  ;;  %p16789_p5 = scmp.ge.s32.totalorder %s1176_s23, 64  }
 0x3bf   : >> { %v1197_v61 = vld [vmem:[%s1196_s21] sm:$0xff]  ;;  %v1201_v63 = vrot.slane %v1195_v60, %v1200_v62  ;;  %s16893_s22 = smov (%p16789_p5), 0  }
 0x3c0   : >> { %v1221_v0 = vrot.slane %v1197_v61, %v1200_v62 }
 0x3c1   : >> { %vm1202_vm0 = vcmp.eq.s32.totalorder %v16231_v2, %v1201_v63  ;;  %vm1203_vm1 = vcmp.eq.s32.totalorder %v16234_v3, %v1201_v63  ;;  %vm1204_vm2 = vcmp.eq.s32.totalorder %v16237_v4, %v1201_v63  ;;  %vm1205_vm3 = vcmp.eq.s32.totalorder %v16240_v5, %v1201_v63 }
 0x3c2   : >> { %vm1206_vm4 = vcmp.eq.s32.totalorder %v16243_v6, %v1201_v63  ;;  %vm1207_vm5 = vcmp.eq.s32.totalorder %v16246_v7, %v1201_v63  ;;  %vm1208_vm6 = vcmp.eq.s32.totalorder %v16249_v8, %v1201_v63  ;;  %vm1209_vm7 = vcmp.eq.s32.totalorder %v16252_v9, %v1201_v63 }
 0x3c3   : >> { %vm1210_vm8 = vcmp.eq.s32.totalorder %v16255_v10, %v1201_v63  ;;  %vm1211_vm9 = vcmp.eq.s32.totalorder %v16258_v11, %v1201_v63  ;;  %vm1212_vm10 = vcmp.eq.s32.totalorder %v16261_v12, %v1201_v63  ;;  %vm1213_vm11 = vcmp.eq.s32.totalorder %v16264_v13, %v1201_v63 }
 0x3c4   : >> { %vm1214_vm12 = vcmp.eq.s32.totalorder %v16267_v14, %v1201_v63  ;;  %vm1215_vm13 = vcmp.eq.s32.totalorder %v16270_v15, %v1201_v63  ;;  %vm1216_vm14 = vcmp.eq.s32.totalorder %v16273_v16, %v1201_v63  ;;  %vm1217_vm15 = vcmp.eq.s32.totalorder %v16276_v17, %v1201_v63 }
 0x3c5   : >> { %v1222_v1 = vsel %vm1202_vm0, %v1221_v0, 0.0  ;;  %v1223_v34 = vsel %vm1203_vm1, %v1221_v0, 0.0  ;;  %v1224_v35 = vsel %vm1204_vm2, %v1221_v0, 0.0  ;;  %v1225_v36 = vsel %vm1205_vm3, %v1221_v0, 0.0 }
 0x3c6   : >> { %v1226_v37 = vsel %vm1206_vm4, %v1221_v0, 0.0  ;;  %v1227_v38 = vsel %vm1207_vm5, %v1221_v0, 0.0  ;;  %v1228_v55 = vsel %vm1208_vm6, %v1221_v0, 0.0  ;;  %v1229_v56 = vsel %vm1209_vm7, %v1221_v0, 0.0 }
 0x3c7   : >> { %v1230_v57 = vsel %vm1210_vm8, %v1221_v0, 0.0  ;;  %v1231_v58 = vsel %vm1211_vm9, %v1221_v0, 0.0  ;;  %v1232_v59 = vsel %vm1212_vm10, %v1221_v0, 0.0  ;;  %v1233_v60 = vsel %vm1213_vm11, %v1221_v0, 0.0 }
 0x3c8   : >> { %v1234_v61 = vsel %vm1214_vm12, %v1221_v0, 0.0  ;;  %v1235_v62 = vsel %vm1215_vm13, %v1221_v0, 0.0  ;;  %v1236_v28 = vsel %vm1216_vm14, %v1221_v0, 0.0  ;;  %v1237_v26 = vsel %vm1217_vm15, %v1221_v0, 0.0 }
 0x3c9   : >> { %v1238_v24 = vadd.f32 %v15001_v54, %v1222_v1   ;;  %v1239_v22 = vadd.f32 %v14997_v53, %v1223_v34   ;;  %v1240_v20 = vadd.f32 %v14993_v52, %v1224_v35   ;;  %v1241_v18 = vadd.f32 %v14989_v51, %v1225_v36  }
 0x3ca   : >> { %v1242_v33 = vadd.f32 %v14985_v50, %v1226_v37   ;;  %v1243_v39 = vadd.f32 %v14981_v49, %v1227_v38   ;;  %v1244_v19 = vadd.f32 %v14977_v48, %v1228_v55   ;;  %v1245_v21 = vadd.f32 %v14973_v47, %v1229_v56   ;;  %1175 = sbr.rel (!%p16789_p5) target bundleno = 956 (0x3bc), region = 300 }
 0x3cb   : >> { %v1246_v23 = vadd.f32 %v14969_v46, %v1230_v57   ;;  %v1247_v25 = vadd.f32 %v14965_v45, %v1231_v58   ;;  %v1248_v27 = vadd.f32 %v14961_v44, %v1232_v59   ;;  %v1249_v29 = vadd.f32 %v14957_v43, %v1233_v60   ;;  %1254 = vxpose.xlu0.b32.start [1/16] (%p16789_p5), %v1238_v24, 128 }
 0x3cc   : >> { %v1250_v31 = vadd.f32 %v14953_v42, %v1234_v61   ;;  %v1251_v30 = vadd.f32 %v14949_v41, %v1235_v62   ;;  %v1252_v63 = vadd.f32 %v14945_v40, %v1236_v28   ;;  %v1253_v0 = vadd.f32 %v14941_v32, %v1237_v26  }
 0x3cd   : >> { %v20377_v43 = vmov %v1249_v29  ;;  %v20378_v44 = vmov %v1248_v27  ;;  %v20379_v45 = vmov %v1247_v25  ;;  %v20380_v46 = vmov %v1246_v23 }
 0x3ce   : >> { %v20373_v32 = vmov %v1253_v0  ;;  %v20374_v40 = vmov %v1252_v63  ;;  %v20375_v41 = vmov %v1251_v30  ;;  %v20376_v42 = vmov %v1250_v31 }
 0x3cf   : >> { %v20381_v47 = vmov %v1245_v21  ;;  %v20382_v48 = vmov %v1244_v19  ;;  %v20383_v49 = vmov %v1243_v39  ;;  %v20384_v50 = vmov %v1242_v33  ;;  %1255 = vxpose.xlu0.b32.cont [2/16] (%p16789_p5), %v1239_v22, 128 }
 0x3d0   : >> { %v20385_v51 = vmov %v1241_v18  ;;  %v20386_v52 = vmov %v1240_v20  ;;  %v20387_v53 = vmov %v1239_v22  ;;  %v20388_v54 = vmov %v1238_v24 }
 0x3d1   : > { %v16861_v32 = vmov 0.0   ;;  %v16863_v40 = vmov 0.0   ;;  %v16865_v41 = vmov 0.0   ;;  %v16867_v42 = vmov 0.0  }
 0x3d2   : > { %v16869_v43 = vmov 0.0   ;;  %v16871_v44 = vmov 0.0   ;;  %v16873_v45 = vmov 0.0   ;;  %v16875_v46 = vmov 0.0  }
 0x3d3   : > { %1256 = vxpose.xlu0.b32.cont [3/16] %v1240_v20, 128  ;;  %v16877_v47 = vmov 0.0   ;;  %v16879_v48 = vmov 0.0   ;;  %v16881_v49 = vmov 0.0   ;;  %v16883_v50 = vmov 0.0  }
 0x3d4   : > { %v16885_v51 = vmov 0.0   ;;  %v16887_v52 = vmov 0.0   ;;  %v16889_v53 = vmov 0.0   ;;  %v16891_v54 = vmov 0.0  }
 0x3d7   : > { %1257 = vxpose.xlu0.b32.cont [4/16] %v1241_v18, 128 }
 0x3db   : > { %1258 = vxpose.xlu0.b32.cont [5/16] %v1242_v33, 128 }
 0x3df   : > { %1259 = vxpose.xlu0.b32.cont [6/16] %v1243_v39, 128 }
 0x3e3   : > { %1260 = vxpose.xlu0.b32.cont [7/16] %v1244_v19, 128 }
 0x3e7   : > { %1261 = vxpose.xlu0.b32.cont [8/16] %v1245_v21, 128 }
 0x3eb   : > { %1262 = vxpose.xlu0.b32.cont [9/16] %v1246_v23, 128 }
 0x3ef   : > { %1263 = vxpose.xlu0.b32.cont [10/16] %v1247_v25, 128 }
 0x3f3   : > { %1264 = vxpose.xlu0.b32.cont [11/16] %v1248_v27, 128 }
 0x3f7   : > { %1265 = vxpose.xlu0.b32.cont [12/16] %v1249_v29, 128 }
 0x3fb   : > { %1266 = vxpose.xlu0.b32.cont [13/16] %v1250_v31, 128 }
 0x3ff   : > { %1267 = vxpose.xlu0.b32.cont [14/16] %v1251_v30, 128 }
 0x403   : > { %1268 = vxpose.xlu0.b32.cont [15/16] %v1252_v63, 128 }
 0x407   : > { %1269 = vxpose.xlu0.b32.end [16/16] %v1253_v0, 128 }
 0x44b   : > { %v16829_v26 = vpop.trf.xlu0 }
 0x44c   : > { %20389 = vst [vmem:[#allocation90_spill] sm:$0xff] %v16829_v26 }
 0x44f   : > { %v16831_v28 = vpop.trf.xlu0 }
 0x450   : > { %20390 = vst [vmem:[#allocation91_spill] sm:$0xff] %v16831_v28 }
 0x453   : > { %v16833_v24 = vpop.trf.xlu0 }
 0x454   : > { %20391 = vst [vmem:[#allocation92_spill] sm:$0xff] %v16833_v24 }
 0x457   : > { %v16835_v20 = vpop.trf.xlu0 }
 0x458   : > { %20392 = vst [vmem:[#allocation93_spill] sm:$0xff] %v16835_v20 }
 0x45b   : > { %v16837_v33 = vpop.trf.xlu0 }
 0x45c   : > { %20393 = vst [vmem:[#allocation94_spill] sm:$0xff] %v16837_v33 }
 0x45f   : > { %v16839_v19 = vpop.trf.xlu0 }
 0x460   : > { %20394 = vst [vmem:[#allocation95_spill] sm:$0xff] %v16839_v19 }
 0x463   : > { %v16841_v23 = vpop.trf.xlu0 }
 0x464   : > { %20395 = vst [vmem:[#allocation96_spill] sm:$0xff] %v16841_v23 }
 0x467   : > { %v16843_v27 = vpop.trf.xlu0 }
 0x468   : > { %20396 = vst [vmem:[#allocation97_spill] sm:$0xff] %v16843_v27 }
 0x46b   : > { %v16845_v31 = vpop.trf.xlu0 }
 0x46c   : > { %20397 = vst [vmem:[#allocation98_spill] sm:$0xff] %v16845_v31 }
 0x46f   : > { %v16847_v30 = vpop.trf.xlu0 }
 0x470   : > { %20398 = vst [vmem:[#allocation99_spill] sm:$0xff] %v16847_v30 }
 0x473   : > { %v16849_v29 = vpop.trf.xlu0 }
 0x474   : > { %20399 = vst [vmem:[#allocation100_spill] sm:$0xff] %v16849_v29 }
 0x477   : > { %v16851_v25 = vpop.trf.xlu0 }
 0x478   : > { %20400 = vst [vmem:[#allocation101_spill] sm:$0xff] %v16851_v25 }
 0x47b   : > { %v16853_v21 = vpop.trf.xlu0 }
 0x47c   : > { %20401 = vst [vmem:[#allocation102_spill] sm:$0xff] %v16853_v21 }
 0x47f   : > { %v16855_v39 = vpop.trf.xlu0 }
 0x480   : > { %20402 = vst [vmem:[#allocation103_spill] sm:$0xff] %v16855_v39 }
 0x483   : > { %v16857_v18 = vpop.trf.xlu0 }
 0x484   : > { %20403 = vst [vmem:[#allocation104_spill] sm:$0xff] %v16857_v18 }
 0x487   : > { %v16859_v22 = vpop.trf.xlu0 }
 0x488   : > { %20404 = vst [vmem:[#allocation105_spill] sm:$0xff] %v16859_v22 }
 0x489 LB: >> { %s10549_s24 = sshll.u32 %s15073_s22, 3  ;;  %v1315_v35 = vsub.s32 3, %v16231_v2  ;;  %s1291_s22 = sadd.s32 1, %s15073_s22   ;;  %s15073_s22 = sphi %s16893_s22, %s1291_s22   ;;  %v15069_v54 = vphi %v16891_v54, %v20421_v54   ;;  %v15065_v53 = vphi %v16889_v53, %v20420_v53   ;;  %v15061_v52 = vphi %v16887_v52, %v20419_v52   ;;  %v15057_v51 = vphi %v16885_v51, %v20418_v51   ;;  %v15053_v50 = vphi %v16883_v50, %v20417_v50   ;;  %v15049_v49 = vphi %v16881_v49, %v20416_v49   ;;  %v15045_v48 = vphi %v16879_v48, %v20415_v48   ;;  %v15041_v47 = vphi %v16877_v47, %v20414_v47   ;;  %v15037_v46 = vphi %v16875_v46, %v20413_v46   ;;  %v15033_v45 = vphi %v16873_v45, %v20412_v45   ;;  %v15029_v44 = vphi %v16871_v44, %v20411_v44   ;;  %v15025_v43 = vphi %v16869_v43, %v20410_v43   ;;  %v15021_v42 = vphi %v16867_v42, %v20409_v42   ;;  %v15017_v41 = vphi %v16865_v41, %v20408_v41   ;;  %v15013_v40 = vphi %v16863_v40, %v20407_v40   ;;  %v15009_v32 = vphi %v16861_v32, %v20406_v32  }
 0x48a   : >> { %s1309_s26 = scalar_lea.vmem %s15926_s20, %s10549_s24 [#allocation3]  ;;  %s1311_s27 = scalar_lea.vmem %s15933_s29, %s10549_s24 [#allocation6] }
 0x48b   : >> { %v1310_v1 = vld [vmem:[%s1309_s26] sm:$0xff]  ;;  %p16982_p8 = scmp.ge.s32.totalorder %s1291_s22, 64  }
 0x48c   : >> { %v1312_v34 = vld [vmem:[%s1311_s27] sm:$0xff]  ;;  %v1316_v36 = vrot.slane %v1310_v1, %v1315_v35  ;;  %s17086_s6 = smov (%p16982_p8), 0  }
 0x48d   : >> { %v1336_v37 = vrot.slane %v1312_v34, %v1315_v35 }
 0x48e   : >> { %vm1317_vm0 = vcmp.eq.s32.totalorder %v16231_v2, %v1316_v36  ;;  %vm1318_vm1 = vcmp.eq.s32.totalorder %v16234_v3, %v1316_v36  ;;  %vm1319_vm2 = vcmp.eq.s32.totalorder %v16237_v4, %v1316_v36  ;;  %vm1320_vm3 = vcmp.eq.s32.totalorder %v16240_v5, %v1316_v36 }
 0x48f   : >> { %vm1321_vm4 = vcmp.eq.s32.totalorder %v16243_v6, %v1316_v36  ;;  %vm1322_vm5 = vcmp.eq.s32.totalorder %v16246_v7, %v1316_v36  ;;  %vm1323_vm6 = vcmp.eq.s32.totalorder %v16249_v8, %v1316_v36  ;;  %vm1324_vm7 = vcmp.eq.s32.totalorder %v16252_v9, %v1316_v36 }
 0x490   : >> { %vm1325_vm8 = vcmp.eq.s32.totalorder %v16255_v10, %v1316_v36  ;;  %vm1326_vm9 = vcmp.eq.s32.totalorder %v16258_v11, %v1316_v36  ;;  %vm1327_vm10 = vcmp.eq.s32.totalorder %v16261_v12, %v1316_v36  ;;  %vm1328_vm11 = vcmp.eq.s32.totalorder %v16264_v13, %v1316_v36 }
 0x491   : >> { %vm1329_vm12 = vcmp.eq.s32.totalorder %v16267_v14, %v1316_v36  ;;  %vm1330_vm13 = vcmp.eq.s32.totalorder %v16270_v15, %v1316_v36  ;;  %vm1331_vm14 = vcmp.eq.s32.totalorder %v16273_v16, %v1316_v36  ;;  %vm1332_vm15 = vcmp.eq.s32.totalorder %v16276_v17, %v1316_v36 }
 0x492   : >> { %v1337_v38 = vsel %vm1317_vm0, %v1336_v37, 0.0  ;;  %v1338_v55 = vsel %vm1318_vm1, %v1336_v37, 0.0  ;;  %v1339_v56 = vsel %vm1319_vm2, %v1336_v37, 0.0  ;;  %v1340_v57 = vsel %vm1320_vm3, %v1336_v37, 0.0 }
 0x493   : >> { %v1341_v58 = vsel %vm1321_vm4, %v1336_v37, 0.0  ;;  %v1342_v59 = vsel %vm1322_vm5, %v1336_v37, 0.0  ;;  %v1343_v60 = vsel %vm1323_vm6, %v1336_v37, 0.0  ;;  %v1344_v61 = vsel %vm1324_vm7, %v1336_v37, 0.0 }
 0x494   : >> { %v1345_v62 = vsel %vm1325_vm8, %v1336_v37, 0.0  ;;  %v1346_v63 = vsel %vm1326_vm9, %v1336_v37, 0.0  ;;  %v1347_v0 = vsel %vm1327_vm10, %v1336_v37, 0.0  ;;  %v1348_v1 = vsel %vm1328_vm11, %v1336_v37, 0.0 }
 0x495   : >> { %v1349_v34 = vsel %vm1329_vm12, %v1336_v37, 0.0  ;;  %v1350_v35 = vsel %vm1330_vm13, %v1336_v37, 0.0  ;;  %v1351_v22 = vsel %vm1331_vm14, %v1336_v37, 0.0  ;;  %v1352_v18 = vsel %vm1332_vm15, %v1336_v37, 0.0 }
 0x496   : >> { %v1353_v39 = vadd.f32 %v15069_v54, %v1337_v38   ;;  %v1354_v21 = vadd.f32 %v15065_v53, %v1338_v55   ;;  %v1355_v25 = vadd.f32 %v15061_v52, %v1339_v56   ;;  %v1356_v29 = vadd.f32 %v15057_v51, %v1340_v57  }
 0x497   : >> { %v1357_v30 = vadd.f32 %v15053_v50, %v1341_v58   ;;  %v1358_v31 = vadd.f32 %v15049_v49, %v1342_v59   ;;  %v1359_v27 = vadd.f32 %v15045_v48, %v1343_v60   ;;  %v1360_v23 = vadd.f32 %v15041_v47, %v1344_v61   ;;  %1290 = sbr.rel (!%p16982_p8) target bundleno = 1161 (0x489), region = 311 }
 0x498   : >> { %v1361_v19 = vadd.f32 %v15037_v46, %v1345_v62   ;;  %v1362_v33 = vadd.f32 %v15033_v45, %v1346_v63   ;;  %v1363_v20 = vadd.f32 %v15029_v44, %v1347_v0   ;;  %v1364_v24 = vadd.f32 %v15025_v43, %v1348_v1   ;;  %1369 = vxpose.xlu0.b32.start [1/16] (%p16982_p8), %v1353_v39, 128 }
 0x499   : >> { %v1365_v28 = vadd.f32 %v15021_v42, %v1349_v34   ;;  %v1366_v26 = vadd.f32 %v15017_v41, %v1350_v35   ;;  %v1367_v36 = vadd.f32 %v15013_v40, %v1351_v22   ;;  %v1368_v37 = vadd.f32 %v15009_v32, %v1352_v18  }
 0x49a   : >> { %v20410_v43 = vmov %v1364_v24  ;;  %v20411_v44 = vmov %v1363_v20  ;;  %v20412_v45 = vmov %v1362_v33  ;;  %v20413_v46 = vmov %v1361_v19 }
 0x49b   : >> { %v20406_v32 = vmov %v1368_v37  ;;  %v20407_v40 = vmov %v1367_v36  ;;  %v20408_v41 = vmov %v1366_v26  ;;  %v20409_v42 = vmov %v1365_v28 }
 0x49c   : >> { %v20414_v47 = vmov %v1360_v23  ;;  %v20415_v48 = vmov %v1359_v27  ;;  %v20416_v49 = vmov %v1358_v31  ;;  %v20417_v50 = vmov %v1357_v30  ;;  %1370 = vxpose.xlu0.b32.cont [2/16] (%p16982_p8), %v1354_v21, 128 }
 0x49d   : >> { %v20418_v51 = vmov %v1356_v29  ;;  %v20419_v52 = vmov %v1355_v25  ;;  %v20420_v53 = vmov %v1354_v21  ;;  %v20421_v54 = vmov %v1353_v39 }
 0x49e   : > { %v17054_v32 = vmov 0.0   ;;  %v17056_v40 = vmov 0.0   ;;  %v17058_v41 = vmov 0.0   ;;  %v17060_v42 = vmov 0.0  }
 0x49f   : > { %v17062_v43 = vmov 0.0   ;;  %v17064_v44 = vmov 0.0   ;;  %v17066_v45 = vmov 0.0   ;;  %v17068_v46 = vmov 0.0  }
 0x4a0   : > { %1371 = vxpose.xlu0.b32.cont [3/16] %v1355_v25, 128  ;;  %v17070_v47 = vmov 0.0   ;;  %v17072_v48 = vmov 0.0   ;;  %v17074_v49 = vmov 0.0   ;;  %v17076_v50 = vmov 0.0  }
 0x4a1   : > { %v17078_v51 = vmov 0.0   ;;  %v17080_v52 = vmov 0.0   ;;  %v17082_v53 = vmov 0.0   ;;  %v17084_v54 = vmov 0.0  }
 0x4a4   : > { %1372 = vxpose.xlu0.b32.cont [4/16] %v1356_v29, 128 }
 0x4a8   : > { %1373 = vxpose.xlu0.b32.cont [5/16] %v1357_v30, 128 }
 0x4ac   : > { %1374 = vxpose.xlu0.b32.cont [6/16] %v1358_v31, 128 }
 0x4b0   : > { %1375 = vxpose.xlu0.b32.cont [7/16] %v1359_v27, 128 }
 0x4b4   : > { %1376 = vxpose.xlu0.b32.cont [8/16] %v1360_v23, 128 }
 0x4b8   : > { %1377 = vxpose.xlu0.b32.cont [9/16] %v1361_v19, 128 }
 0x4bc   : > { %1378 = vxpose.xlu0.b32.cont [10/16] %v1362_v33, 128 }
 0x4c0   : > { %1379 = vxpose.xlu0.b32.cont [11/16] %v1363_v20, 128 }
 0x4c4   : > { %1380 = vxpose.xlu0.b32.cont [12/16] %v1364_v24, 128 }
 0x4c8   : > { %1381 = vxpose.xlu0.b32.cont [13/16] %v1365_v28, 128 }
 0x4cc   : > { %1382 = vxpose.xlu0.b32.cont [14/16] %v1366_v26, 128 }
 0x4d0   : > { %1383 = vxpose.xlu0.b32.cont [15/16] %v1367_v36, 128 }
 0x4d4   : > { %1384 = vxpose.xlu0.b32.end [16/16] %v1368_v37, 128 }
 0x518   : > { %v17022_v18 = vpop.trf.xlu0 }
 0x519   : > { %20422 = vst [vmem:[#allocation106_spill] sm:$0xff] %v17022_v18 }
 0x51c   : > { %v17024_v22 = vpop.trf.xlu0 }
 0x51d   : > { %20423 = vst [vmem:[#allocation107_spill] sm:$0xff] %v17024_v22 }
 0x520   : > { %v17026_v39 = vpop.trf.xlu0 }
 0x521   : > { %20424 = vst [vmem:[#allocation108_spill] sm:$0xff] %v17026_v39 }
 0x524   : > { %v17028_v25 = vpop.trf.xlu0 }
 0x525   : > { %20425 = vst [vmem:[#allocation109_spill] sm:$0xff] %v17028_v25 }
 0x528   : > { %v17030_v30 = vpop.trf.xlu0 }
 0x529   : > { %20426 = vst [vmem:[#allocation110_spill] sm:$0xff] %v17030_v30 }
 0x52c   : > { %v17032_v27 = vpop.trf.xlu0 }
 0x52d   : > { %20427 = vst [vmem:[#allocation111_spill] sm:$0xff] %v17032_v27 }
 0x530   : > { %v17034_v19 = vpop.trf.xlu0 }
 0x531   : > { %20428 = vst [vmem:[#allocation112_spill] sm:$0xff] %v17034_v19 }
 0x534   : > { %v17036_v20 = vpop.trf.xlu0 }
 0x535   : > { %20429 = vst [vmem:[#allocation113_spill] sm:$0xff] %v17036_v20 }
 0x538   : > { %v17038_v28 = vpop.trf.xlu0 }
 0x539   : > { %20430 = vst [vmem:[#allocation114_spill] sm:$0xff] %v17038_v28 }
 0x53c   : > { %v17040_v26 = vpop.trf.xlu0 }
 0x53d   : > { %20431 = vst [vmem:[#allocation115_spill] sm:$0xff] %v17040_v26 }
 0x540   : > { %v17042_v24 = vpop.trf.xlu0 }
 0x541   : > { %20432 = vst [vmem:[#allocation116_spill] sm:$0xff] %v17042_v24 }
 0x544   : > { %v17044_v33 = vpop.trf.xlu0 }
 0x545   : > { %20433 = vst [vmem:[#allocation117_spill] sm:$0xff] %v17044_v33 }
 0x548   : > { %v17046_v23 = vpop.trf.xlu0 }
 0x549   : > { %20434 = vst [vmem:[#allocation118_spill] sm:$0xff] %v17046_v23 }
 0x54c   : > { %v17048_v31 = vpop.trf.xlu0 }
 0x54d   : > { %20435 = vst [vmem:[#allocation119_spill] sm:$0xff] %v17048_v31 }
 0x550   : > { %v17050_v29 = vpop.trf.xlu0 }
 0x551   : > { %20436 = vst [vmem:[#allocation120_spill] sm:$0xff] %v17050_v29 }
 0x554   : > { %v17052_v21 = vpop.trf.xlu0 }
 0x555   : > { %20437 = vst [vmem:[#allocation121_spill] sm:$0xff] %v17052_v21 }
 0x556 LB: >> { %s10550_s14 = sshll.u32 %s15141_s6, 3  ;;  %v1430_v56 = vsub.s32 4, %v16231_v2  ;;  %s1406_s6 = sadd.s32 1, %s15141_s6   ;;  %s15141_s6 = sphi %s17086_s6, %s1406_s6   ;;  %v15137_v54 = vphi %v17084_v54, %v20454_v54   ;;  %v15133_v53 = vphi %v17082_v53, %v20453_v53   ;;  %v15129_v52 = vphi %v17080_v52, %v20452_v52   ;;  %v15125_v51 = vphi %v17078_v51, %v20451_v51   ;;  %v15121_v50 = vphi %v17076_v50, %v20450_v50   ;;  %v15117_v49 = vphi %v17074_v49, %v20449_v49   ;;  %v15113_v48 = vphi %v17072_v48, %v20448_v48   ;;  %v15109_v47 = vphi %v17070_v47, %v20447_v47   ;;  %v15105_v46 = vphi %v17068_v46, %v20446_v46   ;;  %v15101_v45 = vphi %v17066_v45, %v20445_v45   ;;  %v15097_v44 = vphi %v17064_v44, %v20444_v44   ;;  %v15093_v43 = vphi %v17062_v43, %v20443_v43   ;;  %v15089_v42 = vphi %v17060_v42, %v20442_v42   ;;  %v15085_v41 = vphi %v17058_v41, %v20441_v41   ;;  %v15081_v40 = vphi %v17056_v40, %v20440_v40   ;;  %v15077_v32 = vphi %v17054_v32, %v20439_v32  }
 0x557   : >> { %s1424_s3 = scalar_lea.vmem %s15926_s20, %s10550_s14 [#allocation3]  ;;  %s1426_s5 = scalar_lea.vmem %s15933_s29, %s10550_s14 [#allocation6] }
 0x558   : >> { %v1425_v38 = vld [vmem:[%s1424_s3] sm:$0xff]  ;;  %p17175_p2 = scmp.ge.s32.totalorder %s1406_s6, 64  }
 0x559   : >> { %v1427_v55 = vld [vmem:[%s1426_s5] sm:$0xff]  ;;  %v1431_v57 = vrot.slane %v1425_v38, %v1430_v56  ;;  %s17279_s9 = smov (%p17175_p2), 0  }
 0x55a   : >> { %v1451_v58 = vrot.slane %v1427_v55, %v1430_v56 }
 0x55b   : >> { %vm1432_vm0 = vcmp.eq.s32.totalorder %v16231_v2, %v1431_v57  ;;  %vm1433_vm1 = vcmp.eq.s32.totalorder %v16234_v3, %v1431_v57  ;;  %vm1434_vm2 = vcmp.eq.s32.totalorder %v16237_v4, %v1431_v57  ;;  %vm1435_vm3 = vcmp.eq.s32.totalorder %v16240_v5, %v1431_v57 }
 0x55c   : >> { %vm1436_vm4 = vcmp.eq.s32.totalorder %v16243_v6, %v1431_v57  ;;  %vm1437_vm5 = vcmp.eq.s32.totalorder %v16246_v7, %v1431_v57  ;;  %vm1438_vm6 = vcmp.eq.s32.totalorder %v16249_v8, %v1431_v57  ;;  %vm1439_vm7 = vcmp.eq.s32.totalorder %v16252_v9, %v1431_v57 }
 0x55d   : >> { %vm1440_vm8 = vcmp.eq.s32.totalorder %v16255_v10, %v1431_v57  ;;  %vm1441_vm9 = vcmp.eq.s32.totalorder %v16258_v11, %v1431_v57  ;;  %vm1442_vm10 = vcmp.eq.s32.totalorder %v16261_v12, %v1431_v57  ;;  %vm1443_vm11 = vcmp.eq.s32.totalorder %v16264_v13, %v1431_v57 }
 0x55e   : >> { %vm1444_vm12 = vcmp.eq.s32.totalorder %v16267_v14, %v1431_v57  ;;  %vm1445_vm13 = vcmp.eq.s32.totalorder %v16270_v15, %v1431_v57  ;;  %vm1446_vm14 = vcmp.eq.s32.totalorder %v16273_v16, %v1431_v57  ;;  %vm1447_vm15 = vcmp.eq.s32.totalorder %v16276_v17, %v1431_v57 }
 0x55f   : >> { %v1452_v59 = vsel %vm1432_vm0, %v1451_v58, 0.0  ;;  %v1453_v60 = vsel %vm1433_vm1, %v1451_v58, 0.0  ;;  %v1454_v61 = vsel %vm1434_vm2, %v1451_v58, 0.0  ;;  %v1455_v62 = vsel %vm1435_vm3, %v1451_v58, 0.0 }
 0x560   : >> { %v1456_v63 = vsel %vm1436_vm4, %v1451_v58, 0.0  ;;  %v1457_v0 = vsel %vm1437_vm5, %v1451_v58, 0.0  ;;  %v1458_v1 = vsel %vm1438_vm6, %v1451_v58, 0.0  ;;  %v1459_v34 = vsel %vm1439_vm7, %v1451_v58, 0.0 }
 0x561   : >> { %v1460_v35 = vsel %vm1440_vm8, %v1451_v58, 0.0  ;;  %v1461_v36 = vsel %vm1441_vm9, %v1451_v58, 0.0  ;;  %v1462_v37 = vsel %vm1442_vm10, %v1451_v58, 0.0  ;;  %v1463_v38 = vsel %vm1443_vm11, %v1451_v58, 0.0 }
 0x562   : >> { %v1464_v55 = vsel %vm1444_vm12, %v1451_v58, 0.0  ;;  %v1465_v56 = vsel %vm1445_vm13, %v1451_v58, 0.0  ;;  %v1466_v21 = vsel %vm1446_vm14, %v1451_v58, 0.0  ;;  %v1467_v29 = vsel %vm1447_vm15, %v1451_v58, 0.0 }
 0x563   : >> { %v1468_v31 = vadd.f32 %v15137_v54, %v1452_v59   ;;  %v1469_v23 = vadd.f32 %v15133_v53, %v1453_v60   ;;  %v1470_v33 = vadd.f32 %v15129_v52, %v1454_v61   ;;  %v1471_v24 = vadd.f32 %v15125_v51, %v1455_v62  }
 0x564   : >> { %v1472_v26 = vadd.f32 %v15121_v50, %v1456_v63   ;;  %v1473_v28 = vadd.f32 %v15117_v49, %v1457_v0   ;;  %v1474_v20 = vadd.f32 %v15113_v48, %v1458_v1   ;;  %v1475_v19 = vadd.f32 %v15109_v47, %v1459_v34   ;;  %1405 = sbr.rel (!%p17175_p2) target bundleno = 1366 (0x556), region = 322 }
 0x565   : >> { %v1476_v27 = vadd.f32 %v15105_v46, %v1460_v35   ;;  %v1477_v30 = vadd.f32 %v15101_v45, %v1461_v36   ;;  %v1478_v25 = vadd.f32 %v15097_v44, %v1462_v37   ;;  %v1479_v39 = vadd.f32 %v15093_v43, %v1463_v38   ;;  %1484 = vxpose.xlu0.b32.start [1/16] (%p17175_p2), %v1468_v31, 128 }
 0x566   : >> { %v1480_v22 = vadd.f32 %v15089_v42, %v1464_v55   ;;  %v1481_v18 = vadd.f32 %v15085_v41, %v1465_v56   ;;  %v1482_v57 = vadd.f32 %v15081_v40, %v1466_v21   ;;  %v1483_v58 = vadd.f32 %v15077_v32, %v1467_v29  }
 0x567   : >> { %v20443_v43 = vmov %v1479_v39  ;;  %v20444_v44 = vmov %v1478_v25  ;;  %v20445_v45 = vmov %v1477_v30  ;;  %v20446_v46 = vmov %v1476_v27 }
 0x568   : >> { %v20439_v32 = vmov %v1483_v58  ;;  %v20440_v40 = vmov %v1482_v57  ;;  %v20441_v41 = vmov %v1481_v18  ;;  %v20442_v42 = vmov %v1480_v22 }
 0x569   : >> { %v20447_v47 = vmov %v1475_v19  ;;  %v20448_v48 = vmov %v1474_v20  ;;  %v20449_v49 = vmov %v1473_v28  ;;  %v20450_v50 = vmov %v1472_v26  ;;  %1485 = vxpose.xlu0.b32.cont [2/16] (%p17175_p2), %v1469_v23, 128 }
 0x56a   : >> { %v20451_v51 = vmov %v1471_v24  ;;  %v20452_v52 = vmov %v1470_v33  ;;  %v20453_v53 = vmov %v1469_v23  ;;  %v20454_v54 = vmov %v1468_v31 }
 0x56b   : > { %v17247_v32 = vmov 0.0   ;;  %v17249_v40 = vmov 0.0   ;;  %v17251_v41 = vmov 0.0   ;;  %v17253_v42 = vmov 0.0  }
 0x56c   : > { %v17255_v43 = vmov 0.0   ;;  %v17257_v44 = vmov 0.0   ;;  %v17259_v45 = vmov 0.0   ;;  %v17261_v46 = vmov 0.0  }
 0x56d   : > { %1486 = vxpose.xlu0.b32.cont [3/16] %v1470_v33, 128  ;;  %v17263_v47 = vmov 0.0   ;;  %v17265_v48 = vmov 0.0   ;;  %v17267_v49 = vmov 0.0   ;;  %v17269_v50 = vmov 0.0  }
 0x56e   : > { %v17271_v51 = vmov 0.0   ;;  %v17273_v52 = vmov 0.0   ;;  %v17275_v53 = vmov 0.0   ;;  %v17277_v54 = vmov 0.0  }
 0x571   : > { %1487 = vxpose.xlu0.b32.cont [4/16] %v1471_v24, 128 }
 0x575   : > { %1488 = vxpose.xlu0.b32.cont [5/16] %v1472_v26, 128 }
 0x579   : > { %1489 = vxpose.xlu0.b32.cont [6/16] %v1473_v28, 128 }
 0x57d   : > { %1490 = vxpose.xlu0.b32.cont [7/16] %v1474_v20, 128 }
 0x581   : > { %1491 = vxpose.xlu0.b32.cont [8/16] %v1475_v19, 128 }
 0x585   : > { %1492 = vxpose.xlu0.b32.cont [9/16] %v1476_v27, 128 }
 0x589   : > { %1493 = vxpose.xlu0.b32.cont [10/16] %v1477_v30, 128 }
 0x58d   : > { %1494 = vxpose.xlu0.b32.cont [11/16] %v1478_v25, 128 }
 0x591   : > { %1495 = vxpose.xlu0.b32.cont [12/16] %v1479_v39, 128 }
 0x595   : > { %1496 = vxpose.xlu0.b32.cont [13/16] %v1480_v22, 128 }
 0x599   : > { %1497 = vxpose.xlu0.b32.cont [14/16] %v1481_v18, 128 }
 0x59d   : > { %1498 = vxpose.xlu0.b32.cont [15/16] %v1482_v57, 128 }
 0x5a1   : > { %1499 = vxpose.xlu0.b32.end [16/16] %v1483_v58, 128 }
 0x5e5   : > { %v17215_v29 = vpop.trf.xlu0 }
 0x5e6   : > { %20455 = vst [vmem:[#allocation122_spill] sm:$0xff] %v17215_v29 }
 0x5e9   : > { %v17217_v21 = vpop.trf.xlu0 }
 0x5ea   : > { %20456 = vst [vmem:[#allocation123_spill] sm:$0xff] %v17217_v21 }
 0x5ed   : > { %v17219_v31 = vpop.trf.xlu0 }
 0x5ee   : > { %20457 = vst [vmem:[#allocation124_spill] sm:$0xff] %v17219_v31 }
 0x5f1   : > { %v17221_v33 = vpop.trf.xlu0 }
 0x5f2   : > { %20458 = vst [vmem:[#allocation125_spill] sm:$0xff] %v17221_v33 }
 0x5f5   : > { %v17223_v26 = vpop.trf.xlu0 }
 0x5f6   : > { %20459 = vst [vmem:[#allocation126_spill] sm:$0xff] %v17223_v26 }
 0x5f9   : > { %v17225_v20 = vpop.trf.xlu0 }
 0x5fa   : > { %20460 = vst [vmem:[#allocation127_spill] sm:$0xff] %v17225_v20 }
 0x5fd   : > { %v17227_v27 = vpop.trf.xlu0 }
 0x5fe   : > { %20461 = vst [vmem:[#allocation128_spill] sm:$0xff] %v17227_v27 }
 0x601   : > { %v17229_v25 = vpop.trf.xlu0 }
 0x602   : > { %20462 = vst [vmem:[#allocation129_spill] sm:$0xff] %v17229_v25 }
 0x605   : > { %v17231_v22 = vpop.trf.xlu0 }
 0x606   : > { %20463 = vst [vmem:[#allocation130_spill] sm:$0xff] %v17231_v22 }
 0x609   : > { %v17233_v18 = vpop.trf.xlu0 }
 0x60a   : > { %20464 = vst [vmem:[#allocation131_spill] sm:$0xff] %v17233_v18 }
 0x60d   : > { %v17235_v39 = vpop.trf.xlu0 }
 0x60e   : > { %20465 = vst [vmem:[#allocation132_spill] sm:$0xff] %v17235_v39 }
 0x611   : > { %v17237_v30 = vpop.trf.xlu0 }
 0x612   : > { %20466 = vst [vmem:[#allocation133_spill] sm:$0xff] %v17237_v30 }
 0x615   : > { %v17239_v19 = vpop.trf.xlu0 }
 0x616   : > { %20467 = vst [vmem:[#allocation134_spill] sm:$0xff] %v17239_v19 }
 0x619   : > { %v17241_v28 = vpop.trf.xlu0 }
 0x61a   : > { %20468 = vst [vmem:[#allocation135_spill] sm:$0xff] %v17241_v28 }
 0x61d   : > { %v17243_v24 = vpop.trf.xlu0 }
 0x61e   : > { %20469 = vst [vmem:[#allocation136_spill] sm:$0xff] %v17243_v24 }
 0x621   : > { %v17245_v23 = vpop.trf.xlu0 }
 0x622   : > { %20470 = vst [vmem:[#allocation137_spill] sm:$0xff] %v17245_v23 }
 0x623 LB: >> { %s10551_s23 = sshll.u32 %s15209_s9, 3  ;;  %v1545_v61 = vsub.s32 5, %v16231_v2  ;;  %s1521_s9 = sadd.s32 1, %s15209_s9   ;;  %s15209_s9 = sphi %s17279_s9, %s1521_s9   ;;  %v15205_v54 = vphi %v17277_v54, %v20487_v54   ;;  %v15201_v53 = vphi %v17275_v53, %v20486_v53   ;;  %v15197_v52 = vphi %v17273_v52, %v20485_v52   ;;  %v15193_v51 = vphi %v17271_v51, %v20484_v51   ;;  %v15189_v50 = vphi %v17269_v50, %v20483_v50   ;;  %v15185_v49 = vphi %v17267_v49, %v20482_v49   ;;  %v15181_v48 = vphi %v17265_v48, %v20481_v48   ;;  %v15177_v47 = vphi %v17263_v47, %v20480_v47   ;;  %v15173_v46 = vphi %v17261_v46, %v20479_v46   ;;  %v15169_v45 = vphi %v17259_v45, %v20478_v45   ;;  %v15165_v44 = vphi %v17257_v44, %v20477_v44   ;;  %v15161_v43 = vphi %v17255_v43, %v20476_v43   ;;  %v15157_v42 = vphi %v17253_v42, %v20475_v42   ;;  %v15153_v41 = vphi %v17251_v41, %v20474_v41   ;;  %v15149_v40 = vphi %v17249_v40, %v20473_v40   ;;  %v15145_v32 = vphi %v17247_v32, %v20472_v32  }
 0x624   : >> { %s1539_s28 = scalar_lea.vmem %s15926_s20, %s10551_s23 [#allocation3]  ;;  %s1541_s13 = scalar_lea.vmem %s15933_s29, %s10551_s23 [#allocation6] }
 0x625   : >> { %v1540_v59 = vld [vmem:[%s1539_s28] sm:$0xff]  ;;  %p17368_p6 = scmp.ge.s32.totalorder %s1521_s9, 64  }
 0x626   : >> { %v1542_v60 = vld [vmem:[%s1541_s13] sm:$0xff]  ;;  %v1546_v62 = vrot.slane %v1540_v59, %v1545_v61  ;;  %s17472_s0 = smov (%p17368_p6), 0  }
 0x627   : >> { %v1566_v63 = vrot.slane %v1542_v60, %v1545_v61 }
 0x628   : >> { %vm1547_vm0 = vcmp.eq.s32.totalorder %v16231_v2, %v1546_v62  ;;  %vm1548_vm1 = vcmp.eq.s32.totalorder %v16234_v3, %v1546_v62  ;;  %vm1549_vm2 = vcmp.eq.s32.totalorder %v16237_v4, %v1546_v62  ;;  %vm1550_vm3 = vcmp.eq.s32.totalorder %v16240_v5, %v1546_v62 }
 0x629   : >> { %vm1551_vm4 = vcmp.eq.s32.totalorder %v16243_v6, %v1546_v62  ;;  %vm1552_vm5 = vcmp.eq.s32.totalorder %v16246_v7, %v1546_v62  ;;  %vm1553_vm6 = vcmp.eq.s32.totalorder %v16249_v8, %v1546_v62  ;;  %vm1554_vm7 = vcmp.eq.s32.totalorder %v16252_v9, %v1546_v62 }
 0x62a   : >> { %vm1555_vm8 = vcmp.eq.s32.totalorder %v16255_v10, %v1546_v62  ;;  %vm1556_vm9 = vcmp.eq.s32.totalorder %v16258_v11, %v1546_v62  ;;  %vm1557_vm10 = vcmp.eq.s32.totalorder %v16261_v12, %v1546_v62  ;;  %vm1558_vm11 = vcmp.eq.s32.totalorder %v16264_v13, %v1546_v62 }
 0x62b   : >> { %vm1559_vm12 = vcmp.eq.s32.totalorder %v16267_v14, %v1546_v62  ;;  %vm1560_vm13 = vcmp.eq.s32.totalorder %v16270_v15, %v1546_v62  ;;  %vm1561_vm14 = vcmp.eq.s32.totalorder %v16273_v16, %v1546_v62  ;;  %vm1562_vm15 = vcmp.eq.s32.totalorder %v16276_v17, %v1546_v62 }
 0x62c   : >> { %v1567_v0 = vsel %vm1547_vm0, %v1566_v63, 0.0  ;;  %v1568_v1 = vsel %vm1548_vm1, %v1566_v63, 0.0  ;;  %v1569_v34 = vsel %vm1549_vm2, %v1566_v63, 0.0  ;;  %v1570_v35 = vsel %vm1550_vm3, %v1566_v63, 0.0 }
 0x62d   : >> { %v1571_v36 = vsel %vm1551_vm4, %v1566_v63, 0.0  ;;  %v1572_v37 = vsel %vm1552_vm5, %v1566_v63, 0.0  ;;  %v1573_v38 = vsel %vm1553_vm6, %v1566_v63, 0.0  ;;  %v1574_v55 = vsel %vm1554_vm7, %v1566_v63, 0.0 }
 0x62e   : >> { %v1575_v56 = vsel %vm1555_vm8, %v1566_v63, 0.0  ;;  %v1576_v57 = vsel %vm1556_vm9, %v1566_v63, 0.0  ;;  %v1577_v58 = vsel %vm1557_vm10, %v1566_v63, 0.0  ;;  %v1578_v59 = vsel %vm1558_vm11, %v1566_v63, 0.0 }
 0x62f   : >> { %v1579_v60 = vsel %vm1559_vm12, %v1566_v63, 0.0  ;;  %v1580_v61 = vsel %vm1560_vm13, %v1566_v63, 0.0  ;;  %v1581_v23 = vsel %vm1561_vm14, %v1566_v63, 0.0  ;;  %v1582_v24 = vsel %vm1562_vm15, %v1566_v63, 0.0 }
 0x630   : >> { %v1583_v28 = vadd.f32 %v15205_v54, %v1567_v0   ;;  %v1584_v19 = vadd.f32 %v15201_v53, %v1568_v1   ;;  %v1585_v30 = vadd.f32 %v15197_v52, %v1569_v34   ;;  %v1586_v39 = vadd.f32 %v15193_v51, %v1570_v35  }
 0x631   : >> { %v1587_v18 = vadd.f32 %v15189_v50, %v1571_v36   ;;  %v1588_v22 = vadd.f32 %v15185_v49, %v1572_v37   ;;  %v1589_v25 = vadd.f32 %v15181_v48, %v1573_v38   ;;  %v1590_v27 = vadd.f32 %v15177_v47, %v1574_v55   ;;  %1520 = sbr.rel (!%p17368_p6) target bundleno = 1571 (0x623), region = 333 }
 0x632   : >> { %v1591_v20 = vadd.f32 %v15173_v46, %v1575_v56   ;;  %v1592_v26 = vadd.f32 %v15169_v45, %v1576_v57   ;;  %v1593_v33 = vadd.f32 %v15165_v44, %v1577_v58   ;;  %v1594_v31 = vadd.f32 %v15161_v43, %v1578_v59   ;;  %1599 = vxpose.xlu0.b32.start [1/16] (%p17368_p6), %v1583_v28, 128 }
 0x633   : >> { %v1595_v21 = vadd.f32 %v15157_v42, %v1579_v60   ;;  %v1596_v29 = vadd.f32 %v15153_v41, %v1580_v61   ;;  %v1597_v62 = vadd.f32 %v15149_v40, %v1581_v23   ;;  %v1598_v63 = vadd.f32 %v15145_v32, %v1582_v24  }
 0x634   : >> { %v20476_v43 = vmov %v1594_v31  ;;  %v20477_v44 = vmov %v1593_v33  ;;  %v20478_v45 = vmov %v1592_v26  ;;  %v20479_v46 = vmov %v1591_v20 }
 0x635   : >> { %v20472_v32 = vmov %v1598_v63  ;;  %v20473_v40 = vmov %v1597_v62  ;;  %v20474_v41 = vmov %v1596_v29  ;;  %v20475_v42 = vmov %v1595_v21 }
 0x636   : >> { %v20480_v47 = vmov %v1590_v27  ;;  %v20481_v48 = vmov %v1589_v25  ;;  %v20482_v49 = vmov %v1588_v22  ;;  %v20483_v50 = vmov %v1587_v18  ;;  %1600 = vxpose.xlu0.b32.cont [2/16] (%p17368_p6), %v1584_v19, 128 }
 0x637   : >> { %v20484_v51 = vmov %v1586_v39  ;;  %v20485_v52 = vmov %v1585_v30  ;;  %v20486_v53 = vmov %v1584_v19  ;;  %v20487_v54 = vmov %v1583_v28 }
 0x638   : > { %v17440_v32 = vmov 0.0   ;;  %v17442_v40 = vmov 0.0   ;;  %v17444_v41 = vmov 0.0   ;;  %v17446_v42 = vmov 0.0  }
 0x639   : > { %v17448_v43 = vmov 0.0   ;;  %v17450_v44 = vmov 0.0   ;;  %v17452_v45 = vmov 0.0   ;;  %v17454_v46 = vmov 0.0  }
 0x63a   : > { %1601 = vxpose.xlu0.b32.cont [3/16] %v1585_v30, 128  ;;  %v17456_v47 = vmov 0.0   ;;  %v17458_v48 = vmov 0.0   ;;  %v17460_v49 = vmov 0.0   ;;  %v17462_v50 = vmov 0.0  }
 0x63b   : > { %v17464_v51 = vmov 0.0   ;;  %v17466_v52 = vmov 0.0   ;;  %v17468_v53 = vmov 0.0   ;;  %v17470_v54 = vmov 0.0  }
 0x63e   : > { %1602 = vxpose.xlu0.b32.cont [4/16] %v1586_v39, 128 }
 0x642   : > { %1603 = vxpose.xlu0.b32.cont [5/16] %v1587_v18, 128 }
 0x646   : > { %1604 = vxpose.xlu0.b32.cont [6/16] %v1588_v22, 128 }
 0x64a   : > { %1605 = vxpose.xlu0.b32.cont [7/16] %v1589_v25, 128 }
 0x64e   : > { %1606 = vxpose.xlu0.b32.cont [8/16] %v1590_v27, 128 }
 0x652   : > { %1607 = vxpose.xlu0.b32.cont [9/16] %v1591_v20, 128 }
 0x656   : > { %1608 = vxpose.xlu0.b32.cont [10/16] %v1592_v26, 128 }
 0x65a   : > { %1609 = vxpose.xlu0.b32.cont [11/16] %v1593_v33, 128 }
 0x65e   : > { %1610 = vxpose.xlu0.b32.cont [12/16] %v1594_v31, 128 }
 0x662   : > { %1611 = vxpose.xlu0.b32.cont [13/16] %v1595_v21, 128 }
 0x666   : > { %1612 = vxpose.xlu0.b32.cont [14/16] %v1596_v29, 128 }
 0x66a   : > { %1613 = vxpose.xlu0.b32.cont [15/16] %v1597_v62, 128 }
 0x66e   : > { %1614 = vxpose.xlu0.b32.end [16/16] %v1598_v63, 128 }
 0x6b2   : > { %v17408_v24 = vpop.trf.xlu0 }
 0x6b3   : > { %20488 = vst [vmem:[#allocation138_spill] sm:$0xff] %v17408_v24 }
 0x6b6   : > { %v17410_v23 = vpop.trf.xlu0 }
 0x6b7   : > { %20489 = vst [vmem:[#allocation139_spill] sm:$0xff] %v17410_v23 }
 0x6ba   : > { %v17412_v28 = vpop.trf.xlu0 }
 0x6bb   : > { %20490 = vst [vmem:[#allocation140_spill] sm:$0xff] %v17412_v28 }
 0x6be   : > { %v17414_v30 = vpop.trf.xlu0 }
 0x6bf   : > { %20491 = vst [vmem:[#allocation141_spill] sm:$0xff] %v17414_v30 }
 0x6c2   : > { %v17416_v18 = vpop.trf.xlu0 }
 0x6c3   : > { %20492 = vst [vmem:[#allocation142_spill] sm:$0xff] %v17416_v18 }
 0x6c6   : > { %v17418_v25 = vpop.trf.xlu0 }
 0x6c7   : > { %20493 = vst [vmem:[#allocation143_spill] sm:$0xff] %v17418_v25 }
 0x6ca   : > { %v17420_v20 = vpop.trf.xlu0 }
 0x6cb   : > { %20494 = vst [vmem:[#allocation144_spill] sm:$0xff] %v17420_v20 }
 0x6ce   : > { %v17422_v33 = vpop.trf.xlu0 }
 0x6cf   : > { %20495 = vst [vmem:[#allocation145_spill] sm:$0xff] %v17422_v33 }
 0x6d2   : > { %v17424_v21 = vpop.trf.xlu0 }
 0x6d3   : > { %20496 = vst [vmem:[#allocation146_spill] sm:$0xff] %v17424_v21 }
 0x6d6   : > { %v17426_v29 = vpop.trf.xlu0 }
 0x6d7   : > { %20497 = vst [vmem:[#allocation147_spill] sm:$0xff] %v17426_v29 }
 0x6da   : > { %v17428_v31 = vpop.trf.xlu0 }
 0x6db   : > { %20498 = vst [vmem:[#allocation148_spill] sm:$0xff] %v17428_v31 }
 0x6de   : > { %v17430_v26 = vpop.trf.xlu0 }
 0x6df   : > { %20499 = vst [vmem:[#allocation149_spill] sm:$0xff] %v17430_v26 }
 0x6e2   : > { %v17432_v27 = vpop.trf.xlu0 }
 0x6e3   : > { %20500 = vst [vmem:[#allocation150_spill] sm:$0xff] %v17432_v27 }
 0x6e6   : > { %v17434_v22 = vpop.trf.xlu0 }
 0x6e7   : > { %20501 = vst [vmem:[#allocation151_spill] sm:$0xff] %v17434_v22 }
 0x6ea   : > { %v17436_v39 = vpop.trf.xlu0 }
 0x6eb   : > { %20502 = vst [vmem:[#allocation152_spill] sm:$0xff] %v17436_v39 }
 0x6ee   : > { %v17438_v19 = vpop.trf.xlu0 }
 0x6ef   : > { %20503 = vst [vmem:[#allocation153_spill] sm:$0xff] %v17438_v19 }
 0x6f0 LB: >> { %s10552_s22 = sshll.u32 %s15277_s0, 3  ;;  %v1660_v34 = vsub.s32 6, %v16231_v2  ;;  %s1636_s0 = sadd.s32 1, %s15277_s0   ;;  %s15277_s0 = sphi %s17472_s0, %s1636_s0   ;;  %v15273_v54 = vphi %v17470_v54, %v20520_v54   ;;  %v15269_v53 = vphi %v17468_v53, %v20519_v53   ;;  %v15265_v52 = vphi %v17466_v52, %v20518_v52   ;;  %v15261_v51 = vphi %v17464_v51, %v20517_v51   ;;  %v15257_v50 = vphi %v17462_v50, %v20516_v50   ;;  %v15253_v49 = vphi %v17460_v49, %v20515_v49   ;;  %v15249_v48 = vphi %v17458_v48, %v20514_v48   ;;  %v15245_v47 = vphi %v17456_v47, %v20513_v47   ;;  %v15241_v46 = vphi %v17454_v46, %v20512_v46   ;;  %v15237_v45 = vphi %v17452_v45, %v20511_v45   ;;  %v15233_v44 = vphi %v17450_v44, %v20510_v44   ;;  %v15229_v43 = vphi %v17448_v43, %v20509_v43   ;;  %v15225_v42 = vphi %v17446_v42, %v20508_v42   ;;  %v15221_v41 = vphi %v17444_v41, %v20507_v41   ;;  %v15217_v40 = vphi %v17442_v40, %v20506_v40   ;;  %v15213_v32 = vphi %v17440_v32, %v20505_v32  }
 0x6f1   : >> { %s1654_s24 = scalar_lea.vmem %s15926_s20, %s10552_s22 [#allocation3]  ;;  %s1656_s26 = scalar_lea.vmem %s15933_s29, %s10552_s22 [#allocation6] }
 0x6f2   : >> { %v1655_v0 = vld [vmem:[%s1654_s24] sm:$0xff]  ;;  %p17561_p1 = scmp.ge.s32.totalorder %s1636_s0, 64  }
 0x6f3   : >> { %v1657_v1 = vld [vmem:[%s1656_s26] sm:$0xff]  ;;  %v1661_v35 = vrot.slane %v1655_v0, %v1660_v34  ;;  %s17665_s1 = smov (%p17561_p1), 0  }
 0x6f4   : >> { %v1681_v36 = vrot.slane %v1657_v1, %v1660_v34 }
 0x6f5   : >> { %vm1662_vm0 = vcmp.eq.s32.totalorder %v16231_v2, %v1661_v35  ;;  %vm1663_vm1 = vcmp.eq.s32.totalorder %v16234_v3, %v1661_v35  ;;  %vm1664_vm2 = vcmp.eq.s32.totalorder %v16237_v4, %v1661_v35  ;;  %vm1665_vm3 = vcmp.eq.s32.totalorder %v16240_v5, %v1661_v35 }
 0x6f6   : >> { %vm1666_vm4 = vcmp.eq.s32.totalorder %v16243_v6, %v1661_v35  ;;  %vm1667_vm5 = vcmp.eq.s32.totalorder %v16246_v7, %v1661_v35  ;;  %vm1668_vm6 = vcmp.eq.s32.totalorder %v16249_v8, %v1661_v35  ;;  %vm1669_vm7 = vcmp.eq.s32.totalorder %v16252_v9, %v1661_v35 }
 0x6f7   : >> { %vm1670_vm8 = vcmp.eq.s32.totalorder %v16255_v10, %v1661_v35  ;;  %vm1671_vm9 = vcmp.eq.s32.totalorder %v16258_v11, %v1661_v35  ;;  %vm1672_vm10 = vcmp.eq.s32.totalorder %v16261_v12, %v1661_v35  ;;  %vm1673_vm11 = vcmp.eq.s32.totalorder %v16264_v13, %v1661_v35 }
 0x6f8   : >> { %vm1674_vm12 = vcmp.eq.s32.totalorder %v16267_v14, %v1661_v35  ;;  %vm1675_vm13 = vcmp.eq.s32.totalorder %v16270_v15, %v1661_v35  ;;  %vm1676_vm14 = vcmp.eq.s32.totalorder %v16273_v16, %v1661_v35  ;;  %vm1677_vm15 = vcmp.eq.s32.totalorder %v16276_v17, %v1661_v35 }
 0x6f9   : >> { %v1682_v37 = vsel %vm1662_vm0, %v1681_v36, 0.0  ;;  %v1683_v38 = vsel %vm1663_vm1, %v1681_v36, 0.0  ;;  %v1684_v55 = vsel %vm1664_vm2, %v1681_v36, 0.0  ;;  %v1685_v56 = vsel %vm1665_vm3, %v1681_v36, 0.0 }
 0x6fa   : >> { %v1686_v57 = vsel %vm1666_vm4, %v1681_v36, 0.0  ;;  %v1687_v58 = vsel %vm1667_vm5, %v1681_v36, 0.0  ;;  %v1688_v59 = vsel %vm1668_vm6, %v1681_v36, 0.0  ;;  %v1689_v60 = vsel %vm1669_vm7, %v1681_v36, 0.0 }
 0x6fb   : >> { %v1690_v61 = vsel %vm1670_vm8, %v1681_v36, 0.0  ;;  %v1691_v62 = vsel %vm1671_vm9, %v1681_v36, 0.0  ;;  %v1692_v63 = vsel %vm1672_vm10, %v1681_v36, 0.0  ;;  %v1693_v0 = vsel %vm1673_vm11, %v1681_v36, 0.0 }
 0x6fc   : >> { %v1694_v1 = vsel %vm1674_vm12, %v1681_v36, 0.0  ;;  %v1695_v34 = vsel %vm1675_vm13, %v1681_v36, 0.0  ;;  %v1696_v19 = vsel %vm1676_vm14, %v1681_v36, 0.0  ;;  %v1697_v39 = vsel %vm1677_vm15, %v1681_v36, 0.0 }
 0x6fd   : >> { %v1698_v22 = vadd.f32 %v15273_v54, %v1682_v37   ;;  %v1699_v27 = vadd.f32 %v15269_v53, %v1683_v38   ;;  %v1700_v26 = vadd.f32 %v15265_v52, %v1684_v55   ;;  %v1701_v31 = vadd.f32 %v15261_v51, %v1685_v56  }
 0x6fe   : >> { %v1702_v29 = vadd.f32 %v15257_v50, %v1686_v57   ;;  %v1703_v21 = vadd.f32 %v15253_v49, %v1687_v58   ;;  %v1704_v33 = vadd.f32 %v15249_v48, %v1688_v59   ;;  %v1705_v20 = vadd.f32 %v15245_v47, %v1689_v60   ;;  %1635 = sbr.rel (!%p17561_p1) target bundleno = 1776 (0x6f0), region = 344 }
 0x6ff   : >> { %v1706_v25 = vadd.f32 %v15241_v46, %v1690_v61   ;;  %v1707_v18 = vadd.f32 %v15237_v45, %v1691_v62   ;;  %v1708_v30 = vadd.f32 %v15233_v44, %v1692_v63   ;;  %v1709_v28 = vadd.f32 %v15229_v43, %v1693_v0   ;;  %1714 = vxpose.xlu0.b32.start [1/16] (%p17561_p1), %v1698_v22, 128 }
 0x700   : >> { %v1710_v23 = vadd.f32 %v15225_v42, %v1694_v1   ;;  %v1711_v24 = vadd.f32 %v15221_v41, %v1695_v34   ;;  %v1712_v35 = vadd.f32 %v15217_v40, %v1696_v19   ;;  %v1713_v36 = vadd.f32 %v15213_v32, %v1697_v39  }
 0x701   : >> { %v20509_v43 = vmov %v1709_v28  ;;  %v20510_v44 = vmov %v1708_v30  ;;  %v20511_v45 = vmov %v1707_v18  ;;  %v20512_v46 = vmov %v1706_v25 }
 0x702   : >> { %v20505_v32 = vmov %v1713_v36  ;;  %v20506_v40 = vmov %v1712_v35  ;;  %v20507_v41 = vmov %v1711_v24  ;;  %v20508_v42 = vmov %v1710_v23 }
 0x703   : >> { %v20513_v47 = vmov %v1705_v20  ;;  %v20514_v48 = vmov %v1704_v33  ;;  %v20515_v49 = vmov %v1703_v21  ;;  %v20516_v50 = vmov %v1702_v29  ;;  %1715 = vxpose.xlu0.b32.cont [2/16] (%p17561_p1), %v1699_v27, 128 }
 0x704   : >> { %v20517_v51 = vmov %v1701_v31  ;;  %v20518_v52 = vmov %v1700_v26  ;;  %v20519_v53 = vmov %v1699_v27  ;;  %v20520_v54 = vmov %v1698_v22 }
 0x705   : > { %v17633_v32 = vmov 0.0   ;;  %v17635_v40 = vmov 0.0   ;;  %v17637_v41 = vmov 0.0   ;;  %v17639_v42 = vmov 0.0  }
 0x706   : > { %v17641_v43 = vmov 0.0   ;;  %v17643_v44 = vmov 0.0   ;;  %v17645_v45 = vmov 0.0   ;;  %v17647_v46 = vmov 0.0  }
 0x707   : > { %1716 = vxpose.xlu0.b32.cont [3/16] %v1700_v26, 128  ;;  %v17649_v47 = vmov 0.0   ;;  %v17651_v48 = vmov 0.0   ;;  %v17653_v49 = vmov 0.0   ;;  %v17655_v50 = vmov 0.0  }
 0x708   : > { %v17657_v51 = vmov 0.0   ;;  %v17659_v52 = vmov 0.0   ;;  %v17661_v53 = vmov 0.0   ;;  %v17663_v54 = vmov 0.0  }
 0x70b   : > { %1717 = vxpose.xlu0.b32.cont [4/16] %v1701_v31, 128 }
 0x70f   : > { %1718 = vxpose.xlu0.b32.cont [5/16] %v1702_v29, 128 }
 0x713   : > { %1719 = vxpose.xlu0.b32.cont [6/16] %v1703_v21, 128 }
 0x717   : > { %1720 = vxpose.xlu0.b32.cont [7/16] %v1704_v33, 128 }
 0x71b   : > { %1721 = vxpose.xlu0.b32.cont [8/16] %v1705_v20, 128 }
 0x71f   : > { %1722 = vxpose.xlu0.b32.cont [9/16] %v1706_v25, 128 }
 0x723   : > { %1723 = vxpose.xlu0.b32.cont [10/16] %v1707_v18, 128 }
 0x727   : > { %1724 = vxpose.xlu0.b32.cont [11/16] %v1708_v30, 128 }
 0x72b   : > { %1725 = vxpose.xlu0.b32.cont [12/16] %v1709_v28, 128 }
 0x72f   : > { %1726 = vxpose.xlu0.b32.cont [13/16] %v1710_v23, 128 }
 0x733   : > { %1727 = vxpose.xlu0.b32.cont [14/16] %v1711_v24, 128 }
 0x737   : > { %1728 = vxpose.xlu0.b32.cont [15/16] %v1712_v35, 128 }
 0x73b   : > { %1729 = vxpose.xlu0.b32.end [16/16] %v1713_v36, 128 }
 0x77f   : > { %v17601_v39 = vpop.trf.xlu0 }
 0x783   : > { %v17603_v19 = vpop.trf.xlu0 }
 0x787   : > { %v17605_v22 = vpop.trf.xlu0 }
 0x78b   : > { %v17607_v26 = vpop.trf.xlu0 }
 0x78f   : > { %v17609_v29 = vpop.trf.xlu0 }
 0x793   : > { %v17611_v33 = vpop.trf.xlu0 }
 0x797   : > { %v17613_v25 = vpop.trf.xlu0 }
 0x79b   : > { %v17615_v30 = vpop.trf.xlu0 }
 0x79f   : > { %v17617_v23 = vpop.trf.xlu0 }
 0x7a3   : > { %v17619_v24 = vpop.trf.xlu0 }
 0x7a7   : > { %v17621_v28 = vpop.trf.xlu0 }
 0x7ab   : > { %v17623_v18 = vpop.trf.xlu0 }
 0x7af   : > { %v17625_v20 = vpop.trf.xlu0 }
 0x7b3   : > { %v17627_v21 = vpop.trf.xlu0 }
 0x7b7   : > { %v17629_v31 = vpop.trf.xlu0 }
 0x7bb   : > { %v17631_v27 = vpop.trf.xlu0 }
 0x7bc LB: >> { %v20521_v15 = vld [vmem:[#allocation57_spill] sm:$0xff]  ;;  %v20522_v14 = vld [vmem:[#allocation56_spill] sm:$0xff]  ;;  %v20523_v13 = vld [vmem:[#allocation55_spill] sm:$0xff]  ;;  %s10553_s6 = sshll.u32 %s15345_s1, 3  ;;  %v1775_v55 = vsub.s32 7, %v16231_v2  ;;  %s1751_s1 = sadd.s32 1, %s15345_s1   ;;  %v15329_v51 = vphi %v17657_v51, %v20559_v51   ;;  %v15325_v50 = vphi %v17655_v50, %v20558_v50   ;;  %v15321_v49 = vphi %v17653_v49, %v20557_v49   ;;  %v15317_v48 = vphi %v17651_v48, %v20556_v48   ;;  %v15313_v47 = vphi %v17649_v47, %v20555_v47   ;;  %v15309_v46 = vphi %v17647_v46, %v20554_v46   ;;  %v15305_v45 = vphi %v17645_v45, %v20553_v45   ;;  %v15301_v44 = vphi %v17643_v44, %v20552_v44   ;;  %v15297_v43 = vphi %v17641_v43, %v20551_v43   ;;  %v15293_v42 = vphi %v17639_v42, %v20550_v42   ;;  %v15289_v41 = vphi %v17637_v41, %v20549_v41   ;;  %v15285_v40 = vphi %v17635_v40, %v20548_v40   ;;  %v15281_v32 = vphi %v17633_v32, %v20547_v32   ;;  %s15345_s1 = sphi %s17665_s1, %s1751_s1   ;;  %v15341_v54 = vphi %v17663_v54, %v20562_v54   ;;  %v15337_v53 = vphi %v17661_v53, %v20561_v53   ;;  %v15333_v52 = vphi %v17659_v52, %v20560_v52  }
 0x7bd   : >> { %v20524_v12 = vld [vmem:[#allocation54_spill] sm:$0xff]  ;;  %v20525_v11 = vld [vmem:[#allocation53_spill] sm:$0xff]  ;;  %v20526_v10 = vld [vmem:[#allocation52_spill] sm:$0xff]  ;;  %s1769_s14 = scalar_lea.vmem %s15926_s20, %s10553_s6 [#allocation3]  ;;  %s1771_s3 = scalar_lea.vmem %s15933_s29, %s10553_s6 [#allocation6] }
 0x7be   : >> { %v20527_v9 = vld [vmem:[#allocation51_spill] sm:$0xff]  ;;  %v20528_v8 = vld [vmem:[#allocation50_spill] sm:$0xff]  ;;  %v20529_v7 = vld [vmem:[#allocation49_spill] sm:$0xff]  ;;  %p17778_p3 = scmp.ge.s32.totalorder %s1751_s1, 64  }
 0x7bf   : >> { %v20530_v6 = vld [vmem:[#allocation48_spill] sm:$0xff]  ;;  %v20531_v5 = vld [vmem:[#allocation47_spill] sm:$0xff]  ;;  %v20532_v4 = vld [vmem:[#allocation46_spill] sm:$0xff]  ;;  %s15368_s20 = smov (%p17778_p3), 4   ;;  %s15369_s29 = smov (%p17778_p3), 8  }
 0x7c0   : >> { %v20533_v3 = vld [vmem:[#allocation45_spill] sm:$0xff]  ;;  %v1770_v37 = vld [vmem:[%s1769_s14] sm:$0xff]  ;;  %s15371_s15 = smov (%p17778_p3), 16   ;;  %s15372_s9 = smov (%p17778_p3), 20  }
 0x7c1   : >> { %v1772_v38 = vld [vmem:[%s1771_s3] sm:$0xff]  ;;  %v1776_v56 = vrot.slane %v1770_v37, %v1775_v55  ;;  %s15373_s23 = smov (%p17778_p3), 24   ;;  %s15374_s28 = smov (%p17778_p3), 28  }
 0x7c2   : >> { %v1796_v57 = vrot.slane %v1772_v38, %v1775_v55  ;;  %s20862_s13 = sld [smem:[#allocation42_spill]] (%p17778_p3)  ;;  %s9790_s0 = sshll.u32 (%p17778_p3), %s16280_s19, 4  ;;  %s20074_s0 = int_to_ptr.vmem [resolvable:$true] %s9790_s0 }
 0x7c3   : >> { %vm1777_vm0 = vcmp.eq.s32.totalorder %v16231_v2, %v1776_v56  ;;  %vm1778_vm1 = vcmp.eq.s32.totalorder %v20533_v3, %v1776_v56  ;;  %vm1779_vm2 = vcmp.eq.s32.totalorder %v20532_v4, %v1776_v56  ;;  %vm1780_vm3 = vcmp.eq.s32.totalorder %v20531_v5, %v1776_v56  ;;  %s20863_s26 = sld [smem:[#allocation166_spill]] (%p17778_p3)  ;;  %s9775_s1 = scalar_lea.sflag (%p17778_p3), [#allocation5], %s15922_s4 }
 0x7c4   : >> { %vm1781_vm4 = vcmp.eq.s32.totalorder %v20530_v6, %v1776_v56  ;;  %vm1782_vm5 = vcmp.eq.s32.totalorder %v20529_v7, %v1776_v56  ;;  %vm1783_vm6 = vcmp.eq.s32.totalorder %v20528_v8, %v1776_v56  ;;  %vm1784_vm7 = vcmp.eq.s32.totalorder %v20527_v9, %v1776_v56  ;;  %s14143_s6 = scalar_lea.vmem (%p17778_p3), %s20074_s0, 2048  ;;  %s15375_s14 = smov (%p17778_p3), [#allocation26]  }
 0x7c5   : >> { %vm1785_vm8 = vcmp.eq.s32.totalorder %v20526_v10, %v1776_v56  ;;  %vm1786_vm9 = vcmp.eq.s32.totalorder %v20525_v11, %v1776_v56  ;;  %vm1787_vm10 = vcmp.eq.s32.totalorder %v20524_v12, %v1776_v56  ;;  %vm1788_vm11 = vcmp.eq.s32.totalorder %v20523_v13, %v1776_v56  ;;  %p14144_p9 = scmp.ne.s32.totalorder (%p17778_p3), %s20074_s0, %s14143_s6  ;;  %s14147_s3 = sshll.u32 (%p17778_p3), %s15375_s14, 4  ;;  %s14148_s3 = int_to_ptr.vmem [resolvable:$false] %s14147_s3 }
 0x7c6   : >> { %vm1789_vm12 = vcmp.eq.s32.totalorder %v20522_v14, %v1776_v56  ;;  %vm1790_vm13 = vcmp.eq.s32.totalorder %v20521_v15, %v1776_v56  ;;  %vm1791_vm14 = vcmp.eq.s32.totalorder %v16273_v16, %v1776_v56  ;;  %vm1792_vm15 = vcmp.eq.s32.totalorder %v16276_v17, %v1776_v56  ;;  %v10996_v16 = vld [vmem:[%s15940_s2 + $0x50] sm:$0xff] (%p17778_p3)   ;;  %s14149_s5 = scalar_lea.vmem (%p17778_p3), %s14148_s3, 4096  ;;  %p14150_p4 = scmp.lt.s32.totalorder (%p17778_p3), %s20074_s0, %s14148_s3 }
 0x7c7   : >> { %v1797_v58 = vsel %vm1777_vm0, %v1796_v57, 0.0  ;;  %v1798_v59 = vsel %vm1778_vm1, %v1796_v57, 0.0  ;;  %v1799_v60 = vsel %vm1779_vm2, %v1796_v57, 0.0  ;;  %v1800_v61 = vsel %vm1780_vm3, %v1796_v57, 0.0  ;;  %v20564_v17 = vld [vmem:[#allocation74_spill] sm:$0xff] (%p17778_p3)  ;;  %p14151_p7 = scmp.lt.s32.totalorder (%p17778_p3), %s14149_s5, %s14143_s6 }
 0x7c8   : >> { %v1801_v62 = vsel %vm1781_vm4, %v1796_v57, 0.0  ;;  %v1802_v63 = vsel %vm1782_vm5, %v1796_v57, 0.0  ;;  %v1803_v0 = vsel %vm1783_vm6, %v1796_v57, 0.0  ;;  %v1804_v1 = vsel %vm1784_vm7, %v1796_v57, 0.0  ;;  %11426 = vmatprep.mubr.f32.mxu1 (%p17778_p3), %v20564_v17  ;;  %v20586_v17 = vld [vmem:[#allocation85_spill] sm:$0xff] (%p17778_p3)  ;;  %p20864_p10 = scmp.ne.s32.totalorder (%p17778_p3), %s20862_s13, 0 }
 0x7c9   : >> { %v1805_v34 = vsel %vm1785_vm8, %v1796_v57, 0.0  ;;  %v1806_v35 = vsel %vm1786_vm9, %v1796_v57, 0.0  ;;  %v1807_v36 = vsel %vm1787_vm10, %v1796_v57, 0.0  ;;  %v1808_v37 = vsel %vm1788_vm11, %v1796_v57, 0.0  ;;  %p14152_p12 = por (%p17778_p3), %p14151_p7, %p14150_p4 }
 0x7ca   : >> { %v1809_v38 = vsel %vm1789_vm12, %v1796_v57, 0.0  ;;  %v1810_v55 = vsel %vm1790_vm13, %v1796_v57, 0.0  ;;  %v1811_v3 = vsel %vm1791_vm14, %v1796_v57, 0.0  ;;  %v1812_v4 = vsel %vm1792_vm15, %v1796_v57, 0.0  ;;  %p14145_p0 = pnand (%p17778_p3), %p14144_p9, %p20864_p10 }
 0x7cb   : >> { %v1813_v5 = vadd.f32 %v15341_v54, %v1797_v58   ;;  %v1814_v6 = vadd.f32 %v15337_v53, %v1798_v59   ;;  %v1815_v7 = vadd.f32 %v15333_v52, %v1799_v60   ;;  %v1816_v8 = vadd.f32 %v15329_v51, %v1800_v61   ;;  %v20563_v61 = vld [vmem:[#allocation58_spill] sm:$0xff] (%p17778_p3) }
 0x7cc   : >> { %v17748_v50 = vadd.f32 %v15325_v50, %v1801_v62   ;;  %v17750_v49 = vadd.f32 %v15321_v49, %v1802_v63   ;;  %v17752_v48 = vadd.f32 %v15317_v48, %v1803_v0   ;;  %v17754_v47 = vadd.f32 %v15313_v47, %v1804_v1   ;;  %11370 = vmatprep.mubr.f32.mxu0 (%p17778_p3), %v20563_v61  ;;  %v10995_v62 = vld [vmem:[%s15940_s2 + $0x48] sm:$0xff] (%p17778_p3)   ;;  %v20572_v63 = vld [vmem:[#allocation78_spill] sm:$0xff] (%p17778_p3)  ;;  %v20573_v0 = vld [vmem:[#allocation63_spill] sm:$0xff] (%p17778_p3)  ;;  %p14146_p11 = pneg (%p17778_p3), %p14145_p0 }
 0x7cd   : >> { %v17756_v46 = vadd.f32 %v15309_v46, %v1805_v34   ;;  %v17758_v45 = vadd.f32 %v15305_v45, %v1806_v35   ;;  %v17760_v44 = vadd.f32 %v15301_v44, %v1807_v36   ;;  %v17763_v43 = vadd.f32 %v15297_v43, %v1808_v37   ;;  %1829 = vxpose.xlu0.b32.start [1/16] (%p17778_p3), %v1813_v5, 128  ;;  %v11005_v1 = vld [vmem:[%s15940_s2 + $0x98] sm:$0xff] (%p17778_p3)   ;;  %v20575_v34 = vld [vmem:[#allocation64_spill] sm:$0xff] (%p17778_p3)  ;;  %v20578_v37 = vld [vmem:[#allocation81_spill] sm:$0xff] (%p17778_p3) }
 0x7ce   : >> { %v20534_v9 = vmov %v17748_v50  ;;  %v20535_v10 = vmov %v17750_v49  ;;  %v20536_v11 = vmov %v17752_v48  ;;  %v20537_v12 = vmov %v17754_v47  ;;  %v11013_v35 = vld [vmem:[%s15940_s2 + $0xd8] sm:$0xff] (%p17778_p3)   ;;  %v20576_v36 = vld [vmem:[#allocation80_spill] sm:$0xff] (%p17778_p3)  ;;  %p14153_p13 = pnand (%p17778_p3), %p14152_p12, %p14146_p11 }
 0x7cf   : >> { %v20538_v13 = vmov %v17756_v46  ;;  %v20539_v14 = vmov %v17758_v45  ;;  %v20540_v15 = vmov %v17760_v44  ;;  %v20541_v56 = vmov %v17763_v43  ;;  %1750 = sbr.rel (!%p17778_p3) target bundleno = 1980 (0x7bc), region = 355  ;;  %v11007_v61 = vld [vmem:[%s15940_s2 + $0xa8] sm:$0xff] (%p17778_p3)  }
 0x7d0   : >> { %v17766_v42 = vadd.f32 %v15293_v42, %v1809_v38   ;;  %v17769_v41 = vadd.f32 %v15289_v41, %v1810_v55   ;;  %v17772_v40 = vadd.f32 %v15285_v40, %v1811_v3   ;;  %v17775_v32 = vadd.f32 %v15281_v32, %v1812_v4   ;;  %v10732_v3 = vld [vmem:[%s15940_s2] sm:$0xff] (%p17778_p3)  }
 0x7d1   : >> { %v20551_v43 = vmov %v20541_v56  ;;  %v20552_v44 = vmov %v20540_v15  ;;  %v20553_v45 = vmov %v20539_v14  ;;  %v20554_v46 = vmov %v20538_v13  ;;  %v10994_v4 = vld [vmem:[%s15940_s2 + $0x40] sm:$0xff] (%p17778_p3)   ;;  %11851 = vmatprep.subr.bf16.mxu0 (%p17778_p3), %v10732_v3  ;;  %1830 = vxpose.xlu0.b32.cont [2/16] (%p17778_p3), %v1814_v6, 128 }
 0x7d2   : >> { %v20542_v57 = vmov %v17766_v42  ;;  %v20543_v58 = vmov %v17769_v41  ;;  %v20544_v59 = vmov %v17772_v40  ;;  %v20545_v60 = vmov %v17775_v32  ;;  %11883 = vmatprep.subr.bf16.mxu1 (%p17778_p3), %v10994_v4  ;;  %11853 = vmatpush3.bf16.msra.mxu0 (%p17778_p3), %v10732_v3  ;;  %v11000_v43 = vld [vmem:[%s15940_s2 + $0x70] sm:$0xff] (%p17778_p3)   ;;  %v10993_v44 = vld [vmem:[%s15940_s2 + $0x38] sm:$0xff] (%p17778_p3)   ;;  %v11006_v38 = vld [vmem:[%s15940_s2 + $0xa0] sm:$0xff] (%p17778_p3)  }
 0x7d3   : >> { %v20547_v32 = vmov %v20545_v60  ;;  %v20548_v40 = vmov %v20544_v59  ;;  %v20549_v41 = vmov %v20543_v58  ;;  %v20550_v42 = vmov %v20542_v57  ;;  %11885 = vmatpush3.bf16.msra.mxu1 (%p17778_p3), %v10994_v4  ;;  %v11001_v45 = vld [vmem:[%s15940_s2 + $0x78] sm:$0xff] (%p17778_p3)   ;;  %v11014_v55 = vld [vmem:[%s15940_s2 + $0xe0] sm:$0xff] (%p17778_p3)  }
 0x7d4   : >> { %v20555_v47 = vmov %v20537_v12  ;;  %v20556_v48 = vmov %v20536_v11  ;;  %v20557_v49 = vmov %v20535_v10  ;;  %v20558_v50 = vmov %v20534_v9  ;;  %11887 = vmatprep.subr.bf16.mxu1 (%p17778_p3), %v10995_v62  ;;  %v10989_v32 = vld [vmem:[%s15940_s2 + $0x18] sm:$0xff] (%p17778_p3)   ;;  %v10998_v41 = vld [vmem:[%s15940_s2 + $0x60] sm:$0xff] (%p17778_p3)   ;;  %v10999_v42 = vld [vmem:[%s15940_s2 + $0x68] sm:$0xff] (%p17778_p3)  }
 0x7d5   : >> { %v20559_v51 = vmov %v1816_v8  ;;  %v20560_v52 = vmov %v1815_v7  ;;  %v20561_v53 = vmov %v1814_v6  ;;  %v20562_v54 = vmov %v1813_v5  ;;  %v10988_v5 = vld [vmem:[%s15940_s2 + $0x10] sm:$0xff] (%p17778_p3)   ;;  %1831 = vxpose.xlu0.b32.cont [3/16] (%p17778_p3), %v1815_v7, 128  ;;  %v10997_v40 = vld [vmem:[%s15940_s2 + $0x58] sm:$0xff] (%p17778_p3)   ;;  %v10990_v6 = vld [vmem:[%s15940_s2 + $0x20] sm:$0xff] (%p17778_p3)  }
 0x7d6   : > { %v10987_v54 = vld [vmem:[%s15940_s2 + $0x8] sm:$0xff]   ;;  %v20565_v46 = vld [vmem:[#allocation59_spill] sm:$0xff]  ;;  %v20571_v51 = vld [vmem:[#allocation62_spill] sm:$0xff]  ;;  %vm20659_vm0 = vcmask 31744  }
 0x7d7   : > { %11855 = vmatprep.subr.bf16.mxu0 %v10987_v54  ;;  %11889 = vmatpush3.bf16.msra.mxu1 %v10995_v62  ;;  %v10991_v7 = vld [vmem:[%s15940_s2 + $0x28] sm:$0xff]   ;;  %v20566_v47 = vld [vmem:[#allocation75_spill] sm:$0xff]  ;;  %v11004_v52 = vld [vmem:[%s15940_s2 + $0x90] sm:$0xff]  }
 0x7d8   : > { %11857 = vmatpush3.bf16.msra.mxu0 %v10987_v54  ;;  %11891 = vmatprep.subr.bf16.mxu1 %v10996_v16  ;;  %v20567_v48 = vld [vmem:[#allocation60_spill] sm:$0xff]  ;;  %v20569_v50 = vld [vmem:[#allocation61_spill] sm:$0xff]  ;;  %v20580_v3 = vld [vmem:[#allocation82_spill] sm:$0xff] }
 0x7d9   : > { %11859 = vmatprep.subr.bf16.mxu0 %v10988_v5  ;;  %1832 = vxpose.xlu0.b32.cont [4/16] %v1816_v8, 128  ;;  %v10992_v8 = vld [vmem:[%s15940_s2 + $0x30] sm:$0xff]   ;;  %v11011_v49 = vld [vmem:[%s15940_s2 + $0xc8] sm:$0xff]   ;;  %v20581_v4 = vld [vmem:[#allocation67_spill] sm:$0xff] }
 0x7da   : > { %v11012_v53 = vld [vmem:[%s15940_s2 + $0xd0] sm:$0xff]   ;;  %v20582_v54 = vld [vmem:[#allocation83_spill] sm:$0xff]  ;;  %v11015_v62 = vld [vmem:[%s15940_s2 + $0xe8] sm:$0xff]  }
 0x7db   : > { %11893 = vmatpush3.bf16.msra.mxu1 %v10996_v16  ;;  %v20585_v16 = vld [vmem:[#allocation69_spill] sm:$0xff]  ;;  %vm20660_vm1 = vmmov %vm20659_vm0 }
 0x7dc   : > { %11861 = vmatpush3.bf16.msra.mxu0 %v10988_v5  ;;  %11895 = vmatprep.subr.bf16.mxu1 %v10997_v40  ;;  %v20584_v5 = vld [vmem:[#allocation84_spill] sm:$0xff]  ;;  %vm20661_vm2 = vmmov %vm20659_vm0 }
 0x7dd   : > { %11863 = vmatprep.subr.bf16.mxu0 %v10989_v32  ;;  %1833 = vxpose.xlu0.b32.cont [5/16] %v20534_v9, 128  ;;  %v11002_v9 = vld [vmem:[%s15940_s2 + $0x80] sm:$0xff]   ;;  %vm20662_vm3 = vmmov %vm20659_vm0 }
 0x7de   : > { %vm20663_vm4 = vmmov %vm20659_vm0 }
 0x7df   : > { %11897 = vmatpush3.bf16.msra.mxu1 %v10997_v40  ;;  %v11016_v40 = vld [vmem:[%s15940_s2 + $0xf0] sm:$0xff]   ;;  %vm20664_vm5 = vmmov %vm20659_vm0 }
 0x7e0   : > { %11865 = vmatpush3.bf16.msra.mxu0 %v10989_v32  ;;  %11899 = vmatprep.subr.bf16.mxu1 %v10998_v41  ;;  %v11008_v32 = vld [vmem:[%s15940_s2 + $0xb0] sm:$0xff]   ;;  %vm20665_vm6 = vmmov %vm20659_vm0 }
 0x7e1   : > { %11867 = vmatprep.subr.bf16.mxu0 %v10990_v6  ;;  %1834 = vxpose.xlu0.b32.cont [6/16] %v20535_v10, 128  ;;  %v11010_v10 = vld [vmem:[%s15940_s2 + $0xc0] sm:$0xff]   ;;  %vm20666_vm7 = vmmov %vm20659_vm0 }
 0x7e2   : > { %vm20667_vm8 = vmmov %vm20659_vm0 }
 0x7e3   : > { %11901 = vmatpush3.bf16.msra.mxu1 %v10998_v41  ;;  %v20589_v41 = vld [vmem:[#allocation71_spill] sm:$0xff]  ;;  %vm20668_vm9 = vmmov %vm20659_vm0 }
 0x7e4   : > { %11869 = vmatpush3.bf16.msra.mxu0 %v10990_v6  ;;  %11903 = vmatprep.subr.bf16.mxu1 %v10999_v42  ;;  %v20588_v6 = vld [vmem:[#allocation86_spill] sm:$0xff]  ;;  %vm20669_vm10 = vmmov %vm20659_vm0 }
 0x7e5   : > { %11871 = vmatprep.subr.bf16.mxu0 %v10991_v7  ;;  %1835 = vxpose.xlu0.b32.cont [7/16] %v20536_v11, 128  ;;  %v11003_v11 = vld [vmem:[%s15940_s2 + $0x88] sm:$0xff]   ;;  %vm20670_vm11 = vmmov %vm20659_vm0 }
 0x7e6   : > { %vm20671_vm12 = vmmov %vm20659_vm0 }
 0x7e7   : > { %11905 = vmatpush3.bf16.msra.mxu1 %v10999_v42  ;;  %v11009_v42 = vld [vmem:[%s15940_s2 + $0xb8] sm:$0xff]   ;;  %vm20672_vm13 = vmmov %vm20659_vm0 }
 0x7e8   : > { %11873 = vmatpush3.bf16.msra.mxu0 %v10991_v7  ;;  %11907 = vmatprep.subr.bf16.mxu1 %v11000_v43  ;;  %v20590_v7 = vld [vmem:[#allocation87_spill] sm:$0xff]  ;;  %vm20673_vm14 = vmmov %vm20659_vm0 }
 0x7e9   : > { %11875 = vmatprep.subr.bf16.mxu0 %v10992_v8  ;;  %1836 = vxpose.xlu0.b32.cont [8/16] %v20537_v12, 128  ;;  %v20568_v12 = vld [vmem:[#allocation76_spill] sm:$0xff]  ;;  %vm20674_vm15 = vmmov %vm20659_vm0 }
 0x7eb   : > { %11909 = vmatpush3.bf16.msra.mxu1 %v11000_v43  ;;  %v20592_v43 = vld [vmem:[#allocation88_spill] sm:$0xff] }
 0x7ec   : > { %11877 = vmatpush3.bf16.msra.mxu0 %v10992_v8  ;;  %11911 = vmatprep.subr.bf16.mxu1 %v11001_v45  ;;  %v11017_v8 = vld [vmem:[%s15940_s2 + $0xf8] sm:$0xff]  }
 0x7ed   : > { %11879 = vmatprep.subr.bf16.mxu0 %v10993_v44  ;;  %1837 = vxpose.xlu0.b32.cont [9/16] %v20538_v13, 128  ;;  %v20570_v13 = vld [vmem:[#allocation77_spill] sm:$0xff] }
 0x7ef   : > { %11913 = vmatpush3.bf16.msra.mxu1 %v11001_v45  ;;  %v20594_v45 = vld [vmem:[#allocation89_spill] sm:$0xff] }
 0x7f0   : > { %11881 = vmatpush3.bf16.msra.mxu0 %v10993_v44  ;;  %11947 = vmatprep.subr.bf16.mxu1 %v11010_v10  ;;  %v20593_v44 = vld [vmem:[#allocation73_spill] sm:$0xff] }
 0x7f1   : > { %11915 = vmatprep.subr.bf16.mxu0 %v11002_v9  ;;  %1838 = vxpose.xlu0.b32.cont [10/16] %v20539_v14, 128  ;;  %v20574_v14 = vld [vmem:[#allocation79_spill] sm:$0xff] }
 0x7f2   : > { %11427 = vmatmul.mubr.f32.vlgmr.msra.gmra.mrb[0].mxu1 %v20566_v47  ;;  %v20597_v47 = vld [vmem:[#allocation91_spill] sm:$0xff] }
 0x7f3   : > { %11371 = vmatmul.mubr.f32.vlgmr.msra.gmra.mrb[0].mxu0 %v20565_v46  ;;  %11949 = vmatpush3.bf16.msra.mxu1 %v11010_v10  ;;  %v11026_v10 = vld [vmem:[%s15940_s2 + $0x140] sm:$0xff]   ;;  %v20595_v46 = vld [vmem:[#allocation90_spill] sm:$0xff] }
 0x7f4   : > { %11917 = vmatpush3.bf16.msra.mxu0 %v11002_v9  ;;  %11373 = vmatprep.mubr.f32.mxu0 %v20567_v48  ;;  %v11018_v9 = vld [vmem:[%s15940_s2 + $0x100] sm:$0xff]  }
 0x7f5   : > { %11429 = vmatprep.mubr.f32.mxu1 %v20568_v12  ;;  %11919 = vmatprep.subr.bf16.mxu0 %v11003_v11  ;;  %v20598_v48 = vld [vmem:[#allocation107_spill] sm:$0xff]  ;;  %v11027_v12 = vld [vmem:[%s15940_s2 + $0x148] sm:$0xff]  }
 0x7f6   : > { %11430 = vmatmul.mubr.f32.gmra.mrb[2].mxu1 %v20570_v13  ;;  %11951 = vmatprep.subr.bf16.mxu1 %v11011_v49  ;;  %v20601_v13 = vld [vmem:[#allocation93_spill] sm:$0xff] }
 0x7f7   : > { %11374 = vmatmul.mubr.f32.gmra.mrb[2].mxu0 %v20569_v50  ;;  %11953 = vmatpush3.bf16.msra.mxu1 %v11011_v49  ;;  %v20599_v49 = vld [vmem:[#allocation92_spill] sm:$0xff] }
 0x7f8   : > { %11921 = vmatpush3.bf16.msra.mxu0 %v11003_v11  ;;  %11376 = vmatprep.mubr.f32.mxu0 %v20571_v51  ;;  %v11019_v11 = vld [vmem:[%s15940_s2 + $0x108] sm:$0xff]   ;;  %v11020_v51 = vld [vmem:[%s15940_s2 + $0x110] sm:$0xff]  }
 0x7f9   : > { %1839 = vxpose.xlu0.b32.cont [11/16] %v20540_v15, 128  ;;  %11432 = vmatprep.mubr.f32.mxu1 %v20572_v63  ;;  %v20577_v15 = vld [vmem:[#allocation65_spill] sm:$0xff]  ;;  %v20600_v50 = vld [vmem:[#allocation108_spill] sm:$0xff]  ;;  %v20603_v63 = vld [vmem:[#allocation94_spill] sm:$0xff] }
 0x7fa   : > { %11433 = vmatmul.mubr.f32.gmra.mrb[4].mxu1 %v20574_v14  ;;  %11923 = vmatprep.subr.bf16.mxu0 %v11004_v52  ;;  %v20605_v14 = vld [vmem:[#allocation95_spill] sm:$0xff] }
 0x7fb   : > { %11377 = vmatmul.mubr.f32.gmra.mrb[4].mxu0 %v20573_v0  ;;  %11955 = vmatprep.subr.bf16.mxu1 %v11012_v53  ;;  %v20604_v0 = vld [vmem:[#allocation110_spill] sm:$0xff] }
 0x7fc   : > { %11925 = vmatpush3.bf16.msra.mxu0 %v11004_v52  ;;  %11957 = vmatpush3.bf16.msra.mxu1 %v11012_v53  ;;  %v20602_v52 = vld [vmem:[#allocation109_spill] sm:$0xff] }
 0x7fd   : > { %1840 = vxpose.xlu0.b32.cont [12/16] %v20541_v56, 128  ;;  %11379 = vmatprep.mubr.f32.mxu0 %v20575_v34  ;;  %v20579_v56 = vld [vmem:[#allocation66_spill] sm:$0xff]  ;;  %v20606_v34 = vld [vmem:[#allocation111_spill] sm:$0xff] }
 0x7fe   : > { %11435 = vmatprep.mubr.f32.mxu1 %v20576_v36  ;;  %11927 = vmatprep.subr.bf16.mxu0 %v11005_v1  ;;  %v11028_v53 = vld [vmem:[%s15940_s2 + $0x150] sm:$0xff]   ;;  %v20607_v36 = vld [vmem:[#allocation96_spill] sm:$0xff] }
 0x7ff   : > { %11380 = vmatmul.mubr.f32.gmra.mrb[6].mxu0 %v20577_v15  ;;  %11436 = vmatmul.mubr.f32.gmra.mrb[6].mxu1 %v20578_v37  ;;  %v20608_v15 = vld [vmem:[#allocation112_spill] sm:$0xff]  ;;  %v20609_v37 = vld [vmem:[#allocation97_spill] sm:$0xff] }
 0x800   : > { %11959 = vmatprep.subr.bf16.mxu1 %v11013_v35  ;;  %11929 = vmatpush3.bf16.msra.mxu0 %v11005_v1  ;;  %v11021_v1 = vld [vmem:[%s15940_s2 + $0x118] sm:$0xff]  }
 0x801   : > { %11961 = vmatpush3.bf16.msra.mxu1 %v11013_v35  ;;  %1841 = vxpose.xlu0.b32.cont [13/16] %v20542_v57, 128  ;;  %v20583_v57 = vld [vmem:[#allocation68_spill] sm:$0xff]  ;;  %v11029_v35 = vld [vmem:[%s15940_s2 + $0x158] sm:$0xff]  }
 0x802   : > { %11382 = vmatprep.mubr.f32.mxu0 %v20579_v56  ;;  %11438 = vmatprep.mubr.f32.mxu1 %v20580_v3  ;;  %v11030_v56 = vld [vmem:[%s15940_s2 + $0x160] sm:$0xff]   ;;  %v20611_v3 = vld [vmem:[#allocation98_spill] sm:$0xff] }
 0x803   : > { %11383 = vmatmul.mubr.f32.gmra.mrb[8].mxu0 %v20581_v4  ;;  %11439 = vmatmul.mubr.f32.gmra.mrb[8].mxu1 %v20582_v54  ;;  %v20612_v4 = vld [vmem:[#allocation114_spill] sm:$0xff]  ;;  %v20613_v54 = vld [vmem:[#allocation99_spill] sm:$0xff] }
 0x804   : > { %11931 = vmatprep.subr.bf16.mxu0 %v11006_v38  ;;  %11963 = vmatprep.subr.bf16.mxu1 %v11014_v55 }
 0x805   : > { %11933 = vmatpush3.bf16.msra.mxu0 %v11006_v38  ;;  %11965 = vmatpush3.bf16.msra.mxu1 %v11014_v55  ;;  %v11022_v38 = vld [vmem:[%s15940_s2 + $0x120] sm:$0xff]   ;;  %v20610_v55 = vld [vmem:[#allocation113_spill] sm:$0xff] }
 0x806   : > { %1842 = vxpose.xlu0.b32.cont [14/16] %v20543_v58, 128  ;;  %11385 = vmatprep.mubr.f32.mxu0 %v20583_v57  ;;  %v20587_v58 = vld [vmem:[#allocation70_spill] sm:$0xff]  ;;  %v20614_v57 = vld [vmem:[#allocation115_spill] sm:$0xff] }
 0x807   : > { %11441 = vmatprep.mubr.f32.mxu1 %v20584_v5  ;;  %11386 = vmatmul.mubr.f32.gmra.mrb[10].mxu0 %v20585_v16  ;;  %v20615_v5 = vld [vmem:[#allocation100_spill] sm:$0xff] }
 0x808   : > { %11442 = vmatmul.mubr.f32.gmra.mrb[10].mxu1 %v20586_v17  ;;  %11935 = vmatprep.subr.bf16.mxu0 %v11007_v61  ;;  %v20616_v16 = vld [vmem:[#allocation116_spill] sm:$0xff]  ;;  %v20617_v17 = vld [vmem:[#allocation101_spill] sm:$0xff] }
 0x809   : > { %11967 = vmatprep.subr.bf16.mxu1 %v11015_v62  ;;  %11937 = vmatpush3.bf16.msra.mxu0 %v11007_v61  ;;  %v11023_v61 = vld [vmem:[%s15940_s2 + $0x128] sm:$0xff]  }
 0x80a   : > { %11969 = vmatpush3.bf16.msra.mxu1 %v11015_v62  ;;  %1843 = vxpose.xlu0.b32.cont [15/16] %v20544_v59, 128  ;;  %v20591_v59 = vld [vmem:[#allocation72_spill] sm:$0xff] }
 0x80b   : > { %11388 = vmatprep.mubr.f32.mxu0 %v20587_v58  ;;  %11444 = vmatprep.mubr.f32.mxu1 %v20588_v6  ;;  %v11031_v62 = vld [vmem:[%s15940_s2 + $0x168] sm:$0xff]   ;;  %v11032_v58 = vld [vmem:[%s15940_s2 + $0x170] sm:$0xff]  }
 0x80c   : > { %11389 = vmatmul.mubr.f32.gmra.mrb[12].mxu0 %v20589_v41  ;;  %11445 = vmatmul.mubr.f32.gmra.mrb[12].mxu1 %v20590_v7  ;;  %v20619_v6 = vld [vmem:[#allocation102_spill] sm:$0xff]  ;;  %v20621_v7 = vld [vmem:[#allocation103_spill] sm:$0xff] }
 0x80d   : > { %11939 = vmatprep.subr.bf16.mxu0 %v11008_v32  ;;  %11971 = vmatprep.subr.bf16.mxu1 %v11016_v40  ;;  %v20620_v41 = vld [vmem:[#allocation118_spill] sm:$0xff] }
 0x80e   : > { %11941 = vmatpush3.bf16.msra.mxu0 %v11008_v32  ;;  %11973 = vmatpush3.bf16.msra.mxu1 %v11016_v40  ;;  %v11024_v32 = vld [vmem:[%s15940_s2 + $0x130] sm:$0xff]  }
 0x80f   : > { %1844 = vxpose.xlu0.b32.end [16/16] %v20545_v60, 128  ;;  %11391 = vmatprep.mubr.f32.mxu0 %v20591_v59  ;;  %v20596_v60 = vld [vmem:[#allocation106_spill] sm:$0xff]  ;;  %v20618_v40 = vld [vmem:[#allocation117_spill] sm:$0xff]  ;;  %v20622_v59 = vld [vmem:[#allocation119_spill] sm:$0xff] }
 0x810   : > { %11447 = vmatprep.mubr.f32.mxu1 %v20592_v43  ;;  %11392 = vmatmul.mubr.f32.gmra.mrb[14].mxu0 %v20593_v44  ;;  %v20623_v43 = vld [vmem:[#allocation104_spill] sm:$0xff] }
 0x811   : > { %11448 = vmatmul.mubr.f32.gmra.mrb[14].mxu1 %v20594_v45  ;;  %11943 = vmatprep.subr.bf16.mxu0 %v11009_v42  ;;  %v20624_v44 = vld [vmem:[#allocation120_spill] sm:$0xff] }
 0x812   : > { %11975 = vmatprep.subr.bf16.mxu1 %v11017_v8  ;;  %11945 = vmatpush3.bf16.msra.mxu0 %v11009_v42  ;;  %v11025_v42 = vld [vmem:[%s15940_s2 + $0x138] sm:$0xff]   ;;  %v11034_v45 = vld [vmem:[%s15940_s2 + $0x180] sm:$0xff]  }
 0x813   : > { %11977 = vmatpush3.bf16.msra.mxu1 %v11017_v8  ;;  %11482 = vmatprep.mubr.f32.mxu0 %v20595_v46  ;;  %v11033_v8 = vld [vmem:[%s15940_s2 + $0x178] sm:$0xff]   ;;  %v11042_v46 = vld [vmem:[%s15940_s2 + $0x1c0] sm:$0xff]  }
 0x814   : > { %11538 = vmatprep.mubr.f32.mxu1 %v20596_v60  ;;  %11979 = vmatprep.subr.bf16.mxu0 %v11018_v9  ;;  %v20627_v60 = vld [vmem:[#allocation122_spill] sm:$0xff] }
 0x815   : > { %11483 = vmatmul.mubr.f32.vlgmr.msra.gmra.mrb[16].mxu0 %v20597_v47  ;;  %12011 = vmatprep.subr.bf16.mxu1 %v11026_v10  ;;  %v20628_v47 = vld [vmem:[#allocation138_spill] sm:$0xff] }
 0x816   : > { %11539 = vmatmul.mubr.f32.vlgmr.msra.gmra.mrb[16].mxu1 %v20598_v48  ;;  %11981 = vmatpush3.bf16.msra.mxu0 %v11018_v9  ;;  %v20625_v9 = vld [vmem:[#allocation105_spill] sm:$0xff]  ;;  %v20629_v48 = vld [vmem:[#allocation123_spill] sm:$0xff] }
 0x817   : > { %11485 = vmatprep.mubr.f32.mxu0 %v20599_v49  ;;  %11541 = vmatprep.mubr.f32.mxu1 %v20600_v50  ;;  %v11043_v49 = vld [vmem:[%s15940_s2 + $0x1c8] sm:$0xff]   ;;  %v20631_v50 = vld [vmem:[#allocation139_spill] sm:$0xff] }
 0x818   : > { %11983 = vmatprep.subr.bf16.mxu0 %v11019_v11  ;;  %12013 = vmatpush3.bf16.msra.mxu1 %v11026_v10  ;;  %v20626_v10 = vld [vmem:[#allocation121_spill] sm:$0xff] }
 0x819   : > { %11486 = vmatmul.mubr.f32.gmra.mrb[18].mxu0 %v20601_v13  ;;  %12015 = vmatprep.subr.bf16.mxu1 %v11027_v12  ;;  %v20632_v13 = vld [vmem:[#allocation140_spill] sm:$0xff] }
 0x81a   : > { %11542 = vmatmul.mubr.f32.gmra.mrb[18].mxu1 %v20602_v52  ;;  %11985 = vmatpush3.bf16.msra.mxu0 %v11019_v11  ;;  %v11035_v11 = vld [vmem:[%s15940_s2 + $0x188] sm:$0xff]  }
 0x81b   : > { %11488 = vmatprep.mubr.f32.mxu0 %v20603_v63  ;;  %11544 = vmatprep.mubr.f32.mxu1 %v20604_v0  ;;  %v20633_v52 = vld [vmem:[#allocation125_spill] sm:$0xff] }
 0x81c   : > { %11987 = vmatprep.subr.bf16.mxu0 %v11020_v51  ;;  %12017 = vmatpush3.bf16.msra.mxu1 %v11027_v12  ;;  %v20630_v12 = vld [vmem:[#allocation124_spill] sm:$0xff]  ;;  %v11044_v63 = vld [vmem:[%s15940_s2 + $0x1d0] sm:$0xff]  }
 0x81d   : > { %11489 = vmatmul.mubr.f32.gmra.mrb[20].mxu0 %v20605_v14  ;;  %12019 = vmatprep.subr.bf16.mxu1 %v11028_v53  ;;  %v20635_v0 = vld [vmem:[#allocation141_spill] sm:$0xff]  ;;  %v20636_v14 = vld [vmem:[#allocation142_spill] sm:$0xff] }
 0x81e   : > { %11545 = vmatmul.mubr.f32.gmra.mrb[20].mxu1 %v20606_v34  ;;  %11989 = vmatpush3.bf16.msra.mxu0 %v11020_v51  ;;  %v11036_v51 = vld [vmem:[%s15940_s2 + $0x190] sm:$0xff]   ;;  %v20637_v34 = vld [vmem:[#allocation127_spill] sm:$0xff] }
 0x81f   : > { %11491 = vmatprep.mubr.f32.mxu0 %v20607_v36  ;;  %11547 = vmatprep.mubr.f32.mxu1 %v20608_v15  ;;  %v11045_v36 = vld [vmem:[%s15940_s2 + $0x1d8] sm:$0xff]  }
 0x820   : > { %11991 = vmatprep.subr.bf16.mxu0 %v11021_v1  ;;  %12021 = vmatpush3.bf16.msra.mxu1 %v11028_v53  ;;  %v20634_v53 = vld [vmem:[#allocation126_spill] sm:$0xff]  ;;  %v20639_v15 = vld [vmem:[#allocation143_spill] sm:$0xff] }
 0x821   : > { %11492 = vmatmul.mubr.f32.gmra.mrb[22].mxu0 %v20609_v37  ;;  %12023 = vmatprep.subr.bf16.mxu1 %v11029_v35  ;;  %v20640_v37 = vld [vmem:[#allocation144_spill] sm:$0xff] }
 0x822   : > { %11548 = vmatmul.mubr.f32.gmra.mrb[22].mxu1 %v20610_v55  ;;  %11993 = vmatpush3.bf16.msra.mxu0 %v11021_v1  ;;  %v11037_v1 = vld [vmem:[%s15940_s2 + $0x198] sm:$0xff]   ;;  %v20641_v55 = vld [vmem:[#allocation129_spill] sm:$0xff] }
 0x823   : > { %11494 = vmatprep.mubr.f32.mxu0 %v20611_v3  ;;  %11550 = vmatprep.mubr.f32.mxu1 %v20612_v4  ;;  %v11046_v3 = vld [vmem:[%s15940_s2 + $0x1e0] sm:$0xff]   ;;  %v20643_v4 = vld [vmem:[#allocation145_spill] sm:$0xff] }
 0x824   : > { %11995 = vmatprep.subr.bf16.mxu0 %v11022_v38  ;;  %12025 = vmatpush3.bf16.msra.mxu1 %v11029_v35  ;;  %v20638_v35 = vld [vmem:[#allocation128_spill] sm:$0xff] }
 0x825   : > { %11495 = vmatmul.mubr.f32.gmra.mrb[24].mxu0 %v20613_v54  ;;  %12027 = vmatprep.subr.bf16.mxu1 %v11030_v56  ;;  %v20644_v54 = vld [vmem:[#allocation146_spill] sm:$0xff] }
 0x826   : > { %11551 = vmatmul.mubr.f32.gmra.mrb[24].mxu1 %v20614_v57  ;;  %11997 = vmatpush3.bf16.msra.mxu0 %v11022_v38  ;;  %v11038_v38 = vld [vmem:[%s15940_s2 + $0x1a0] sm:$0xff]  }
 0x827   : > { %11497 = vmatprep.mubr.f32.mxu0 %v20615_v5  ;;  %11553 = vmatprep.mubr.f32.mxu1 %v20616_v16  ;;  %v20645_v57 = vld [vmem:[#allocation131_spill] sm:$0xff]  ;;  %v11047_v5 = vld [vmem:[%s15940_s2 + $0x1e8] sm:$0xff]  }
 0x828   : > { %11999 = vmatprep.subr.bf16.mxu0 %v11023_v61  ;;  %12029 = vmatpush3.bf16.msra.mxu1 %v11030_v56  ;;  %v20642_v56 = vld [vmem:[#allocation130_spill] sm:$0xff]  ;;  %v20647_v16 = vld [vmem:[#allocation147_spill] sm:$0xff] }
 0x829   : > { %11498 = vmatmul.mubr.f32.gmra.mrb[26].mxu0 %v20617_v17  ;;  %12031 = vmatprep.subr.bf16.mxu1 %v11031_v62  ;;  %v20648_v17 = vld [vmem:[#allocation148_spill] sm:$0xff] }
 0x82a   : > { %11554 = vmatmul.mubr.f32.gmra.mrb[26].mxu1 %v20618_v40  ;;  %12001 = vmatpush3.bf16.msra.mxu0 %v11023_v61  ;;  %v11039_v61 = vld [vmem:[%s15940_s2 + $0x1a8] sm:$0xff]  }
 0x82b   : > { %11500 = vmatprep.mubr.f32.mxu0 %v20619_v6  ;;  %11556 = vmatprep.mubr.f32.mxu1 %v20620_v41  ;;  %v20649_v40 = vld [vmem:[#allocation133_spill] sm:$0xff] }
 0x82c   : > { %12003 = vmatprep.subr.bf16.mxu0 %v11024_v32  ;;  %12033 = vmatpush3.bf16.msra.mxu1 %v11031_v62  ;;  %v20646_v62 = vld [vmem:[#allocation132_spill] sm:$0xff]  ;;  %v11048_v6 = vld [vmem:[%s15940_s2 + $0x1f0] sm:$0xff]  }
 0x82d   : > { %11501 = vmatmul.mubr.f32.gmra.mrb[28].mxu0 %v20621_v7  ;;  %12035 = vmatprep.subr.bf16.mxu1 %v11032_v58  ;;  %v20651_v41 = vld [vmem:[#allocation149_spill] sm:$0xff]  ;;  %v20652_v7 = vld [vmem:[#allocation150_spill] sm:$0xff] }
 0x82e   : > { %11557 = vmatmul.mubr.f32.gmra.mrb[28].mxu1 %v20622_v59  ;;  %12005 = vmatpush3.bf16.msra.mxu0 %v11024_v32  ;;  %v11040_v32 = vld [vmem:[%s15940_s2 + $0x1b0] sm:$0xff]   ;;  %v20653_v59 = vld [vmem:[#allocation135_spill] sm:$0xff] }
 0x82f   : > { %11503 = vmatprep.mubr.f32.mxu0 %v20623_v43  ;;  %11559 = vmatprep.mubr.f32.mxu1 %v20624_v44  ;;  %v11049_v43 = vld [vmem:[%s15940_s2 + $0x1f8] sm:$0xff]  }
 0x830   : > { %12007 = vmatprep.subr.bf16.mxu0 %v11025_v42  ;;  %12037 = vmatpush3.bf16.msra.mxu1 %v11032_v58  ;;  %v20650_v58 = vld [vmem:[#allocation134_spill] sm:$0xff]  ;;  %v20655_v44 = vld [vmem:[#allocation151_spill] sm:$0xff] }
 0x831   : > { %11504 = vmatmul.mubr.f32.gmra.mrb[30].mxu0 %v20625_v9  ;;  %12039 = vmatprep.subr.bf16.mxu1 %v11033_v8  ;;  %v20657_v9 = vld [vmem:[#allocation137_spill] sm:$0xff] }
 0x832   : > { %11560 = vmatmul.mubr.f32.gmra.mrb[30].mxu1 %v20626_v10  ;;  %12009 = vmatpush3.bf16.msra.mxu0 %v11025_v42  ;;  %v11041_v42 = vld [vmem:[%s15940_s2 + $0x1b8] sm:$0xff]   ;;  %s15370_s2 = smov 12  }
 0x833   : > { %11594 = vmatprep.mubr.f32.mxu0 %v20627_v60  ;;  %12043 = vmatprep.subr.bf16.mxu0 %v11034_v45 }
 0x834   : > { %12041 = vmatpush3.bf16.msra.mxu1 %v11033_v8  ;;  %11650 = vmatprep.mubr.f32.mxu1 %v20628_v47  ;;  %v20654_v8 = vld [vmem:[#allocation136_spill] sm:$0xff] }
 0x835   : > { %11595 = vmatmul.mubr.f32.vlgmr.msra.gmra.mrb[32].mxu0 %v20629_v48  ;;  %12075 = vmatprep.subr.bf16.mxu1 %v11042_v46 }
 0x836   : > { %12045 = vmatpush3.bf16.msra.mxu0 %v11034_v45  ;;  %11597 = vmatprep.mubr.f32.mxu0 %v20630_v12  ;;  %v20656_v45 = vld [vmem:[#allocation152_spill] sm:$0xff] }
 0x837   : > { %11651 = vmatmul.mubr.f32.vlgmr.msra.gmra.mrb[32].mxu1 %v20631_v50  ;;  %12047 = vmatprep.subr.bf16.mxu0 %v11035_v11 }
 0x838   : > { %12077 = vmatpush3.bf16.msra.mxu1 %v11042_v46  ;;  %11653 = vmatprep.mubr.f32.mxu1 %v20632_v13  ;;  %v20658_v46 = vld [vmem:[#allocation153_spill] sm:$0xff] }
 0x839   : > { %11598 = vmatmul.mubr.f32.gmra.mrb[34].mxu0 %v20633_v52  ;;  %12079 = vmatprep.subr.bf16.mxu1 %v11043_v49 }
 0x83a   : > { %12049 = vmatpush3.bf16.msra.mxu0 %v11035_v11  ;;  %11600 = vmatprep.mubr.f32.mxu0 %v20634_v53  ;;  %v2117_v11 = vld [vmem:[#allocation2] sm:$0xff] }
 0x83b   : > { %11654 = vmatmul.mubr.f32.gmra.mrb[34].mxu1 %v20635_v0  ;;  %12051 = vmatprep.subr.bf16.mxu0 %v11036_v51  ;;  %v2136_v0 = vld [vmem:[#allocation2 + $0x98] sm:$0xff] }
 0x83c   : > { %12081 = vmatpush3.bf16.msra.mxu1 %v11043_v49  ;;  %11656 = vmatprep.mubr.f32.mxu1 %v20636_v14  ;;  %v2119_v14 = vld [vmem:[#allocation2 + $0x10] sm:$0xff] }
 0x83d   : > { %11601 = vmatmul.mubr.f32.gmra.mrb[36].mxu0 %v20637_v34  ;;  %12083 = vmatprep.subr.bf16.mxu1 %v11044_v63 }
 0x83e   : > { %12053 = vmatpush3.bf16.msra.mxu0 %v11036_v51  ;;  %11603 = vmatprep.mubr.f32.mxu0 %v20638_v35 }
 0x83f   : > { %11657 = vmatmul.mubr.f32.gmra.mrb[36].mxu1 %v20639_v15  ;;  %12055 = vmatprep.subr.bf16.mxu0 %v11037_v1 }
 0x840   : > { %12085 = vmatpush3.bf16.msra.mxu1 %v11044_v63  ;;  %11659 = vmatprep.mubr.f32.mxu1 %v20640_v37  ;;  %v2120_v63 = vld [vmem:[#allocation2 + $0x18] sm:$0xff] }
 0x841   : > { %11604 = vmatmul.mubr.f32.gmra.mrb[38].mxu0 %v20641_v55  ;;  %12087 = vmatprep.subr.bf16.mxu1 %v11045_v36 }
 0x842   : > { %12057 = vmatpush3.bf16.msra.mxu0 %v11037_v1  ;;  %11606 = vmatprep.mubr.f32.mxu0 %v20642_v56  ;;  %v2135_v1 = vld [vmem:[#allocation2 + $0x90] sm:$0xff] }
 0x843   : > { %11660 = vmatmul.mubr.f32.gmra.mrb[38].mxu1 %v20643_v4  ;;  %12059 = vmatprep.subr.bf16.mxu0 %v11038_v38  ;;  %v2138_v4 = vld [vmem:[#allocation2 + $0xa8] sm:$0xff] }
 0x844   : > { %12089 = vmatpush3.bf16.msra.mxu1 %v11045_v36  ;;  %11662 = vmatprep.mubr.f32.mxu1 %v20644_v54  ;;  %v2121_v54 = vld [vmem:[#allocation2 + $0x20] sm:$0xff] }
 0x845   : > { %11607 = vmatmul.mubr.f32.gmra.mrb[40].mxu0 %v20645_v57  ;;  %12091 = vmatprep.subr.bf16.mxu1 %v11046_v3 }
 0x846   : > { %12061 = vmatpush3.bf16.msra.mxu0 %v11038_v38  ;;  %11609 = vmatprep.mubr.f32.mxu0 %v20646_v62 }
 0x847   : > { %11663 = vmatmul.mubr.f32.gmra.mrb[40].mxu1 %v20647_v16  ;;  %12063 = vmatprep.subr.bf16.mxu0 %v11039_v61 }
 0x848   : > { %12093 = vmatpush3.bf16.msra.mxu1 %v11046_v3  ;;  %11665 = vmatprep.mubr.f32.mxu1 %v20648_v17  ;;  %v2122_v3 = vld [vmem:[#allocation2 + $0x28] sm:$0xff] }
 0x849   : > { %11610 = vmatmul.mubr.f32.gmra.mrb[42].mxu0 %v20649_v40  ;;  %12095 = vmatprep.subr.bf16.mxu1 %v11047_v5 }
 0x84a   : > { %12065 = vmatpush3.bf16.msra.mxu0 %v11039_v61  ;;  %11612 = vmatprep.mubr.f32.mxu0 %v20650_v58  ;;  %v2137_v61 = vld [vmem:[#allocation2 + $0xa0] sm:$0xff] }
 0x84b   : > { %11666 = vmatmul.mubr.f32.gmra.mrb[42].mxu1 %v20651_v41  ;;  %12067 = vmatprep.subr.bf16.mxu0 %v11040_v32  ;;  %v2140_v41 = vld [vmem:[#allocation2 + $0xb8] sm:$0xff] }
 0x84c   : > { %12097 = vmatpush3.bf16.msra.mxu1 %v11047_v5  ;;  %11668 = vmatprep.mubr.f32.mxu1 %v20652_v7  ;;  %v2123_v7 = vld [vmem:[#allocation2 + $0x30] sm:$0xff] }
 0x84d   : > { %11613 = vmatmul.mubr.f32.gmra.mrb[44].mxu0 %v20653_v59  ;;  %12099 = vmatprep.subr.bf16.mxu1 %v11048_v6  ;;  %v2139_v59 = vld [vmem:[#allocation2 + $0xb0] sm:$0xff] }
 0x84e   : > { %12069 = vmatpush3.bf16.msra.mxu0 %v11040_v32  ;;  %11615 = vmatprep.mubr.f32.mxu0 %v20654_v8 }
 0x84f   : > { %11669 = vmatmul.mubr.f32.gmra.mrb[44].mxu1 %v20655_v44  ;;  %12071 = vmatprep.subr.bf16.mxu0 %v11041_v42 }
 0x850   : > { %12101 = vmatpush3.bf16.msra.mxu1 %v11048_v6  ;;  %11671 = vmatprep.mubr.f32.mxu1 %v20656_v45  ;;  %v2124_v6 = vld [vmem:[#allocation2 + $0x38] sm:$0xff] }
 0x851   : > { %11616 = vmatmul.mubr.f32.gmra.mrb[46].mxu0 %v20657_v9  ;;  %12103 = vmatprep.subr.bf16.mxu1 %v11049_v43 }
 0x852   : > { %12073 = vmatpush3.bf16.msra.mxu0 %v11041_v42  ;;  %11706 = vmatprep.mubr.f32.mxu0 %v17601_v39 }
 0x853   : > { %v1845_v10 = vpop.trf.xlu0  ;;  %11672 = vmatmul.mubr.f32.gmra.mrb[46].mxu1 %v20658_v46 }
 0x854   : > { %12105 = vmatpush3.bf16.msra.mxu1 %v11049_v43  ;;  %11762 = vmatprep.mubr.f32.mxu1 %v1845_v10 }
 0x855   : > { %11707 = vmatmul.mubr.f32.vlgmr.msra.gmra.mrb[48].mxu0 %v17603_v19 }
 0x856   : > { %11709 = vmatprep.mubr.f32.mxu0 %v17605_v22 }
 0x857   : > { %v1846_v60 = vpop.trf.xlu0 }
 0x858   : > { %11763 = vmatmul.mubr.f32.vlgmr.msra.gmra.mrb[48].mxu1 %v1846_v60  ;;  %v2126_v60 = vld [vmem:[#allocation2 + $0x48] sm:$0xff] }
 0x859   : > { %11710 = vmatmul.mubr.f32.gmra.mrb[50].mxu0 %v17607_v26 }
 0x85a   : > { %11712 = vmatprep.mubr.f32.mxu0 %v17609_v29 }
 0x85b   : > { %v1847_v47 = vpop.trf.xlu0 }
 0x85c   : > { %11765 = vmatprep.mubr.f32.mxu1 %v1847_v47  ;;  %v2142_v47 = vld [vmem:[#allocation2 + $0xc8] sm:$0xff] }
 0x85d   : > { %11713 = vmatmul.mubr.f32.gmra.mrb[52].mxu0 %v17611_v33 }
 0x85e   : > { %11715 = vmatprep.mubr.f32.mxu0 %v17613_v25 }
 0x85f   : > { %v1848_v39 = vpop.trf.xlu0 }
 0x860   : > { %11766 = vmatmul.mubr.f32.gmra.mrb[50].mxu1 %v1848_v39  ;;  %v2125_v39 = vld [vmem:[#allocation2 + $0x40] sm:$0xff] }
 0x861   : > { %11716 = vmatmul.mubr.f32.gmra.mrb[54].mxu0 %v17615_v30 }
 0x862   : > { %11718 = vmatprep.mubr.f32.mxu0 %v17617_v23 }
 0x863   : > { %v1849_v19 = vpop.trf.xlu0 }
 0x864   : > { %11768 = vmatprep.mubr.f32.mxu1 %v1849_v19  ;;  %v2141_v19 = vld [vmem:[#allocation2 + $0xc0] sm:$0xff] }
 0x865   : > { %11719 = vmatmul.mubr.f32.gmra.mrb[56].mxu0 %v17619_v24 }
 0x866   : > { %11721 = vmatprep.mubr.f32.mxu0 %v17621_v28 }
 0x867   : > { %v1850_v22 = vpop.trf.xlu0 }
 0x868   : > { %11769 = vmatmul.mubr.f32.gmra.mrb[52].mxu1 %v1850_v22 }
 0x869   : > { %11722 = vmatmul.mubr.f32.gmra.mrb[58].mxu0 %v17623_v18 }
 0x86a   : > { %11724 = vmatprep.mubr.f32.mxu0 %v17625_v20 }
 0x86b   : > { %v1851_v26 = vpop.trf.xlu0 }
 0x86c   : > { %11771 = vmatprep.mubr.f32.mxu1 %v1851_v26 }
 0x86d   : > { %11725 = vmatmul.mubr.f32.gmra.mrb[60].mxu0 %v17627_v21  ;;  %v2118_v21 = vld [vmem:[#allocation2 + $0x8] sm:$0xff] }
 0x86e   : > { %11727 = vmatprep.mubr.f32.mxu0 %v17629_v31  ;;  %v2134_v31 = vld [vmem:[#allocation2 + $0x88] sm:$0xff] }
 0x86f   : > { %v1852_v29 = vpop.trf.xlu0 }
 0x870   : > { %11772 = vmatmul.mubr.f32.gmra.mrb[54].mxu1 %v1852_v29 }
 0x871   : > { %11728 = vmatmul.mubr.f32.gmra.mrb[62].mxu0 %v17631_v27  ;;  %v2133_v27 = vld [vmem:[#allocation2 + $0x80] sm:$0xff] }
 0x873   : > { %v1853_v33 = vpop.trf.xlu0 }
 0x874   : > { %11774 = vmatprep.mubr.f32.mxu1 %v1853_v33 }
 0x877   : > { %v1854_v25 = vpop.trf.xlu0 }
 0x878   : > { %11775 = vmatmul.mubr.f32.gmra.mrb[56].mxu1 %v1854_v25 }
 0x87b   : > { %v1855_v30 = vpop.trf.xlu0 }
 0x87c   : > { %11777 = vmatprep.mubr.f32.mxu1 %v1855_v30 }
 0x87f   : > { %v1856_v23 = vpop.trf.xlu0 }
 0x880   : > { %11778 = vmatmul.mubr.f32.gmra.mrb[58].mxu1 %v1856_v23 }
 0x883   : > { %v1857_v24 = vpop.trf.xlu0 }
 0x884   : > { %11780 = vmatprep.mubr.f32.mxu1 %v1857_v24 }
 0x887   : > { %v1858_v28 = vpop.trf.xlu0 }
 0x888   : > { %11781 = vmatmul.mubr.f32.gmra.mrb[60].mxu1 %v1858_v28  ;;  %v2128_v28 = vld [vmem:[#allocation2 + $0x58] sm:$0xff] }
 0x88b   : > { %v1859_v18 = vpop.trf.xlu0 }
 0x88c   : > { %11783 = vmatprep.mubr.f32.mxu1 %v1859_v18  ;;  %v2144_v18 = vld [vmem:[#allocation2 + $0xd8] sm:$0xff] }
 0x88f   : > { %v1860_v20 = vpop.trf.xlu0 }
 0x890   : > { %11784 = vmatmul.mubr.f32.gmra.mrb[62].mxu1 %v1860_v20  ;;  %v2127_v20 = vld [vmem:[#allocation2 + $0x50] sm:$0xff] }
 0x8c5   : > { %v11428_v12 = vpop.f32.mrb[0].mxu1 }
 0x8c6   : > { %v11372_v48 = vpop.f32.mrb[0].mxu0  ;;  %v3422_v50 = vadd.f32 %v11428_v12, %v2134_v31  ;;  %v2456_v51 = vpop.f32.mrb[1].mxu1  ;;  %v2143_v31 = vld [vmem:[#allocation2 + $0xd0] sm:$0xff] }
 0x8c7   : > { %v3406_v49 = vadd.f32 %v11372_v48, %v2118_v21  ;;  %v2311_v13 = vpop.f32.mrb[1].mxu0  ;;  %v3421_v53 = vadd.f32 %v2456_v51, %v2133_v27  ;;  %v2130_v51 = vld [vmem:[#allocation2 + $0x68] sm:$0xff] }
 0x8c8   : > { %v3405_v52 = vadd.f32 %v2311_v13, %v2117_v11  ;;  %3551 = vst.msk [vmem:[#allocation2 + $0x88] sm:$0xff] %vm20660_vm1, %v3422_v50  ;;  %vm20675_vm1 = vmmov %vm20659_vm0 }
 0x8c9   : > { %3535 = vst.msk [vmem:[#allocation2 + $0x8] sm:$0xff] %vm20659_vm0, %v3406_v49  ;;  %v11431_v35 = vpop.f32.mrb[2].mxu1 }
 0x8ca   : > { %3534 = vst.msk [vmem:[#allocation2] sm:$0xff] %vm20661_vm2, %v3405_v52  ;;  %v11375_v34 = vpop.f32.mrb[2].mxu0  ;;  %v3424_v15 = vadd.f32 %v11431_v35, %v2136_v0  ;;  %v2466_v38 = vpop.f32.mrb[3].mxu1  ;;  %vm20676_vm2 = vmmov %vm20659_vm0  ;;  %v2146_v52 = vld [vmem:[#allocation2 + $0xe8] sm:$0xff] }
 0x8cb   : > { %3550 = vst.msk [vmem:[#allocation2 + $0x80] sm:$0xff] %vm20662_vm3, %v3421_v53  ;;  %v3408_v36 = vadd.f32 %v11375_v34, %v2120_v63  ;;  %v2321_v37 = vpop.f32.mrb[3].mxu0  ;;  %v3423_v56 = vadd.f32 %v2466_v38, %v2135_v1  ;;  %vm20677_vm3 = vmmov %vm20659_vm0  ;;  %v2129_v53 = vld [vmem:[#allocation2 + $0x60] sm:$0xff]  ;;  %v2132_v38 = vld [vmem:[#allocation2 + $0x78] sm:$0xff] }
 0x8cc   : > { %v3407_v55 = vadd.f32 %v2321_v37, %v2119_v14  ;;  %3553 = vst.msk [vmem:[#allocation2 + $0x98] sm:$0xff] %vm20664_vm5, %v3424_v15  ;;  %vm20679_vm5 = vmmov %vm20659_vm0  ;;  %v2145_v63 = vld [vmem:[#allocation2 + $0xe0] sm:$0xff] }
 0x8cd   : > { %3537 = vst.msk [vmem:[#allocation2 + $0x18] sm:$0xff] %vm20663_vm4, %v3408_v36  ;;  %v11434_v62 = vpop.f32.mrb[4].mxu1  ;;  %vm20678_vm4 = vmmov %vm20659_vm0 }
 0x8ce   : > { %3536 = vst.msk [vmem:[#allocation2 + $0x10] sm:$0xff] %vm20665_vm6, %v3407_v55  ;;  %v11378_v57 = vpop.f32.mrb[4].mxu0  ;;  %v3426_v16 = vadd.f32 %v11434_v62, %v2138_v4  ;;  %v2476_v32 = vpop.f32.mrb[5].mxu1  ;;  %vm20680_vm6 = vmmov %vm20659_vm0  ;;  %v2148_v55 = vld [vmem:[#allocation2 + $0xf8] sm:$0xff]  ;;  %v2147_v4 = vld [vmem:[#allocation2 + $0xf0] sm:$0xff] }
 0x8cf   : > { %3552 = vst.msk [vmem:[#allocation2 + $0x90] sm:$0xff] %vm20666_vm7, %v3423_v56  ;;  %v3410_v5 = vadd.f32 %v11378_v57, %v2122_v3  ;;  %v2331_v17 = vpop.f32.mrb[5].mxu0  ;;  %v3425_v58 = vadd.f32 %v2476_v32, %v2137_v61  ;;  %vm20681_vm7 = vmmov %vm20659_vm0  ;;  %v2131_v56 = vld [vmem:[#allocation2 + $0x70] sm:$0xff]  ;;  %v2150_v32 = vld [vmem:[#allocation2 + $0x108] sm:$0xff] }
 0x8d0   : > { %v3409_v40 = vadd.f32 %v2331_v17, %v2121_v54  ;;  %3555 = vst.msk [vmem:[#allocation2 + $0xa8] sm:$0xff] %vm20668_vm9, %v3426_v16  ;;  %vm20683_vm9 = vmmov %vm20659_vm0 }
 0x8d1   : > { %3539 = vst.msk [vmem:[#allocation2 + $0x28] sm:$0xff] %vm20667_vm8, %v3410_v5  ;;  %vm20682_vm8 = vmmov %vm20659_vm0 }
 0x8d2   : > { %3538 = vst.msk [vmem:[#allocation2 + $0x20] sm:$0xff] %vm20669_vm10, %v3409_v40  ;;  %v11381_v42 = vpop.f32.mrb[6].mxu0  ;;  %v11437_v43 = vpop.f32.mrb[6].mxu1  ;;  %vm20684_vm10 = vmmov %vm20659_vm0  ;;  %v2166_v40 = vld [vmem:[#allocation2 + $0x188] sm:$0xff] }
 0x8d3   : > { %3554 = vst.msk [vmem:[#allocation2 + $0xa0] sm:$0xff] %vm20670_vm11, %v3425_v58  ;;  %v3412_v8 = vadd.f32 %v11381_v42, %v2124_v6  ;;  %v2341_v44 = vpop.f32.mrb[7].mxu0  ;;  %v3428_v45 = vadd.f32 %v11437_v43, %v2140_v41  ;;  %v2486_v10 = vpop.f32.mrb[7].mxu1  ;;  %vm20685_vm11 = vmmov %vm20659_vm0  ;;  %v2149_v58 = vld [vmem:[#allocation2 + $0x100] sm:$0xff] }
 0x8d4   : > { %v3411_v9 = vadd.f32 %v2341_v44, %v2123_v7  ;;  %v3427_v46 = vadd.f32 %v2486_v10, %v2139_v59  ;;  %v2165_v41 = vld [vmem:[#allocation2 + $0x180] sm:$0xff]  ;;  %v2152_v10 = vld [vmem:[#allocation2 + $0x118] sm:$0xff] }
 0x8d5   : > { %3541 = vst.msk [vmem:[#allocation2 + $0x38] sm:$0xff] %vm20671_vm12, %v3412_v8  ;;  %vm20686_vm12 = vmmov %vm20659_vm0  ;;  %v15366_v8 = vmov 1983009808  }
 0x8d6   : > { %3557 = vst.msk [vmem:[#allocation2 + $0xb8] sm:$0xff] %vm20672_vm13, %v3428_v45  ;;  %v11384_v22 = vpop.f32.mrb[8].mxu0  ;;  %v11440_v26 = vpop.f32.mrb[8].mxu1  ;;  %vm20687_vm13 = vmmov %vm20659_vm0  ;;  %v3796_v43 = vunpack.c.l.s4 %v15366_v8  ;;  %v2158_v8 = vld [vmem:[#allocation2 + $0x148] sm:$0xff] }
 0x8d7   : > { %3540 = vst.msk [vmem:[#allocation2 + $0x30] sm:$0xff] %vm20673_vm14, %v3411_v9  ;;  %v3414_v29 = vadd.f32 %v11384_v22, %v2126_v60  ;;  %v3430_v33 = vadd.f32 %v11440_v26, %v2142_v47  ;;  %v2351_v25 = vpop.f32.mrb[9].mxu0  ;;  %v2496_v30 = vpop.f32.mrb[9].mxu1  ;;  %vm20688_vm14 = vmmov %vm20659_vm0  ;;  %v2168_v60 = vld [vmem:[#allocation2 + $0x198] sm:$0xff]  ;;  %v2151_v47 = vld [vmem:[#allocation2 + $0x110] sm:$0xff] }
 0x8d8   : > { %3556 = vst.msk [vmem:[#allocation2 + $0xb0] sm:$0xff] %vm20674_vm15, %v3427_v46  ;;  %v3413_v23 = vadd.f32 %v2351_v25, %v2125_v39  ;;  %v3429_v24 = vadd.f32 %v2496_v30, %v2141_v19  ;;  %vm20689_vm15 = vmmov %vm20659_vm0  ;;  %v15367_v39 = vmov 1934713408   ;;  %v2167_v26 = vld [vmem:[#allocation2 + $0x190] sm:$0xff]  ;;  %v3797_v30 = vunpack.c.0.s8 %v3796_v43  ;;  %v2174_v43 = vld [vmem:[#allocation2 + $0x1c8] sm:$0xff] }
 0x8d9   : > { %3543 = vst.msk [vmem:[#allocation2 + $0x48] sm:$0xff] %vm20659_vm0, %v3414_v29  ;;  %v3860_v19 = vunpack.c.l.s4 %v15367_v39  ;;  %v18077_v39 = vld [vmem:[#allocation2 + $0x10] sm:$0xff] }
 0x8da   : > { %3559 = vst.msk [vmem:[#allocation2 + $0xc8] sm:$0xff] %vm20675_vm1, %v3430_v33  ;;  %v11387_v21 = vpop.f32.mrb[10].mxu0  ;;  %vm20690_vm1 = vmmov %vm20659_vm0 }
 0x8db   : > { %3542 = vst.msk [vmem:[#allocation2 + $0x40] sm:$0xff] %vm20676_vm2, %v3413_v23  ;;  %v3416_v11 = vadd.f32 %v11387_v21, %v2128_v28  ;;  %v11443_v27 = vpop.f32.mrb[10].mxu1  ;;  %v2361_v48 = vpop.f32.mrb[11].mxu0  ;;  %vm20691_vm2 = vmmov %vm20659_vm0  ;;  %v2170_v21 = vld [vmem:[#allocation2 + $0x1a8] sm:$0xff] }
 0x8dc   : > { %3558 = vst.msk [vmem:[#allocation2 + $0xc0] sm:$0xff] %vm20677_vm3, %v3429_v24  ;;  %v3432_v12 = vadd.f32 %v11443_v27, %v2144_v18  ;;  %v3415_v49 = vadd.f32 %v2361_v48, %v2127_v20  ;;  %v2506_v50 = vpop.f32.mrb[11].mxu1  ;;  %vm20692_vm3 = vmmov %vm20659_vm0  ;;  %v2154_v18 = vld [vmem:[#allocation2 + $0x128] sm:$0xff]  ;;  %v2169_v48 = vld [vmem:[#allocation2 + $0x1a0] sm:$0xff] }
 0x8dd   : > { %3545 = vst.msk [vmem:[#allocation2 + $0x58] sm:$0xff] %vm20678_vm4, %v3416_v11  ;;  %v3431_v13 = vadd.f32 %v2506_v50, %v2143_v31  ;;  %vm20693_vm4 = vmmov %vm20659_vm0  ;;  %v2153_v31 = vld [vmem:[#allocation2 + $0x120] sm:$0xff]  ;;  %v3861_v11 = vunpack.c.0.s8 %v3860_v19 }
 0x8de   : > { %3561 = vst.msk [vmem:[#allocation2 + $0xd8] sm:$0xff] %vm20679_vm5, %v3432_v12  ;;  %vm20694_vm5 = vmmov %vm20659_vm0 }
 0x8df   : > { %3544 = vst.msk [vmem:[#allocation2 + $0x50] sm:$0xff] %vm20680_vm6, %v3415_v49  ;;  %v11390_v0 = vpop.f32.mrb[12].mxu0  ;;  %v11446_v14 = vpop.f32.mrb[12].mxu1  ;;  %vm20695_vm6 = vmmov %vm20659_vm0 }
 0x8e0   : > { %3560 = vst.msk [vmem:[#allocation2 + $0xd0] sm:$0xff] %vm20681_vm7, %v3431_v13  ;;  %v3418_v1 = vadd.f32 %v11390_v0, %v2130_v51  ;;  %v3434_v34 = vadd.f32 %v11446_v14, %v2146_v52  ;;  %v2371_v35 = vpop.f32.mrb[13].mxu0  ;;  %v2516_v36 = vpop.f32.mrb[13].mxu1  ;;  %vm20696_vm7 = vmmov %vm20659_vm0  ;;  %v2156_v13 = vld [vmem:[#allocation2 + $0x138] sm:$0xff]  ;;  %v2155_v52 = vld [vmem:[#allocation2 + $0x130] sm:$0xff] }
 0x8e1   : > { %v3417_v15 = vadd.f32 %v2371_v35, %v2129_v53  ;;  %v3433_v37 = vadd.f32 %v2516_v36, %v2145_v63  ;;  %v2172_v51 = vld [vmem:[#allocation2 + $0x1b8] sm:$0xff]  ;;  %v18059_v53 = vsub.s32 %v3797_v30, %v16231_v2 }
 0x8e2   : > { %3547 = vst.msk [vmem:[#allocation2 + $0x68] sm:$0xff] %vm20682_vm8, %v3418_v1  ;;  %v3666_v1 = vld [vmem:[#allocation2 + $0x8] sm:$0xff]  ;;  %vm20697_vm8 = vmmov %vm20659_vm0 }
 0x8e3   : > { %3563 = vst.msk [vmem:[#allocation2 + $0xe8] sm:$0xff] %vm20683_vm9, %v3434_v34  ;;  %v11393_v3 = vpop.f32.mrb[14].mxu0  ;;  %v3682_v34 = vld [vmem:[#allocation2 + $0x88] sm:$0xff]  ;;  %vm20698_vm9 = vmmov %vm20659_vm0 }
 0x8e4   : > { %3546 = vst.msk [vmem:[#allocation2 + $0x60] sm:$0xff] %vm20684_vm10, %v3417_v15  ;;  %v3420_v54 = vadd.f32 %v11393_v3, %v2132_v38  ;;  %v11449_v61 = vpop.f32.mrb[14].mxu1  ;;  %v2381_v57 = vpop.f32.mrb[15].mxu0  ;;  %v3665_v15 = vld [vmem:[#allocation2] sm:$0xff]  ;;  %vm20699_vm10 = vmmov %vm20659_vm0 }
 0x8e5   : > { %3562 = vst.msk [vmem:[#allocation2 + $0xe0] sm:$0xff] %vm20685_vm11, %v3433_v37  ;;  %v3436_v62 = vadd.f32 %v11449_v61, %v2148_v55  ;;  %v3419_v5 = vadd.f32 %v2381_v57, %v2131_v56  ;;  %v2526_v16 = vpop.f32.mrb[15].mxu1  ;;  %v18063_v55 = vsub.s32 %v3861_v11, %v16231_v2  ;;  %v3681_v61 = vld [vmem:[#allocation2 + $0x80] sm:$0xff]  ;;  %vm20700_vm11 = vmmov %vm20659_vm0 }
 0x8e6   : > { %3549 = vst.msk [vmem:[#allocation2 + $0x78] sm:$0xff] %vm20686_vm12, %v3420_v54  ;;  %v3435_v17 = vadd.f32 %v2526_v16, %v2147_v4  ;;  %v2171_v54 = vld [vmem:[#allocation2 + $0x1b0] sm:$0xff]  ;;  %vm20701_vm12 = vmmov %vm20659_vm0 }
 0x8e7   : > { %3565 = vst.msk [vmem:[#allocation2 + $0xf8] sm:$0xff] %vm20687_vm13, %v3436_v62  ;;  %vm20702_vm13 = vmmov %vm20659_vm0 }
 0x8e8   : > { %3548 = vst.msk [vmem:[#allocation2 + $0x70] sm:$0xff] %vm20688_vm14, %v3419_v5  ;;  %v11484_v6 = vpop.f32.mrb[16].mxu0  ;;  %vm20703_vm14 = vmmov %vm20659_vm0 }
 0x8e9   : > { %3564 = vst.msk [vmem:[#allocation2 + $0xf0] sm:$0xff] %vm20689_vm15, %v3435_v17  ;;  %v3438_v7 = vadd.f32 %v11484_v6, %v2150_v32  ;;  %v11540_v42 = vpop.f32.mrb[16].mxu1  ;;  %v2601_v59 = vpop.f32.mrb[17].mxu0  ;;  %vm20704_vm15 = vmmov %vm20659_vm0 }
 0x8ea   : > { %v3454_v44 = vadd.f32 %v11540_v42, %v2166_v40  ;;  %v3437_v45 = vadd.f32 %v2601_v59, %v2149_v58  ;;  %v2746_v9 = vpop.f32.mrb[17].mxu1 }
 0x8eb   : > { %3567 = vst.msk [vmem:[#allocation2 + $0x108] sm:$0xff] %vm20659_vm0, %v3438_v7  ;;  %v3453_v46 = vadd.f32 %v2746_v9, %v2165_v41 }
 0x8ec   : > { %3583 = vst.msk [vmem:[#allocation2 + $0x188] sm:$0xff] %vm20690_vm1, %v3454_v44  ;;  %v11487_v22 = vpop.f32.mrb[18].mxu0  ;;  %vm20705_vm1 = vmmov %vm20659_vm0 }
 0x8ed   : > { %3566 = vst.msk [vmem:[#allocation2 + $0x100] sm:$0xff] %vm20691_vm2, %v3437_v45  ;;  %v3440_v29 = vadd.f32 %v11487_v22, %v2152_v10  ;;  %v11543_v33 = vpop.f32.mrb[18].mxu1  ;;  %v2611_v25 = vpop.f32.mrb[19].mxu0  ;;  %v2157_v10 = vld [vmem:[#allocation2 + $0x140] sm:$0xff]  ;;  %vm20706_vm2 = vmmov %vm20659_vm0 }
 0x8ee   : > { %3582 = vst.msk [vmem:[#allocation2 + $0x180] sm:$0xff] %vm20692_vm3, %v3453_v46  ;;  %v3456_v23 = vadd.f32 %v11543_v33, %v2168_v60  ;;  %v3439_v24 = vadd.f32 %v2611_v25, %v2151_v47  ;;  %v2756_v28 = vpop.f32.mrb[19].mxu1  ;;  %vm20707_vm3 = vmmov %vm20659_vm0 }
 0x8ef   : > { %3569 = vst.msk [vmem:[#allocation2 + $0x118] sm:$0xff] %vm20693_vm4, %v3440_v29  ;;  %v3455_v20 = vadd.f32 %v2756_v28, %v2167_v26  ;;  %v2173_v26 = vld [vmem:[#allocation2 + $0x1c0] sm:$0xff]  ;;  %vm20708_vm4 = vmmov %vm20659_vm0 }
 0x8f0   : > { %3585 = vst.msk [vmem:[#allocation2 + $0x198] sm:$0xff] %vm20694_vm5, %v3456_v23  ;;  %v11490_v27 = vpop.f32.mrb[20].mxu0  ;;  %vm20709_vm5 = vmmov %vm20659_vm0 }
 0x8f1   : > { %3568 = vst.msk [vmem:[#allocation2 + $0x110] sm:$0xff] %vm20695_vm6, %v3439_v24  ;;  %v3442_v12 = vadd.f32 %v11490_v27, %v2154_v18  ;;  %v11546_v49 = vpop.f32.mrb[20].mxu1  ;;  %v2621_v50 = vpop.f32.mrb[21].mxu0  ;;  %vm20710_vm6 = vmmov %vm20659_vm0 }
 0x8f2   : > { %3584 = vst.msk [vmem:[#allocation2 + $0x190] sm:$0xff] %vm20696_vm7, %v3455_v20  ;;  %v3458_v63 = vadd.f32 %v11546_v49, %v2170_v21  ;;  %v3441_v0 = vadd.f32 %v2621_v50, %v2153_v31  ;;  %v2766_v14 = vpop.f32.mrb[21].mxu1  ;;  %v3698_v35 = vld [vmem:[#allocation2 + $0x108] sm:$0xff]  ;;  %vm20711_vm7 = vmmov %vm20659_vm0 }
 0x8f3   : > { %3571 = vst.msk [vmem:[#allocation2 + $0x128] sm:$0xff] %vm20697_vm8, %v3442_v12  ;;  %v3457_v36 = vadd.f32 %v2766_v14, %v2169_v48  ;;  %v3714_v38 = vld [vmem:[#allocation2 + $0x188] sm:$0xff]  ;;  %v3929_v56 = vcombine.low %v3666_v1, %v3698_v35  ;;  %v3930_v3 = vcombine.high %v3666_v1, %v3698_v35  ;;  %v2160_v48 = vld [vmem:[#allocation2 + $0x158] sm:$0xff]  ;;  %v2175_v1 = vld [vmem:[#allocation2 + $0x1d0] sm:$0xff] }
 0x8f4   : > { %v3697_v37 = vld [vmem:[#allocation2 + $0x100] sm:$0xff]  ;;  %3587 = vst.msk [vmem:[#allocation2 + $0x1a8] sm:$0xff] %vm20698_vm9, %v3458_v63  ;;  %v11493_v4 = vpop.f32.mrb[22].mxu0  ;;  %v3945_v16 = vcombine.low %v3682_v34, %v3714_v38  ;;  %v3946_v17 = vcombine.high %v3682_v34, %v3714_v38  ;;  %vm20712_vm8 = vmmov %vm20659_vm0 }
 0x8f5   : > { %3570 = vst.msk [vmem:[#allocation2 + $0x120] sm:$0xff] %vm20699_vm10, %v3441_v0  ;;  %v3713_v57 = vld [vmem:[#allocation2 + $0x180] sm:$0xff]  ;;  %v3793_v62 = vcombine.low %v3665_v15, %v3697_v37  ;;  %v3794_v5 = vcombine.high %v3665_v15, %v3697_v37  ;;  %v3444_v32 = vadd.f32 %v11493_v4, %v2156_v13  ;;  %v11549_v40 = vpop.f32.mrb[22].mxu1  ;;  %v2631_v2 = vpop.f32.mrb[23].mxu0  ;;  %v18069_v41 = vrot.slane %v3929_v56, %v18059_v53  ;;  %v2176_v13 = vld [vmem:[#allocation2 + $0x1d8] sm:$0xff]  ;;  %vm20714_vm9 = vmmov %vm20659_vm0 }
 0x8f6   : > { %3586 = vst.msk [vmem:[#allocation2 + $0x1a0] sm:$0xff] %vm20700_vm11, %v3457_v36  ;;  %v3809_v58 = vcombine.low %v3681_v61, %v3713_v57  ;;  %v3810_v6 = vcombine.high %v3681_v61, %v3713_v57  ;;  %v3460_v7 = vadd.f32 %v11549_v40, %v2172_v51  ;;  %v3443_v42 = vadd.f32 %v2631_v2, %v2155_v52  ;;  %v2776_v59 = vpop.f32.mrb[23].mxu1  ;;  %v2159_v51 = vld [vmem:[#allocation2 + $0x150] sm:$0xff]  ;;  %v2178_v40 = vld [vmem:[#allocation2 + $0x1e8] sm:$0xff]  ;;  %v2161_v2 = vld [vmem:[#allocation2 + $0x160] sm:$0xff] }
 0x8f7   : > { %v3801_v44 = vrot.slane %v3793_v62, %v18059_v53  ;;  %v3808_v45 = vrot.slane %v3794_v5, %v18059_v53  ;;  %3573 = vst.msk [vmem:[#allocation2 + $0x138] sm:$0xff] %vm20701_vm12, %v3444_v32  ;;  %v3459_v9 = vadd.f32 %v2776_v59, %v2171_v54  ;;  %v3944_v47 = vrot.slane %v3930_v3, %v18059_v53  ;;  %v2162_v5 = vld [vmem:[#allocation2 + $0x168] sm:$0xff]  ;;  %vm20715_vm10 = vmmov %vm20659_vm0 }
 0x8f8   : > { %v3817_v46 = vrot.slane %v3809_v58, %v18059_v53  ;;  %v3824_v60 = vrot.slane %v3810_v6, %v18059_v53  ;;  %v18079_v19 = vld [vmem:[#allocation2 + $0x110] sm:$0xff]  ;;  %3589 = vst.msk [vmem:[#allocation2 + $0x1b8] sm:$0xff] %vm20702_vm13, %v3460_v7  ;;  %v11496_v22 = vpop.f32.mrb[24].mxu0  ;;  %v3953_v29 = vrot.slane %v3945_v16, %v18059_v53  ;;  %v3960_v33 = vrot.slane %v3946_v17, %v18059_v53  ;;  %vm20716_vm11 = vmmov %vm20659_vm0 }
 0x8f9   : > { %3572 = vst.msk [vmem:[#allocation2 + $0x130] sm:$0xff] %vm20703_vm14, %v3443_v42  ;;  %v4065_v25 = vcombine.low %v18077_v39, %v18079_v19  ;;  %v4066_v30 = vcombine.high %v18077_v39, %v18079_v19  ;;  %v3446_v23 = vadd.f32 %v11496_v22, %v2158_v8  ;;  %v11552_v24 = vpop.f32.mrb[24].mxu1  ;;  %v2641_v28 = vpop.f32.mrb[25].mxu0  ;;  %v2177_v42 = vld [vmem:[#allocation2 + $0x1e0] sm:$0xff]  ;;  %vm20718_vm12 = vmmov %vm20659_vm0 }
 0x8fa   : > { %3588 = vst.msk [vmem:[#allocation2 + $0x1b0] sm:$0xff] %vm20704_vm15, %v3459_v9  ;;  %v3857_v18 = vcombine.low %v3801_v44, %v3817_v46  ;;  %v3858_v20 = vcombine.high %v3801_v44, %v3817_v46  ;;  %v3873_v21 = vcombine.low %v3808_v45, %v3824_v60  ;;  %v3462_v31 = vadd.f32 %v11552_v24, %v2174_v43  ;;  %v2786_v27 = vpop.f32.mrb[25].mxu1  ;;  %vm20720_vm13 = vmmov %vm20659_vm0 }
 0x8fb   : > { %v3445_v11 = vadd.f32 %v2641_v28, %v2157_v10  ;;  %v3874_v12 = vcombine.high %v3808_v45, %v3824_v60  ;;  %v3993_v49 = vcombine.low %v18069_v41, %v3953_v29  ;;  %3575 = vst.msk [vmem:[#allocation2 + $0x148] sm:$0xff] %vm20659_vm0, %v3446_v23  ;;  %v3461_v50 = vadd.f32 %v2786_v27, %v2173_v26  ;;  %vm20721_vm14 = vmmov %vm20659_vm0 }
 0x8fc   : > { %v3865_v52 = vrot.slane %v3857_v18, %v18063_v55  ;;  %v3872_v63 = vrot.slane %v3858_v20, %v18063_v55  ;;  %v3881_v0 = vrot.slane %v3873_v21, %v18063_v55  ;;  %3591 = vst.msk [vmem:[#allocation2 + $0x1c8] sm:$0xff] %vm20705_vm1, %v3462_v31  ;;  %v11499_v14 = vpop.f32.mrb[26].mxu0  ;;  %v3994_v35 = vcombine.high %v18069_v41, %v3953_v29  ;;  %v2180_v18 = vld [vmem:[#allocation2 + $0x1f8] sm:$0xff]  ;;  %v2163_v20 = vld [vmem:[#allocation2 + $0x170] sm:$0xff]  ;;  %vm20723_vm15 = vmmov %vm20659_vm0 }
 0x8fd   : > { %3574 = vst.msk [vmem:[#allocation2 + $0x140] sm:$0xff] %vm20706_vm2, %v3445_v11  ;;  %v3888_v34 = vrot.slane %v3874_v12, %v18063_v55  ;;  %v4001_v36 = vrot.slane %v3993_v49, %v18063_v55  ;;  %v4009_v15 = vcombine.low %v3944_v47, %v3960_v33  ;;  %v3448_v37 = vadd.f32 %v11499_v14, %v2160_v48  ;;  %v11555_v38 = vpop.f32.mrb[26].mxu1  ;;  %v2651_v56 = vpop.f32.mrb[27].mxu0  ;;  %v2179_v48 = vld [vmem:[#allocation2 + $0x1f0] sm:$0xff]  ;;  %vm20724_vm1 = vmmov %vm20659_vm0 }
 0x8fe   : > { %3590 = vst.msk [vmem:[#allocation2 + $0x1c0] sm:$0xff] %vm20707_vm3, %v3461_v50  ;;  %v4010_v3 = vcombine.high %v3944_v47, %v3960_v33  ;;  %v10554_v4 = vcombine.low %v3865_v52, %v3872_v63  ;;  %v10556_v54 = vcombine.high %v3865_v52, %v3872_v63  ;;  %v3464_v61 = vadd.f32 %v11555_v38, %v2176_v13  ;;  %v2796_v62 = vpop.f32.mrb[27].mxu1  ;;  %v2164_v33 = vld [vmem:[#allocation2 + $0x178] sm:$0xff]  ;;  %v2182_v38 = vld [vmem:[#allocation2 + $0x208] sm:$0xff]  ;;  %vm20725_vm2 = vmmov %vm20659_vm0 }
 0x8ff   : > { %v3447_v57 = vadd.f32 %v2651_v56, %v2159_v51  ;;  %v4008_v16 = vrot.slane %v3994_v35, %v18063_v55  ;;  %v4017_v17 = vrot.slane %v4009_v15, %v18063_v55  ;;  %3577 = vst.msk [vmem:[#allocation2 + $0x158] sm:$0xff] %vm20708_vm4, %v3448_v37  ;;  %v3463_v32 = vadd.f32 %v2796_v62, %v2175_v1  ;;  %v3701_v56 = vld [vmem:[#allocation2 + $0x120] sm:$0xff]  ;;  %vm20726_vm3 = vmmov %vm20659_vm0 }
 0x900   : > { %v4024_v58 = vrot.slane %v4010_v3, %v18063_v55  ;;  %v5977_v6 = vrot.slane %v10554_v4, %v18059_v53  ;;  %v5993_v41 = vrot.slane %v10556_v54, %v18059_v53  ;;  %3593 = vst.msk [vmem:[#allocation2 + $0x1d8] sm:$0xff] %vm20709_vm5, %v3464_v61  ;;  %v11502_v7 = vpop.f32.mrb[28].mxu0  ;;  %v10558_v59 = vcombine.low %v3881_v0, %v3888_v34  ;;  %vm20727_vm4 = vmmov %vm20659_vm0 }
 0x901   : > { %3576 = vst.msk [vmem:[#allocation2 + $0x150] sm:$0xff] %vm20710_vm6, %v3447_v57  ;;  %v10560_v8 = vcombine.high %v3881_v0, %v3888_v34  ;;  %v10562_v43 = vcombine.low %v4001_v36, %v4008_v16  ;;  %v10564_v44 = vcombine.high %v4001_v36, %v4008_v16  ;;  %v3450_v45 = vadd.f32 %v11502_v7, %v2162_v5  ;;  %v11558_v9 = vpop.f32.mrb[28].mxu1  ;;  %v2661_v10 = vpop.f32.mrb[29].mxu0  ;;  %v2181_v57 = vld [vmem:[#allocation2 + $0x200] sm:$0xff]  ;;  %v2198_v16 = vld [vmem:[#allocation2 + $0x288] sm:$0xff]  ;;  %vm20728_vm5 = vmmov %vm20659_vm0 }
 0x902   : > { %3592 = vst.msk [vmem:[#allocation2 + $0x1d0] sm:$0xff] %vm20711_vm7, %v3463_v32  ;;  %v6033_v46 = vcombine.low %v5977_v6, %v5993_v41  ;;  %v10566_v60 = vcombine.low %v4017_v17, %v4024_v58  ;;  %v10568_v47 = vcombine.high %v4017_v17, %v4024_v58  ;;  %v3466_v22 = vadd.f32 %v11558_v9, %v2178_v40  ;;  %v2806_v29 = vpop.f32.mrb[29].mxu1  ;;  %v3717_v58 = vld [vmem:[#allocation2 + $0x1a0] sm:$0xff]  ;;  %vm20729_vm6 = vmmov %vm20659_vm0 }
 0x903   : > { %v3449_v26 = vadd.f32 %v2661_v10, %v2161_v2  ;;  %v6009_v23 = vrot.slane %v10558_v59, %v18059_v53  ;;  %v6025_v24 = vrot.slane %v10560_v8, %v18059_v53  ;;  %3579 = vst.msk [vmem:[#allocation2 + $0x168] sm:$0xff] %vm20712_vm8, %v3450_v45  ;;  %v3465_v28 = vadd.f32 %v2806_v29, %v2177_v42  ;;  %v3669_v2 = vld [vmem:[#allocation2 + $0x20] sm:$0xff]  ;;  %vm20730_vm7 = vmmov %vm20659_vm0 }
 0x904   : > { %v18114_v21 = vrot.slane %v6033_v46, %v18063_v55  ;;  %v6113_v31 = vrot.slane %v10562_v43, %v18059_v53  ;;  %v6129_v11 = vrot.slane %v10564_v44, %v18059_v53  ;;  %3595 = vst.msk [vmem:[#allocation2 + $0x1e8] sm:$0xff] %vm20714_vm9, %v3466_v22  ;;  %v11505_v27 = vpop.f32.mrb[30].mxu0  ;;  %v6145_v49 = vrot.slane %v10566_v60, %v18059_v53  ;;  %v2197_v42 = vld [vmem:[#allocation2 + $0x280] sm:$0xff]  ;;  %v3702_v46 = vld [vmem:[#allocation2 + $0x128] sm:$0xff]  ;;  %vm20731_vm8 = vmmov %vm20659_vm0 }
 0x905   : > { %3578 = vst.msk [vmem:[#allocation2 + $0x160] sm:$0xff] %vm20715_vm10, %v3449_v26  ;;  %v6065_v12 = vcombine.low %v6009_v23, %v6025_v24  ;;  %v6161_v50 = vrot.slane %v10568_v47, %v18059_v53  ;;  %v6034_v13 = vcombine.high %v5977_v6, %v5993_v41  ;;  %v3452_v51 = vadd.f32 %v11505_v27, %v2164_v33  ;;  %v11561_v52 = vpop.f32.mrb[30].mxu1  ;;  %v2671_v63 = vpop.f32.mrb[31].mxu0  ;;  %v3685_v10 = vld [vmem:[#allocation2 + $0xa0] sm:$0xff]  ;;  %v3718_v26 = vld [vmem:[#allocation2 + $0x1a8] sm:$0xff]  ;;  %vm20733_vm9 = vmmov %vm20659_vm0 }
 0x906   : > { %20713 = vst [vmem:[#allocation45_spill] sm:$0xff] %v18114_v21  ;;  %3594 = vst.msk [vmem:[#allocation2 + $0x1e0] sm:$0xff] %vm20716_vm11, %v3465_v28  ;;  %v6169_v0 = vcombine.low %v6113_v31, %v6129_v11  ;;  %v6066_v14 = vcombine.high %v6009_v23, %v6025_v24  ;;  %v6170_v1 = vcombine.high %v6113_v31, %v6129_v11  ;;  %v2816_v36 = vpop.f32.mrb[31].mxu1  ;;  %v3670_v11 = vld [vmem:[#allocation2 + $0x28] sm:$0xff] }
 0x907   : > { %v3468_v34 = vadd.f32 %v11561_v52, %v2180_v18  ;;  %v3451_v35 = vadd.f32 %v2671_v63, %v2163_v20  ;;  %v18124_v15 = vrot.slane %v6065_v12, %v18063_v55  ;;  %v6201_v37 = vcombine.low %v6145_v49, %v6161_v50  ;;  %3581 = vst.msk [vmem:[#allocation2 + $0x178] sm:$0xff] %vm20718_vm12, %v3452_v51  ;;  %v2200_v20 = vld [vmem:[#allocation2 + $0x298] sm:$0xff]  ;;  %vm20736_vm10 = vmmov %vm20659_vm0 }
 0x908   : > { %v3467_v3 = vadd.f32 %v2816_v36, %v2179_v48  ;;  %v18128_v4 = vrot.slane %v6169_v0, %v18063_v55  ;;  %v6048_v54 = vrot.slane %v6034_v13, %v18063_v55  ;;  %v6080_v61 = vrot.slane %v6066_v14, %v18063_v55  ;;  %v11596_v40 = vpop.f32.mrb[32].mxu0  ;;  %v3686_v48 = vld [vmem:[#allocation2 + $0xa8] sm:$0xff]  ;;  %vm20740_vm11 = vmmov %vm20659_vm0 }
 0x909   : > { %20717 = vst [vmem:[#allocation46_spill] sm:$0xff] %v18124_v15  ;;  %3597 = vst.msk [vmem:[#allocation2 + $0x1f8] sm:$0xff] %vm20720_vm13, %v3468_v34  ;;  %v6098_v62 = vcombine.high %v18114_v21, %v18124_v15  ;;  %v18137_v5 = vrot.slane %v6201_v37, %v18063_v55  ;;  %v6184_v17 = vrot.slane %v6170_v1, %v18063_v55  ;;  %v2891_v7 = vpop.f32.mrb[33].mxu0  ;;  %v3690_v15 = vld [vmem:[#allocation2 + $0xc8] sm:$0xff] }
 0x90a   : > { %20719 = vst [vmem:[#allocation47_spill] sm:$0xff] %v18128_v4  ;;  %3580 = vst.msk [vmem:[#allocation2 + $0x170] sm:$0xff] %vm20721_vm14, %v3451_v35  ;;  %v6202_v32 = vcombine.high %v6145_v49, %v6161_v50  ;;  %v6099_v6 = vcombine.low %v6048_v54, %v6080_v61  ;;  %v3470_v41 = vadd.f32 %v11596_v40, %v2182_v38  ;;  %v11652_v44 = vpop.f32.mrb[32].mxu1  ;;  %v2184_v38 = vld [vmem:[#allocation2 + $0x218] sm:$0xff] }
 0x90b   : > { %20722 = vst [vmem:[#allocation48_spill] sm:$0xff] %v18137_v5  ;;  %3596 = vst.msk [vmem:[#allocation2 + $0x1f0] sm:$0xff] %vm20723_vm15, %v3467_v3  ;;  %v6100_v59 = vcombine.high %v6048_v54, %v6080_v61  ;;  %v4337_v8 = vcombine.low %v3669_v2, %v3701_v56  ;;  %v6234_v43 = vcombine.high %v18128_v4, %v18137_v5  ;;  %v3036_v22 = vpop.f32.mrb[33].mxu1 }
 0x90c   : > { %v6216_v45 = vrot.slane %v6202_v32, %v18063_v55  ;;  %v3469_v9 = vadd.f32 %v2891_v7, %v2181_v57  ;;  %v4338_v60 = vcombine.high %v3669_v2, %v3701_v56  ;;  %v3486_v47 = vadd.f32 %v11652_v44, %v2198_v16  ;;  %3599 = vst.msk [vmem:[#allocation2 + $0x208] sm:$0xff] %vm20659_vm0, %v3470_v41  ;;  %v11599_v27 = vpop.f32.mrb[34].mxu0  ;;  %v2183_v56 = vld [vmem:[#allocation2 + $0x210] sm:$0xff]  ;;  %vm20741_vm12 = vmmov %vm20659_vm0 }
 0x90d   : > { %v4345_v29 = vrot.slane %v4337_v8, %v18059_v53  ;;  %v4353_v33 = vcombine.low %v3685_v10, %v3717_v58  ;;  %v4354_v23 = vcombine.high %v3685_v10, %v3717_v58  ;;  %v13391_v24 = vpack.i.bf16 %v6234_v43, %v6098_v62  ;;  %v2901_v51 = vpop.f32.mrb[35].mxu0  ;;  %vm20748_vm13 = vmmov %vm20659_vm0 }
 0x90e   : > { %v6235_v28 = vcombine.low %v6184_v17, %v6216_v45  ;;  %3598 = vst.msk [vmem:[#allocation2 + $0x200] sm:$0xff] %vm20724_vm1, %v3469_v9  ;;  %v3485_v18 = vadd.f32 %v3036_v22, %v2197_v42  ;;  %v6236_v31 = vcombine.high %v6184_v17, %v6216_v45  ;;  %v4352_v12 = vrot.slane %v4338_v60, %v18059_v53  ;;  %v11655_v63 = vpop.f32.mrb[34].mxu1  ;;  %v2199_v22 = vld [vmem:[#allocation2 + $0x290] sm:$0xff]  ;;  %vm20750_vm14 = vmmov %vm20659_vm0 }
 0x90f   : > { %3615 = vst.msk [vmem:[#allocation2 + $0x288] sm:$0xff] %vm20725_vm2, %v3486_v47  ;;  %v4361_v49 = vrot.slane %v4353_v33, %v18059_v53  ;;  %v4368_v50 = vrot.slane %v4354_v23, %v18059_v53  ;;  %v4473_v13 = vcombine.low %v3670_v11, %v3702_v46  ;;  %13392 = vrot.lane.b32.xlu1 %v13391_v24, %s15368_s20  ;;  %v3046_v3 = vpop.f32.mrb[35].mxu1  ;;  %vm20752_vm15 = vmmov %vm20659_vm0 }
 0x910   : > { %v13396_v52 = vpack.i.bf16 %v6235_v28, %v6099_v6  ;;  %3614 = vst.msk [vmem:[#allocation2 + $0x280] sm:$0xff] %vm20726_vm3, %v3485_v18  ;;  %v13401_v0 = vpack.i.bf16 %v6236_v31, %v6100_v59  ;;  %v4474_v14 = vcombine.high %v3670_v11, %v3702_v46  ;;  %v4489_v1 = vcombine.low %v3686_v48, %v3718_v26  ;;  %v18155_v16 = vpop.f32.mrb[36].mxu0  ;;  %v2202_v28 = vld [vmem:[#allocation2 + $0x2a8] sm:$0xff]  ;;  %vm20756_vm1 = vmmov %vm20659_vm0 }
 0x911   : > { %v3488_v34 = vadd.f32 %v11655_v63, %v2200_v20  ;;  %v4401_v35 = vcombine.low %v4345_v29, %v4361_v49  ;;  %v4402_v36 = vcombine.high %v4345_v29, %v4361_v49  ;;  %v4417_v37 = vcombine.low %v4352_v12, %v4368_v50  ;;  %v18162_v58 = vpop.f32.mrb[37].mxu0  ;;  %vm20757_vm2 = vmmov %vm20659_vm0 }
 0x912   : > { %v4418_v54 = vcombine.high %v4352_v12, %v4368_v50  ;;  %v4481_v61 = vrot.slane %v4473_v13, %v18059_v53  ;;  %v4488_v57 = vrot.slane %v4474_v14, %v18059_v53  ;;  %v4490_v62 = vcombine.high %v3686_v48, %v3718_v26  ;;  %v11658_v59 = vpop.f32.mrb[36].mxu1  ;;  %vm20758_vm3 = vmmov %vm20659_vm0 }
 0x913   : > { %3617 = vst.msk [vmem:[#allocation2 + $0x298] sm:$0xff] %vm20727_vm4, %v3488_v34  ;;  %v4409_v17 = vrot.slane %v4401_v35, %v18063_v55  ;;  %v4416_v32 = vrot.slane %v4402_v36, %v18063_v55  ;;  %v4425_v40 = vrot.slane %v4417_v37, %v18063_v55  ;;  %v4497_v2 = vrot.slane %v4489_v1, %v18059_v53  ;;  %v18167_v9 = vpop.f32.mrb[37].mxu1  ;;  %v3700_v1 = vld [vmem:[#allocation2 + $0x118] sm:$0xff]  ;;  %v3715_v34 = vld [vmem:[#allocation2 + $0x190] sm:$0xff]  ;;  %vm20759_vm4 = vmmov %vm20659_vm0 }
 0x914   : > { %13397 = vrot.lane.b32.xlu1 %v13396_v52, %s15369_s29  ;;  %v4432_v6 = vrot.slane %v4418_v54, %v18063_v55  ;;  %v4504_v41 = vrot.slane %v4490_v62, %v18059_v53  ;;  %v3472_v7 = vadd.f32 %v11599_v27, %v2184_v38  ;;  %v3471_v42 = vadd.f32 %v2901_v51, %v2183_v56  ;;  %v18171_v26 = vpop.f32.mrb[38].mxu0  ;;  %v3716_v56 = vld [vmem:[#allocation2 + $0x198] sm:$0xff] }
 0x915   : > { %v4537_v8 = vcombine.low %v4481_v61, %v4497_v2  ;;  %v4538_v43 = vcombine.high %v4481_v61, %v4497_v2  ;;  %v10586_v44 = vcombine.low %v4409_v17, %v4416_v32  ;;  %v10588_v45 = vcombine.high %v4409_v17, %v4416_v32  ;;  %v18181_v18 = vpop.f32.mrb[39].mxu0  ;;  %v3668_v17 = vld [vmem:[#allocation2 + $0x18] sm:$0xff]  ;;  %v3683_v32 = vld [vmem:[#allocation2 + $0x90] sm:$0xff] }
 0x916   : > { %v4553_v10 = vcombine.low %v4488_v57, %v4504_v41  ;;  %v4554_v46 = vcombine.high %v4488_v57, %v4504_v41  ;;  %v10590_v60 = vcombine.low %v4425_v40, %v4432_v6  ;;  %v10592_v47 = vcombine.high %v4425_v40, %v4432_v6  ;;  %3601 = vst.msk [vmem:[#allocation2 + $0x218] sm:$0xff] %vm20728_vm5, %v3472_v7  ;;  %v18192_v48 = vpop.f32.mrb[38].mxu1  ;;  %v3684_v6 = vld [vmem:[#allocation2 + $0x98] sm:$0xff]  ;;  %vm20760_vm5 = vmmov %vm20659_vm0 }
 0x917   : > { %3600 = vst.msk [vmem:[#allocation2 + $0x210] sm:$0xff] %vm20729_vm6, %v3471_v42  ;;  %v4545_v29 = vrot.slane %v4537_v8, %v18063_v55  ;;  %v4552_v33 = vrot.slane %v4538_v43, %v18063_v55  ;;  %v18176_v23 = vrot.slane %v10586_v44, %v18059_v53  ;;  %v18179_v24 = vrot.slane %v10588_v45, %v18059_v53  ;;  %v18196_v51 = vpop.f32.mrb[39].mxu1  ;;  %vm20761_vm6 = vmmov %vm20659_vm0 }
 0x918   : > { %13402 = vrot.lane.b32.xlu1 %v13401_v0, %s15370_s2  ;;  %v4561_v20 = vrot.slane %v4553_v10, %v18063_v55  ;;  %v4568_v31 = vrot.slane %v4554_v46, %v18063_v55  ;;  %v18187_v11 = vrot.slane %v10590_v60, %v18059_v53  ;;  %v18190_v27 = vrot.slane %v10592_v47, %v18059_v53  ;;  %v18200_v35 = vpop.f32.mrb[40].mxu0 }
 0x919   : > { %v6578_v12 = vcombine.high %v18176_v23, %v18179_v24  ;;  %v10594_v49 = vcombine.low %v4545_v29, %v4552_v33  ;;  %v10596_v50 = vcombine.high %v4545_v29, %v4552_v33  ;;  %v3487_v13 = vadd.f32 %v3046_v3, %v2199_v22  ;;  %v18216_v54 = vpop.f32.mrb[41].mxu0 }
 0x91a   : > { %v6610_v52 = vcombine.high %v18187_v11, %v18190_v27  ;;  %v10598_v63 = vcombine.low %v4561_v20, %v4568_v31  ;;  %v10600_v0 = vcombine.high %v4561_v20, %v4568_v31  ;;  %v3490_v14 = vadd.f32 %v11658_v59, %v2202_v28  ;;  %v18232_v40 = vpop.f32.mrb[40].mxu1 }
 0x91b   : > { %v18203_v36 = vrot.slane %v6578_v12, %v18063_v55  ;;  %v18206_v37 = vrot.slane %v10594_v49, %v18059_v53  ;;  %v18209_v38 = vrot.slane %v10596_v50, %v18059_v53  ;;  %3616 = vst.msk [vmem:[#allocation2 + $0x290] sm:$0xff] %vm20730_vm7, %v3487_v13  ;;  %v4073_v3 = vrot.slane %v4065_v25, %v18059_v53  ;;  %v18236_v59 = vpop.f32.mrb[41].mxu1  ;;  %vm20762_vm7 = vmmov %vm20659_vm0 }
 0x91c   : > { %v18219_v61 = vrot.slane %v6610_v52, %v18063_v55  ;;  %v18222_v57 = vrot.slane %v10598_v63, %v18059_v53  ;;  %v18225_v62 = vrot.slane %v10600_v0, %v18059_v53  ;;  %3619 = vst.msk [vmem:[#allocation2 + $0x2a8] sm:$0xff] %vm20731_vm8, %v3490_v14  ;;  %v4080_v25 = vrot.slane %v4066_v30, %v18059_v53  ;;  %v18242_v19 = vpop.f32.mrb[42].mxu0  ;;  %vm20763_vm8 = vmmov %vm20659_vm0 }
 0x91d   : > { %v6714_v2 = vcombine.high %v18206_v37, %v18209_v38  ;;  %v4081_v41 = vcombine.low %v3683_v32, %v3715_v34  ;;  %v4082_v7 = vcombine.high %v3683_v32, %v3715_v34  ;;  %v4201_v42 = vcombine.low %v3668_v17, %v3700_v1  ;;  %v18250_v60 = vpop.f32.mrb[43].mxu0 }
 0x91e   : > { %v6643_v8 = vcombine.low %v18203_v36, %v18219_v61  ;;  %v6746_v43 = vcombine.high %v18222_v57, %v18225_v62  ;;  %v4202_v44 = vcombine.high %v3668_v17, %v3700_v1  ;;  %v4217_v39 = vcombine.low %v3684_v6, %v3716_v56  ;;  %v18257_v28 = vpop.f32.mrb[42].mxu1 }
 0x91f   : > { %v18245_v30 = vrot.slane %v6714_v2, %v18063_v55  ;;  %v4089_v45 = vrot.slane %v4081_v41, %v18059_v53  ;;  %v4096_v10 = vrot.slane %v4082_v7, %v18059_v53  ;;  %v4209_v46 = vrot.slane %v4201_v42, %v18059_v53  ;;  %v18259_v50 = vpop.f32.mrb[43].mxu1 }
 0x920   : > { %v18253_v47 = vrot.slane %v6746_v43, %v18063_v55  ;;  %v4216_v22 = vrot.slane %v4202_v44, %v18059_v53  ;;  %v4218_v29 = vcombine.high %v3684_v6, %v3716_v56  ;;  %v4225_v33 = vrot.slane %v4217_v39, %v18059_v53  ;;  %v18264_v14 = vpop.f32.mrb[44].mxu0  ;;  %v2186_v39 = vld [vmem:[#allocation2 + $0x228] sm:$0xff] }
 0x921   : > { %v4129_v20 = vcombine.low %v4073_v3, %v4089_v45  ;;  %v4130_v31 = vcombine.high %v4073_v3, %v4089_v45  ;;  %v4145_v12 = vcombine.low %v4080_v25, %v4096_v10  ;;  %v4146_v49 = vcombine.high %v4080_v25, %v4096_v10  ;;  %v18270_v17 = vpop.f32.mrb[45].mxu0 }
 0x922   : > { %v6779_v13 = vcombine.low %v18245_v30, %v18253_v47  ;;  %v4232_v52 = vrot.slane %v4218_v29, %v18059_v53  ;;  %v4265_v63 = vcombine.low %v4209_v46, %v4225_v33  ;;  %v4266_v0 = vcombine.high %v4209_v46, %v4225_v33  ;;  %v18274_v41 = vpop.f32.mrb[44].mxu1  ;;  %v2185_v33 = vld [vmem:[#allocation2 + $0x220] sm:$0xff] }
 0x923   : > { %v4137_v1 = vrot.slane %v4129_v20, %v18063_v55  ;;  %v4144_v34 = vrot.slane %v4130_v31, %v18063_v55  ;;  %v4153_v56 = vrot.slane %v4145_v12, %v18063_v55  ;;  %v4160_v3 = vrot.slane %v4146_v49, %v18063_v55  ;;  %v18276_v45 = vpop.f32.mrb[45].mxu1 }
 0x924   : > { %v13426_v32 = vpack.i.bf16 %v6779_v13, %v6643_v8  ;;  %v4273_v25 = vrot.slane %v4265_v63, %v18063_v55  ;;  %v4280_v2 = vrot.slane %v4266_v0, %v18063_v55  ;;  %v4281_v6 = vcombine.low %v4216_v22, %v4232_v52  ;;  %v18280_v20 = vpop.f32.mrb[46].mxu0  ;;  %v2201_v13 = vld [vmem:[#allocation2 + $0x2a0] sm:$0xff] }
 0x925   : > { %v4282_v7 = vcombine.high %v4216_v22, %v4232_v52  ;;  %v10570_v42 = vcombine.low %v4137_v1, %v4144_v34  ;;  %v10572_v43 = vcombine.high %v4137_v1, %v4144_v34  ;;  %v10574_v44 = vcombine.low %v4153_v56, %v4160_v3  ;;  %v2204_v52 = vld [vmem:[#allocation2 + $0x2b8] sm:$0xff]  ;;  %v18286_v63 = vpop.f32.mrb[47].mxu0 }
 0x926   : > { %13427 = vrot.lane.b32.xlu0 %v13426_v32, %s15369_s29  ;;  %v4289_v10 = vrot.slane %v4281_v6, %v18063_v55  ;;  %v10576_v46 = vcombine.high %v4153_v56, %v4160_v3  ;;  %v10578_v8 = vcombine.low %v4273_v25, %v4280_v2  ;;  %v10580_v29 = vcombine.high %v4273_v25, %v4280_v2  ;;  %v18292_v3 = vpop.f32.mrb[46].mxu1 }
 0x927   : > { %v4296_v31 = vrot.slane %v4282_v7, %v18063_v55  ;;  %v6249_v22 = vrot.slane %v10570_v42, %v18059_v53  ;;  %v6265_v12 = vrot.slane %v10572_v43, %v18059_v53  ;;  %v6281_v49 = vrot.slane %v10574_v44, %v18059_v53  ;;  %v18295_v7 = vpop.f32.mrb[47].mxu1 }
 0x928   : > { %v6297_v0 = vrot.slane %v10576_v46, %v18059_v53  ;;  %v6385_v1 = vrot.slane %v10578_v8, %v18059_v53  ;;  %v6401_v34 = vrot.slane %v10580_v29, %v18059_v53  ;;  %v3474_v56 = vadd.f32 %v18155_v16, %v2186_v39  ;;  %20732 = vst [vmem:[#allocation49_spill] sm:$0xff] %v18295_v7  ;;  %v3705_v8 = vld [vmem:[#allocation2 + $0x140] sm:$0xff]  ;;  %v18300_v29 = vpop.f32.mrb[48].mxu0 }
 0x929   : > { %v6305_v32 = vcombine.low %v6249_v22, %v6265_v12  ;;  %v10582_v25 = vcombine.low %v4289_v10, %v4296_v31  ;;  %v10584_v2 = vcombine.high %v4289_v10, %v4296_v31  ;;  %v3473_v6 = vadd.f32 %v18162_v58, %v2185_v33  ;;  %20734 = vst [vmem:[#allocation50_spill] sm:$0xff] %v18300_v29  ;;  %v18308_v33 = vpop.f32.mrb[49].mxu0 }
 0x92a   : > { %v6337_v42 = vcombine.low %v6281_v49, %v6297_v0  ;;  %v6441_v43 = vcombine.low %v6385_v1, %v6401_v34  ;;  %3603 = vst.msk [vmem:[#allocation2 + $0x228] sm:$0xff] %vm20733_vm9, %v3474_v56  ;;  %v3489_v44 = vadd.f32 %v18167_v9, %v2201_v13  ;;  %v3492_v46 = vadd.f32 %v18192_v48, %v2204_v52  ;;  %v3673_v52 = vld [vmem:[#allocation2 + $0x40] sm:$0xff]  ;;  %vm20764_vm9 = vmmov %vm20659_vm0 }
 0x92b   : > { %v18303_v16 = vrot.slane %v6305_v32, %v18063_v55  ;;  %v6417_v39 = vrot.slane %v10582_v25, %v18059_v53  ;;  %v6433_v58 = vrot.slane %v10584_v2, %v18059_v53  ;;  %3602 = vst.msk [vmem:[#allocation2 + $0x220] sm:$0xff] %vm20736_vm10, %v3473_v6  ;;  %v6306_v10 = vcombine.high %v6249_v22, %v6265_v12  ;;  %v3721_v56 = vld [vmem:[#allocation2 + $0x1c0] sm:$0xff]  ;;  %v3706_v12 = vld [vmem:[#allocation2 + $0x148] sm:$0xff]  ;;  %v18321_v6 = vpop.f32.mrb[48].mxu1  ;;  %vm20765_vm10 = vmmov %vm20659_vm0 }
 0x92c   : > { %20737 = vst [vmem:[#allocation52_spill] sm:$0xff] %v18308_v33  ;;  %v18311_v31 = vrot.slane %v6337_v42, %v18063_v55  ;;  %v18314_v9 = vrot.slane %v6441_v43, %v18063_v55  ;;  %3618 = vst.msk [vmem:[#allocation2 + $0x2a0] sm:$0xff] %vm20740_vm11, %v3489_v44  ;;  %v6338_v48 = vcombine.high %v6281_v49, %v6297_v0  ;;  %v3689_v0 = vld [vmem:[#allocation2 + $0xc0] sm:$0xff]  ;;  %v18333_v44 = vpop.f32.mrb[49].mxu1 }
 0x92d   : > { %20735 = vst [vmem:[#allocation51_spill] sm:$0xff] %v18303_v16  ;;  %3621 = vst.msk [vmem:[#allocation2 + $0x2b8] sm:$0xff] %vm20741_vm12, %v3492_v46  ;;  %v6442_v13 = vcombine.high %v6385_v1, %v6401_v34  ;;  %v6473_v32 = vcombine.low %v6417_v39, %v6433_v58  ;;  %v18319_v25 = vrot.slane %v6306_v10, %v18063_v55  ;;  %v18331_v34 = vpop.f32.mrb[50].mxu0  ;;  %v3722_v10 = vld [vmem:[#allocation2 + $0x1c8] sm:$0xff] }
 0x92e   : > { %20738 = vst [vmem:[#allocation53_spill] sm:$0xff] %v18311_v31  ;;  %20739 = vst [vmem:[#allocation54_spill] sm:$0xff] %v18314_v9  ;;  %v6474_v22 = vcombine.high %v6417_v39, %v6433_v58  ;;  %v4881_v2 = vcombine.low %v3673_v52, %v3705_v8  ;;  %v6370_v42 = vcombine.high %v18303_v16, %v18311_v31  ;;  %v3674_v58 = vld [vmem:[#allocation2 + $0x48] sm:$0xff]  ;;  %v18342_v31 = vpop.f32.mrb[51].mxu0 }
 0x92f   : > { %20742 = vst [vmem:[#allocation55_spill] sm:$0xff] %v18321_v6  ;;  %v18326_v43 = vrot.slane %v6338_v48, %v18063_v55  ;;  %v18329_v49 = vrot.slane %v6442_v13, %v18063_v55  ;;  %v4882_v1 = vcombine.high %v3673_v52, %v3705_v8  ;;  %20743 = vst [vmem:[#allocation56_spill] sm:$0xff] %v18331_v34  ;;  %v2188_v6 = vld [vmem:[#allocation2 + $0x238] sm:$0xff] }
 0x930   : > { %20744 = vst [vmem:[#allocation57_spill] sm:$0xff] %v18333_v44  ;;  %v18336_v46 = vrot.slane %v6473_v32, %v18063_v55  ;;  %v18339_v39 = vrot.slane %v6474_v22, %v18063_v55  ;;  %v4889_v48 = vrot.slane %v4881_v2, %v18059_v53  ;;  %v4897_v16 = vcombine.low %v3689_v0, %v3721_v56  ;;  %vm20766_vm11 = vmmov %vm20659_vm0 }
 0x931   : > { %20746 = vst [vmem:[#allocation74_spill] sm:$0xff] %v18342_v31  ;;  %v6371_v8 = vcombine.low %v18319_v25, %v18326_v43  ;;  %v4896_v13 = vrot.slane %v4882_v1, %v18059_v53  ;;  %v4898_v52 = vcombine.high %v3689_v0, %v3721_v56  ;;  %v5017_v21 = vcombine.low %v3674_v58, %v3706_v12  ;;  %v18354_v1 = vpop.f32.mrb[52].mxu0  ;;  %vm20768_vm12 = vmmov %vm20659_vm0 }
 0x932   : > { %20745 = vst [vmem:[#allocation58_spill] sm:$0xff] %v18336_v46  ;;  %v6506_v32 = vcombine.high %v18314_v9, %v18336_v46  ;;  %v6507_v22 = vcombine.low %v18329_v49, %v18339_v39  ;;  %v4905_v4 = vrot.slane %v4897_v16, %v18059_v53  ;;  %v5018_v2 = vcombine.high %v3674_v58, %v3706_v12  ;;  %v18356_v46 = vpop.f32.mrb[53].mxu0 }
 0x933   : > { %v4912_v5 = vrot.slane %v4898_v52, %v18059_v53  ;;  %v5025_v44 = vrot.slane %v5017_v21, %v18059_v53  ;;  %v5033_v31 = vcombine.low %v3690_v15, %v3722_v10  ;;  %v5034_v34 = vcombine.high %v3690_v15, %v3722_v10  ;;  %v18365_v10 = vpop.f32.mrb[50].mxu1 }
 0x934   : > { %v13406_v56 = vpack.i.bf16 %v6506_v32, %v6370_v42  ;;  %v13411_v0 = vpack.i.bf16 %v6507_v22, %v6371_v8  ;;  %v4945_v33 = vcombine.low %v4889_v48, %v4905_v4  ;;  %v4946_v9 = vcombine.high %v4889_v48, %v4905_v4  ;;  %v2187_v22 = vld [vmem:[#allocation2 + $0x230] sm:$0xff] }
 0x935   : > { %v4961_v7 = vcombine.low %v4896_v13, %v4912_v5  ;;  %v4962_v29 = vcombine.high %v4896_v13, %v4912_v5  ;;  %v5032_v16 = vrot.slane %v5018_v2, %v18059_v53  ;;  %v5041_v12 = vrot.slane %v5033_v31, %v18059_v53  ;;  %v18369_v13 = vpop.f32.mrb[54].mxu0  ;;  %v18371_v31 = vpop.f32.mrb[51].mxu1 }
 0x936   : > { %13407 = vrot.lane.b32.xlu1 %v13406_v56, %s15368_s20  ;;  %v4953_v21 = vrot.slane %v4945_v33, %v18063_v55  ;;  %v4960_v15 = vrot.slane %v4946_v9, %v18063_v55  ;;  %v5048_v58 = vrot.slane %v5034_v34, %v18059_v53  ;;  %v3476_v42 = vadd.f32 %v18171_v26, %v2188_v6  ;;  %v18374_v34 = vpop.f32.mrb[55].mxu0 }
 0x937   : > { %v4969_v4 = vrot.slane %v4961_v7, %v18063_v55  ;;  %v4976_v5 = vrot.slane %v4962_v29, %v18063_v55  ;;  %v5081_v48 = vcombine.low %v5025_v44, %v5041_v12  ;;  %v5082_v8 = vcombine.high %v5025_v44, %v5041_v12  ;;  %20747 = vst [vmem:[#allocation59_spill] sm:$0xff] %v18371_v31  ;;  %v2203_v12 = vld [vmem:[#allocation2 + $0x2b0] sm:$0xff] }
 0x938   : > { %v5097_v52 = vcombine.low %v5032_v16, %v5048_v58  ;;  %v5098_v33 = vcombine.high %v5032_v16, %v5048_v58  ;;  %v10618_v32 = vcombine.low %v4953_v21, %v4960_v15  ;;  %v10620_v9 = vcombine.high %v4953_v21, %v4960_v15  ;;  %3605 = vst.msk [vmem:[#allocation2 + $0x238] sm:$0xff] %vm20748_vm13, %v3476_v42  ;;  %vm20770_vm13 = vmmov %vm20659_vm0 }
 0x939   : > { %v5089_v26 = vrot.slane %v5081_v48, %v18063_v55  ;;  %v5096_v7 = vrot.slane %v5082_v8, %v18063_v55  ;;  %v10622_v6 = vcombine.low %v4969_v4, %v4976_v5  ;;  %v10624_v29 = vcombine.high %v4969_v4, %v4976_v5  ;;  %v2206_v48 = vld [vmem:[#allocation2 + $0x2c8] sm:$0xff]  ;;  %v18385_v4 = vpop.f32.mrb[56].mxu0 }
 0x93a   : > { %13412 = vrot.lane.b32.xlu1 %v13411_v0, %s15369_s29  ;;  %v5105_v44 = vrot.slane %v5097_v52, %v18063_v55  ;;  %v5112_v2 = vrot.slane %v5098_v33, %v18063_v55  ;;  %v7065_v56 = vrot.slane %v10618_v32, %v18059_v53  ;;  %v7081_v16 = vrot.slane %v10620_v9, %v18059_v53  ;;  %v18388_v33 = vpop.f32.mrb[57].mxu0 }
 0x93b   : > { %v7097_v21 = vrot.slane %v10622_v6, %v18059_v53  ;;  %v7113_v15 = vrot.slane %v10624_v29, %v18059_v53  ;;  %v10626_v58 = vcombine.low %v5089_v26, %v5096_v7  ;;  %v10628_v42 = vcombine.high %v5089_v26, %v5096_v7 }
 0x93c   : > { %v7121_v5 = vcombine.low %v7065_v56, %v7081_v16  ;;  %v10630_v0 = vcombine.low %v5105_v44, %v5112_v2  ;;  %v10632_v8 = vcombine.high %v5105_v44, %v5112_v2  ;;  %v3475_v52 = vadd.f32 %v18181_v18, %v2187_v22  ;;  %v18400_v22 = vpop.f32.mrb[52].mxu1 }
 0x93d   : > { %v7153_v32 = vcombine.low %v7097_v21, %v7113_v15  ;;  %v7201_v9 = vrot.slane %v10626_v58, %v18059_v53  ;;  %v7217_v31 = vrot.slane %v10628_v42, %v18059_v53  ;;  %v3491_v6 = vadd.f32 %v18196_v51, %v2203_v12  ;;  %v18410_v58 = vpop.f32.mrb[58].mxu0  ;;  %v18412_v42 = vpop.f32.mrb[53].mxu1 }
 0x93e   : > { %v18394_v29 = vrot.slane %v7121_v5, %v18063_v55  ;;  %v7233_v26 = vrot.slane %v10630_v0, %v18059_v53  ;;  %v7249_v7 = vrot.slane %v10632_v8, %v18059_v53  ;;  %3604 = vst.msk [vmem:[#allocation2 + $0x230] sm:$0xff] %vm20750_vm14, %v3475_v52  ;;  %v3494_v18 = vadd.f32 %v18232_v40, %v2206_v48  ;;  %v2190_v8 = vld [vmem:[#allocation2 + $0x248] sm:$0xff]  ;;  %v2189_v52 = vld [vmem:[#allocation2 + $0x240] sm:$0xff]  ;;  %vm20771_vm14 = vmmov %vm20659_vm0 }
 0x93f   : > { %v18403_v44 = vrot.slane %v7153_v32, %v18063_v55  ;;  %v7257_v2 = vcombine.low %v7201_v9, %v7217_v31  ;;  %3620 = vst.msk [vmem:[#allocation2 + $0x2b0] sm:$0xff] %vm20752_vm15, %v3491_v6  ;;  %v6372_v51 = vcombine.high %v18319_v25, %v18326_v43  ;;  %v6508_v12 = vcombine.high %v18329_v49, %v18339_v39  ;;  %v2205_v32 = vld [vmem:[#allocation2 + $0x2c0] sm:$0xff]  ;;  %v18415_v6 = vpop.f32.mrb[59].mxu0  ;;  %vm20779_vm15 = vmmov %vm20659_vm0 }
 0x940   : > { %20749 = vst [vmem:[#allocation75_spill] sm:$0xff] %v18394_v29  ;;  %20753 = vst [vmem:[#allocation76_spill] sm:$0xff] %v18410_v58  ;;  %v7289_v5 = vcombine.low %v7233_v26, %v7249_v7  ;;  %v7122_v40 = vcombine.high %v7065_v56, %v7081_v16  ;;  %v7154_v48 = vcombine.high %v7097_v21, %v7113_v15 }
 0x941   : > { %20751 = vst [vmem:[#allocation60_spill] sm:$0xff] %v18403_v44  ;;  %20754 = vst [vmem:[#allocation61_spill] sm:$0xff] %v18412_v42  ;;  %v7258_v0 = vcombine.high %v7201_v9, %v7217_v31  ;;  %v7186_v25 = vcombine.high %v18394_v29, %v18403_v44  ;;  %v18420_v43 = vrot.slane %v7257_v2, %v18063_v55  ;;  %v2208_v42 = vld [vmem:[#allocation2 + $0x2d8] sm:$0xff]  ;;  %v20777_v29 = vld [vmem:[#allocation52_spill] sm:$0xff] }
 0x942   : > { %3623 = vst.msk [vmem:[#allocation2 + $0x2c8] sm:$0xff] %vm20659_vm0, %v3494_v18  ;;  %v13416_v49 = vpack.i.bf16 %v6508_v12, %v6372_v51  ;;  %v7290_v39 = vcombine.high %v7233_v26, %v7249_v7  ;;  %v18423_v58 = vrot.slane %v7289_v5, %v18063_v55  ;;  %v7136_v56 = vrot.slane %v7122_v40, %v18063_v55  ;;  %v18433_v7 = vpop.f32.mrb[60].mxu0 }
 0x943   : > { %20755 = vst [vmem:[#allocation77_spill] sm:$0xff] %v18420_v43  ;;  %v7168_v31 = vrot.slane %v7154_v48, %v18063_v55  ;;  %v7272_v16 = vrot.slane %v7258_v0, %v18063_v55  ;;  %v3478_v15 = vadd.f32 %v18200_v35, %v2190_v8  ;;  %v3477_v9 = vadd.f32 %v18216_v54, %v2189_v52  ;;  %v18440_v5 = vpop.f32.mrb[61].mxu0  ;;  %v2210_v52 = vld [vmem:[#allocation2 + $0x2e8] sm:$0xff] }
 0x944   : > { %13417 = vrot.lane.b32.xlu1 %v13416_v49, %s15370_s2  ;;  %v7304_v21 = vrot.slane %v7290_v39, %v18063_v55  ;;  %v3493_v26 = vadd.f32 %v18236_v59, %v2205_v32  ;;  %v7322_v18 = vcombine.high %v18420_v43, %v18423_v58  ;;  %v3496_v51 = vadd.f32 %v18257_v28, %v2208_v42  ;;  %v2192_v28 = vld [vmem:[#allocation2 + $0x258] sm:$0xff]  ;;  %v18455_v32 = vpop.f32.mrb[54].mxu1 }
 0x945   : > { %v7187_v2 = vcombine.low %v7136_v56, %v7168_v31  ;;  %v6577_v12 = vcombine.low %v18176_v23, %v18179_v24  ;;  %3607 = vst.msk [vmem:[#allocation2 + $0x248] sm:$0xff] %vm20756_vm1, %v3478_v15  ;;  %v6609_v35 = vcombine.low %v18187_v11, %v18190_v27  ;;  %v6713_v54 = vcombine.low %v18206_v37, %v18209_v38  ;;  %v2191_v23 = vld [vmem:[#allocation2 + $0x250] sm:$0xff]  ;;  %v18468_v49 = vpop.f32.mrb[55].mxu1  ;;  %v20778_v43 = vld [vmem:[#allocation55_spill] sm:$0xff]  ;;  %vm20780_vm1 = vmmov %vm20659_vm0 }
 0x946   : > { %v7323_v40 = vcombine.low %v7272_v16, %v7304_v21  ;;  %3606 = vst.msk [vmem:[#allocation2 + $0x240] sm:$0xff] %vm20757_vm2, %v3477_v9  ;;  %v6745_v59 = vcombine.low %v18222_v57, %v18225_v62  ;;  %v2207_v24 = vld [vmem:[#allocation2 + $0x2d0] sm:$0xff]  ;;  %v13451_v42 = vpack.i.bf16 %v7322_v18, %v7186_v25  ;;  %v7188_v0 = vcombine.high %v7136_v56, %v7168_v31  ;;  %v3709_v57 = vld [vmem:[#allocation2 + $0x160] sm:$0xff]  ;;  %v18466_v25 = vpop.f32.mrb[62].mxu0  ;;  %vm20781_vm2 = vmmov %vm20659_vm0 }
 0x947   : > { %3622 = vst.msk [vmem:[#allocation2 + $0x2c0] sm:$0xff] %vm20758_vm3, %v3493_v26  ;;  %v18453_v48 = vrot.slane %v6577_v12, %v18063_v55  ;;  %v7324_v8 = vcombine.high %v7272_v16, %v7304_v21  ;;  %v18458_v27 = vrot.slane %v6609_v35, %v18063_v55  ;;  %v18461_v37 = vrot.slane %v6713_v54, %v18063_v55  ;;  %v3725_v62 = vld [vmem:[#allocation2 + $0x1e0] sm:$0xff]  ;;  %v3710_v21 = vld [vmem:[#allocation2 + $0x168] sm:$0xff]  ;;  %v18474_v15 = vpop.f32.mrb[63].mxu0  ;;  %vm20784_vm3 = vmmov %vm20659_vm0 }
 0x948   : > { %3625 = vst.msk [vmem:[#allocation2 + $0x2d8] sm:$0xff] %vm20759_vm4, %v3496_v51  ;;  %v13456_v11 = vpack.i.bf16 %v7323_v40, %v7187_v2  ;;  %v18464_v38 = vrot.slane %v6745_v59, %v18063_v55  ;;  %13452 = vrot.lane.b32.xlu0 %v13451_v42, %s15368_s20  ;;  %v3480_v56 = vadd.f32 %v18242_v19, %v2192_v28  ;;  %v3677_v51 = vld [vmem:[#allocation2 + $0x60] sm:$0xff]  ;;  %v3726_v12 = vld [vmem:[#allocation2 + $0x1e8] sm:$0xff]  ;;  %vm20786_vm4 = vmmov %vm20659_vm0 }
 0x949   : > { %v13461_v39 = vpack.i.bf16 %v7324_v8, %v7188_v0  ;;  %v3479_v31 = vadd.f32 %v18250_v60, %v2191_v23  ;;  %v3495_v16 = vadd.f32 %v18259_v50, %v2207_v24  ;;  %v6642_v9 = vcombine.high %v18453_v48, %v18458_v27  ;;  %v3693_v19 = vld [vmem:[#allocation2 + $0xe0] sm:$0xff]  ;;  %v3678_v50 = vld [vmem:[#allocation2 + $0x68] sm:$0xff] }
 0x94a   : > { %v6778_v26 = vcombine.high %v18461_v37, %v18464_v38  ;;  %v3498_v18 = vadd.f32 %v18274_v41, %v2210_v52  ;;  %v6644_v2 = vcombine.high %v18203_v36, %v18219_v61  ;;  %3609 = vst.msk [vmem:[#allocation2 + $0x258] sm:$0xff] %vm20760_vm5, %v3480_v56  ;;  %v6780_v60 = vcombine.high %v18245_v30, %v18253_v47  ;;  %v2194_v28 = vld [vmem:[#allocation2 + $0x268] sm:$0xff]  ;;  %v2193_v0 = vld [vmem:[#allocation2 + $0x260] sm:$0xff]  ;;  %vm20787_vm5 = vmmov %vm20659_vm0 }
 0x94b   : > { %3608 = vst.msk [vmem:[#allocation2 + $0x250] sm:$0xff] %vm20761_vm6, %v3479_v31  ;;  %v5425_v40 = vcombine.low %v3677_v51, %v3709_v57  ;;  %v5426_v35 = vcombine.high %v3677_v51, %v3709_v57  ;;  %v5441_v54 = vcombine.low %v3693_v19, %v3725_v62  ;;  %v5442_v36 = vcombine.high %v3693_v19, %v3725_v62  ;;  %v3694_v24 = vld [vmem:[#allocation2 + $0xe8] sm:$0xff]  ;;  %v2209_v56 = vld [vmem:[#allocation2 + $0x2e0] sm:$0xff]  ;;  %vm20788_vm6 = vmmov %vm20659_vm0 }
 0x94c   : > { %3624 = vst.msk [vmem:[#allocation2 + $0x2d0] sm:$0xff] %vm20762_vm7, %v3495_v16  ;;  %v13421_v41 = vpack.i.bf16 %v6778_v26, %v6642_v9  ;;  %v5561_v61 = vcombine.low %v3678_v50, %v3710_v21  ;;  %v5562_v59 = vcombine.high %v3678_v50, %v3710_v21  ;;  %13457 = vrot.lane.b32.xlu0 %v13456_v11, %s15369_s29  ;;  %v18498_v9 = vpop.f32.mrb[56].mxu1  ;;  %vm20789_vm7 = vmmov %vm20659_vm0 }
 0x94d   : > { %3627 = vst.msk [vmem:[#allocation2 + $0x2e8] sm:$0xff] %vm20763_vm8, %v3498_v18  ;;  %v13431_v23 = vpack.i.bf16 %v6780_v60, %v6644_v2  ;;  %v5433_v42 = vrot.slane %v5425_v40, %v18059_v53  ;;  %v5440_v30 = vrot.slane %v5426_v35, %v18059_v53  ;;  %v5449_v47 = vrot.slane %v5441_v54, %v18059_v53  ;;  %v18502_v19 = vpop.f32.mrb[57].mxu1  ;;  %vm20790_vm8 = vmmov %vm20659_vm0 }
 0x94e   : > { %13422 = vrot.lane.b32.xlu1 %v13421_v41, %s15368_s20  ;;  %v5456_v8 = vrot.slane %v5442_v36, %v18059_v53  ;;  %v5569_v52 = vrot.slane %v5561_v61, %v18059_v53  ;;  %v5576_v57 = vrot.slane %v5562_v59, %v18059_v53  ;;  %v5577_v62 = vcombine.low %v3694_v24, %v3726_v12 }
 0x94f   : > { %v5489_v11 = vcombine.low %v5433_v42, %v5449_v47  ;;  %v5490_v31 = vcombine.high %v5433_v42, %v5449_v47  ;;  %v5578_v16 = vcombine.high %v3694_v24, %v3726_v12  ;;  %v3482_v21 = vadd.f32 %v18264_v14, %v2194_v28  ;;  %v2196_v24 = vld [vmem:[#allocation2 + $0x278] sm:$0xff] }
 0x950   : > { %v5505_v26 = vcombine.low %v5440_v30, %v5456_v8  ;;  %v5506_v18 = vcombine.high %v5440_v30, %v5456_v8  ;;  %v5585_v2 = vrot.slane %v5577_v62, %v18059_v53  ;;  %v3481_v51 = vadd.f32 %v18270_v17, %v2193_v0  ;;  %13462 = vrot.lane.b32.xlu0 %v13461_v39, %s15370_s2  ;;  %v2195_v8 = vld [vmem:[#allocation2 + $0x270] sm:$0xff] }
 0x951   : > { %v5497_v60 = vrot.slane %v5489_v11, %v18063_v55  ;;  %v5504_v50 = vrot.slane %v5490_v31, %v18063_v55  ;;  %v5592_v12 = vrot.slane %v5578_v16, %v18059_v53  ;;  %3611 = vst.msk [vmem:[#allocation2 + $0x268] sm:$0xff] %vm20764_vm9, %v3482_v21  ;;  %v3497_v14 = vadd.f32 %v18276_v45, %v2209_v56  ;;  %v2212_v11 = vld [vmem:[#allocation2 + $0x2f8] sm:$0xff]  ;;  %vm20791_vm9 = vmmov %vm20659_vm0 }
 0x952   : > { %13432 = vrot.lane.b32.xlu1 %v13431_v23, %s15370_s2  ;;  %v5513_v40 = vrot.slane %v5505_v26, %v18063_v55  ;;  %v5520_v17 = vrot.slane %v5506_v18, %v18063_v55  ;;  %v5625_v35 = vcombine.low %v5569_v52, %v5585_v2  ;;  %v5626_v54 = vcombine.high %v5569_v52, %v5585_v2  ;;  %v3703_v18 = vld [vmem:[#allocation2 + $0x130] sm:$0xff] }
 0x953   : > { %3610 = vst.msk [vmem:[#allocation2 + $0x260] sm:$0xff] %vm20765_vm10, %v3481_v51  ;;  %v5641_v39 = vcombine.low %v5576_v57, %v5592_v12  ;;  %v5642_v41 = vcombine.high %v5576_v57, %v5592_v12  ;;  %v10650_v36 = vcombine.low %v5497_v60, %v5504_v50  ;;  %v10652_v61 = vcombine.high %v5497_v60, %v5504_v50  ;;  %v18534_v2 = vpop.f32.mrb[58].mxu1  ;;  %vm20793_vm10 = vmmov %vm20659_vm0 }
 0x954   : > { %3626 = vst.msk [vmem:[#allocation2 + $0x2e0] sm:$0xff] %vm20766_vm11, %v3497_v14  ;;  %v5633_v59 = vrot.slane %v5625_v35, %v18063_v55  ;;  %v5640_v45 = vrot.slane %v5626_v54, %v18063_v55  ;;  %v10654_v28 = vcombine.low %v5513_v40, %v5520_v17  ;;  %v10656_v23 = vcombine.high %v5513_v40, %v5520_v17  ;;  %v3704_v14 = vld [vmem:[#allocation2 + $0x138] sm:$0xff]  ;;  %v3719_v40 = vld [vmem:[#allocation2 + $0x1b0] sm:$0xff]  ;;  %v18545_v17 = vpop.f32.mrb[59].mxu1  ;;  %vm20794_vm11 = vmmov %vm20659_vm0 }
 0x955   : > { %v5649_v42 = vrot.slane %v5641_v39, %v18063_v55  ;;  %v5656_v30 = vrot.slane %v5642_v41, %v18063_v55  ;;  %v18520_v47 = vrot.slane %v10650_v36, %v18059_v53  ;;  %v18523_v0 = vrot.slane %v10652_v61, %v18059_v53  ;;  %v3671_v41 = vld [vmem:[#allocation2 + $0x30] sm:$0xff]  ;;  %v3672_v61 = vld [vmem:[#allocation2 + $0x38] sm:$0xff] }
 0x956   : > { %v18526_v52 = vrot.slane %v10654_v28, %v18059_v53  ;;  %v18529_v57 = vrot.slane %v10656_v23, %v18059_v53  ;;  %v10658_v62 = vcombine.low %v5633_v59, %v5640_v45  ;;  %v10660_v56 = vcombine.high %v5633_v59, %v5640_v45  ;;  %v3687_v59 = vld [vmem:[#allocation2 + $0xb0] sm:$0xff] }
 0x957   : > { %v7665_v31 = vcombine.low %v18520_v47, %v18523_v0  ;;  %v10662_v16 = vcombine.low %v5649_v42, %v5656_v30  ;;  %v10664_v21 = vcombine.high %v5649_v42, %v5656_v30  ;;  %v3484_v26 = vadd.f32 %v18280_v20, %v2196_v24  ;;  %v3720_v24 = vld [vmem:[#allocation2 + $0x1b8] sm:$0xff] }
 0x958   : > { %v7697_v51 = vcombine.low %v18526_v52, %v18529_v57  ;;  %v18539_v60 = vrot.slane %v10658_v62, %v18059_v53  ;;  %v18542_v50 = vrot.slane %v10660_v56, %v18059_v53  ;;  %v3483_v12 = vadd.f32 %v18286_v63, %v2195_v8 }
 0x959   : > { %v18548_v20 = vrot.slane %v7665_v31, %v18063_v55  ;;  %v18551_v35 = vrot.slane %v10662_v16, %v18059_v53  ;;  %v18554_v54 = vrot.slane %v10664_v21, %v18059_v53  ;;  %3613 = vst.msk [vmem:[#allocation2 + $0x278] sm:$0xff] %vm20768_vm12, %v3484_v26  ;;  %v3500_v39 = vadd.f32 %v18292_v3, %v2212_v11  ;;  %v3688_v16 = vld [vmem:[#allocation2 + $0xb8] sm:$0xff]  ;;  %vm20795_vm12 = vmmov %vm20659_vm0 }
 0x95a   : > { %v18559_v63 = vrot.slane %v7697_v51, %v18063_v55  ;;  %v7801_v36 = vcombine.low %v18539_v60, %v18542_v50  ;;  %3612 = vst.msk [vmem:[#allocation2 + $0x270] sm:$0xff] %vm20770_vm13, %v3483_v12  ;;  %v4609_v45 = vcombine.low %v3671_v41, %v3703_v18  ;;  %v4610_v28 = vcombine.high %v3671_v41, %v3703_v18  ;;  %vm20796_vm13 = vmmov %vm20659_vm0 }
 0x95b   : > { %20767 = vst [vmem:[#allocation62_spill] sm:$0xff] %v18548_v20  ;;  %v7833_v23 = vcombine.low %v18551_v35, %v18554_v54  ;;  %3629 = vst.msk [vmem:[#allocation2 + $0x2f8] sm:$0xff] %vm20771_vm14, %v3500_v39  ;;  %v4625_v3 = vcombine.low %v3687_v59, %v3719_v40  ;;  %v4626_v42 = vcombine.high %v3687_v59, %v3719_v40 }
 0x95c   : > { %20769 = vst [vmem:[#allocation78_spill] sm:$0xff] %v18559_v63  ;;  %v4745_v30 = vcombine.low %v3672_v61, %v3704_v14  ;;  %v7730_v8 = vcombine.high %v18548_v20, %v18559_v63  ;;  %v18570_v62 = vrot.slane %v7801_v36, %v18063_v55  ;;  %v4617_v56 = vrot.slane %v4609_v45, %v18059_v53  ;;  %v20775_v20 = vld [vmem:[#allocation50_spill] sm:$0xff]  ;;  %vm20799_vm14 = vmmov %vm20659_vm0 }
 0x95d   : > { %v4624_v11 = vrot.slane %v4610_v28, %v18059_v53  ;;  %v18575_v31 = vrot.slane %v7833_v23, %v18063_v55  ;;  %v4633_v21 = vrot.slane %v4625_v3, %v18059_v53  ;;  %v4640_v26 = vrot.slane %v4626_v42, %v18059_v53  ;;  %v18584_v28 = vpop.f32.mrb[60].mxu1 }
 0x95e   : > { %20772 = vst [vmem:[#allocation63_spill] sm:$0xff] %v18570_v62  ;;  %v4746_v18 = vcombine.high %v3672_v61, %v3704_v14  ;;  %v4753_v51 = vrot.slane %v4745_v30, %v18059_v53  ;;  %v4761_v12 = vcombine.low %v3688_v16, %v3720_v24  ;;  %v4762_v40 = vcombine.high %v3688_v16, %v3720_v24  ;;  %v18589_v42 = vpop.f32.mrb[61].mxu1 }
 0x95f   : > { %20773 = vst [vmem:[#allocation79_spill] sm:$0xff] %v18575_v31  ;;  %v7666_v39 = vcombine.high %v18520_v47, %v18523_v0  ;;  %v7866_v41 = vcombine.high %v18570_v62, %v18575_v31  ;;  %v4673_v36 = vcombine.low %v4617_v56, %v4633_v21  ;;  %v4674_v59 = vcombine.high %v4617_v56, %v4633_v21  ;;  %v20776_v62 = vld [vmem:[#allocation49_spill] sm:$0xff] }
 0x960   : > { %v4689_v45 = vcombine.low %v4624_v11, %v4640_v26  ;;  %v4690_v23 = vcombine.high %v4624_v11, %v4640_v26  ;;  %v4760_v3 = vrot.slane %v4746_v18, %v18059_v53  ;;  %v4769_v14 = vrot.slane %v4761_v12, %v18059_v53 }
 0x961   : > { %v4776_v61 = vrot.slane %v4762_v40, %v18059_v53  ;;  %v13481_v24 = vpack.i.bf16 %v7866_v41, %v7730_v8  ;;  %v4681_v47 = vrot.slane %v4673_v36, %v18063_v55  ;;  %v4688_v0 = vrot.slane %v4674_v59, %v18063_v55 }
 0x962   : > { %v4697_v30 = vrot.slane %v4689_v45, %v18063_v55  ;;  %v4704_v56 = vrot.slane %v4690_v23, %v18063_v55  ;;  %v4809_v16 = vcombine.low %v4753_v51, %v4769_v14  ;;  %v4810_v21 = vcombine.high %v4753_v51, %v4769_v14 }
 0x963   : > { %v4825_v11 = vcombine.low %v4760_v3, %v4776_v61  ;;  %13482 = vrot.lane.b32.xlu0 %v13481_v24, %s15368_s20  ;;  %v4826_v26 = vcombine.high %v4760_v3, %v4776_v61  ;;  %v10602_v18 = vcombine.low %v4681_v47, %v4688_v0  ;;  %v10604_v12 = vcombine.high %v4681_v47, %v4688_v0 }
 0x964   : > { %v18597_v40 = vrot.slane %v7666_v39, %v18063_v55  ;;  %v4817_v8 = vrot.slane %v4809_v16, %v18063_v55  ;;  %v4824_v41 = vrot.slane %v4810_v21, %v18063_v55  ;;  %v10606_v59 = vcombine.low %v4697_v30, %v4704_v56 }
 0x965   : > { %v4833_v36 = vrot.slane %v4825_v11, %v18063_v55  ;;  %v4840_v45 = vrot.slane %v4826_v26, %v18063_v55  ;;  %v6793_v51 = vrot.slane %v10602_v18, %v18059_v53  ;;  %v6809_v23 = vrot.slane %v10604_v12, %v18059_v53  ;;  %v18609_v11 = vpop.f32.mrb[62].mxu1  ;;  %v2214_v12 = vld [vmem:[#allocation2 + $0x308] sm:$0xff] }
 0x966   : > { %v10608_v14 = vcombine.high %v4697_v30, %v4704_v56  ;;  %v6825_v3 = vrot.slane %v10606_v59, %v18059_v53  ;;  %v10610_v61 = vcombine.low %v4817_v8, %v4824_v41  ;;  %v10612_v24 = vcombine.high %v4817_v8, %v4824_v41  ;;  %v2211_v8 = vld [vmem:[#allocation2 + $0x2f0] sm:$0xff]  ;;  %v18616_v41 = vpop.f32.mrb[63].mxu1 }
 0x967   : > { %v7698_v39 = vcombine.high %v18526_v52, %v18529_v57  ;;  %v6849_v0 = vcombine.low %v6793_v51, %v6809_v23  ;;  %v10614_v16 = vcombine.low %v4833_v36, %v4840_v45  ;;  %v10616_v21 = vcombine.high %v4833_v36, %v4840_v45  ;;  %v2213_v45 = vld [vmem:[#allocation2 + $0x300] sm:$0xff] }
 0x968   : > { %v6841_v47 = vrot.slane %v10608_v14, %v18059_v53  ;;  %v6929_v26 = vrot.slane %v10610_v61, %v18059_v53  ;;  %v6945_v18 = vrot.slane %v10612_v24, %v18059_v53  ;;  %v7802_v56 = vcombine.high %v18539_v60, %v18542_v50  ;;  %v2230_v14 = vld [vmem:[#allocation2 + $0x388] sm:$0xff] }
 0x969   : > { %v7712_v30 = vrot.slane %v7698_v39, %v18063_v55  ;;  %v18619_v52 = vrot.slane %v6849_v0, %v18063_v55  ;;  %v6961_v36 = vrot.slane %v10614_v16, %v18059_v53  ;;  %v6977_v59 = vrot.slane %v10616_v21, %v18059_v53 }
 0x96a   : > { %v6881_v57 = vcombine.low %v6825_v3, %v6841_v47  ;;  %v6985_v61 = vcombine.low %v6929_v26, %v6945_v18  ;;  %v7816_v39 = vrot.slane %v7802_v56, %v18063_v55  ;;  %v7834_v60 = vcombine.high %v18551_v35, %v18554_v54 }
 0x96b   : > { %20774 = vst [vmem:[#allocation64_spill] sm:$0xff] %v18619_v52  ;;  %v7731_v24 = vcombine.low %v18597_v40, %v7712_v30  ;;  %v7017_v0 = vcombine.low %v6961_v36, %v6977_v59  ;;  %v3502_v63 = vadd.f32 %v20775_v20, %v2214_v12  ;;  %v3499_v16 = vadd.f32 %v20776_v62, %v2211_v8  ;;  %v2216_v12 = vld [vmem:[#allocation2 + $0x318] sm:$0xff] }
 0x96c   : > { %v18628_v50 = vrot.slane %v6881_v57, %v18063_v55  ;;  %v18633_v21 = vrot.slane %v6985_v61, %v18063_v55  ;;  %v7848_v31 = vrot.slane %v7834_v60, %v18063_v55  ;;  %v3501_v44 = vadd.f32 %v20777_v29, %v2213_v45  ;;  %v2215_v45 = vld [vmem:[#allocation2 + $0x310] sm:$0xff] }
 0x96d   : > { %v3518_v56 = vadd.f32 %v20778_v43, %v2230_v14  ;;  %v18641_v54 = vrot.slane %v7017_v0, %v18063_v55  ;;  %3631 = vst.msk [vmem:[#allocation2 + $0x308] sm:$0xff] %vm20779_vm15, %v3502_v63  ;;  %v6850_v20 = vcombine.high %v6793_v51, %v6809_v23  ;;  %v6882_v62 = vcombine.high %v6825_v3, %v6841_v47  ;;  %v2229_v23 = vld [vmem:[#allocation2 + $0x380] sm:$0xff]  ;;  %v2218_v3 = vld [vmem:[#allocation2 + $0x328] sm:$0xff]  ;;  %vm20800_vm15 = vmmov %vm20659_vm0 }
 0x96e   : > { %v6914_v35 = vcombine.high %v18619_v52, %v18628_v50  ;;  %3628 = vst.msk [vmem:[#allocation2 + $0x2f0] sm:$0xff] %vm20659_vm0, %v3499_v16  ;;  %v7867_v8 = vcombine.low %v7816_v39, %v7848_v31  ;;  %v6986_v29 = vcombine.high %v6929_v26, %v6945_v18  ;;  %v7018_v43 = vcombine.high %v6961_v36, %v6977_v59  ;;  %v20782_v26 = vld [vmem:[#allocation56_spill] sm:$0xff]  ;;  %v3723_v52 = vld [vmem:[#allocation2 + $0x1d0] sm:$0xff] }
 0x96f   : > { %3630 = vst.msk [vmem:[#allocation2 + $0x300] sm:$0xff] %vm20780_vm1, %v3501_v44  ;;  %v7732_v57 = vcombine.high %v18597_v40, %v7712_v30  ;;  %v7050_v14 = vcombine.high %v18633_v21, %v18641_v54  ;;  %v6864_v63 = vrot.slane %v6850_v20, %v18063_v55  ;;  %v6896_v61 = vrot.slane %v6882_v62, %v18063_v55  ;;  %v2217_v36 = vld [vmem:[#allocation2 + $0x320] sm:$0xff]  ;;  %v2232_v40 = vld [vmem:[#allocation2 + $0x398] sm:$0xff]  ;;  %v3707_v30 = vld [vmem:[#allocation2 + $0x150] sm:$0xff] }
 0x970   : > { %3647 = vst.msk [vmem:[#allocation2 + $0x388] sm:$0xff] %vm20781_vm2, %v3518_v56  ;;  %v7868_v51 = vcombine.high %v7816_v39, %v7848_v31  ;;  %v13486_v47 = vpack.i.bf16 %v7867_v8, %v7731_v24  ;;  %v7000_v44 = vrot.slane %v6986_v29, %v18063_v55  ;;  %v7032_v60 = vrot.slane %v7018_v43, %v18063_v55  ;;  %v20783_v56 = vld [vmem:[#allocation74_spill] sm:$0xff]  ;;  %v20785_v24 = vld [vmem:[#allocation57_spill] sm:$0xff]  ;;  %vm20801_vm1 = vmmov %vm20659_vm0 }
 0x971   : > { %v3504_v18 = vadd.f32 %v20782_v26, %v2216_v12  ;;  %v13436_v59 = vpack.i.bf16 %v7050_v14, %v6914_v35  ;;  %v6915_v0 = vcombine.low %v6864_v63, %v6896_v61  ;;  %v3503_v20 = vadd.f32 %v20783_v56, %v2215_v45  ;;  %v3675_v29 = vld [vmem:[#allocation2 + $0x50] sm:$0xff]  ;;  %v3708_v12 = vld [vmem:[#allocation2 + $0x158] sm:$0xff]  ;;  %vm20802_vm2 = vmmov %vm20659_vm0 }
 0x972   : > { %v13491_v16 = vpack.i.bf16 %v7868_v51, %v7732_v57  ;;  %13487 = vrot.lane.b32.xlu0 %v13486_v47, %s15369_s29  ;;  %v7051_v31 = vcombine.low %v7000_v44, %v7032_v60  ;;  %v3517_v39 = vadd.f32 %v20785_v24, %v2229_v23  ;;  %v6916_v62 = vcombine.high %v6864_v63, %v6896_v61  ;;  %v3691_v45 = vld [vmem:[#allocation2 + $0xd0] sm:$0xff]  ;;  %v3724_v14 = vld [vmem:[#allocation2 + $0x1d8] sm:$0xff] }
 0x973   : > { %3633 = vst.msk [vmem:[#allocation2 + $0x318] sm:$0xff] %vm20784_vm3, %v3504_v18  ;;  %v7052_v8 = vcombine.high %v7000_v44, %v7032_v60  ;;  %13437 = vrot.lane.b32.xlu1 %v13436_v59, %s15368_s20  ;;  %v3506_v35 = vadd.f32 %v18354_v1, %v2218_v3  ;;  %v3505_v43 = vadd.f32 %v18356_v46, %v2217_v36  ;;  %v3676_v61 = vld [vmem:[#allocation2 + $0x58] sm:$0xff]  ;;  %v2219_v59 = vld [vmem:[#allocation2 + $0x330] sm:$0xff]  ;;  %vm20805_vm3 = vmmov %vm20659_vm0 }
 0x974   : > { %3632 = vst.msk [vmem:[#allocation2 + $0x310] sm:$0xff] %vm20786_vm4, %v3503_v20  ;;  %v3520_v57 = vadd.f32 %v18365_v10, %v2232_v40  ;;  %v5153_v51 = vcombine.low %v3675_v29, %v3707_v30  ;;  %v13441_v47 = vpack.i.bf16 %v7051_v31, %v6915_v0  ;;  %v5154_v23 = vcombine.high %v3675_v29, %v3707_v30  ;;  %v2220_v60 = vld [vmem:[#allocation2 + $0x338] sm:$0xff]  ;;  %v2231_v0 = vld [vmem:[#allocation2 + $0x390] sm:$0xff]  ;;  %vm20806_vm4 = vmmov %vm20659_vm0 }
 0x975   : > { %3646 = vst.msk [vmem:[#allocation2 + $0x380] sm:$0xff] %vm20787_vm5, %v3517_v39  ;;  %v13446_v63 = vpack.i.bf16 %v7052_v8, %v6916_v62  ;;  %v5169_v44 = vcombine.low %v3691_v45, %v3723_v52  ;;  %v3692_v46 = vld [vmem:[#allocation2 + $0xd8] sm:$0xff]  ;;  %v5170_v10 = vcombine.high %v3691_v45, %v3723_v52  ;;  %v5289_v3 = vcombine.low %v3676_v61, %v3708_v12  ;;  %vm20809_vm5 = vmmov %vm20659_vm0 }
 0x976   : > { %3635 = vst.msk [vmem:[#allocation2 + $0x328] sm:$0xff] %vm20788_vm6, %v3506_v35  ;;  %v5161_v1 = vrot.slane %v5153_v51, %v18059_v53  ;;  %v5290_v26 = vcombine.high %v3676_v61, %v3708_v12  ;;  %13492 = vrot.lane.b32.xlu0 %v13491_v16, %s15370_s2  ;;  %v5168_v18 = vrot.slane %v5154_v23, %v18059_v53  ;;  %v20792_v35 = vld [vmem:[#allocation59_spill] sm:$0xff]  ;;  %vm20810_vm6 = vmmov %vm20659_vm0 }
 0x977   : > { %3634 = vst.msk [vmem:[#allocation2 + $0x320] sm:$0xff] %vm20789_vm7, %v3505_v43  ;;  %v5177_v36 = vrot.slane %v5169_v44, %v18059_v53  ;;  %v5305_v40 = vcombine.low %v3692_v46, %v3724_v14  ;;  %v5306_v30 = vcombine.high %v3692_v46, %v3724_v14  ;;  %13442 = vrot.lane.b32.xlu1 %v13441_v47, %s15369_s29  ;;  %vm20811_vm7 = vmmov %vm20659_vm0 }
 0x978   : > { %3649 = vst.msk [vmem:[#allocation2 + $0x398] sm:$0xff] %vm20790_vm8, %v3520_v57  ;;  %v5184_v56 = vrot.slane %v5170_v10, %v18059_v53  ;;  %v5297_v20 = vrot.slane %v5289_v3, %v18059_v53  ;;  %v5304_v52 = vrot.slane %v5290_v26, %v18059_v53  ;;  %v3508_v31 = vadd.f32 %v18369_v13, %v2220_v60  ;;  %vm20812_vm8 = vmmov %vm20659_vm0 }
 0x979   : > { %v5217_v24 = vcombine.low %v5161_v1, %v5177_v36  ;;  %v5218_v16 = vcombine.high %v5161_v1, %v5177_v36  ;;  %v5313_v39 = vrot.slane %v5305_v40, %v18059_v53  ;;  %v5320_v62 = vrot.slane %v5306_v30, %v18059_v53 }
 0x97a   : > { %v5233_v8 = vcombine.low %v5168_v18, %v5184_v56  ;;  %v5234_v29 = vcombine.high %v5168_v18, %v5184_v56  ;;  %3637 = vst.msk [vmem:[#allocation2 + $0x338] sm:$0xff] %vm20791_vm9, %v3508_v31  ;;  %v3507_v12 = vadd.f32 %v18374_v34, %v2219_v59  ;;  %v3519_v43 = vadd.f32 %v20792_v35, %v2231_v0  ;;  %vm20813_vm9 = vmmov %vm20659_vm0 }
 0x97b   : > { %v5225_v57 = vrot.slane %v5217_v24, %v18063_v55  ;;  %v5232_v45 = vrot.slane %v5218_v16, %v18063_v55  ;;  %v5353_v14 = vcombine.low %v5297_v20, %v5313_v39  ;;  %v5354_v13 = vcombine.high %v5297_v20, %v5313_v39  ;;  %13447 = vrot.lane.b32.xlu1 %v13446_v63, %s15370_s2 }
 0x97c   : > { %v5241_v51 = vrot.slane %v5233_v8, %v18063_v55  ;;  %v5248_v47 = vrot.slane %v5234_v29, %v18063_v55  ;;  %v5369_v61 = vcombine.low %v5304_v52, %v5320_v62  ;;  %v5370_v23 = vcombine.high %v5304_v52, %v5320_v62  ;;  %3636 = vst.msk [vmem:[#allocation2 + $0x330] sm:$0xff] %vm20793_vm10, %v3507_v12  ;;  %v2222_v29 = vld [vmem:[#allocation2 + $0x348] sm:$0xff]  ;;  %v2221_v12 = vld [vmem:[#allocation2 + $0x340] sm:$0xff]  ;;  %vm20814_vm10 = vmmov %vm20659_vm0 }
 0x97d   : > { %3648 = vst.msk [vmem:[#allocation2 + $0x390] sm:$0xff] %vm20794_vm11, %v3519_v43  ;;  %v5361_v34 = vrot.slane %v5353_v14, %v18063_v55  ;;  %v5368_v44 = vrot.slane %v5354_v13, %v18063_v55  ;;  %v10634_v60 = vcombine.low %v5225_v57, %v5232_v45  ;;  %v10636_v46 = vcombine.high %v5225_v57, %v5232_v45  ;;  %vm20815_vm11 = vmmov %vm20659_vm0 }
 0x97e   : > { %v5377_v1 = vrot.slane %v5369_v61, %v18063_v55  ;;  %v5384_v63 = vrot.slane %v5370_v23, %v18063_v55  ;;  %v10638_v10 = vcombine.low %v5241_v51, %v5248_v47  ;;  %v10640_v3 = vcombine.high %v5241_v51, %v5248_v47  ;;  %v2234_v61 = vld [vmem:[#allocation2 + $0x3a8] sm:$0xff]  ;;  %v2224_v23 = vld [vmem:[#allocation2 + $0x358] sm:$0xff] }
 0x97f   : > { %v7337_v26 = vrot.slane %v10634_v60, %v18059_v53  ;;  %v7353_v18 = vrot.slane %v10636_v46, %v18059_v53  ;;  %v10642_v36 = vcombine.low %v5361_v34, %v5368_v44  ;;  %v10644_v40 = vcombine.high %v5361_v34, %v5368_v44  ;;  %v2223_v34 = vld [vmem:[#allocation2 + $0x350] sm:$0xff] }
 0x980   : > { %v7369_v30 = vrot.slane %v10638_v10, %v18059_v53  ;;  %v7385_v59 = vrot.slane %v10640_v3, %v18059_v53  ;;  %v10646_v0 = vcombine.low %v5377_v1, %v5384_v63  ;;  %v10648_v56 = vcombine.high %v5377_v1, %v5384_v63  ;;  %v2233_v63 = vld [vmem:[#allocation2 + $0x3a0] sm:$0xff] }
 0x981   : > { %v7393_v20 = vcombine.low %v7337_v26, %v7353_v18  ;;  %v7473_v52 = vrot.slane %v10642_v36, %v18059_v53  ;;  %v7489_v31 = vrot.slane %v10644_v40, %v18059_v53  ;;  %v7394_v24 = vcombine.high %v7337_v26, %v7353_v18  ;;  %v3711_v36 = vld [vmem:[#allocation2 + $0x170] sm:$0xff] }
 0x982   : > { %v7425_v16 = vcombine.low %v7369_v30, %v7385_v59  ;;  %v7505_v39 = vrot.slane %v10646_v0, %v18059_v53  ;;  %v7521_v62 = vrot.slane %v10648_v56, %v18059_v53  ;;  %v7426_v8 = vcombine.high %v7369_v30, %v7385_v59  ;;  %v3727_v40 = vld [vmem:[#allocation2 + $0x1f0] sm:$0xff]  ;;  %v3712_v56 = vld [vmem:[#allocation2 + $0x178] sm:$0xff] }
 0x983   : > { %v18702_v35 = vrot.slane %v7393_v20, %v18063_v55  ;;  %v7529_v43 = vcombine.low %v7473_v52, %v7489_v31  ;;  %v7408_v57 = vrot.slane %v7394_v24, %v18063_v55  ;;  %v7530_v45 = vcombine.high %v7473_v52, %v7489_v31  ;;  %v20798_v24 = vld [vmem:[#allocation61_spill] sm:$0xff] }
 0x984   : > { %v18706_v14 = vrot.slane %v7425_v16, %v18063_v55  ;;  %v7561_v13 = vcombine.low %v7505_v39, %v7521_v62  ;;  %v7440_v51 = vrot.slane %v7426_v8, %v18063_v55  ;;  %v7562_v47 = vcombine.high %v7505_v39, %v7521_v62  ;;  %v3679_v39 = vld [vmem:[#allocation2 + $0x70] sm:$0xff]  ;;  %v3728_v8 = vld [vmem:[#allocation2 + $0x1f8] sm:$0xff] }
 0x985   : > { %v18710_v44 = vrot.slane %v7529_v43, %v18063_v55  ;;  %v7544_v60 = vrot.slane %v7530_v45, %v18063_v55  ;;  %v3510_v46 = vadd.f32 %v18385_v4, %v2222_v29  ;;  %v3509_v1 = vadd.f32 %v18388_v33, %v2221_v12  ;;  %v20797_v33 = vld [vmem:[#allocation76_spill] sm:$0xff]  ;;  %v3695_v62 = vld [vmem:[#allocation2 + $0xf0] sm:$0xff] }
 0x986   : > { %v7458_v10 = vcombine.high %v18702_v35, %v18706_v14  ;;  %v18718_v3 = vrot.slane %v7561_v13, %v18063_v55  ;;  %v7459_v26 = vcombine.low %v7408_v57, %v7440_v51  ;;  %v7576_v18 = vrot.slane %v7562_v47, %v18063_v55  ;;  %v3696_v47 = vld [vmem:[#allocation2 + $0xf8] sm:$0xff] }
 0x987   : > { %3639 = vst.msk [vmem:[#allocation2 + $0x348] sm:$0xff] %vm20795_vm12, %v3510_v46  ;;  %v3522_v4 = vadd.f32 %v18400_v22, %v2234_v61  ;;  %v7460_v30 = vcombine.high %v7408_v57, %v7440_v51  ;;  %v3512_v59 = vadd.f32 %v20797_v33, %v2224_v23  ;;  %v3511_v0 = vadd.f32 %v18415_v6, %v2223_v34  ;;  %v3680_v22 = vld [vmem:[#allocation2 + $0x78] sm:$0xff]  ;;  %v2226_v46 = vld [vmem:[#allocation2 + $0x368] sm:$0xff]  ;;  %vm20816_vm12 = vmmov %vm20659_vm0 }
 0x988   : > { %3638 = vst.msk [vmem:[#allocation2 + $0x340] sm:$0xff] %vm20796_vm13, %v3509_v1  ;;  %v7594_v20 = vcombine.high %v18710_v44, %v18718_v3  ;;  %v7595_v52 = vcombine.low %v7544_v60, %v7576_v18  ;;  %v7596_v31 = vcombine.high %v7544_v60, %v7576_v18  ;;  %v3521_v16 = vadd.f32 %v20798_v24, %v2233_v63  ;;  %vm20817_vm13 = vmmov %vm20659_vm0 }
 0x989   : > { %3651 = vst.msk [vmem:[#allocation2 + $0x3a8] sm:$0xff] %vm20799_vm14, %v3522_v4  ;;  %v5697_v29 = vcombine.low %v3679_v39, %v3711_v36  ;;  %v5698_v6 = vcombine.high %v3679_v39, %v3711_v36  ;;  %v5713_v12 = vcombine.low %v3695_v62, %v3727_v40  ;;  %v5714_v43 = vcombine.high %v3695_v62, %v3727_v40  ;;  %vm20818_vm14 = vmmov %vm20659_vm0 }
 0x98a   : > { %3641 = vst.msk [vmem:[#allocation2 + $0x358] sm:$0xff] %vm20800_vm15, %v3512_v59  ;;  %v13466_v57 = vpack.i.bf16 %v7594_v20, %v7458_v10  ;;  %v13471_v45 = vpack.i.bf16 %v7595_v52, %v7459_v26  ;;  %v13476_v13 = vpack.i.bf16 %v7596_v31, %v7460_v30  ;;  %v5833_v51 = vcombine.low %v3680_v22, %v3712_v56  ;;  %vm20819_vm15 = vmmov %vm20659_vm0 }
 0x98b   : > { %3640 = vst.msk [vmem:[#allocation2 + $0x350] sm:$0xff] %vm20659_vm0, %v3511_v0  ;;  %v5705_v61 = vrot.slane %v5697_v29, %v18059_v53  ;;  %v5712_v23 = vrot.slane %v5698_v6, %v18059_v53  ;;  %v5721_v34 = vrot.slane %v5713_v12, %v18059_v53  ;;  %v5728_v60 = vrot.slane %v5714_v43, %v18059_v53 }
 0x98c   : > { %3650 = vst.msk [vmem:[#allocation2 + $0x3a0] sm:$0xff] %vm20801_vm1, %v3521_v16  ;;  %13467 = vrot.lane.b32.xlu1 %v13466_v57, %s15368_s20  ;;  %v5834_v1 = vcombine.high %v3680_v22, %v3712_v56  ;;  %v5841_v63 = vrot.slane %v5833_v51, %v18059_v53  ;;  %v5849_v10 = vcombine.low %v3696_v47, %v3728_v8  ;;  %v2225_v51 = vld [vmem:[#allocation2 + $0x360] sm:$0xff]  ;;  %vm8609_vm0 = vcmask 64512  }
 0x98d   : > { %v5850_v26 = vcombine.high %v3696_v47, %v3728_v8  ;;  %v5761_v18 = vcombine.low %v5705_v61, %v5721_v34  ;;  %v5762_v36 = vcombine.high %v5705_v61, %v5721_v34  ;;  %v5777_v40 = vcombine.low %v5712_v23, %v5728_v60 }
 0x98e   : > { %v5778_v4 = vcombine.high %v5712_v23, %v5728_v60  ;;  %v5848_v30 = vrot.slane %v5834_v1, %v18059_v53  ;;  %v5857_v33 = vrot.slane %v5849_v10, %v18059_v53  ;;  %v3514_v0 = vadd.f32 %v18433_v7, %v2226_v46 }
 0x98f   : > { %v5864_v59 = vrot.slane %v5850_v26, %v18059_v53  ;;  %v5769_v20 = vrot.slane %v5761_v18, %v18063_v55  ;;  %v5776_v56 = vrot.slane %v5762_v36, %v18063_v55  ;;  %v5785_v52 = vrot.slane %v5777_v40, %v18063_v55 }
 0x990   : > { %v5792_v31 = vrot.slane %v5778_v4, %v18063_v55  ;;  %13472 = vrot.lane.b32.xlu1 %v13471_v45, %s15369_s29  ;;  %v5897_v24 = vcombine.low %v5841_v63, %v5857_v33  ;;  %v5898_v16 = vcombine.high %v5841_v63, %v5857_v33  ;;  %3643 = vst.msk [vmem:[#allocation2 + $0x368] sm:$0xff] %vm20802_vm2, %v3514_v0  ;;  %v2236_v45 = vld [vmem:[#allocation2 + $0x3b8] sm:$0xff]  ;;  %vm20827_vm2 = vmmov %vm20801_vm1 }
 0x991   : > { %v5913_v39 = vcombine.low %v5848_v30, %v5864_v59  ;;  %v5914_v62 = vcombine.high %v5848_v30, %v5864_v59  ;;  %v10666_v22 = vcombine.low %v5769_v20, %v5776_v56  ;;  %v10668_v8 = vcombine.high %v5769_v20, %v5776_v56  ;;  %v2228_v59 = vld [vmem:[#allocation2 + $0x378] sm:$0xff] }
 0x992   : > { %v10670_v29 = vcombine.low %v5785_v52, %v5792_v31  ;;  %v10672_v7 = vcombine.high %v5785_v52, %v5792_v31  ;;  %v5905_v6 = vrot.slane %v5897_v24, %v18063_v55  ;;  %v5912_v12 = vrot.slane %v5898_v16, %v18063_v55  ;;  %v2227_v24 = vld [vmem:[#allocation2 + $0x370] sm:$0xff] }
 0x993   : > { %v5921_v43 = vrot.slane %v5913_v39, %v18063_v55  ;;  %v5928_v57 = vrot.slane %v5914_v62, %v18063_v55  ;;  %v7881_v47 = vrot.slane %v10666_v22, %v18059_v53  ;;  %v7897_v61 = vrot.slane %v10668_v8, %v18059_v53  ;;  %v2235_v16 = vld [vmem:[#allocation2 + $0x3b0] sm:$0xff] }
 0x994   : > { %v7913_v23 = vrot.slane %v10670_v29, %v18059_v53  ;;  %v7929_v34 = vrot.slane %v10672_v7, %v18059_v53  ;;  %13477 = vrot.lane.b32.xlu1 %v13476_v13, %s15370_s2  ;;  %v10674_v60 = vcombine.low %v5905_v6, %v5912_v12  ;;  %v10676_v46 = vcombine.high %v5905_v6, %v5912_v12  ;;  %v2238_v29 = vld [vmem:[#allocation2 + $0x3c8] sm:$0xff] }
 0x995   : > { %v10678_v1 = vcombine.low %v5921_v43, %v5928_v57  ;;  %v10680_v63 = vcombine.high %v5921_v43, %v5928_v57  ;;  %v7937_v10 = vcombine.low %v7881_v47, %v7897_v61  ;;  %v3513_v18 = vadd.f32 %v18440_v5, %v2225_v51  ;;  %v3761_v57 = vld [vmem:[#allocation2 + $0x300] sm:$0xff] }
 0x996   : > { %v7969_v26 = vcombine.low %v7913_v23, %v7929_v34  ;;  %v3524_v36 = vadd.f32 %v18455_v32, %v2236_v45  ;;  %v8017_v40 = vrot.slane %v10674_v60, %v18059_v53  ;;  %v8033_v4 = vrot.slane %v10676_v46, %v18059_v53  ;;  %v3777_v51 = vld [vmem:[#allocation2 + $0x380] sm:$0xff] }
 0x997   : > { %v8049_v30 = vrot.slane %v10678_v1, %v18059_v53  ;;  %v8065_v33 = vrot.slane %v10680_v63, %v18059_v53  ;;  %v18765_v13 = vrot.slane %v7937_v10, %v18063_v55  ;;  %3642 = vst.msk [vmem:[#allocation2 + $0x360] sm:$0xff] %vm20805_vm3, %v3513_v18  ;;  %v7938_v5 = vcombine.high %v7881_v47, %v7897_v61  ;;  %v3729_v63 = vld [vmem:[#allocation2 + $0x200] sm:$0xff]  ;;  %v3778_v18 = vld [vmem:[#allocation2 + $0x388] sm:$0xff] }
 0x998   : > { %v18768_v0 = vrot.slane %v7969_v26, %v18063_v55  ;;  %3653 = vst.msk [vmem:[#allocation2 + $0x3b8] sm:$0xff] %vm20806_vm4, %v3524_v36  ;;  %v7970_v32 = vcombine.high %v7913_v23, %v7929_v34  ;;  %v8073_v20 = vcombine.low %v8017_v40, %v8033_v4  ;;  %v8074_v52 = vcombine.high %v8017_v40, %v8033_v4  ;;  %v3762_v23 = vld [vmem:[#allocation2 + $0x308] sm:$0xff]  ;;  %v3745_v10 = vld [vmem:[#allocation2 + $0x280] sm:$0xff]  ;;  %vm20832_vm4 = vmmov %vm20801_vm1 }
 0x999   : > { %20803 = vst [vmem:[#allocation80_spill] sm:$0xff] %v18765_v13  ;;  %v8105_v56 = vcombine.low %v8049_v30, %v8065_v33  ;;  %v8106_v31 = vcombine.high %v8049_v30, %v8065_v33  ;;  %v7952_v62 = vrot.slane %v7938_v5, %v18063_v55  ;;  %v3516_v8 = vadd.f32 %v18466_v25, %v2228_v59  ;;  %v3730_v26 = vld [vmem:[#allocation2 + $0x208] sm:$0xff] }
 0x99a   : > { %20804 = vst [vmem:[#allocation65_spill] sm:$0xff] %v18768_v0  ;;  %v8002_v39 = vcombine.high %v18765_v13, %v18768_v0  ;;  %v7984_v22 = vrot.slane %v7970_v32, %v18063_v55  ;;  %v18778_v7 = vrot.slane %v8073_v20, %v18063_v55  ;;  %v8088_v12 = vrot.slane %v8074_v52, %v18063_v55  ;;  %v3746_v5 = vld [vmem:[#allocation2 + $0x288] sm:$0xff]  ;;  %v2237_v52 = vld [vmem:[#allocation2 + $0x3c0] sm:$0xff] }
 0x99b   : > { %v18781_v6 = vrot.slane %v8105_v56, %v18063_v55  ;;  %v8120_v43 = vrot.slane %v8106_v31, %v18063_v55  ;;  %3645 = vst.msk [vmem:[#allocation2 + $0x378] sm:$0xff] %vm20809_vm5, %v3516_v8  ;;  %v3515_v47 = vadd.f32 %v18474_v15, %v2227_v24  ;;  %v3523_v25 = vadd.f32 %v18468_v49, %v2235_v16  ;;  %vm20833_vm5 = vmmov %vm20801_vm1 }
 0x99c   : > { %20807 = vst [vmem:[#allocation81_spill] sm:$0xff] %v18778_v7  ;;  %v8003_v45 = vcombine.low %v7952_v62, %v7984_v22  ;;  %v8004_v61 = vcombine.high %v7952_v62, %v7984_v22  ;;  %v3526_v1 = vadd.f32 %v18498_v9, %v2238_v29  ;;  %v3825_v15 = vcombine.low %v3729_v63, %v3761_v57 }
 0x99d   : > { %20808 = vst [vmem:[#allocation66_spill] sm:$0xff] %v18781_v6  ;;  %v8138_v34 = vcombine.high %v18778_v7, %v18781_v6  ;;  %v8139_v60 = vcombine.low %v8088_v12, %v8120_v43  ;;  %v8140_v46 = vcombine.high %v8088_v12, %v8120_v43  ;;  %3644 = vst.msk [vmem:[#allocation2 + $0x370] sm:$0xff] %vm20810_vm6, %v3515_v47  ;;  %v20826_v7 = vld [vmem:[#allocation45_spill] sm:$0xff]  ;;  %vm8626_vm3 = vcmask 97280  }
 0x99e   : > { %3652 = vst.msk [vmem:[#allocation2 + $0x3b0] sm:$0xff] %vm20811_vm7, %v3523_v25  ;;  %v3826_v36 = vcombine.high %v3729_v63, %v3761_v57  ;;  %v3841_v49 = vcombine.low %v3745_v10, %v3777_v51  ;;  %v3842_v40 = vcombine.high %v3745_v10, %v3777_v51  ;;  %v3961_v59 = vcombine.low %v3730_v26, %v3762_v23  ;;  %vm20834_vm7 = vmmov %vm20801_vm1 }
 0x99f   : > { %v13496_v4 = vpack.i.bf16 %v8138_v34, %v8002_v39  ;;  %v13501_v30 = vpack.i.bf16 %v8139_v60, %v8003_v45  ;;  %v13506_v33 = vpack.i.bf16 %v8140_v46, %v8004_v61  ;;  %3655 = vst.msk [vmem:[#allocation2 + $0x3c8] sm:$0xff] %vm20812_vm8, %v3526_v1  ;;  %v3833_v9 = vrot.slane %v3825_v15, %v18059_v53  ;;  %vm20835_vm8 = vmmov %vm20801_vm1 }
 0x9a0   : > { %v3840_v32 = vrot.slane %v3826_v36, %v18059_v53  ;;  %v3849_v20 = vrot.slane %v3841_v49, %v18059_v53  ;;  %v3856_v56 = vrot.slane %v3842_v40, %v18059_v53  ;;  %v3962_v31 = vcombine.high %v3730_v26, %v3762_v23  ;;  %v2240_v49 = vld [vmem:[#allocation2 + $0x3d8] sm:$0xff] }
 0x9a1   : > { %13497 = vrot.lane.b32.xlu1 %v13496_v4, %s15368_s20  ;;  %v3969_v24 = vrot.slane %v3961_v59, %v18059_v53  ;;  %v3977_v16 = vcombine.low %v3746_v5, %v3778_v18  ;;  %v3978_v39 = vcombine.high %v3746_v5, %v3778_v18  ;;  %v3525_v51 = vadd.f32 %v18502_v19, %v2237_v52 }
 0x9a2   : > { %v3889_v62 = vcombine.low %v3833_v9, %v3849_v20  ;;  %v3890_v22 = vcombine.high %v3833_v9, %v3849_v20  ;;  %v3905_v8 = vcombine.low %v3840_v32, %v3856_v56  ;;  %v3906_v29 = vcombine.high %v3840_v32, %v3856_v56 }
 0x9a3   : > { %v3976_v12 = vrot.slane %v3962_v31, %v18059_v53  ;;  %v3985_v43 = vrot.slane %v3977_v16, %v18059_v53  ;;  %v3992_v57 = vrot.slane %v3978_v39, %v18059_v53  ;;  %3654 = vst.msk [vmem:[#allocation2 + $0x3c0] sm:$0xff] %vm20813_vm9, %v3525_v51  ;;  %v3528_v31 = vadd.f32 %v18534_v2, %v2240_v49 }
 0x9a4   : > { %v3897_v45 = vrot.slane %v3889_v62, %v18063_v55  ;;  %v3904_v47 = vrot.slane %v3890_v22, %v18063_v55  ;;  %v3913_v25 = vrot.slane %v3905_v8, %v18063_v55  ;;  %v3920_v61 = vrot.slane %v3906_v29, %v18063_v55  ;;  %v2239_v8 = vld [vmem:[#allocation2 + $0x3d0] sm:$0xff] }
 0x9a5   : > { %13502 = vrot.lane.b32.xlu1 %v13501_v30, %s15369_s29  ;;  %v4025_v23 = vcombine.low %v3969_v24, %v3985_v43  ;;  %v4026_v34 = vcombine.high %v3969_v24, %v3985_v43  ;;  %v4041_v60 = vcombine.low %v3976_v12, %v3992_v57  ;;  %v4042_v46 = vcombine.high %v3976_v12, %v3992_v57 }
 0x9a6   : > { %v10555_v1 = vcombine.low %v3897_v45, %v3904_v47  ;;  %v10557_v63 = vcombine.high %v3897_v45, %v3904_v47  ;;  %v10559_v10 = vcombine.low %v3913_v25, %v3920_v61  ;;  %v10561_v19 = vcombine.high %v3913_v25, %v3920_v61  ;;  %3657 = vst.msk [vmem:[#allocation2 + $0x3d8] sm:$0xff] %vm20814_vm10, %v3528_v31  ;;  %v2242_v47 = vld [vmem:[#allocation2 + $0x3e8] sm:$0xff]  ;;  %v3763_v25 = vld [vmem:[#allocation2 + $0x310] sm:$0xff]  ;;  %v2241_v31 = vld [vmem:[#allocation2 + $0x3e0] sm:$0xff] }
 0x9a7   : > { %v4033_v26 = vrot.slane %v4025_v23, %v18063_v55  ;;  %v4040_v18 = vrot.slane %v4026_v34, %v18063_v55  ;;  %v4049_v15 = vrot.slane %v4041_v60, %v18063_v55  ;;  %v4056_v36 = vrot.slane %v4042_v46, %v18063_v55 }
 0x9a8   : > { %v5984_v40 = vrot.slane %v10555_v1, %v18059_v53  ;;  %v6000_v4 = vrot.slane %v10557_v63, %v18059_v53  ;;  %v6016_v30 = vrot.slane %v10559_v10, %v18059_v53  ;;  %v6032_v59 = vrot.slane %v10561_v19, %v18059_v53  ;;  %v3731_v19 = vld [vmem:[#allocation2 + $0x210] sm:$0xff] }
 0x9a9   : > { %13507 = vrot.lane.b32.xlu1 %v13506_v33, %s15370_s2  ;;  %v10563_v5 = vcombine.low %v4033_v26, %v4040_v18  ;;  %v10565_v9 = vcombine.high %v4033_v26, %v4040_v18  ;;  %v10567_v32 = vcombine.low %v4049_v15, %v4056_v36  ;;  %v10569_v20 = vcombine.high %v4049_v15, %v4056_v36  ;;  %v3779_v26 = vld [vmem:[#allocation2 + $0x390] sm:$0xff] }
 0x9aa   : > { %v6049_v56 = vcombine.low %v5984_v40, %v6000_v4  ;;  %v6081_v52 = vcombine.low %v6016_v30, %v6032_v59  ;;  %v6050_v24 = vcombine.high %v5984_v40, %v6000_v4  ;;  %v6082_v43 = vcombine.high %v6016_v30, %v6032_v59  ;;  %v3747_v59 = vld [vmem:[#allocation2 + $0x290] sm:$0xff] }
 0x9ab   : > { %v6120_v16 = vrot.slane %v10563_v5, %v18059_v53  ;;  %v6136_v39 = vrot.slane %v10565_v9, %v18059_v53  ;;  %v6152_v62 = vrot.slane %v10567_v32, %v18059_v53  ;;  %v6168_v22 = vrot.slane %v10569_v20, %v18059_v53  ;;  %v3764_v5 = vld [vmem:[#allocation2 + $0x318] sm:$0xff] }
 0x9ac   : > { %v6057_v33 = vrot.slane %v6049_v56, %v18063_v55  ;;  %v6089_v29 = vrot.slane %v6081_v52, %v18063_v55  ;;  %v6064_v12 = vrot.slane %v6050_v24, %v18063_v55  ;;  %v6096_v34 = vrot.slane %v6082_v43, %v18063_v55  ;;  %v3780_v9 = vld [vmem:[#allocation2 + $0x398] sm:$0xff] }
 0x9ad   : > { %v6185_v2 = vcombine.low %v6120_v16, %v6136_v39  ;;  %v6217_v57 = vcombine.low %v6152_v62, %v6168_v22  ;;  %v6186_v51 = vcombine.high %v6120_v16, %v6136_v39  ;;  %v6218_v45 = vcombine.high %v6152_v62, %v6168_v22  ;;  %v3732_v62 = vld [vmem:[#allocation2 + $0x218] sm:$0xff] }
 0x9ae   : > { %v6101_v61 = vcombine.low %v6057_v33, %v6089_v29  ;;  %v6102_v23 = vcombine.high %v6057_v33, %v6089_v29  ;;  %v3527_v60 = vadd.f32 %v18545_v17, %v2239_v8  ;;  %v6103_v18 = vcombine.low %v6064_v12, %v6096_v34  ;;  %v3748_v22 = vld [vmem:[#allocation2 + $0x298] sm:$0xff] }
 0x9af   : > { %v6193_v46 = vrot.slane %v6185_v2, %v18063_v55  ;;  %v6225_v1 = vrot.slane %v6217_v57, %v18063_v55  ;;  %v6200_v63 = vrot.slane %v6186_v51, %v18063_v55  ;;  %v6232_v10 = vrot.slane %v6218_v45, %v18063_v55 }
 0x9b0   : > { %3656 = vst.msk [vmem:[#allocation2 + $0x3d0] sm:$0xff] %vm20815_vm11, %v3527_v60  ;;  %v6104_v15 = vcombine.high %v6064_v12, %v6096_v34  ;;  %v3530_v36 = vadd.f32 %v18584_v28, %v2242_v47  ;;  %v4097_v49 = vcombine.low %v3731_v19, %v3763_v25  ;;  %v4098_v32 = vcombine.high %v3731_v19, %v3763_v25 }
 0x9b1   : > { %v6237_v40 = vcombine.low %v6193_v46, %v6225_v1  ;;  %v6238_v4 = vcombine.high %v6193_v46, %v6225_v1  ;;  %v6239_v17 = vcombine.low %v6200_v63, %v6232_v10  ;;  %v6240_v30 = vcombine.high %v6200_v63, %v6232_v10 }
 0x9b2   : > { %3659 = vst.msk [vmem:[#allocation2 + $0x3e8] sm:$0xff] %vm20816_vm12, %v3530_v36  ;;  %v4105_v20 = vrot.slane %v4097_v49, %v18059_v53  ;;  %v4113_v56 = vcombine.low %v3747_v59, %v3779_v26  ;;  %v4114_v52 = vcombine.high %v3747_v59, %v3779_v26  ;;  %v4112_v8 = vrot.slane %v4098_v32, %v18059_v53 }
 0x9b3   : > { %v13511_v24 = vpack.i.bf16 %v6237_v40, %v6101_v61  ;;  %v13516_v16 = vpack.i.bf16 %v6238_v4, %v6102_v23  ;;  %v13521_v39 = vpack.i.bf16 %v6239_v17, %v6103_v18  ;;  %v18838_v28 = vpack.i.bf16 %v6240_v30, %v6104_v15 }
 0x9b4   : > { %v4121_v33 = vrot.slane %v4113_v56, %v18059_v53  ;;  %v4128_v29 = vrot.slane %v4114_v52, %v18059_v53  ;;  %v4233_v12 = vcombine.low %v3732_v62, %v3764_v5  ;;  %v4234_v43 = vcombine.high %v3732_v62, %v3764_v5 }
 0x9b5   : > { %13512 = vrot.lane.b32.xlu1 %v13511_v24, %s15371_s15  ;;  %v4249_v2 = vcombine.low %v3748_v22, %v3780_v9  ;;  %v4250_v57 = vcombine.high %v3748_v22, %v3780_v9  ;;  %v3529_v51 = vadd.f32 %v18589_v42, %v2241_v31  ;;  %v2244_v9 = vld [vmem:[#allocation2 + $0x3f8] sm:$0xff]  ;;  %vm8643_vm6 = vcmask 130048  }
 0x9b6   : > { %v4161_v45 = vcombine.low %v4105_v20, %v4121_v33  ;;  %v4162_v47 = vcombine.high %v4105_v20, %v4121_v33  ;;  %v4177_v25 = vcombine.low %v4112_v8, %v4128_v29  ;;  %v4178_v61 = vcombine.high %v4112_v8, %v4128_v29 }
 0x9b7   : > { %v4241_v23 = vrot.slane %v4233_v12, %v18059_v53  ;;  %v4248_v34 = vrot.slane %v4234_v43, %v18059_v53  ;;  %v4257_v60 = vrot.slane %v4249_v2, %v18059_v53  ;;  %v4264_v46 = vrot.slane %v4250_v57, %v18059_v53  ;;  %3658 = vst.msk [vmem:[#allocation2 + $0x3e0] sm:$0xff] %vm20817_vm13, %v3529_v51  ;;  %v2243_v51 = vld [vmem:[#allocation2 + $0x3f0] sm:$0xff]  ;;  %vm20840_vm13 = vmmov %vm20801_vm1 }
 0x9b8   : > { %v4169_v1 = vrot.slane %v4161_v45, %v18063_v55  ;;  %v4176_v63 = vrot.slane %v4162_v47, %v18063_v55  ;;  %v4185_v42 = vrot.slane %v4177_v25, %v18063_v55  ;;  %v4192_v10 = vrot.slane %v4178_v61, %v18063_v55 }
 0x9b9   : > { %13517 = vrot.lane.b32.xlu1 %v13516_v16, %s15372_s9  ;;  %v4297_v19 = vcombine.low %v4241_v23, %v4257_v60  ;;  %v4298_v26 = vcombine.high %v4241_v23, %v4257_v60  ;;  %v4313_v18 = vcombine.low %v4248_v34, %v4264_v46  ;;  %v4314_v15 = vcombine.high %v4248_v34, %v4264_v46  ;;  %v3765_v60 = vld [vmem:[#allocation2 + $0x320] sm:$0xff]  ;;  %v18875_v46 = vpop.permute.xlu1 %13392 }
 0x9ba   : > { %v10571_v36 = vcombine.low %v4169_v1, %v4176_v63  ;;  %v10573_v49 = vcombine.high %v4169_v1, %v4176_v63  ;;  %v10575_v40 = vcombine.low %v4185_v42, %v4192_v10  ;;  %v10577_v4 = vcombine.high %v4185_v42, %v4192_v10 }
 0x9bb   : > { %v4305_v17 = vrot.slane %v4297_v19, %v18063_v55  ;;  %v4312_v30 = vrot.slane %v4298_v26, %v18063_v55  ;;  %v4321_v59 = vrot.slane %v4313_v18, %v18063_v55  ;;  %v4328_v5 = vrot.slane %v4314_v15, %v18063_v55  ;;  %v3733_v15 = vld [vmem:[#allocation2 + $0x220] sm:$0xff] }
 0x9bc   : > { %v6256_v32 = vrot.slane %v10571_v36, %v18059_v53  ;;  %v6272_v20 = vrot.slane %v10573_v49, %v18059_v53  ;;  %v6288_v56 = vrot.slane %v10575_v40, %v18059_v53  ;;  %v6304_v52 = vrot.slane %v10577_v4, %v18059_v53  ;;  %v3781_v36 = vld [vmem:[#allocation2 + $0x3a0] sm:$0xff] }
 0x9bd   : > { %13522 = vrot.lane.b32.xlu1 %v13521_v39, %s15373_s23  ;;  %v10579_v31 = vcombine.low %v4305_v17, %v4312_v30  ;;  %v10581_v24 = vcombine.high %v4305_v17, %v4312_v30  ;;  %v10583_v16 = vcombine.low %v4321_v59, %v4328_v5  ;;  %v10585_v62 = vcombine.high %v4321_v59, %v4328_v5 }
 0x9be   : > { %v6321_v22 = vcombine.low %v6256_v32, %v6272_v20  ;;  %v6353_v8 = vcombine.low %v6288_v56, %v6304_v52  ;;  %v3532_v33 = vadd.f32 %v18609_v11, %v2244_v9  ;;  %v6322_v29 = vcombine.high %v6256_v32, %v6272_v20  ;;  %v3749_v9 = vld [vmem:[#allocation2 + $0x2a0] sm:$0xff]  ;;  %v3766_v32 = vld [vmem:[#allocation2 + $0x328] sm:$0xff] }
 0x9bf   : > { %v6392_v12 = vrot.slane %v10579_v31, %v18059_v53  ;;  %v6408_v43 = vrot.slane %v10581_v24, %v18059_v53  ;;  %v6424_v2 = vrot.slane %v10583_v16, %v18059_v53  ;;  %v6440_v57 = vrot.slane %v10585_v62, %v18059_v53  ;;  %v3782_v20 = vld [vmem:[#allocation2 + $0x3a8] sm:$0xff]  ;;  %v3769_v16 = vld [vmem:[#allocation2 + $0x340] sm:$0xff] }
 0x9c0   : > { %v6329_v39 = vrot.slane %v6321_v22, %v18063_v55  ;;  %v6361_v45 = vrot.slane %v6353_v8, %v18063_v55  ;;  %3661 = vst.msk [vmem:[#allocation2 + $0x3f8] sm:$0xff] %vm20818_vm14, %v3532_v33  ;;  %v6336_v47 = vrot.slane %v6322_v29, %v18063_v55  ;;  %v6354_v25 = vcombine.high %v6288_v56, %v6304_v52  ;;  %v3734_v29 = vld [vmem:[#allocation2 + $0x228] sm:$0xff]  ;;  %vm20841_vm14 = vmmov %vm20801_vm1 }
 0x9c1   : > { %13527 = vrot.lane.b32.xlu1 %v18838_v28, %s15374_s28  ;;  %v6457_v11 = vcombine.low %v6392_v12, %v6408_v43  ;;  %v6489_v61 = vcombine.low %v6424_v2, %v6440_v57  ;;  %v6458_v23 = vcombine.high %v6392_v12, %v6408_v43  ;;  %v6490_v34 = vcombine.high %v6424_v2, %v6440_v57  ;;  %v18888_v12 = vpop.permute.xlu1 %13397  ;;  %v3750_v43 = vld [vmem:[#allocation2 + $0x2a8] sm:$0xff] }
 0x9c2   : > { %v6373_v1 = vcombine.low %v6329_v39, %v6361_v45  ;;  %v6374_v63 = vcombine.high %v6329_v39, %v6361_v45  ;;  %v6368_v42 = vrot.slane %v6354_v25, %v18063_v55  ;;  %v3531_v10 = vadd.f32 %v18616_v41, %v2243_v51  ;;  %v3737_v45 = vld [vmem:[#allocation2 + $0x240] sm:$0xff] }
 0x9c3   : > { %v6465_v19 = vrot.slane %v6457_v11, %v18063_v55  ;;  %v6497_v26 = vrot.slane %v6489_v61, %v18063_v55  ;;  %v6472_v18 = vrot.slane %v6458_v23, %v18063_v55  ;;  %v6504_v28 = vrot.slane %v6490_v34, %v18063_v55 }
 0x9c4   : > { %v6375_v49 = vcombine.low %v6336_v47, %v6368_v42  ;;  %3660 = vst.msk [vmem:[#allocation2 + $0x3f0] sm:$0xff] %vm20819_vm15, %v3531_v10  ;;  %v6376_v40 = vcombine.high %v6336_v47, %v6368_v42  ;;  %v4369_v4 = vcombine.low %v3733_v15, %v3765_v60  ;;  %v4370_v17 = vcombine.high %v3733_v15, %v3765_v60  ;;  %vm20843_vm15 = vmmov %vm20801_vm1 }
 0x9c5   : > { %v6509_v30 = vcombine.low %v6465_v19, %v6497_v26  ;;  %v6510_v59 = vcombine.high %v6465_v19, %v6497_v26  ;;  %v6511_v5 = vcombine.low %v6472_v18, %v6504_v28  ;;  %v6512_v41 = vcombine.high %v6472_v18, %v6504_v28 }
 0x9c6   : > { %v4377_v56 = vrot.slane %v4369_v4, %v18059_v53  ;;  %v4384_v52 = vrot.slane %v4370_v17, %v18059_v53  ;;  %v4385_v31 = vcombine.low %v3749_v9, %v3781_v36  ;;  %v4386_v24 = vcombine.high %v3749_v9, %v3781_v36  ;;  %v18902_v17 = vpop.permute.xlu1 %13402 }
 0x9c7   : > { %v13531_v62 = vpack.i.bf16 %v6509_v30, %v6373_v1  ;;  %v13536_v22 = vpack.i.bf16 %v6510_v59, %v6374_v63  ;;  %v13541_v8 = vpack.i.bf16 %v6511_v5, %v6375_v49  ;;  %v18886_v33 = vpack.i.bf16 %v6512_v41, %v6376_v40 }
 0x9c8   : > { %v4393_v2 = vrot.slane %v4385_v31, %v18059_v53  ;;  %v4400_v57 = vrot.slane %v4386_v24, %v18059_v53  ;;  %v4505_v51 = vcombine.low %v3734_v29, %v3766_v32  ;;  %v4506_v39 = vcombine.high %v3734_v29, %v3766_v32 }
 0x9c9   : > { %13532 = vrot.lane.b32.xlu1 %v13531_v62, %s15371_s15  ;;  %v4521_v47 = vcombine.low %v3750_v43, %v3782_v20  ;;  %v4522_v25 = vcombine.high %v3750_v43, %v3782_v20  ;;  %v4913_v11 = vcombine.low %v3737_v45, %v3769_v16  ;;  %v4914_v61 = vcombine.high %v3737_v45, %v3769_v16 }
 0x9ca   : > { %v4433_v23 = vcombine.low %v4377_v56, %v4393_v2  ;;  %v4434_v34 = vcombine.high %v4377_v56, %v4393_v2  ;;  %v4449_v60 = vcombine.low %v4384_v52, %v4400_v57  ;;  %v4450_v1 = vcombine.high %v4384_v52, %v4400_v57  ;;  %v3785_v2 = vld [vmem:[#allocation2 + $0x3c0] sm:$0xff] }
 0x9cb   : > { %v4513_v63 = vrot.slane %v4505_v51, %v18059_v53  ;;  %v4520_v42 = vrot.slane %v4506_v39, %v18059_v53  ;;  %v4529_v10 = vrot.slane %v4521_v47, %v18059_v53  ;;  %v4536_v19 = vrot.slane %v4522_v25, %v18059_v53  ;;  %v3770_v39 = vld [vmem:[#allocation2 + $0x348] sm:$0xff] }
 0x9cc   : > { %v4441_v26 = vrot.slane %v4433_v23, %v18063_v55  ;;  %v4448_v18 = vrot.slane %v4434_v34, %v18063_v55  ;;  %v4457_v28 = vrot.slane %v4449_v60, %v18063_v55  ;;  %v4464_v15 = vrot.slane %v4450_v1, %v18063_v55  ;;  %v3753_v60 = vld [vmem:[#allocation2 + $0x2c0] sm:$0xff]  ;;  %v3786_v1 = vld [vmem:[#allocation2 + $0x3c8] sm:$0xff] }
 0x9cd   : > { %13537 = vrot.lane.b32.xlu1 %v13536_v22, %s15372_s9  ;;  %v4569_v36 = vcombine.low %v4513_v63, %v4529_v10  ;;  %v4570_v49 = vcombine.high %v4513_v63, %v4529_v10  ;;  %v4585_v40 = vcombine.low %v4520_v42, %v4536_v19  ;;  %v4586_v4 = vcombine.high %v4520_v42, %v4536_v19  ;;  %v18939_v63 = vpop.permute.xlu1 %13407  ;;  %v3738_v42 = vld [vmem:[#allocation2 + $0x248] sm:$0xff] }
 0x9ce   : > { %v10587_v30 = vcombine.low %v4441_v26, %v4448_v18  ;;  %v10589_v59 = vcombine.high %v4441_v26, %v4448_v18  ;;  %v10591_v5 = vcombine.low %v4457_v28, %v4464_v15  ;;  %v10593_v41 = vcombine.high %v4457_v28, %v4464_v15  ;;  %v3754_v28 = vld [vmem:[#allocation2 + $0x2c8] sm:$0xff] }
 0x9cf   : > { %v4577_v9 = vrot.slane %v4569_v36, %v18063_v55  ;;  %v4584_v32 = vrot.slane %v4570_v49, %v18063_v55  ;;  %v4593_v20 = vrot.slane %v4585_v40, %v18063_v55  ;;  %v4600_v56 = vrot.slane %v4586_v4, %v18063_v55 }
 0x9d0   : > { %v18909_v52 = vrot.slane %v10587_v30, %v18059_v53  ;;  %v18912_v31 = vrot.slane %v10589_v59, %v18059_v53  ;;  %v18915_v24 = vrot.slane %v10591_v5, %v18059_v53  ;;  %v18918_v16 = vrot.slane %v10593_v41, %v18059_v53 }
 0x9d1   : > { %13542 = vrot.lane.b32.xlu1 %v13541_v8, %s15373_s23  ;;  %v10595_v62 = vcombine.low %v4577_v9, %v4584_v32  ;;  %v10597_v22 = vcombine.high %v4577_v9, %v4584_v32  ;;  %v10599_v29 = vcombine.low %v4593_v20, %v4600_v56  ;;  %v10601_v43 = vcombine.high %v4593_v20, %v4600_v56 }
 0x9d2   : > { %v6593_v57 = vcombine.low %v18909_v52, %v18912_v31  ;;  %v6625_v51 = vcombine.low %v18915_v24, %v18918_v16  ;;  %v4921_v45 = vrot.slane %v4913_v11, %v18059_v53  ;;  %v4928_v47 = vrot.slane %v4914_v61, %v18059_v53 }
 0x9d3   : > { %v18928_v25 = vrot.slane %v10595_v62, %v18059_v53  ;;  %v18931_v8 = vrot.slane %v10597_v22, %v18059_v53  ;;  %v18934_v23 = vrot.slane %v10599_v29, %v18059_v53  ;;  %v18937_v34 = vrot.slane %v10601_v43, %v18059_v53 }
 0x9d4   : > { %v18942_v11 = vrot.slane %v6593_v57, %v18063_v55  ;;  %v18945_v61 = vrot.slane %v6625_v51, %v18063_v55  ;;  %v4929_v10 = vcombine.low %v3753_v60, %v3785_v2  ;;  %v4930_v19 = vcombine.high %v3753_v60, %v3785_v2  ;;  %v18964_v2 = vpop.permute.xlu1 %13412 }
 0x9d5   : > { %13547 = vrot.lane.b32.xlu1 %v18886_v33, %s15374_s28  ;;  %v6729_v26 = vcombine.low %v18928_v25, %v18931_v8  ;;  %v6761_v18 = vcombine.low %v18934_v23, %v18937_v34  ;;  %v5049_v15 = vcombine.low %v3738_v42, %v3770_v39  ;;  %v5050_v36 = vcombine.high %v3738_v42, %v3770_v39 }
 0x9d6   : > { %v6645_v49 = vcombine.low %v18942_v11, %v18945_v61  ;;  %v4937_v40 = vrot.slane %v4929_v10, %v18059_v53  ;;  %v4944_v4 = vrot.slane %v4930_v19, %v18059_v53  ;;  %v5065_v30 = vcombine.low %v3754_v28, %v3786_v1 }
 0x9d7   : > { %v6737_v59 = vrot.slane %v6729_v26, %v18063_v55  ;;  %v6769_v33 = vrot.slane %v6761_v18, %v18063_v55  ;;  %v5057_v5 = vrot.slane %v5049_v15, %v18059_v53  ;;  %v5064_v41 = vrot.slane %v5050_v36, %v18059_v53 }
 0x9d8   : > { %v4977_v9 = vcombine.low %v4921_v45, %v4937_v40  ;;  %v4978_v32 = vcombine.high %v4921_v45, %v4937_v40  ;;  %v4993_v20 = vcombine.low %v4928_v47, %v4944_v4  ;;  %v4994_v56 = vcombine.high %v4928_v47, %v4944_v4 }
 0x9d9   : > { %v6781_v62 = vcombine.low %v6737_v59, %v6769_v33  ;;  %v5066_v22 = vcombine.high %v3754_v28, %v3786_v1  ;;  %v5073_v29 = vrot.slane %v5065_v30, %v18059_v53  ;;  %v6646_v43 = vcombine.high %v18942_v11, %v18945_v61  ;;  %v13671_v30 = vld [vmem:[#allocation11] sm:$0xff]  }
 0x9da   : > { %v4985_v57 = vrot.slane %v4977_v9, %v18063_v55  ;;  %v4992_v51 = vrot.slane %v4978_v32, %v18063_v55  ;;  %v5001_v39 = vrot.slane %v4993_v20, %v18063_v55  ;;  %v5008_v60 = vrot.slane %v4994_v56, %v18063_v55  ;;  %v18980_v56 = vpop.permute.xlu1 %13417  ;;  %11786 = vmatprep.subr.bf16.mxu0 %v13671_v30 }
 0x9db   : > { %v13551_v45 = vpack.i.bf16 %v6781_v62, %v6645_v49  ;;  %v5080_v47 = vrot.slane %v5066_v22, %v18059_v53  ;;  %v5113_v42 = vcombine.low %v5057_v5, %v5073_v29  ;;  %v5114_v1 = vcombine.high %v5057_v5, %v5073_v29  ;;  %11787 = vmatpush3.bf16.msra.mxu0 %v13671_v30 }
 0x9dc   : > { %v10619_v10 = vcombine.low %v4985_v57, %v4992_v51  ;;  %v10621_v19 = vcombine.high %v4985_v57, %v4992_v51  ;;  %v10623_v26 = vcombine.low %v5001_v39, %v5008_v60  ;;  %v10625_v18 = vcombine.high %v5001_v39, %v5008_v60  ;;  %v13672_v57 = vld [vmem:[#allocation11 + $0x8] sm:$0xff]   ;;  %12106 = vmatprep.subr.bf16.mxu1 %v13671_v30 }
 0x9dd   : > { %13552 = vrot.lane.b32.xlu1 %v13551_v45, %s15371_s15  ;;  %v5121_v11 = vrot.slane %v5113_v42, %v18063_v55  ;;  %v5128_v61 = vrot.slane %v5114_v1, %v18063_v55  ;;  %v5129_v28 = vcombine.low %v5064_v41, %v5080_v47  ;;  %v5130_v15 = vcombine.high %v5064_v41, %v5080_v47 }
 0x9de   : > { %v7072_v36 = vrot.slane %v10619_v10, %v18059_v53  ;;  %v7088_v49 = vrot.slane %v10621_v19, %v18059_v53  ;;  %v7104_v40 = vrot.slane %v10623_v26, %v18059_v53  ;;  %v7120_v4 = vrot.slane %v10625_v18, %v18059_v53  ;;  %11788 = vmatprep.subr.bf16.mxu0 %v13672_v57 }
 0x9df   : > { %v5137_v5 = vrot.slane %v5129_v28, %v18063_v55  ;;  %v5144_v9 = vrot.slane %v5130_v15, %v18063_v55  ;;  %v10627_v32 = vcombine.low %v5121_v11, %v5128_v61  ;;  %v10629_v20 = vcombine.high %v5121_v11, %v5128_v61  ;;  %v19000_v15 = vpop.permute.xlu1 %13422  ;;  %11789 = vmatpush3.bf16.msra.mxu0 %v13672_v57 }
 0x9e0   : > { %v7137_v62 = vcombine.low %v7072_v36, %v7088_v49  ;;  %v7169_v22 = vcombine.low %v7104_v40, %v7120_v4  ;;  %v6782_v41 = vcombine.high %v6737_v59, %v6769_v33  ;;  %v6594_v29 = vcombine.high %v18909_v52, %v18912_v31  ;;  %12108 = vmatpush3.bf16.msra.mxu1 %v13671_v30 }
 0x9e1   : > { %v7208_v51 = vrot.slane %v10627_v32, %v18059_v53  ;;  %v7224_v39 = vrot.slane %v10629_v20, %v18059_v53  ;;  %v10631_v60 = vcombine.low %v5137_v5, %v5144_v9  ;;  %v10633_v45 = vcombine.high %v5137_v5, %v5144_v9  ;;  %12107 = vmatprep.subr.bf16.mxu1 %v13672_v57 }
 0x9e2   : > { %v7145_v47 = vrot.slane %v7137_v62, %v18063_v55  ;;  %v7177_v42 = vrot.slane %v7169_v22, %v18063_v55  ;;  %v13556_v1 = vpack.i.bf16 %v6782_v41, %v6646_v43  ;;  %v6608_v10 = vrot.slane %v6594_v29, %v18063_v55 }
 0x9e3   : > { %v7240_v59 = vrot.slane %v10631_v60, %v18059_v53  ;;  %v7256_v52 = vrot.slane %v10633_v45, %v18059_v53  ;;  %v7273_v31 = vcombine.low %v7208_v51, %v7224_v39  ;;  %v6626_v33 = vcombine.high %v18915_v24, %v18918_v16 }
 0x9e4   : > { %v7189_v19 = vcombine.low %v7145_v47, %v7177_v42  ;;  %13557 = vrot.lane.b32.xlu1 %v13556_v1, %s15372_s9  ;;  %v6730_v26 = vcombine.high %v18928_v25, %v18931_v8  ;;  %v6762_v43 = vcombine.high %v18934_v23, %v18937_v34  ;;  %v7138_v28 = vcombine.high %v7072_v36, %v7088_v49  ;;  %v19009_v1 = vpop.permute.xlu1 %13432 }
 0x9e5   : > { %v7281_v18 = vrot.slane %v7273_v31, %v18063_v55  ;;  %v7305_v11 = vcombine.low %v7240_v59, %v7256_v52  ;;  %v6640_v61 = vrot.slane %v6626_v33, %v18063_v55  ;;  %v7170_v5 = vcombine.high %v7104_v40, %v7120_v4  ;;  %12109 = vmatpush3.bf16.msra.mxu1 %v13672_v57  ;;  %v3751_v31 = vld [vmem:[#allocation2 + $0x2b0] sm:$0xff] }
 0x9e6   : > { %v6744_v24 = vrot.slane %v6730_v26, %v18063_v55  ;;  %v6776_v16 = vrot.slane %v6762_v43, %v18063_v55  ;;  %v7274_v9 = vcombine.high %v7208_v51, %v7224_v39  ;;  %v7152_v23 = vrot.slane %v7138_v28, %v18063_v55  ;;  %v3767_v51 = vld [vmem:[#allocation2 + $0x330] sm:$0xff]  ;;  %v3752_v28 = vld [vmem:[#allocation2 + $0x2b8] sm:$0xff] }
 0x9e7   : > { %v7313_v25 = vrot.slane %v7305_v11, %v18063_v55  ;;  %v6647_v8 = vcombine.low %v6608_v10, %v6640_v61  ;;  %v7306_v34 = vcombine.high %v7240_v59, %v7256_v52  ;;  %v7184_v36 = vrot.slane %v7170_v5, %v18063_v55  ;;  %v3783_v39 = vld [vmem:[#allocation2 + $0x3b0] sm:$0xff] }
 0x9e8   : > { %v6783_v32 = vcombine.low %v6744_v24, %v6776_v16  ;;  %v7288_v49 = vrot.slane %v7274_v9, %v18063_v55  ;;  %v7190_v62 = vcombine.high %v7145_v47, %v7177_v42  ;;  %v6648_v41 = vcombine.high %v6608_v10, %v6640_v61  ;;  %v3735_v52 = vld [vmem:[#allocation2 + $0x230] sm:$0xff]  ;;  %v3768_v47 = vld [vmem:[#allocation2 + $0x338] sm:$0xff] }
 0x9e9   : > { %v7325_v20 = vcombine.low %v7281_v18, %v7313_v25  ;;  %v7320_v22 = vrot.slane %v7306_v34, %v18063_v55  ;;  %v7326_v40 = vcombine.high %v7281_v18, %v7313_v25  ;;  %v7191_v30 = vcombine.low %v7152_v23, %v7184_v36  ;;  %v3784_v10 = vld [vmem:[#allocation2 + $0x3b8] sm:$0xff]  ;;  %v19016_v25 = vld [vmem:[#allocation2 + $0x360] sm:$0xff] }
 0x9ea   : > { %v13561_v4 = vpack.i.bf16 %v6783_v32, %v6647_v8  ;;  %v6784_v29 = vcombine.high %v6744_v24, %v6776_v16  ;;  %v7192_v59 = vcombine.high %v7152_v23, %v7184_v36  ;;  %v4641_v33 = vcombine.low %v3735_v52, %v3767_v51 }
 0x9eb   : > { %v13591_v60 = vpack.i.bf16 %v7325_v20, %v7189_v19  ;;  %v7327_v45 = vcombine.low %v7288_v49, %v7320_v22  ;;  %v7328_v42 = vcombine.high %v7288_v49, %v7320_v22  ;;  %v4642_v26 = vcombine.high %v3735_v52, %v3767_v51  ;;  %v3736_v19 = vld [vmem:[#allocation2 + $0x238] sm:$0xff]  ;;  %v19022_v22 = vld [vmem:[#allocation2 + $0x260] sm:$0xff] }
 0x9ec   : > { %13562 = vrot.lane.b32.xlu1 %v13561_v4, %s15373_s23  ;;  %v4657_v43 = vcombine.low %v3751_v31, %v3783_v39  ;;  %v13596_v18 = vpack.i.bf16 %v7326_v40, %v7190_v62  ;;  %v13566_v57 = vpack.i.bf16 %v6784_v29, %v6648_v41  ;;  %v4658_v61 = vcombine.high %v3751_v31, %v3783_v39  ;;  %v19024_v41 = vpop.permute.xlu1 %13437 }
 0x9ed   : > { %13592 = vrot.lane.b32.xlu0 %v13591_v60, %s15371_s15  ;;  %v13601_v11 = vpack.i.bf16 %v7327_v45, %v7191_v30  ;;  %v4649_v24 = vrot.slane %v4641_v33, %v18059_v53  ;;  %v4656_v16 = vrot.slane %v4642_v26, %v18059_v53  ;;  %v4777_v9 = vcombine.low %v3736_v19, %v3768_v47 }
 0x9ee   : > { %v4665_v5 = vrot.slane %v4657_v43, %v18059_v53  ;;  %v4672_v8 = vrot.slane %v4658_v61, %v18059_v53  ;;  %v4778_v23 = vcombine.high %v3736_v19, %v3768_v47  ;;  %v4793_v34 = vcombine.low %v3752_v28, %v3784_v10 }
 0x9ef   : > { %v4794_v32 = vcombine.high %v3752_v28, %v3784_v10  ;;  %v13606_v36 = vpack.i.bf16 %v7328_v42, %v7192_v59  ;;  %v4785_v62 = vrot.slane %v4777_v9, %v18059_v53  ;;  %v5457_v29 = vcombine.low %v19022_v22, %v19016_v25 }
 0x9f0   : > { %13567 = vrot.lane.b32.xlu1 %v13566_v57, %s15374_s28  ;;  %v4705_v49 = vcombine.low %v4649_v24, %v4665_v5  ;;  %v4706_v20 = vcombine.high %v4649_v24, %v4665_v5  ;;  %v4721_v40 = vcombine.low %v4656_v16, %v4672_v8  ;;  %v4722_v4 = vcombine.high %v4656_v16, %v4672_v8 }
 0x9f1   : > { %13597 = vrot.lane.b32.xlu0 %v13596_v18, %s15372_s9  ;;  %v4801_v30 = vrot.slane %v4793_v34, %v18059_v53  ;;  %v4792_v60 = vrot.slane %v4778_v23, %v18059_v53  ;;  %v4808_v45 = vrot.slane %v4794_v32, %v18059_v53  ;;  %v3789_v34 = vld [vmem:[#allocation2 + $0x3e0] sm:$0xff]  ;;  %vm8660_vm9 = vcmask 162816  }
 0x9f2   : > { %v4713_v51 = vrot.slane %v4705_v49, %v18063_v55  ;;  %v4720_v39 = vrot.slane %v4706_v20, %v18063_v55  ;;  %v4729_v59 = vrot.slane %v4721_v40, %v18063_v55  ;;  %v4736_v52 = vrot.slane %v4722_v4, %v18063_v55 }
 0x9f3   : > { %v4841_v31 = vcombine.low %v4785_v62, %v4801_v30  ;;  %v4842_v47 = vcombine.high %v4785_v62, %v4801_v30  ;;  %v4857_v42 = vcombine.low %v4792_v60, %v4808_v45  ;;  %v4858_v10 = vcombine.high %v4792_v60, %v4808_v45  ;;  %v3774_v62 = vld [vmem:[#allocation2 + $0x368] sm:$0xff] }
 0x9f4   : > { %v10603_v33 = vcombine.low %v4713_v51, %v4720_v39  ;;  %v10605_v26 = vcombine.high %v4713_v51, %v4720_v39  ;;  %v10607_v57 = vcombine.low %v4729_v59, %v4736_v52  ;;  %v10609_v19 = vcombine.high %v4729_v59, %v4736_v52  ;;  %v3757_v39 = vld [vmem:[#allocation2 + $0x2e0] sm:$0xff] }
 0x9f5   : > { %13602 = vrot.lane.b32.xlu0 %v13601_v11, %s15373_s23  ;;  %v4849_v43 = vrot.slane %v4841_v31, %v18063_v55  ;;  %v4856_v18 = vrot.slane %v4842_v47, %v18063_v55  ;;  %v4865_v61 = vrot.slane %v4857_v42, %v18063_v55  ;;  %v4872_v28 = vrot.slane %v4858_v10, %v18063_v55  ;;  %v19046_v11 = vpop.permute.xlu1 %13442  ;;  %v3758_v42 = vld [vmem:[#allocation2 + $0x2e8] sm:$0xff] }
 0x9f6   : > { %v19041_v24 = vrot.slane %v10603_v33, %v18059_v53  ;;  %v19044_v16 = vrot.slane %v10605_v26, %v18059_v53  ;;  %v19049_v5 = vrot.slane %v10607_v57, %v18059_v53  ;;  %v19052_v9 = vrot.slane %v10609_v19, %v18059_v53 }
 0x9f7   : > { %v10611_v8 = vcombine.low %v4849_v43, %v4856_v18  ;;  %v10613_v23 = vcombine.high %v4849_v43, %v4856_v18  ;;  %v10615_v49 = vcombine.low %v4865_v61, %v4872_v28  ;;  %v10617_v20 = vcombine.high %v4865_v61, %v4872_v28 }
 0x9f8   : > { %v6865_v32 = vcombine.low %v19041_v24, %v19044_v16  ;;  %v5458_v40 = vcombine.high %v19022_v22, %v19016_v25  ;;  %v6897_v4 = vcombine.low %v19049_v5, %v19052_v9  ;;  %v5465_v60 = vrot.slane %v5457_v29, %v18059_v53  ;;  %v3742_v22 = vld [vmem:[#allocation2 + $0x268] sm:$0xff] }
 0x9f9   : > { %13607 = vrot.lane.b32.xlu0 %v13606_v36, %s15374_s28  ;;  %v19062_v30 = vrot.slane %v10611_v8, %v18059_v53  ;;  %v19065_v51 = vrot.slane %v10613_v23, %v18059_v53  ;;  %v3790_v36 = vld [vmem:[#allocation2 + $0x3e8] sm:$0xff]  ;;  %v19072_v59 = vrot.slane %v10615_v49, %v18059_v53  ;;  %v19075_v25 = vrot.slane %v10617_v20, %v18059_v53  ;;  %v19085_v57 = vpop.permute.xlu1 %13447 }
 0x9fa   : > { %v19069_v45 = vrot.slane %v6865_v32, %v18063_v55  ;;  %v5473_v52 = vcombine.low %v3757_v39, %v3789_v34  ;;  %v19078_v31 = vrot.slane %v6897_v4, %v18063_v55  ;;  %v5474_v10 = vcombine.high %v3757_v39, %v3789_v34 }
 0x9fb   : > { %v7001_v47 = vcombine.low %v19062_v30, %v19065_v51  ;;  %v5593_v29 = vcombine.low %v3742_v22, %v3774_v62  ;;  %v7033_v33 = vcombine.low %v19072_v59, %v19075_v25  ;;  %v5594_v43 = vcombine.high %v3742_v22, %v3774_v62 }
 0x9fc   : > { %v5481_v26 = vrot.slane %v5473_v52, %v18059_v53  ;;  %v5609_v18 = vcombine.low %v3758_v42, %v3790_v36  ;;  %v6917_v19 = vcombine.low %v19069_v45, %v19078_v31  ;;  %v5472_v28 = vrot.slane %v5458_v40, %v18059_v53 }
 0x9fd   : > { %v7009_v61 = vrot.slane %v7001_v47, %v18063_v55  ;;  %v5488_v8 = vrot.slane %v5474_v10, %v18059_v53  ;;  %v7041_v23 = vrot.slane %v7033_v33, %v18063_v55  ;;  %v5601_v49 = vrot.slane %v5593_v29, %v18059_v53 }
 0x9fe   : > { %v5521_v34 = vcombine.low %v5465_v60, %v5481_v26  ;;  %v5522_v32 = vcombine.high %v5465_v60, %v5481_v26  ;;  %v5610_v4 = vcombine.high %v3758_v42, %v3790_v36  ;;  %v5617_v39 = vrot.slane %v5609_v18, %v18059_v53  ;;  %v19101_v42 = vpop.permute.xlu1 %13467 }
 0x9ff   : > { %v5537_v20 = vcombine.low %v5472_v28, %v5488_v8  ;;  %v5538_v62 = vcombine.high %v5472_v28, %v5488_v8  ;;  %v7053_v22 = vcombine.low %v7009_v61, %v7041_v23  ;;  %v5608_v40 = vrot.slane %v5594_v43, %v18059_v53 }
 0xa00   : > { %v5529_v52 = vrot.slane %v5521_v34, %v18063_v55  ;;  %v5536_v47 = vrot.slane %v5522_v32, %v18063_v55  ;;  %v5624_v60 = vrot.slane %v5610_v4, %v18059_v53  ;;  %v5657_v26 = vcombine.low %v5601_v49, %v5617_v39 }
 0xa01   : > { %v5545_v10 = vrot.slane %v5537_v20, %v18063_v55  ;;  %v5552_v33 = vrot.slane %v5538_v62, %v18063_v55  ;;  %v13571_v29 = vpack.i.bf16 %v7053_v22, %v6917_v19  ;;  %v5658_v13 = vcombine.high %v5601_v49, %v5617_v39 }
 0xa02   : > { %v10651_v28 = vcombine.low %v5529_v52, %v5536_v47  ;;  %v10653_v36 = vcombine.high %v5529_v52, %v5536_v47  ;;  %v5665_v18 = vrot.slane %v5657_v26, %v18063_v55  ;;  %v5673_v8 = vcombine.low %v5608_v40, %v5624_v60 }
 0xa03   : > { %v5674_v34 = vcombine.high %v5608_v40, %v5624_v60  ;;  %v10655_v32 = vcombine.low %v5545_v10, %v5552_v33  ;;  %13572 = vrot.lane.b32.xlu1 %v13571_v29, %s15371_s15  ;;  %v5672_v43 = vrot.slane %v5658_v13, %v18063_v55  ;;  %v10657_v4 = vcombine.high %v5545_v10, %v5552_v33 }
 0xa04   : > { %v7616_v20 = vrot.slane %v10651_v28, %v18059_v53  ;;  %v7632_v62 = vrot.slane %v10653_v36, %v18059_v53  ;;  %v5681_v19 = vrot.slane %v5673_v8, %v18063_v55  ;;  %v19114_v36 = vpop.permute.xlu1 %13472  ;;  %vm8677_vm10 = vcmask 195584  }
 0xa05   : > { %v5688_v49 = vrot.slane %v5674_v34, %v18063_v55  ;;  %v7648_v39 = vrot.slane %v10655_v32, %v18059_v53  ;;  %v7664_v22 = vrot.slane %v10657_v4, %v18059_v53  ;;  %v10659_v47 = vcombine.low %v5665_v18, %v5672_v43 }
 0xa06   : > { %v7681_v52 = vcombine.low %v7616_v20, %v7632_v62  ;;  %v10661_v40 = vcombine.high %v5665_v18, %v5672_v43  ;;  %v6918_v34 = vcombine.high %v19069_v45, %v19078_v31  ;;  %v7054_v43 = vcombine.high %v7009_v61, %v7041_v23 }
 0xa07   : > { %v10663_v60 = vcombine.low %v5681_v19, %v5688_v49  ;;  %v10665_v26 = vcombine.high %v5681_v19, %v5688_v49  ;;  %v7713_v29 = vcombine.low %v7648_v39, %v7664_v22  ;;  %v7752_v13 = vrot.slane %v10659_v47, %v18059_v53 }
 0xa08   : > { %v7768_v28 = vrot.slane %v10661_v40, %v18059_v53  ;;  %v7689_v10 = vrot.slane %v7681_v52, %v18063_v55  ;;  %v13576_v49 = vpack.i.bf16 %v7054_v43, %v6918_v34  ;;  %v6866_v52 = vcombine.high %v19041_v24, %v19044_v16  ;;  %v19133_v61 = vpop.permute.xlu1 %13477 }
 0xa09   : > { %v7784_v33 = vrot.slane %v10663_v60, %v18059_v53  ;;  %v7800_v8 = vrot.slane %v10665_v26, %v18059_v53  ;;  %v7721_v18 = vrot.slane %v7713_v29, %v18063_v55  ;;  %v6898_v60 = vcombine.high %v19049_v5, %v19052_v9 }
 0xa0a   : > { %v7817_v32 = vcombine.low %v7752_v13, %v7768_v28  ;;  %13577 = vrot.lane.b32.xlu1 %v13576_v49, %s15372_s9  ;;  %v7002_v45 = vcombine.high %v19062_v30, %v19065_v51  ;;  %v7034_v31 = vcombine.high %v19072_v59, %v19075_v25  ;;  %v7682_v29 = vcombine.high %v7616_v20, %v7632_v62 }
 0xa0b   : > { %v7849_v4 = vcombine.low %v7784_v33, %v7800_v8  ;;  %v7733_v47 = vcombine.low %v7689_v10, %v7721_v18  ;;  %v7734_v26 = vcombine.high %v7689_v10, %v7721_v18  ;;  %v7714_v34 = vcombine.high %v7648_v39, %v7664_v22 }
 0xa0c   : > { %v7825_v19 = vrot.slane %v7817_v32, %v18063_v55  ;;  %v6880_v32 = vrot.slane %v6866_v52, %v18063_v55  ;;  %v6912_v43 = vrot.slane %v6898_v60, %v18063_v55  ;;  %v7016_v24 = vrot.slane %v7002_v45, %v18063_v55  ;;  %v3771_v52 = vld [vmem:[#allocation2 + $0x350] sm:$0xff]  ;;  %v3788_v60 = vld [vmem:[#allocation2 + $0x3d8] sm:$0xff] }
 0xa0d   : > { %v7857_v40 = vrot.slane %v7849_v4, %v18063_v55  ;;  %v7048_v16 = vrot.slane %v7034_v31, %v18063_v55  ;;  %v7696_v30 = vrot.slane %v7682_v29, %v18063_v55  ;;  %v7728_v51 = vrot.slane %v7714_v34, %v18063_v55  ;;  %v3740_v29 = vld [vmem:[#allocation2 + $0x258] sm:$0xff]  ;;  %v3755_v34 = vld [vmem:[#allocation2 + $0x2d0] sm:$0xff] }
 0xa0e   : > { %v6919_v59 = vcombine.low %v6880_v32, %v6912_v43  ;;  %v7818_v4 = vcombine.high %v7752_v13, %v7768_v28  ;;  %v7850_v10 = vcombine.high %v7784_v33, %v7800_v8  ;;  %v3772_v13 = vld [vmem:[#allocation2 + $0x358] sm:$0xff]  ;;  %v3787_v28 = vld [vmem:[#allocation2 + $0x3d0] sm:$0xff]  ;;  %vm8694_vm11 = vcmask 228352  }
 0xa0f   : > { %v7869_v23 = vcombine.low %v7825_v19, %v7857_v40  ;;  %v7870_v9 = vcombine.high %v7825_v19, %v7857_v40  ;;  %v7055_v25 = vcombine.low %v7016_v24, %v7048_v16  ;;  %v7735_v49 = vcombine.low %v7696_v30, %v7728_v51  ;;  %v3739_v8 = vld [vmem:[#allocation2 + $0x250] sm:$0xff] }
 0xa10   : > { %v7832_v62 = vrot.slane %v7818_v4, %v18063_v55  ;;  %v7864_v39 = vrot.slane %v7850_v10, %v18063_v55  ;;  %v6920_v19 = vcombine.high %v6880_v32, %v6912_v43  ;;  %v7736_v31 = vcombine.high %v7696_v30, %v7728_v51  ;;  %v3756_v32 = vld [vmem:[#allocation2 + $0x2d8] sm:$0xff] }
 0xa11   : > { %v13631_v5 = vpack.i.bf16 %v7869_v23, %v7733_v47  ;;  %v13581_v20 = vpack.i.bf16 %v7055_v25, %v6919_v59  ;;  %v13636_v18 = vpack.i.bf16 %v7870_v9, %v7734_v26  ;;  %v7056_v47 = vcombine.high %v7016_v24, %v7048_v16 }
 0xa12   : > { %v7871_v40 = vcombine.low %v7832_v62, %v7864_v39  ;;  %v7872_v23 = vcombine.high %v7832_v62, %v7864_v39  ;;  %v5185_v26 = vcombine.low %v3739_v8, %v3771_v52  ;;  %v5186_v43 = vcombine.high %v3739_v8, %v3771_v52 }
 0xa13   : > { %13632 = vrot.lane.b32.xlu0 %v13631_v5, %s15371_s15  ;;  %v19144_v22 = vpop.permute.xlu1 %13497  ;;  %13582 = vrot.lane.b32.xlu1 %v13581_v20, %s15373_s23  ;;  %v13586_v33 = vpack.i.bf16 %v7056_v47, %v6920_v19  ;;  %v5201_v24 = vcombine.low %v3755_v34, %v3787_v28  ;;  %v5202_v16 = vcombine.high %v3755_v34, %v3787_v28  ;;  %vm8758_vm12 = vcmask 261120  }
 0xa14   : > { %20820 = vst [vmem:[#allocation82_spill] sm:$0xff] %v19144_v22  ;;  %v13641_v45 = vpack.i.bf16 %v7871_v40, %v7735_v49  ;;  %v5321_v5 = vcombine.low %v3740_v29, %v3772_v13  ;;  %v5322_v59 = vcombine.high %v3740_v29, %v3772_v13  ;;  %v5337_v25 = vcombine.low %v3756_v32, %v3788_v60 }
 0xa15   : > { %v5193_v4 = vrot.slane %v5185_v26, %v18059_v53  ;;  %v5200_v30 = vrot.slane %v5186_v43, %v18059_v53  ;;  %v5209_v51 = vrot.slane %v5201_v24, %v18059_v53  ;;  %v5216_v10 = vrot.slane %v5202_v16, %v18059_v53 }
 0xa16   : > { %v13646_v20 = vpack.i.bf16 %v7872_v23, %v7736_v31  ;;  %v5329_v62 = vrot.slane %v5321_v5, %v18059_v53  ;;  %v5338_v39 = vcombine.high %v3756_v32, %v3788_v60  ;;  %v5336_v52 = vrot.slane %v5322_v59, %v18059_v53 }
 0xa17   : > { %13637 = vrot.lane.b32.xlu0 %v13636_v18, %s15372_s9  ;;  %13587 = vrot.lane.b32.xlu1 %v13586_v33, %s15374_s28  ;;  %v19149_v9 = vpop.permute.xlu1 %13502  ;;  %v5345_v18 = vrot.slane %v5337_v25, %v18059_v53  ;;  %v5249_v49 = vcombine.low %v5193_v4, %v5209_v51  ;;  %v5250_v19 = vcombine.high %v5193_v4, %v5209_v51 }
 0xa18   : > { %20821 = vst [vmem:[#allocation67_spill] sm:$0xff] %v19149_v9  ;;  %v5265_v47 = vcombine.low %v5200_v30, %v5216_v10  ;;  %v5266_v40 = vcombine.high %v5200_v30, %v5216_v10  ;;  %v5352_v13 = vrot.slane %v5338_v39, %v18059_v53 }
 0xa19   : > { %v5385_v28 = vcombine.low %v5329_v62, %v5345_v18  ;;  %v5386_v33 = vcombine.high %v5329_v62, %v5345_v18  ;;  %v5257_v8 = vrot.slane %v5249_v49, %v18063_v55 }
 0xa1a   : > { %v5273_v60 = vrot.slane %v5265_v47, %v18063_v55  ;;  %v5280_v31 = vrot.slane %v5266_v40, %v18063_v55  ;;  %v5401_v26 = vcombine.low %v5336_v52, %v5352_v13  ;;  %v5402_v32 = vcombine.high %v5336_v52, %v5352_v13 }
 0xa1b   : > { %13642 = vrot.lane.b32.xlu0 %v13641_v45, %s15373_s23  ;;  %v5264_v45 = vrot.slane %v5250_v19, %v18063_v55  ;;  %v19165_v23 = vpop.permute.xlu1 %13507  ;;  %v5393_v29 = vrot.slane %v5385_v28, %v18063_v55  ;;  %v5400_v34 = vrot.slane %v5386_v33, %v18063_v55 }
 0xa1c   : > { %20822 = vst [vmem:[#allocation83_spill] sm:$0xff] %v19165_v23  ;;  %v10639_v16 = vcombine.low %v5273_v60, %v5280_v31  ;;  %v10641_v5 = vcombine.high %v5273_v60, %v5280_v31  ;;  %v5409_v59 = vrot.slane %v5401_v26, %v18063_v55  ;;  %v5416_v25 = vrot.slane %v5402_v32, %v18063_v55 }
 0xa1d   : > { %v10635_v43 = vcombine.low %v5257_v8, %v5264_v45  ;;  %v10637_v24 = vcombine.high %v5257_v8, %v5264_v45  ;;  %v10643_v4 = vcombine.low %v5393_v29, %v5400_v34  ;;  %v10645_v30 = vcombine.high %v5393_v29, %v5400_v34 }
 0xa1e   : > { %v7392_v62 = vrot.slane %v10641_v5, %v18059_v53  ;;  %v10647_v49 = vcombine.low %v5409_v59, %v5416_v25  ;;  %v10649_v19 = vcombine.high %v5409_v59, %v5416_v25 }
 0xa1f   : > { %13647 = vrot.lane.b32.xlu0 %v13646_v20, %s15374_s28  ;;  %v7344_v51 = vrot.slane %v10635_v43, %v18059_v53  ;;  %v7360_v10 = vrot.slane %v10637_v24, %v18059_v53  ;;  %v7376_v20 = vrot.slane %v10639_v16, %v18059_v53  ;;  %v7480_v39 = vrot.slane %v10643_v4, %v18059_v53 }
 0xa20   : > { %v7496_v18 = vrot.slane %v10645_v30, %v18059_v53  ;;  %v7512_v13 = vrot.slane %v10647_v49, %v18059_v53  ;;  %v7528_v28 = vrot.slane %v10649_v19, %v18059_v53 }
 0xa21   : > { %v7409_v47 = vcombine.low %v7344_v51, %v7360_v10  ;;  %v7441_v40 = vcombine.low %v7376_v20, %v7392_v62  ;;  %v7410_v32 = vcombine.high %v7344_v51, %v7360_v10  ;;  %v7442_v43 = vcombine.high %v7376_v20, %v7392_v62  ;;  %v3775_v62 = vld [vmem:[#allocation2 + $0x370] sm:$0xff] }
 0xa22   : > { %v7545_v33 = vcombine.low %v7480_v39, %v7496_v18  ;;  %v7577_v31 = vcombine.low %v7512_v13, %v7528_v28  ;;  %v7546_v49 = vcombine.high %v7480_v39, %v7496_v18  ;;  %v7578_v19 = vcombine.high %v7512_v13, %v7528_v28  ;;  %v3759_v18 = vld [vmem:[#allocation2 + $0x2f0] sm:$0xff]  ;;  %v3792_v13 = vld [vmem:[#allocation2 + $0x3f8] sm:$0xff] }
 0xa23   : > { %v7417_v8 = vrot.slane %v7409_v47, %v18063_v55  ;;  %v7449_v45 = vrot.slane %v7441_v40, %v18063_v55  ;;  %v7424_v59 = vrot.slane %v7410_v32, %v18063_v55  ;;  %v7456_v30 = vrot.slane %v7442_v43, %v18063_v55  ;;  %v3744_v32 = vld [vmem:[#allocation2 + $0x278] sm:$0xff] }
 0xa24   : > { %v7553_v60 = vrot.slane %v7545_v33, %v18063_v55  ;;  %v7585_v26 = vrot.slane %v7577_v31, %v18063_v55  ;;  %v7560_v47 = vrot.slane %v7546_v49, %v18063_v55  ;;  %v7592_v40 = vrot.slane %v7578_v19, %v18063_v55  ;;  %v3791_v33 = vld [vmem:[#allocation2 + $0x3f0] sm:$0xff] }
 0xa25   : > { %v7461_v34 = vcombine.low %v7417_v8, %v7449_v45  ;;  %v7462_v16 = vcombine.high %v7417_v8, %v7449_v45  ;;  %v7463_v10 = vcombine.low %v7424_v59, %v7456_v30  ;;  %v3743_v45 = vld [vmem:[#allocation2 + $0x270] sm:$0xff]  ;;  %v7464_v31 = vcombine.high %v7424_v59, %v7456_v30 }
 0xa26   : > { %v7597_v24 = vcombine.low %v7553_v60, %v7585_v26  ;;  %v7598_v5 = vcombine.high %v7553_v60, %v7585_v26  ;;  %v7599_v20 = vcombine.low %v7560_v47, %v7592_v40  ;;  %v3776_v60 = vld [vmem:[#allocation2 + $0x378] sm:$0xff]  ;;  %v7600_v39 = vcombine.high %v7560_v47, %v7592_v40 }
 0xa27   : > { %v19177_v52 = vpop.permute.xlu1 %13512  ;;  %v5729_v28 = vcombine.low %v3743_v45, %v3775_v62  ;;  %v5745_v43 = vcombine.low %v3759_v18, %v3791_v33  ;;  %v5865_v19 = vcombine.low %v3744_v32, %v3776_v60 }
 0xa28   : > { %v13611_v4 = vpack.i.bf16 %v7597_v24, %v7461_v34  ;;  %v13616_v51 = vpack.i.bf16 %v7598_v5, %v7462_v16  ;;  %v5730_v34 = vcombine.high %v3743_v45, %v3775_v62  ;;  %v13621_v26 = vpack.i.bf16 %v7599_v20, %v7463_v10  ;;  %v19197_v16 = vpop.permute.xlu0 %13427  ;;  %v3760_v5 = vld [vmem:[#allocation2 + $0x2f8] sm:$0xff]  ;;  %v20823_v10 = vld [vmem:[#allocation48_spill] sm:$0xff] }
 0xa29   : > { %v5746_v24 = vcombine.high %v3759_v18, %v3791_v33  ;;  %v5753_v59 = vrot.slane %v5745_v43, %v18059_v53  ;;  %v5881_v47 = vcombine.low %v3760_v5, %v3792_v13  ;;  %v5882_v40 = vcombine.high %v3760_v5, %v3792_v13  ;;  %v20824_v20 = vld [vmem:[#allocation47_spill] sm:$0xff] }
 0xa2a   : > { %13612 = vrot.lane.b32.xlu1 %v13611_v4, %s15371_s15  ;;  %v5737_v4 = vrot.slane %v5729_v28, %v18059_v53  ;;  %v5744_v49 = vrot.slane %v5730_v34, %v18059_v53  ;;  %v6233_v62 = vcombine.low %v20824_v20, %v20823_v10  ;;  %v13395_v33 = vunpack.i.h.bf16 %v18875_v46 }
 0xa2b   : > { %v19184_v29 = vpop.permute.xlu1 %13517  ;;  %v5760_v30 = vrot.slane %v5746_v24, %v18059_v53  ;;  %v13394_v45 = vunpack.i.l.bf16 %v18875_v46  ;;  %v13626_v18 = vpack.i.bf16 %v7600_v39, %v7464_v31  ;;  %v5873_v24 = vrot.slane %v5865_v19, %v18059_v53 }
 0xa2c   : > { %v5793_v34 = vcombine.low %v5737_v4, %v5753_v59  ;;  %v19210_v43 = vpop.permute.xlu0 %13452  ;;  %v5889_v5 = vrot.slane %v5881_v47, %v18059_v53  ;;  %v5896_v10 = vrot.slane %v5882_v40, %v18059_v53 }
 0xa2e   : > { %13617 = vrot.lane.b32.xlu1 %v13616_v51, %s15372_s9  ;;  %v5866_v51 = vcombine.high %v3744_v32, %v3776_v60  ;;  %v5794_v60 = vcombine.high %v5737_v4, %v5753_v59  ;;  %v5809_v32 = vcombine.low %v5744_v49, %v5760_v30  ;;  %v5801_v46 = vrot.slane %v5793_v34, %v18063_v55 }
 0xa2f   : > { %v19188_v25 = vpop.permute.xlu1 %13522  ;;  %v5930_v59 = vcombine.high %v5873_v24, %v5889_v5 }
 0xa30   : > { %v5880_v13 = vrot.slane %v5866_v51, %v18059_v53  ;;  %v5808_v31 = vrot.slane %v5794_v60, %v18063_v55  ;;  %v5817_v39 = vrot.slane %v5809_v32, %v18063_v55 }
 0xa32   : > { %13622 = vrot.lane.b32.xlu1 %v13621_v26, %s15373_s23  ;;  %v5810_v26 = vcombine.high %v5744_v49, %v5760_v30  ;;  %v5929_v49 = vcombine.low %v5873_v24, %v5889_v5  ;;  %v5945_v30 = vcombine.low %v5880_v13, %v5896_v10  ;;  %v5946_v19 = vcombine.high %v5880_v13, %v5896_v10  ;;  %v19231_v5 = vpop.permute.xlu0 %13457 }
 0xa33   : > { %v19194_v8 = vpop.permute.xlu1 %13527  ;;  %v10667_v20 = vcombine.low %v5801_v46, %v5808_v31  ;;  %v10669_v51 = vcombine.high %v5801_v46, %v5808_v31 }
 0xa34   : > { %v5824_v4 = vrot.slane %v5810_v26, %v18063_v55  ;;  %v5937_v40 = vrot.slane %v5929_v49, %v18063_v55  ;;  %v5953_v34 = vrot.slane %v5945_v30, %v18063_v55  ;;  %v5960_v60 = vrot.slane %v5946_v19, %v18063_v55 }
 0xa35   : > { %v7888_v32 = vrot.slane %v10667_v20, %v18059_v53  ;;  %v7904_v26 = vrot.slane %v10669_v51, %v18059_v53  ;;  %v13399_v49 = vunpack.i.l.bf16 %v18888_v12 }
 0xa36   : > { %13627 = vrot.lane.b32.xlu1 %v13626_v18, %s15374_s28  ;;  %v10671_v23 = vcombine.low %v5817_v39, %v5824_v4  ;;  %v10673_v47 = vcombine.high %v5817_v39, %v5824_v4  ;;  %v5944_v18 = vrot.slane %v5930_v59, %v18063_v55  ;;  %v10679_v31 = vcombine.low %v5953_v34, %v5960_v60 }
 0xa37   : > { %v10681_v39 = vcombine.high %v5953_v34, %v5960_v60  ;;  %v13400_v4 = vunpack.i.h.bf16 %v18888_v12  ;;  %v7953_v59 = vcombine.low %v7888_v32, %v7904_v26  ;;  %v8594_v12 = vsel %vm20801_vm1, %v6233_v62, %v13395_v33 }
 0xa38   : > { %v7920_v24 = vrot.slane %v10671_v23, %v18059_v53  ;;  %v7936_v13 = vrot.slane %v10673_v47, %v18059_v53  ;;  %v10675_v10 = vcombine.low %v5937_v40, %v5944_v18  ;;  %v10677_v46 = vcombine.high %v5937_v40, %v5944_v18  ;;  %v20825_v47 = vld [vmem:[#allocation46_spill] sm:$0xff] }
 0xa39   : > { %v8056_v23 = vrot.slane %v10679_v31, %v18059_v53  ;;  %v8072_v51 = vrot.slane %v10681_v39, %v18059_v53  ;;  %v6097_v6 = vcombine.low %v20826_v7, %v20825_v47  ;;  %v7961_v40 = vrot.slane %v7953_v59, %v18063_v55  ;;  %v19249_v39 = vpop.permute.xlu0 %13462 }
 0xa3a   : > { %v7985_v30 = vcombine.low %v7920_v24, %v7936_v13  ;;  %v8024_v19 = vrot.slane %v10675_v10, %v18059_v53  ;;  %v8040_v20 = vrot.slane %v10677_v46, %v18059_v53  ;;  %v8611_v46 = vsel %vm8609_vm0, %v8594_v12, %v13400_v4 }
 0xa3b   : > { %v19208_v28 = vpop.permute.xlu1 %13532  ;;  %v8121_v9 = vcombine.low %v8056_v23, %v8072_v51  ;;  %v8593_v10 = vsel %vm20827_vm2, %v6097_v6, %v13394_v45  ;;  %v7954_v31 = vcombine.high %v7888_v32, %v7904_v26  ;;  %v7986_v22 = vcombine.high %v7920_v24, %v7936_v13  ;;  %v20830_v45 = vld [vmem:[#allocation53_spill] sm:$0xff]  ;;  %vm20848_vm2 = vmmov %vm20801_vm1 }
 0xa3c   : > { %v7993_v18 = vrot.slane %v7985_v30, %v18063_v55  ;;  %v8089_v60 = vcombine.low %v8024_v19, %v8040_v20  ;;  %v8610_v53 = vsel %vm8609_vm0, %v8593_v10, %v13399_v49  ;;  %v13404_v62 = vunpack.i.l.bf16 %v18902_v17 }
 0xa3d   : > { %v8129_v30 = vrot.slane %v8121_v9, %v18063_v55  ;;  %v8090_v33 = vcombine.high %v8024_v19, %v8040_v20  ;;  %v8122_v47 = vcombine.high %v8056_v23, %v8072_v51  ;;  %v13405_v6 = vunpack.i.h.bf16 %v18902_v17  ;;  %v20828_v23 = vld [vmem:[#allocation58_spill] sm:$0xff] }
 0xa3e   : > { %v8005_v7 = vcombine.low %v7961_v40, %v7993_v18  ;;  %v8097_v59 = vrot.slane %v8089_v60, %v18063_v55  ;;  %v13410_v32 = vunpack.i.h.bf16 %v18939_v63  ;;  %v13409_v24 = vunpack.i.l.bf16 %v18939_v63  ;;  %v20829_v51 = vld [vmem:[#allocation54_spill] sm:$0xff]  ;;  %v20831_v63 = vld [vmem:[#allocation51_spill] sm:$0xff] }
 0xa3f   : > { %v19221_v0 = vpop.permute.xlu1 %13537  ;;  %v8006_v13 = vcombine.high %v7961_v40, %v7993_v18  ;;  %v7968_v4 = vrot.slane %v7954_v31, %v18063_v55  ;;  %v8000_v49 = vrot.slane %v7986_v22, %v18063_v55  ;;  %v8104_v19 = vrot.slane %v8090_v33, %v18063_v55 }
 0xa40   : > { %v8141_v26 = vcombine.low %v8097_v59, %v8129_v30  ;;  %v8142_v60 = vcombine.high %v8097_v59, %v8129_v30  ;;  %v8136_v17 = vrot.slane %v8122_v47, %v18063_v55  ;;  %v8627_v20 = vsel %vm8626_vm3, %v8610_v53, %v13404_v62  ;;  %v19274_v30 = vpop.permute.xlu0 %13482 }
 0xa41   : > { %v6505_v10 = vcombine.low %v20829_v51, %v20828_v23  ;;  %v6369_v40 = vcombine.low %v20831_v63, %v20830_v45  ;;  %v13414_v18 = vunpack.i.l.bf16 %v18964_v2  ;;  %v8628_v22 = vsel %vm8626_vm3, %v8611_v46, %v13405_v6 }
 0xa42   : > { %v13651_v12 = vpack.i.bf16 %v8141_v26, %v8005_v7  ;;  %v13429_v31 = vunpack.i.l.bf16 %v19197_v16  ;;  %v13415_v7 = vunpack.i.h.bf16 %v18964_v2  ;;  %v13419_v59 = vunpack.i.l.bf16 %v18980_v56 }
 0xa43   : > { %v19243_v34 = vpop.permute.xlu1 %13542  ;;  %v8596_v55 = vsel %vm20832_vm4, %v6505_v10, %v13410_v32  ;;  %v8595_v53 = vsel %vm20833_vm5, %v6369_v40, %v13409_v24  ;;  %v13420_v62 = vunpack.i.h.bf16 %v18980_v56  ;;  %v13425_v33 = vunpack.i.h.bf16 %v19000_v15  ;;  %vm20849_vm4 = vmmov %vm20801_vm1 }
 0xa44   : > { %13652 = vrot.lane.b32.xlu1 %v13651_v12, %s15371_s15  ;;  %v13424_v46 = vunpack.i.l.bf16 %v19000_v15  ;;  %v13656_v47 = vpack.i.bf16 %v8142_v60, %v8006_v13  ;;  %v8007_v6 = vcombine.low %v7968_v4, %v8000_v49  ;;  %v8143_v45 = vcombine.low %v8104_v19, %v8136_v17  ;;  %vm20850_vm5 = vmmov %vm20801_vm1 }
 0xa45   : > { %v8612_v2 = vsel %vm8609_vm0, %v8595_v53, %v13414_v18  ;;  %v6777_v26 = vcombine.low %v18461_v37, %v18464_v38  ;;  %v8008_v23 = vcombine.high %v7968_v4, %v8000_v49  ;;  %v8144_v12 = vcombine.high %v8104_v19, %v8136_v17  ;;  %v19297_v49 = vpop.permute.xlu0 %13487 }
 0xa46   : > { %v8613_v32 = vsel %vm8609_vm0, %v8596_v55, %v13415_v7  ;;  %v8629_v56 = vsel %vm8626_vm3, %v8612_v2, %v13419_v59  ;;  %v6641_v24 = vcombine.low %v18453_v48, %v18458_v27  ;;  %v13515_v37 = vunpack.i.h.bf16 %v19177_v52 }
 0xa47   : > { %v19260_v9 = vpop.permute.xlu1 %13547  ;;  %v8630_v15 = vsel %vm8626_vm3, %v8613_v32, %v13420_v62  ;;  %v8598_v13 = vsel %vm20834_vm7, %v6777_v26, %v13425_v33  ;;  %v13514_v38 = vunpack.i.l.bf16 %v19177_v52  ;;  %v13661_v60 = vpack.i.bf16 %v8143_v45, %v8007_v6  ;;  %vm20851_vm7 = vmmov %vm20801_vm1 }
 0xa48   : > { %13657 = vrot.lane.b32.xlu1 %v13656_v47, %s15372_s9  ;;  %v8597_v4 = vsel %vm20835_vm8, %v6641_v24, %v13424_v46  ;;  %v13520_v19 = vunpack.i.h.bf16 %v19184_v29  ;;  %v13666_v48 = vpack.i.bf16 %v8144_v12, %v8008_v23  ;;  %v8645_v27 = vsel %vm8643_vm6, %v8628_v22, %v13515_v37  ;;  %vm20859_vm8 = vmmov %vm20801_vm1 }
 0xa49   : > { %v8644_v17 = vsel %vm8643_vm6, %v8627_v20, %v13514_v38  ;;  %v13519_v10 = vunpack.i.l.bf16 %v19184_v29  ;;  %v13525_v52 = vunpack.i.h.bf16 %v19188_v25  ;;  %v13524_v40 = vunpack.i.l.bf16 %v19188_v25  ;;  %v19318_v47 = vpop.permute.xlu0 %13492 }
 0xa4a   : > { %v8662_v63 = vsel %vm8660_vm9, %v8645_v27, %v13520_v19  ;;  %v13530_v7 = vunpack.i.h.bf16 %v19194_v8  ;;  %v13529_v22 = vunpack.i.l.bf16 %v19194_v8  ;;  %v13535_v55 = vunpack.i.h.bf16 %v19208_v28 }
 0xa4b   : > { %v8661_v18 = vsel %vm8660_vm9, %v8644_v17, %v13519_v10  ;;  %v8679_v29 = vsel %vm8677_vm10, %v8662_v63, %v13525_v52  ;;  %v13534_v53 = vunpack.i.l.bf16 %v19208_v28  ;;  %v13540_v33 = vunpack.i.h.bf16 %v19221_v0 }
 0xa4c   : > { %13662 = vrot.lane.b32.xlu1 %v13661_v60, %s15373_s23  ;;  %v8678_v20 = vsel %vm8677_vm10, %v8661_v18, %v13524_v40  ;;  %v8696_v25 = vsel %vm8694_vm11, %v8679_v29, %v13530_v7  ;;  %v13435_v46 = vunpack.i.h.bf16 %v19009_v1  ;;  %v8647_v8 = vsel %vm8643_vm6, %v8630_v15, %v13535_v55  ;;  %v20837_v7 = vld [vmem:[#allocation77_spill] sm:$0xff] }
 0xa4d   : > { %v8695_v62 = vsel %vm8694_vm11, %v8678_v20, %v13529_v22  ;;  %v13539_v45 = vunpack.i.l.bf16 %v19221_v0  ;;  %v8646_v28 = vsel %vm8643_vm6, %v8629_v56, %v13534_v53  ;;  %v13545_v2 = vunpack.i.h.bf16 %v19243_v34 }
 0xa4e   : > { %v8727_v6 = vpack.c.bf16 %v8696_v25, %v8695_v62  ;;  %v13544_v26 = vunpack.i.l.bf16 %v19243_v34  ;;  %v13550_v23 = vunpack.i.h.bf16 %v19260_v9  ;;  %v13434_v12 = vunpack.i.l.bf16 %v19009_v1 }
 0xa4f   : > { %v19285_v51 = vpop.permute.xlu1 %13552  ;;  %v8663_v32 = vsel %vm8660_vm9, %v8646_v28, %v13539_v45  ;;  %v8664_v24 = vsel %vm8660_vm9, %v8647_v8, %v13540_v33  ;;  %v13549_v15 = vunpack.i.l.bf16 %v19260_v9  ;;  %v20836_v17 = vunpack.i.h.bf16 %v19197_v16  ;;  %v20838_v45 = vld [vmem:[#allocation60_spill] sm:$0xff]  ;;  %v20839_v28 = vld [vmem:[#allocation75_spill] sm:$0xff] }
 0xa50   : > { %13667 = vrot.lane.b32.xlu1 %v13666_v48, %s15374_s28  ;;  %11790 = vmatprep.mubr.msk.bf16.mxu0 %vm8758_vm12, %v8727_v6  ;;  %v8680_v0 = vsel %vm8677_vm10, %v8663_v32, %v13544_v26  ;;  %v8681_v56 = vsel %vm8677_vm10, %v8664_v24, %v13545_v2  ;;  %v13555_v37 = vunpack.i.h.bf16 %v19285_v51  ;;  %v13554_v34 = vunpack.i.l.bf16 %v19285_v51 }
 0xa51   : > { %v8697_v60 = vsel %vm8694_vm11, %v8680_v0, %v13549_v15  ;;  %v8698_v1 = vsel %vm8694_vm11, %v8681_v56, %v13550_v23  ;;  %v8615_v9 = vsel %vm8609_vm0, %v8598_v13, %v20836_v17  ;;  %v8614_v10 = vsel %vm8609_vm0, %v8597_v4, %v13429_v31 }
 0xa52   : > { %v8728_v63 = vpack.c.bf16 %v8698_v1, %v8697_v60  ;;  %v8631_v52 = vsel %vm8626_vm3, %v8614_v10, %v13434_v12  ;;  %v8632_v51 = vsel %vm8626_vm3, %v8615_v9, %v13435_v46  ;;  %v7321_v22 = vcombine.low %v20837_v7, %v18423_v58 }
 0xa53   : > { %v8648_v20 = vsel %vm8643_vm6, %v8631_v52, %v13554_v34  ;;  %v13455_v53 = vunpack.i.h.bf16 %v19210_v43  ;;  %v13454_v62 = vunpack.i.l.bf16 %v19210_v43  ;;  %v13460_v33 = vunpack.i.h.bf16 %v19231_v5 }
 0xa54   : > { %11791 = vmatmul.mubr.msk.bf16.vlgmr.msra.gmra.mrb[64].mxu0 %vm8758_vm12, %v8728_v63  ;;  %v13459_v46 = vunpack.i.l.bf16 %v19231_v5  ;;  %v7185_v2 = vcombine.low %v20839_v28, %v20838_v45  ;;  %v13465_v26 = vunpack.i.h.bf16 %v19249_v39  ;;  %v13464_v23 = vunpack.i.l.bf16 %v19249_v39 }
 0xa55   : > { %v8602_v15 = vsel %vm20840_vm13, %v7321_v22, %v13455_v53  ;;  %v13450_v53 = vunpack.i.h.bf16 %v19085_v57  ;;  %vm20860_vm13 = vmmov %vm20801_vm1 }
 0xa56   : > { %v13558_v59 = vpop.permute.xlu1 %13557  ;;  %v8601_v0 = vsel %vm20841_vm14, %v7185_v2, %v13454_v62  ;;  %v8619_v34 = vsel %vm8609_vm0, %v8602_v15, %v13460_v33  ;;  %v13449_v62 = vunpack.i.l.bf16 %v19085_v57 }
 0xa57   : > { %v13560_v48 = vunpack.i.h.bf16 %v13558_v59  ;;  %v13559_v27 = vunpack.i.l.bf16 %v13558_v59  ;;  %v8649_v59 = vsel %vm8643_vm6, %v8632_v51, %v13555_v37  ;;  %v8618_v37 = vsel %vm8609_vm0, %v8601_v0, %v13459_v46 }
 0xa58   : > { %v8635_v39 = vsel %vm8626_vm3, %v8618_v37, %v13464_v23  ;;  %v8636_v1 = vsel %vm8626_vm3, %v8619_v34, %v13465_v26 }
 0xa59   : > { %v8665_v16 = vsel %vm8660_vm9, %v8648_v20, %v13559_v27  ;;  %v8666_v31 = vsel %vm8660_vm9, %v8649_v59, %v13560_v48  ;;  %v13440_v20 = vunpack.i.h.bf16 %v19024_v41 }
 0xa5e   : > { %v13563_v38 = vpop.permute.xlu1 %13562 }
 0xa5f   : > { %v13593_v19 = vpop.permute.xlu0 %13592  ;;  %v13565_v40 = vunpack.i.h.bf16 %v13563_v38  ;;  %v13564_v18 = vunpack.i.l.bf16 %v13563_v38 }
 0xa60   : > { %v13595_v12 = vunpack.i.h.bf16 %v13593_v19  ;;  %v13594_v32 = vunpack.i.l.bf16 %v13593_v19 }
 0xa61   : > { %v8682_v58 = vsel %vm8677_vm10, %v8665_v16, %v13564_v18  ;;  %v8683_v25 = vsel %vm8677_vm10, %v8666_v31, %v13565_v40  ;;  %v13445_v16 = vunpack.i.h.bf16 %v19046_v11  ;;  %v13444_v31 = vunpack.i.l.bf16 %v19046_v11 }
 0xa62   : > { %v13568_v13 = vpop.permute.xlu1 %13567  ;;  %v8653_v19 = vsel %vm8643_vm6, %v8636_v1, %v13595_v12  ;;  %v8652_v48 = vsel %vm8643_vm6, %v8635_v39, %v13594_v32  ;;  %v13490_v39 = vunpack.i.h.bf16 %v19297_v49  ;;  %v13489_v1 = vunpack.i.l.bf16 %v19297_v49 }
 0xa63   : > { %v13598_v4 = vpop.permute.xlu0 %13597  ;;  %v13570_v29 = vunpack.i.h.bf16 %v13568_v13  ;;  %v13569_v55 = vunpack.i.l.bf16 %v13568_v13  ;;  %v13439_v13 = vunpack.i.l.bf16 %v19024_v41 }
 0xa64   : > { %v13600_v5 = vunpack.i.h.bf16 %v13598_v4  ;;  %v13599_v56 = vunpack.i.l.bf16 %v13598_v4  ;;  %v7049_v4 = vcombine.low %v18633_v21, %v18641_v54 }
 0xa65   : > { %v8699_v8 = vsel %vm8694_vm11, %v8682_v58, %v13569_v55  ;;  %v8700_v6 = vsel %vm8694_vm11, %v8683_v25, %v13570_v29  ;;  %v20842_v29 = vld [vmem:[#allocation64_spill] sm:$0xff] }
 0xa66   : > { %v8729_v43 = vpack.c.bf16 %v8700_v6, %v8699_v8  ;;  %v8669_v17 = vsel %vm8660_vm9, %v8652_v48, %v13599_v56  ;;  %v8670_v9 = vsel %vm8660_vm9, %v8653_v19, %v13600_v5  ;;  %v6913_v55 = vcombine.low %v20842_v29, %v18628_v50  ;;  %v20844_v48 = vld [vmem:[#allocation79_spill] sm:$0xff] }
 0xa67   : > { %v13603_v24 = vpop.permute.xlu0 %13602  ;;  %v8600_v46 = vsel %vm20843_vm15, %v7049_v4, %v13440_v20 }
 0xa68   : > { %11794 = vmatprep.mubr.msk.bf16.mxu0 %vm8758_vm12, %v8729_v43  ;;  %v13605_v38 = vunpack.i.h.bf16 %v13603_v24  ;;  %v13604_v60 = vunpack.i.l.bf16 %v13603_v24  ;;  %v8599_v41 = vsel %vm20801_vm1, %v6913_v55, %v13439_v13  ;;  %v8617_v21 = vsel %vm8609_vm0, %v8600_v46, %v13445_v16 }
 0xa69   : > { %v8616_v11 = vsel %vm8609_vm0, %v8599_v41, %v13444_v31  ;;  %v8634_v28 = vsel %vm8626_vm3, %v8617_v21, %v13450_v53  ;;  %v7457_v16 = vcombine.low %v18702_v35, %v18706_v14 }
 0xa6a   : > { %v8686_v52 = vsel %vm8677_vm10, %v8669_v17, %v13604_v60  ;;  %v8687_v51 = vsel %vm8677_vm10, %v8670_v9, %v13605_v38  ;;  %v8633_v50 = vsel %vm8626_vm3, %v8616_v11, %v13449_v62  ;;  %v13485_v38 = vunpack.i.h.bf16 %v19274_v30  ;;  %v20846_v9 = vld [vmem:[#allocation78_spill] sm:$0xff] }
 0xa6b   : > { %v13608_v27 = vpop.permute.xlu0 %13607  ;;  %v13484_v60 = vunpack.i.l.bf16 %v19274_v30  ;;  %v13469_v30 = vunpack.i.l.bf16 %v19101_v42  ;;  %v13480_v62 = vunpack.i.h.bf16 %v19133_v61 }
 0xa6c   : > { %v13610_v10 = vunpack.i.h.bf16 %v13608_v27  ;;  %v13609_v63 = vunpack.i.l.bf16 %v13608_v27  ;;  %v20845_v27 = vld [vmem:[#allocation63_spill] sm:$0xff] }
 0xa6d   : > { %v7865_v17 = vcombine.low %v20845_v27, %v20844_v48 }
 0xa6e   : > { %v8703_v40 = vsel %vm8694_vm11, %v8686_v52, %v13609_v63  ;;  %v8704_v18 = vsel %vm8694_vm11, %v8687_v51, %v13610_v10  ;;  %v20847_v10 = vld [vmem:[#allocation62_spill] sm:$0xff]  ;;  %v13495_v52 = vunpack.i.h.bf16 %v19318_v47  ;;  %v13494_v51 = vunpack.i.l.bf16 %v19318_v47 }
 0xa6f   : > { %v8731_v7 = vpack.c.bf16 %v8704_v18, %v8703_v40  ;;  %v7729_v63 = vcombine.low %v20847_v10, %v20846_v9  ;;  %v13470_v18 = vunpack.i.h.bf16 %v19101_v42  ;;  %v7593_v47 = vcombine.low %v18710_v44, %v18718_v3 }
 0xa71   : > { %11798 = vmatprep.mubr.msk.bf16.mxu1 %vm8758_vm12, %v8731_v7  ;;  %v8606_v7 = vsel %vm20848_vm2, %v7865_v17, %v13485_v38  ;;  %v8605_v49 = vsel %vm20849_vm4, %v7729_v63, %v13484_v60  ;;  %v8604_v53 = vsel %vm20850_vm5, %v7593_v47, %v13470_v18  ;;  %v20852_v63 = vld [vmem:[#allocation82_spill] sm:$0xff]  ;;  %v20858_v47 = vld [vmem:[#allocation83_spill] sm:$0xff] }
 0xa72   : > { %v8622_v20 = vsel %vm8609_vm0, %v8605_v49, %v13489_v1  ;;  %v8623_v13 = vsel %vm8609_vm0, %v8606_v7, %v13490_v39  ;;  %v20854_v7 = vld [vmem:[#allocation66_spill] sm:$0xff]  ;;  %v20855_v49 = vld [vmem:[#allocation81_spill] sm:$0xff] }
 0xa73   : > { %v8639_v42 = vsel %vm8626_vm3, %v8622_v20, %v13494_v51  ;;  %v8640_v4 = vsel %vm8626_vm3, %v8623_v13, %v13495_v52  ;;  %v13500_v52 = vunpack.i.h.bf16 %v20852_v63  ;;  %v13499_v51 = vunpack.i.l.bf16 %v20852_v63  ;;  %v20857_v20 = vld [vmem:[#allocation80_spill] sm:$0xff] }
 0xa75   : > { %v13573_v22 = vpop.permute.xlu1 %13572 }
 0xa76   : > { %v13575_v58 = vunpack.i.h.bf16 %v13573_v22  ;;  %v13574_v25 = vunpack.i.l.bf16 %v13573_v22  ;;  %v13475_v22 = vunpack.i.h.bf16 %v19114_v36 }
 0xa78   : > { %v8651_v57 = vsel %vm8643_vm6, %v8634_v28, %v13575_v58  ;;  %v8650_v2 = vsel %vm8643_vm6, %v8633_v50, %v13574_v25  ;;  %v13479_v58 = vunpack.i.l.bf16 %v19133_v61  ;;  %v8621_v3 = vsel %vm8609_vm0, %v8604_v53, %v13475_v22 }
 0xa79   : > { %v8137_v22 = vcombine.low %v20855_v49, %v20854_v7 }
 0xa7c   : > { %v13578_v59 = vpop.permute.xlu1 %13577 }
 0xa7d   : > { %v13580_v8 = vunpack.i.h.bf16 %v13578_v59  ;;  %v13579_v6 = vunpack.i.l.bf16 %v13578_v59  ;;  %v13474_v59 = vunpack.i.l.bf16 %v19114_v36  ;;  %v8603_v36 = vsel %vm20851_vm7, %v7457_v16, %v13469_v30 }
 0xa7e   : > { %v13510_v16 = vunpack.i.h.bf16 %v20858_v47 }
 0xa7f   : > { %v8667_v23 = vsel %vm8660_vm9, %v8650_v2, %v13579_v6  ;;  %v8668_v43 = vsel %vm8660_vm9, %v8651_v57, %v13580_v8  ;;  %v8620_v44 = vsel %vm8609_vm0, %v8603_v36, %v13474_v59  ;;  %v20856_v59 = vld [vmem:[#allocation65_spill] sm:$0xff] }
 0xa80   : > { %v8637_v2 = vsel %vm8626_vm3, %v8620_v44, %v13479_v58  ;;  %v8001_v13 = vcombine.low %v20857_v20, %v20856_v59  ;;  %v8718_v59 = vld [vmem:[%s15944_s16 + $0x38] sm:$0xff] }
 0xa82   : > { %v8607_v53 = vsel %vm20860_vm13, %v8001_v13, %v13499_v51 }
 0xa85   : > { %v13583_v33 = vpop.permute.xlu1 %13582  ;;  %v13633_v37 = vpop.permute.xlu0 %13632 }
 0xa86   : > { %v13585_v54 = vunpack.i.h.bf16 %v13583_v33  ;;  %v13584_v45 = vunpack.i.l.bf16 %v13583_v33  ;;  %v13635_v29 = vunpack.i.h.bf16 %v13633_v37  ;;  %v13634_v55 = vunpack.i.l.bf16 %v13633_v37 }
 0xa88   : > { %v8684_v24 = vsel %vm8677_vm10, %v8667_v23, %v13584_v45  ;;  %v8685_v15 = vsel %vm8677_vm10, %v8668_v43, %v13585_v54  ;;  %v8657_v11 = vsel %vm8643_vm6, %v8640_v4, %v13635_v29  ;;  %v8656_v21 = vsel %vm8643_vm6, %v8639_v42, %v13634_v55 }
 0xa89   : > { %v13588_v26 = vpop.permute.xlu1 %13587  ;;  %v13638_v34 = vpop.permute.xlu0 %13637  ;;  %v8608_v55 = vsel %vm20859_vm8, %v8137_v22, %v13500_v52 }
 0xa8a   : > { %v13590_v12 = vunpack.i.h.bf16 %v13588_v26  ;;  %v13589_v32 = vunpack.i.l.bf16 %v13588_v26  ;;  %v13640_v35 = vunpack.i.h.bf16 %v13638_v34  ;;  %v13639_v14 = vunpack.i.l.bf16 %v13638_v34 }
 0xa8b   : > { %v8638_v26 = vsel %vm8626_vm3, %v8621_v3, %v13480_v62 }
 0xa8c   : > { %v8701_v0 = vsel %vm8694_vm11, %v8684_v24, %v13589_v32  ;;  %v8702_v5 = vsel %vm8694_vm11, %v8685_v15, %v13590_v12  ;;  %v8673_v23 = vsel %vm8660_vm9, %v8656_v21, %v13639_v14  ;;  %v8674_v43 = vsel %vm8660_vm9, %v8657_v11, %v13640_v35 }
 0xa8d   : > { %v8730_v56 = vpack.c.bf16 %v8702_v5, %v8701_v0  ;;  %v13643_v40 = vpop.permute.xlu0 %13642 }
 0xa8e   : > { %v13645_v33 = vunpack.i.h.bf16 %v13643_v40  ;;  %v13644_v46 = vunpack.i.l.bf16 %v13643_v40  ;;  %v20853_v40 = vld [vmem:[#allocation67_spill] sm:$0xff] }
 0xa8f   : > { %11795 = vmatmul.mubr.msk.bf16.gmra.mrb[68].mxu0 %vm8758_vm12, %v8730_v56  ;;  %v13505_v18 = vunpack.i.h.bf16 %v20853_v40  ;;  %v13504_v30 = vunpack.i.l.bf16 %v20853_v40 }
 0xa90   : > { %v8690_v12 = vsel %vm8677_vm10, %v8673_v23, %v13644_v46  ;;  %v8691_v32 = vsel %vm8677_vm10, %v8674_v43, %v13645_v33  ;;  %v8711_v23 = vld [vmem:[%s15944_s16] sm:$0xff] }
 0xa91   : > { %v13648_v25 = vpop.permute.xlu0 %13647  ;;  %v8624_v58 = vsel %vm8609_vm0, %v8607_v53, %v13504_v30  ;;  %v8625_v44 = vsel %vm8609_vm0, %v8608_v55, %v13505_v18  ;;  %v8716_v18 = vld [vmem:[%s15944_s16 + $0x28] sm:$0xff]  ;;  %v8717_v30 = vld [vmem:[%s15944_s16 + $0x30] sm:$0xff]  ;;  %v8719_v53 = vld [vmem:[%s15944_s16 + $0x40] sm:$0xff]  ;;  %vm9366_vm0 = vcmask 523264  }
 0xa92   : > { %v13650_v50 = vunpack.i.h.bf16 %v13648_v25  ;;  %v13649_v61 = vunpack.i.l.bf16 %v13648_v25  ;;  %v8642_v25 = vsel %vm8626_vm3, %v8625_v44, %v13510_v16 }
 0xa94   : > { %v8707_v38 = vsel %vm8694_vm11, %v8690_v12, %v13649_v61  ;;  %v8708_v60 = vsel %vm8694_vm11, %v8691_v32, %v13650_v50 }
 0xa95   : > { %v8733_v17 = vpack.c.bf16 %v8708_v60, %v8707_v38 }
 0xa9c   : > { %v13613_v19 = vpop.permute.xlu1 %13612 }
 0xa9d   : > { %v13615_v41 = vunpack.i.h.bf16 %v13613_v19  ;;  %v13614_v8 = vunpack.i.l.bf16 %v13613_v19 }
 0xa9f   : > { %v8655_v24 = vsel %vm8643_vm6, %v8638_v26, %v13615_v41  ;;  %v8654_v15 = vsel %vm8643_vm6, %v8637_v2, %v13614_v8 }
 0xaa0   : > { %v13618_v31 = vpop.permute.xlu1 %13617 }
 0xaa1   : > { %v13620_v54 = vunpack.i.h.bf16 %v13618_v31  ;;  %v13619_v45 = vunpack.i.l.bf16 %v13618_v31  ;;  %v13509_v31 = vunpack.i.l.bf16 %v20858_v47 }
 0xaa3   : > { %v8671_v5 = vsel %vm8660_vm9, %v8654_v15, %v13619_v45  ;;  %v8672_v56 = vsel %vm8660_vm9, %v8655_v24, %v13620_v54  ;;  %v8641_v14 = vsel %vm8626_vm3, %v8624_v58, %v13509_v31  ;;  %v8712_v15 = vld [vmem:[%s15944_s16 + $0x8] sm:$0xff] }
 0xaa4   : > { %v13623_v6 = vpop.permute.xlu1 %13622 }
 0xaa5   : > { %v13625_v28 = vunpack.i.h.bf16 %v13623_v6  ;;  %v13624_v57 = vunpack.i.l.bf16 %v13623_v6 }
 0xaa7   : > { %v8688_v39 = vsel %vm8677_vm10, %v8671_v5, %v13624_v57  ;;  %v8689_v1 = vsel %vm8677_vm10, %v8672_v56, %v13625_v28  ;;  %v19481_v57 = vld [vmem:[#allocation12] ss:$0 sm:$0xff] }
 0xaa8   : > { %v13628_v0 = vpop.permute.xlu1 %13627 }
 0xaa9   : > { %v13630_v37 = vunpack.i.h.bf16 %v13628_v0  ;;  %v13629_v34 = vunpack.i.l.bf16 %v13628_v0  ;;  %v8713_v0 = vld [vmem:[%s15944_s16 + $0x10] sm:$0xff] }
 0xaab   : > { %v8705_v19 = vsel %vm8694_vm11, %v8688_v39, %v13629_v34  ;;  %v8706_v48 = vsel %vm8694_vm11, %v8689_v1, %v13630_v37  ;;  %v8714_v39 = vld [vmem:[%s15944_s16 + $0x18] sm:$0xff] }
 0xaac   : > { %v8732_v27 = vpack.c.bf16 %v8706_v48, %v8705_v19 }
 0xaae   : > { %11799 = vmatmul.mubr.msk.bf16.vlgmr.msra.gmra.mrb[64].mxu1 %vm8758_vm12, %v8732_v27 }
 0xaaf   : > { %11802 = vmatprep.mubr.msk.bf16.mxu1 %vm8758_vm12, %v8733_v17 }
 0xab6   : > { %v13653_v9 = vpop.permute.xlu1 %13652 }
 0xab7   : > { %v13655_v42 = vunpack.i.h.bf16 %v13653_v9  ;;  %v13654_v4 = vunpack.i.l.bf16 %v13653_v9 }
 0xab9   : > { %v8659_v33 = vsel %vm8643_vm6, %v8642_v25, %v13655_v42  ;;  %v8658_v46 = vsel %vm8643_vm6, %v8641_v14, %v13654_v4 }
 0xaba   : > { %v13658_v10 = vpop.permute.xlu1 %13657 }
 0xabb   : > { %v13660_v36 = vunpack.i.h.bf16 %v13658_v10  ;;  %v13659_v62 = vunpack.i.l.bf16 %v13658_v10  ;;  %v8715_v10 = vld [vmem:[%s15944_s16 + $0x20] sm:$0xff] }
 0xabd   : > { %v8675_v8 = vsel %vm8660_vm9, %v8658_v46, %v13659_v62  ;;  %v8676_v6 = vsel %vm8660_vm9, %v8659_v33, %v13660_v36  ;;  %v8722_v46 = vld [vmem:[%s15944_s16 + $0x58] sm:$0xff] }
 0xabe   : > { %v13663_v29 = vpop.permute.xlu1 %13662 }
 0xabf   : > { %v13665_v3 = vunpack.i.h.bf16 %v13663_v29  ;;  %v13664_v35 = vunpack.i.l.bf16 %v13663_v29 }
 0xac1   : > { %v8692_v54 = vsel %vm8677_vm10, %v8675_v8, %v13664_v35  ;;  %v8693_v45 = vsel %vm8677_vm10, %v8676_v6, %v13665_v3  ;;  %v8720_v3 = vld [vmem:[%s15944_s16 + $0x48] sm:$0xff]  ;;  %v8721_v35 = vld [vmem:[%s15944_s16 + $0x50] sm:$0xff] }
 0xac2   : > { %v13668_v41 = vpop.permute.xlu1 %13667 }
 0xac3   : > { %v13670_v11 = vunpack.i.h.bf16 %v13668_v41  ;;  %v13669_v21 = vunpack.i.l.bf16 %v13668_v41 }
 0xac5   : > { %v8709_v50 = vsel %vm8694_vm11, %v8692_v54, %v13669_v21  ;;  %v8710_v61 = vsel %vm8694_vm11, %v8693_v45, %v13670_v11 }
 0xac6   : > { %v8734_v28 = vpack.c.bf16 %v8710_v61, %v8709_v50 }
 0xac8   : > { %11803 = vmatmul.mubr.msk.bf16.gmra.mrb[68].mxu1 %vm8758_vm12, %v8734_v28  ;;  %v8723_v28 = vld [vmem:[%s15944_s16 + $0x60] sm:$0xff] }
 0xb27   : > { %v11792_v2 = vpop.f32.mrb[64].mxu0 }
 0xb28   : > { %v8817_v26 = vpop.f32.mrb[65].mxu0  ;;  %v8826_v43 = vadd.f32 %v11792_v2, %v19481_v57 }
 0xb29   : > { %v8818_v12 = vadd.f32 %v19481_v57, %v8817_v26  ;;  %v11793_v32 = vpop.f32.mrb[66].mxu0 }
 0xb2a   : > { %v8820_v24 = vpop.f32.mrb[67].mxu0  ;;  %v8829_v37 = vadd.f32 %v11793_v32, %v19481_v57  ;;  %v19496_v60 = vadd.f32 %v8826_v43, %v8713_v0  ;;  %v8725_v32 = vld [vmem:[%s15944_s16 + $0x70] sm:$0xff] }
 0xb2b   : > { %v8821_v5 = vadd.f32 %v19481_v57, %v8820_v24  ;;  %v19489_v56 = vadd.f32 %v8818_v12, %v8711_v23  ;;  %v8724_v12 = vld [vmem:[%s15944_s16 + $0x68] sm:$0xff] }
 0xb2c   : > { %v8904_v19 = vsel %vm8758_vm12, %v19496_v60, 0.0  ;;  %v19503_v48 = vadd.f32 %v8829_v37, %v8714_v39 }
 0xb2d   : > { %v8898_v34 = vsel %vm8758_vm12, %v19489_v56, 0.0  ;;  %v19494_v38 = vadd.f32 %v8821_v5, %v8712_v15  ;;  %v8726_v5 = vld [vmem:[%s15944_s16 + $0x78] sm:$0xff]  ;;  %s20861_s16 = sld [smem:[#allocation39_spill]] }
 0xb2e   : > { %8899 = vadd.xlane.f32.xlu0 %v8898_v34  ;;  %v8907_v27 = vsel %vm8758_vm12, %v19503_v48, 0.0 }
 0xb2f   : > { %v8901_v1 = vsel %vm8758_vm12, %v19494_v38, 0.0 }
 0xb30   : > { %8902 = vadd.xlane.f32.xlu1 %v8901_v1 }
 0xb32   : > { %8905 = vadd.xlane.f32.xlu0 %v8904_v19 }
 0xb33   : > { %s10730_s21 = sshll.u32 %s20861_s16, 11 }
 0xb34   : > { %s20069_s27 = scalar_lea.hbm %s20863_s26, %s10730_s21 }
 0xb36   : > { %8908 = vadd.xlane.f32.xlu0 %v8907_v27 }
 0xb62   : > { %v11796_v17 = vpop.f32.mrb[68].mxu0 }
 0xb63   : > { %v8833_v9 = vpop.f32.mrb[69].mxu0  ;;  %v8842_v63 = vadd.f32 %v11796_v17, %v19481_v57 }
 0xb64   : > { %v8834_v52 = vadd.f32 %v19481_v57, %v8833_v9  ;;  %v11797_v51 = vpop.f32.mrb[70].mxu0 }
 0xb65   : > { %v8836_v40 = vpop.f32.mrb[71].mxu0  ;;  %v8845_v7 = vadd.f32 %v11797_v51, %v19481_v57  ;;  %v19521_v47 = vadd.f32 %v8842_v63, %v8717_v30 }
 0xb66   : > { %v8837_v49 = vadd.f32 %v19481_v57, %v8836_v40  ;;  %v19514_v22 = vadd.f32 %v8834_v52, %v8715_v10 }
 0xb67   : > { %v19525_v31 = vadd.f32 %v8845_v7, %v8718_v59  ;;  %v8916_v42 = vsel %vm8758_vm12, %v19521_v47, 0.0 }
 0xb68   : > { %v8910_v20 = vsel %vm8758_vm12, %v19514_v22, 0.0  ;;  %v19519_v13 = vadd.f32 %v8837_v49, %v8716_v18 }
 0xb69   : > { %8911 = vadd.xlane.f32.xlu0 %v8910_v20  ;;  %v8919_v4 = vsel %vm8758_vm12, %v19525_v31, 0.0 }
 0xb6a   : > { %v8913_v16 = vsel %vm8758_vm12, %v19519_v13, 0.0 }
 0xb6b   : > { %8914 = vadd.xlane.f32.xlu1 %v8913_v16 }
 0xb6d   : > { %8917 = vadd.xlane.f32.xlu0 %v8916_v42 }
 0xb6f   : > { %8920 = vadd.xlane.f32.xlu1 %v8919_v4 }
 0xb81   : > { %v11800_v29 = vpop.f32.mrb[64].mxu1 }
 0xb82   : > { %v8849_v55 = vpop.f32.mrb[65].mxu1  ;;  %v8858_v36 = vadd.f32 %v11800_v29, %v19481_v57 }
 0xb83   : > { %v8850_v62 = vadd.f32 %v19481_v57, %v8849_v55  ;;  %v11801_v58 = vpop.f32.mrb[66].mxu1 }
 0xb84   : > { %v8852_v44 = vpop.f32.mrb[67].mxu1  ;;  %v8861_v14 = vadd.f32 %v11801_v58, %v19481_v57  ;;  %v19545_v6 = vadd.f32 %v8858_v36, %v8721_v35  ;;  %v13674_v36 = vld [vmem:[#allocation17 + $0x8] sm:$0xff]  }
 0xb85   : > { %v8853_v25 = vadd.f32 %v19481_v57, %v8852_v44  ;;  %v19538_v33 = vadd.f32 %v8850_v62, %v8719_v53  ;;  %v13673_v53 = vld [vmem:[#allocation17] sm:$0xff]  }
 0xb86   : > { %v19549_v21 = vadd.f32 %v8861_v14, %v8722_v46  ;;  %v8928_v54 = vsel %vm8758_vm12, %v19545_v6, 0.0  ;;  %11806 = vmatprep.subr.bf16.mxu1 %v13673_v53 }
 0xb87   : > { %v8922_v41 = vsel %vm8758_vm12, %v19538_v33, 0.0  ;;  %v19543_v8 = vadd.f32 %v8853_v25, %v8720_v3  ;;  %11807 = vmatpush3.bf16.msra.mxu1 %v13673_v53 }
 0xb88   : > { %8923 = vadd.xlane.f32.xlu0 %v8922_v41  ;;  %v8931_v45 = vsel %vm8758_vm12, %v19549_v21, 0.0  ;;  %11808 = vmatprep.subr.bf16.mxu1 %v13674_v36 }
 0xb89   : > { %v8925_v11 = vsel %vm8758_vm12, %v19543_v8, 0.0 }
 0xb8a   : > { %8926 = vadd.xlane.f32.xlu1 %v8925_v11 }
 0xb8b   : > { %11809 = vmatpush3.bf16.msra.mxu1 %v13674_v36 }
 0xb8c   : > { %8929 = vadd.xlane.f32.xlu0 %v8928_v54 }
 0xb8e   : > { %8932 = vadd.xlane.f32.xlu1 %v8931_v45 }
 0xb9b   : > { %v11804_v50 = vpop.f32.mrb[68].mxu1 }
 0xb9c   : > { %v8865_v61 = vpop.f32.mrb[69].mxu1  ;;  %v8874_v2 = vadd.f32 %v11804_v50, %v19481_v57 }
 0xb9d   : > { %v8866_v26 = vadd.f32 %v19481_v57, %v8865_v61  ;;  %v11805_v23 = vpop.f32.mrb[70].mxu1 }
 0xb9e   : > { %v8868_v43 = vpop.f32.mrb[71].mxu1  ;;  %v8877_v24 = vadd.f32 %v11805_v23, %v19481_v57  ;;  %v19569_v39 = vadd.f32 %v8874_v2, %v8725_v32 }
 0xb9f   : > { %v8869_v15 = vadd.f32 %v19481_v57, %v8868_v43  ;;  %v19562_v0 = vadd.f32 %v8866_v26, %v8723_v28 }
 0xba0   : > { %v19573_v19 = vadd.f32 %v8877_v24, %v8726_v5  ;;  %v8940_v57 = vsel %vm8758_vm12, %v19569_v39, 0.0 }
 0xba1   : > { %v8934_v37 = vsel %vm8758_vm12, %v19562_v0, 0.0  ;;  %v19567_v34 = vadd.f32 %v8869_v15, %v8724_v12 }
 0xba2   : > { %8935 = vadd.xlane.f32.xlu0 %v8934_v37  ;;  %v8943_v27 = vsel %vm8758_vm12, %v19573_v19, 0.0 }
 0xba3   : > { %v8937_v1 = vsel %vm8758_vm12, %v19567_v34, 0.0 }
 0xba4   : > { %8938 = vadd.xlane.f32.xlu1 %v8937_v1 }
 0xba6   : > { %8941 = vadd.xlane.f32.xlu0 %v8940_v57 }
 0xba8   : > { %8944 = vadd.xlane.f32.xlu1 %v8943_v27 }
 0xbbb   : > { %v8900_v17 = vpop.xlane.xlu0 %8899 }
 0xbbc   : > { %v8947_v9 = vmul.f32 0.03125, %v8900_v17 }
 0xbbd   : > { %v8903_v10 = vpop.xlane.xlu1 %8902 }
 0xbbe   : > { %v19580_v63 = vsub.f32 %v19489_v56, %v8947_v9  ;;  %v8948_v52 = vmul.f32 0.03125, %v8903_v10 }
 0xbbf   : > { %v8906_v51 = vpop.xlane.xlu0 %8905 }
 0xbc0   : > { %v19583_v40 = vsub.f32 %v19494_v38, %v8948_v52  ;;  %v8949_v18 = vmul.f32 0.03125, %v8906_v51  ;;  %v8979_v30 = vmul.f32 %v19580_v63, %v19580_v63 }
 0xbc2   : > { %v19588_v7 = vsub.f32 %v19496_v60, %v8949_v18  ;;  %v8995_v49 = vsel %vm8758_vm12, %v8979_v30, 0.0  ;;  %v8980_v59 = vmul.f32 %v19583_v40, %v19583_v40 }
 0xbc3   : > { %v8909_v20 = vpop.xlane.xlu0 %8908  ;;  %8996 = vadd.xlane.f32.xlu0 %v8995_v49 }
 0xbc4   : > { %v8950_v56 = vmul.f32 0.03125, %v8909_v20  ;;  %v8998_v16 = vsel %vm8758_vm12, %v8980_v59, 0.0  ;;  %v8981_v38 = vmul.f32 %v19588_v7, %v19588_v7 }
 0xbc5   : > { %8999 = vadd.xlane.f32.xlu1 %v8998_v16 }
 0xbc6   : > { %v19597_v42 = vsub.f32 %v19503_v48, %v8950_v56  ;;  %v9001_v60 = vsel %vm8758_vm12, %v8981_v38, 0.0 }
 0xbc7   : > { %9002 = vadd.xlane.f32.xlu0 %v9001_v60 }
 0xbc8   : > { %v8982_v4 = vmul.f32 %v19597_v42, %v19597_v42 }
 0xbca   : > { %v9004_v29 = vsel %vm8758_vm12, %v8982_v4, 0.0 }
 0xbcb   : > { %9005 = vadd.xlane.f32.xlu1 %v9004_v29 }
 0xbf6   : > { %v8912_v55 = vpop.xlane.xlu0 %8911 }
 0xbf7   : > { %v8951_v62 = vmul.f32 0.03125, %v8912_v55 }
 0xbf8   : > { %v8915_v58 = vpop.xlane.xlu1 %8914 }
 0xbf9   : > { %v19604_v44 = vsub.f32 %v19514_v22, %v8951_v62  ;;  %v8952_v48 = vmul.f32 0.03125, %v8915_v58 }
 0xbfa   : > { %v8918_v3 = vpop.xlane.xlu0 %8917 }
 0xbfb   : > { %v19607_v35 = vsub.f32 %v19519_v13, %v8952_v48  ;;  %v8953_v14 = vmul.f32 0.03125, %v8918_v3  ;;  %v8983_v25 = vmul.f32 %v19604_v44, %v19604_v44 }
 0xbfc   : > { %v8921_v46 = vpop.xlane.xlu1 %8920 }
 0xbfd   : > { %v19612_v41 = vsub.f32 %v19521_v47, %v8953_v14  ;;  %v8954_v11 = vmul.f32 0.03125, %v8921_v46  ;;  %v9007_v54 = vsel %vm8758_vm12, %v8983_v25, 0.0  ;;  %v8984_v22 = vmul.f32 %v19607_v35, %v19607_v35 }
 0xbfe   : > { %9008 = vadd.xlane.f32.xlu0 %v9007_v54 }
 0xbff   : > { %v19618_v45 = vsub.f32 %v19525_v31, %v8954_v11  ;;  %v9010_v13 = vsel %vm8758_vm12, %v8984_v22, 0.0  ;;  %v8985_v50 = vmul.f32 %v19612_v41, %v19612_v41 }
 0xc00   : > { %9011 = vadd.xlane.f32.xlu1 %v9010_v13 }
 0xc01   : > { %v9013_v47 = vsel %vm8758_vm12, %v8985_v50, 0.0  ;;  %v8986_v61 = vmul.f32 %v19618_v45, %v19618_v45 }
 0xc02   : > { %9014 = vadd.xlane.f32.xlu0 %v9013_v47  ;;  %v19675_v47 = vld [vmem:[#allocation14] ss:$0 sm:$0xff] }
 0xc03   : > { %v9016_v28 = vsel %vm8758_vm12, %v8986_v61, 0.0  ;;  %v13675_v61 = vld [vmem:[#allocation20] sm:$0xff]  }
 0xc04   : > { %9017 = vadd.xlane.f32.xlu1 %v9016_v28  ;;  %v13676_v28 = vld [vmem:[#allocation20 + $0x8] sm:$0xff]   ;;  %11826 = vmatprep.subr.bf16.mxu0 %v13675_v61 }
 0xc05   : > { %11827 = vmatpush3.bf16.msra.mxu0 %v13675_v61 }
 0xc06   : > { %11828 = vmatprep.subr.bf16.mxu0 %v13676_v28 }
 0xc09   : > { %11829 = vmatpush3.bf16.msra.mxu0 %v13676_v28 }
 0xc15   : > { %v8924_v2 = vpop.xlane.xlu0 %8923 }
 0xc16   : > { %v8955_v26 = vmul.f32 0.03125, %v8924_v2 }
 0xc17   : > { %v8927_v23 = vpop.xlane.xlu1 %8926 }
 0xc18   : > { %v19628_v31 = vsub.f32 %v19538_v33, %v8955_v26  ;;  %v8956_v43 = vmul.f32 0.03125, %v8927_v23 }
 0xc19   : > { %v8930_v12 = vpop.xlane.xlu0 %8929 }
 0xc1a   : > { %v19631_v32 = vsub.f32 %v19543_v8, %v8956_v43  ;;  %v8957_v24 = vmul.f32 0.03125, %v8930_v12  ;;  %v8987_v15 = vmul.f32 %v19628_v31, %v19628_v31 }
 0xc1b   : > { %v8933_v5 = vpop.xlane.xlu1 %8932 }
 0xc1c   : > { %v19636_v37 = vsub.f32 %v19545_v6, %v8957_v24  ;;  %v8958_v1 = vmul.f32 0.03125, %v8933_v5  ;;  %v9019_v57 = vsel %vm8758_vm12, %v8987_v15, 0.0  ;;  %v8988_v33 = vmul.f32 %v19631_v32, %v19631_v32  ;;  %v19680_v24 = vld [vmem:[#allocation15] ss:$0 sm:$0xff] }
 0xc1d   : > { %9020 = vadd.xlane.f32.xlu0 %v9019_v57 }
 0xc1e   : > { %v19642_v27 = vsub.f32 %v19549_v21, %v8958_v1  ;;  %v9022_v8 = vsel %vm8758_vm12, %v8988_v33, 0.0  ;;  %v8989_v17 = vmul.f32 %v19636_v37, %v19636_v37 }
 0xc1f   : > { %9023 = vadd.xlane.f32.xlu1 %v9022_v8 }
 0xc20   : > { %v9025_v9 = vsel %vm8758_vm12, %v8989_v17, 0.0  ;;  %v8990_v6 = vmul.f32 %v19642_v27, %v19642_v27 }
 0xc21   : > { %9026 = vadd.xlane.f32.xlu0 %v9025_v9 }
 0xc22   : > { %v9028_v10 = vsel %vm8758_vm12, %v8990_v6, 0.0 }
 0xc23   : > { %9029 = vadd.xlane.f32.xlu1 %v9028_v10 }
 0xc2f   : > { %v8936_v52 = vpop.xlane.xlu0 %8935 }
 0xc30   : > { %v8959_v51 = vmul.f32 0.03125, %v8936_v52 }
 0xc31   : > { %v8939_v18 = vpop.xlane.xlu1 %8938 }
 0xc32   : > { %v19652_v21 = vsub.f32 %v19562_v0, %v8959_v51  ;;  %v8960_v30 = vmul.f32 0.03125, %v8939_v18 }
 0xc33   : > { %v8942_v49 = vpop.xlane.xlu0 %8941 }
 0xc34   : > { %v19655_v59 = vsub.f32 %v19567_v34, %v8960_v30  ;;  %v8961_v20 = vmul.f32 0.03125, %v8942_v49  ;;  %v8991_v56 = vmul.f32 %v19652_v21, %v19652_v21 }
 0xc35   : > { %v8945_v16 = vpop.xlane.xlu1 %8944 }
 0xc36   : > { %v19660_v38 = vsub.f32 %v19569_v39, %v8961_v20  ;;  %v8962_v60 = vmul.f32 0.03125, %v8945_v16  ;;  %v9031_v4 = vsel %vm8758_vm12, %v8991_v56, 0.0  ;;  %v8992_v0 = vmul.f32 %v19655_v59, %v19655_v59 }
 0xc37   : > { %9032 = vadd.xlane.f32.xlu0 %v9031_v4 }
 0xc38   : > { %v19666_v29 = vsub.f32 %v19573_v19, %v8962_v60  ;;  %v9034_v34 = vsel %vm8758_vm12, %v8992_v0, 0.0  ;;  %v8993_v55 = vmul.f32 %v19660_v38, %v19660_v38 }
 0xc39   : > { %9035 = vadd.xlane.f32.xlu1 %v9034_v34 }
 0xc3a   : > { %v9037_v53 = vsel %vm8758_vm12, %v8993_v55, 0.0  ;;  %v8994_v39 = vmul.f32 %v19666_v29, %v19666_v29 }
 0xc3b   : > { %9038 = vadd.xlane.f32.xlu0 %v9037_v53 }
 0xc3c   : > { %v9040_v36 = vsel %vm8758_vm12, %v8994_v39, 0.0 }
 0xc3d   : > { %9041 = vadd.xlane.f32.xlu1 %v9040_v36 }
 0xc50   : > { %v8997_v62 = vpop.xlane.xlu0 %8996 }
 0xc51   : > { %v9043_v58 = vmul.f32 0.03125, %v8997_v62 }
 0xc52   : > { %v9000_v48 = vpop.xlane.xlu1 %8999 }
 0xc53   : > { %v9059_v19 = vadd.f32 1e-05, %v9043_v58  ;;  %v9044_v3 = vmul.f32 0.03125, %v9000_v48 }
 0xc54   : > { %v9003_v14 = vpop.xlane.xlu0 %9002 }
 0xc55   : > { %13679 = vrsqrt.f32 %v9059_v19  ;;  %v9060_v25 = vadd.f32 1e-05, %v9044_v3  ;;  %v9045_v46 = vmul.f32 0.03125, %v9003_v14 }
 0xc57   : > { %13681 = vrsqrt.f32 %v9060_v25  ;;  %v9061_v11 = vadd.f32 1e-05, %v9045_v46 }
 0xc58   : > { %v9006_v54 = vpop.xlane.xlu1 %9005 }
 0xc59   : > { %13683 = vrsqrt.f32 %v9061_v11  ;;  %v9046_v22 = vmul.f32 0.03125, %v9006_v54 }
 0xc5b   : > { %v9062_v13 = vadd.f32 1e-05, %v9046_v22 }
 0xc5d   : > { %13685 = vrsqrt.f32 %v9062_v13 }
 0xc5f   : > { %v13680_v50 = vpop.eup %13679 }
 0xc60   : > { %v9091_v2 = vmul.f32 %v13680_v50, %v19580_v63 }
 0xc61   : > { %v13682_v26 = vpop.eup %13681 }
 0xc62   : > { %v9092_v23 = vmul.f32 %v13682_v26, %v19583_v40  ;;  %v9113_v43 = vmul.f32 %v19675_v47, %v9091_v2 }
 0xc63   : > { %v13684_v12 = vpop.eup %13683 }
 0xc64   : > { %v9093_v15 = vmul.f32 %v13684_v12, %v19588_v7  ;;  %v9114_v5 = vmul.f32 %v19675_v47, %v9092_v23  ;;  %v19685_v1 = vadd.f32 %v19680_v24, %v9113_v43 }
 0xc66   : > { %v19688_v63 = vadd.f32 %v19680_v24, %v9114_v5  ;;  %v9115_v40 = vmul.f32 %v19675_v47, %v9093_v15 }
 0xc67   : > { %v13686_v57 = vpop.eup %13685 }
 0xc68   : > { %v9094_v33 = vmul.f32 %v13686_v57, %v19597_v42  ;;  %v9151_v8 = vpack.c.bf16 %v19688_v63, %v19685_v1  ;;  %v19697_v7 = vadd.f32 %v19680_v24, %v9115_v40 }
 0xc6a   : > { %v9116_v17 = vmul.f32 %v19675_v47, %v9094_v33  ;;  %11810 = vmatprep.mubr.msk.bf16.mxu1 %vm8758_vm12, %v9151_v8 }
 0xc6c   : > { %v19700_v9 = vadd.f32 %v19680_v24, %v9116_v17 }
 0xc6e   : > { %v9152_v6 = vpack.c.bf16 %v19700_v9, %v19697_v7 }
 0xc70   : > { %11811 = vmatmul.mubr.msk.bf16.vlgmr.msra.gmra.mrb[72].mxu1 %vm8758_vm12, %v9152_v6 }
 0xc8b   : > { %v9009_v10 = vpop.xlane.xlu0 %9008 }
 0xc8c   : > { %v9047_v42 = vmul.f32 0.03125, %v9009_v10 }
 0xc8d   : > { %v9012_v52 = vpop.xlane.xlu1 %9011 }
 0xc8e   : > { %v9063_v51 = vadd.f32 1e-05, %v9047_v42  ;;  %v9048_v18 = vmul.f32 0.03125, %v9012_v52 }
 0xc8f   : > { %v9015_v30 = vpop.xlane.xlu0 %9014 }
 0xc90   : > { %13687 = vrsqrt.f32 %v9063_v51  ;;  %v9064_v49 = vadd.f32 1e-05, %v9048_v18  ;;  %v9049_v20 = vmul.f32 0.03125, %v9015_v30 }
 0xc91   : > { %v9018_v56 = vpop.xlane.xlu1 %9017 }
 0xc92   : > { %13689 = vrsqrt.f32 %v9064_v49  ;;  %v9065_v16 = vadd.f32 1e-05, %v9049_v20  ;;  %v9050_v60 = vmul.f32 0.03125, %v9018_v56 }
 0xc94   : > { %13691 = vrsqrt.f32 %v9065_v16  ;;  %v9066_v4 = vadd.f32 1e-05, %v9050_v60 }
 0xc96   : > { %13693 = vrsqrt.f32 %v9066_v4 }
 0xc9a   : > { %v13688_v0 = vpop.eup %13687 }
 0xc9b   : > { %v9095_v34 = vmul.f32 %v13688_v0, %v19604_v44 }
 0xc9c   : > { %v13690_v55 = vpop.eup %13689 }
 0xc9d   : > { %v9096_v53 = vmul.f32 %v13690_v55, %v19607_v35  ;;  %v9117_v39 = vmul.f32 %v19675_v47, %v9095_v34 }
 0xc9e   : > { %v13692_v36 = vpop.eup %13691 }
 0xc9f   : > { %v9097_v62 = vmul.f32 %v13692_v36, %v19612_v41  ;;  %v9118_v58 = vmul.f32 %v19675_v47, %v9096_v53  ;;  %v19712_v3 = vadd.f32 %v19680_v24, %v9117_v39 }
 0xca0   : > { %v13694_v48 = vpop.eup %13693 }
 0xca1   : > { %v9098_v19 = vmul.f32 %v13694_v48, %v19618_v45  ;;  %v19715_v14 = vadd.f32 %v19680_v24, %v9118_v58  ;;  %v9119_v44 = vmul.f32 %v19675_v47, %v9097_v62  ;;  %v13677_v62 = vld [vmem:[#allocation20 + $0x10] sm:$0xff]   ;;  %v13678_v58 = vld [vmem:[#allocation20 + $0x18] sm:$0xff]  }
 0xca2   : > { %11830 = vmatprep.subr.bf16.mxu0 %v13677_v62 }
 0xca3   : > { %v9153_v35 = vpack.c.bf16 %v19715_v14, %v19712_v3  ;;  %v9120_v25 = vmul.f32 %v19675_v47, %v9098_v19  ;;  %v19723_v41 = vadd.f32 %v19680_v24, %v9119_v44  ;;  %11831 = vmatpush3.bf16.msra.mxu0 %v13677_v62 }
 0xca4   : > { %11832 = vmatprep.subr.bf16.mxu0 %v13678_v58 }
 0xca5   : > { %11814 = vmatprep.mubr.msk.bf16.mxu1 %vm8758_vm12, %v9153_v35  ;;  %v19726_v45 = vadd.f32 %v19680_v24, %v9120_v25 }
 0xca7   : > { %v9154_v46 = vpack.c.bf16 %v19726_v45, %v19723_v41  ;;  %11833 = vmatpush3.bf16.msra.mxu0 %v13678_v58 }
 0xca9   : > { %11815 = vmatmul.mubr.msk.bf16.gmra.mrb[76].mxu1 %vm8758_vm12, %v9154_v46 }
 0xcaa   : > { %v9021_v11 = vpop.xlane.xlu0 %9020 }
 0xcab   : > { %v9051_v54 = vmul.f32 0.03125, %v9021_v11 }
 0xcac   : > { %v9024_v22 = vpop.xlane.xlu1 %9023 }
 0xcad   : > { %v9067_v13 = vadd.f32 1e-05, %v9051_v54  ;;  %v9052_v50 = vmul.f32 0.03125, %v9024_v22 }
 0xcae   : > { %v9027_v61 = vpop.xlane.xlu0 %9026 }
 0xcaf   : > { %13695 = vrsqrt.f32 %v9067_v13  ;;  %v9068_v28 = vadd.f32 1e-05, %v9052_v50  ;;  %v9053_v2 = vmul.f32 0.03125, %v9027_v61 }
 0xcb0   : > { %v9030_v26 = vpop.xlane.xlu1 %9029 }
 0xcb1   : > { %13697 = vrsqrt.f32 %v9068_v28  ;;  %v9069_v23 = vadd.f32 1e-05, %v9053_v2  ;;  %v9054_v43 = vmul.f32 0.03125, %v9030_v26  ;;  %v10695_v26 = vld [vmem:[#allocation18] ss:$0 sm:$0xff] }
 0xcb3   : > { %13699 = vrsqrt.f32 %v9069_v23  ;;  %v9070_v12 = vadd.f32 1e-05, %v9054_v43 }
 0xcb5   : > { %13701 = vrsqrt.f32 %v9070_v12 }
 0xcb9   : > { %v13696_v15 = vpop.eup %13695 }
 0xcba   : > { %v9099_v5 = vmul.f32 %v13696_v15, %v19628_v31 }
 0xcbb   : > { %v13698_v57 = vpop.eup %13697 }
 0xcbc   : > { %v9100_v40 = vmul.f32 %v13698_v57, %v19631_v32  ;;  %v9121_v33 = vmul.f32 %v19675_v47, %v9099_v5 }
 0xcbd   : > { %v13700_v8 = vpop.eup %13699 }
 0xcbe   : > { %v9101_v17 = vmul.f32 %v13700_v8, %v19636_v37  ;;  %v9122_v6 = vmul.f32 %v19675_v47, %v9100_v40  ;;  %v19738_v52 = vadd.f32 %v19680_v24, %v9121_v33 }
 0xcbf   : > { %v13702_v10 = vpop.eup %13701 }
 0xcc0   : > { %v9102_v42 = vmul.f32 %v13702_v10, %v19642_v27  ;;  %v19741_v51 = vadd.f32 %v19680_v24, %v9122_v6  ;;  %v9123_v31 = vmul.f32 %v19675_v47, %v9101_v17 }
 0xcc2   : > { %v9155_v32 = vpack.c.bf16 %v19741_v51, %v19738_v52  ;;  %v9124_v18 = vmul.f32 %v19675_v47, %v9102_v42  ;;  %v19749_v37 = vadd.f32 %v19680_v24, %v9123_v31 }
 0xcc4   : > { %11818 = vmatprep.mubr.msk.bf16.mxu1 %vm8758_vm12, %v9155_v32  ;;  %v19752_v27 = vadd.f32 %v19680_v24, %v9124_v18  ;;  %v9033_v49 = vpop.xlane.xlu0 %9032 }
 0xcc5   : > { %v9055_v20 = vmul.f32 0.03125, %v9033_v49 }
 0xcc6   : > { %v9156_v30 = vpack.c.bf16 %v19752_v27, %v19749_v37  ;;  %v9036_v56 = vpop.xlane.xlu1 %9035 }
 0xcc7   : > { %v9071_v16 = vadd.f32 1e-05, %v9055_v20  ;;  %v9056_v60 = vmul.f32 0.03125, %v9036_v56 }
 0xcc8   : > { %11819 = vmatmul.mubr.msk.bf16.gmra.mrb[80].mxu1 %vm8758_vm12, %v9156_v30  ;;  %v9039_v4 = vpop.xlane.xlu0 %9038 }
 0xcc9   : > { %13703 = vrsqrt.f32 %v9071_v16  ;;  %v9072_v0 = vadd.f32 1e-05, %v9056_v60  ;;  %v9057_v34 = vmul.f32 0.03125, %v9039_v4 }
 0xcca   : > { %v9042_v55 = vpop.xlane.xlu1 %9041 }
 0xccb   : > { %13705 = vrsqrt.f32 %v9072_v0  ;;  %v9073_v53 = vadd.f32 1e-05, %v9057_v34  ;;  %v9058_v39 = vmul.f32 0.03125, %v9042_v55 }
 0xccd   : > { %13707 = vrsqrt.f32 %v9073_v53  ;;  %v9074_v36 = vadd.f32 1e-05, %v9058_v39 }
 0xccf   : > { %13709 = vrsqrt.f32 %v9074_v36 }
 0xcd3   : > { %v13704_v48 = vpop.eup %13703 }
 0xcd4   : > { %v9103_v19 = vmul.f32 %v13704_v48, %v19652_v21 }
 0xcd5   : > { %v13706_v44 = vpop.eup %13705 }
 0xcd6   : > { %v9104_v35 = vmul.f32 %v13706_v44, %v19655_v59  ;;  %v9125_v25 = vmul.f32 %v19675_v47, %v9103_v19 }
 0xcd7   : > { %v13708_v46 = vpop.eup %13707 }
 0xcd8   : > { %v9105_v11 = vmul.f32 %v13708_v46, %v19660_v38  ;;  %v9126_v54 = vmul.f32 %v19675_v47, %v9104_v35  ;;  %v19764_v50 = vadd.f32 %v19680_v24, %v9125_v25 }
 0xcd9   : > { %v13710_v22 = vpop.eup %13709 }
 0xcda   : > { %v9106_v13 = vmul.f32 %v13710_v22, %v19666_v29  ;;  %v19767_v61 = vadd.f32 %v19680_v24, %v9126_v54  ;;  %v9127_v21 = vmul.f32 %v19675_v47, %v9105_v11 }
 0xcdc   : > { %v9157_v59 = vpack.c.bf16 %v19767_v61, %v19764_v50  ;;  %v9128_v28 = vmul.f32 %v19675_v47, %v9106_v13  ;;  %v19775_v38 = vadd.f32 %v19680_v24, %v9127_v21 }
 0xcde   : > { %11822 = vmatprep.mubr.msk.bf16.mxu1 %vm8758_vm12, %v9157_v59  ;;  %v19778_v29 = vadd.f32 %v19680_v24, %v9128_v28 }
 0xce0   : > { %v9158_v2 = vpack.c.bf16 %v19778_v29, %v19775_v38 }
 0xce2   : > { %11823 = vmatmul.mubr.msk.bf16.gmra.mrb[84].mxu1 %vm8758_vm12, %v9158_v2 }
 0xd43   : > { %v11812_v23 = vpop.f32.mrb[72].mxu1 }
 0xd44   : > { %v9249_v43 = vadd.f32 %v11812_v23, %v10695_v26  ;;  %v9240_v12 = vpop.f32.mrb[73].mxu1 }
 0xd45   : > { %v9241_v15 = vadd.f32 %v10695_v26, %v9240_v12  ;;  %v11813_v5 = vpop.f32.mrb[74].mxu1 }
 0xd46   : > { %v9252_v47 = vadd.f32 %v11813_v5, %v10695_v26  ;;  %v9243_v57 = vpop.f32.mrb[75].mxu1  ;;  %v9305_v33 = vmax.f32 %v9249_v43, 0.0 }
 0xd47   : > { %v9244_v40 = vadd.f32 %v10695_v26, %v9243_v57  ;;  %v9303_v17 = vmax.f32 %v9241_v15, 0.0 }
 0xd48   : > { %v9306_v8 = vmax.f32 %v9252_v47, 0.0 }
 0xd49   : > { %v9304_v6 = vmax.f32 %v9244_v40, 0.0 }
 0xd4a   : > { %v9320_v24 = vpack.c.bf16 %v9306_v8, %v9305_v33  ;;  %v19791_v8 = vld [vmem:[#allocation21] ss:$0 sm:$0xff] }
 0xd4b   : > { %v9319_v10 = vpack.c.bf16 %v9304_v6, %v9303_v17 }
 0xd4d   : > { %11834 = vmatprep.mubr.msk.bf16.mxu0 %vm9366_vm0, %v9319_v10 }
 0xd4e   : > { %11835 = vmatmul.mubr.msk.bf16.vlgmr.msra.gmra.mrb[72].mxu0 %vm9366_vm0, %v9320_v24 }
 0xd7c   : > { %v11816_v42 = vpop.f32.mrb[76].mxu1 }
 0xd7d   : > { %v9265_v31 = vadd.f32 %v11816_v42, %v10695_v26  ;;  %v9256_v32 = vpop.f32.mrb[77].mxu1 }
 0xd7e   : > { %v9257_v18 = vadd.f32 %v10695_v26, %v9256_v32  ;;  %v11817_v30 = vpop.f32.mrb[78].mxu1 }
 0xd7f   : > { %v9268_v49 = vadd.f32 %v11817_v30, %v10695_v26  ;;  %v9259_v20 = vpop.f32.mrb[79].mxu1  ;;  %v9309_v16 = vmax.f32 %v9265_v31, 0.0 }
 0xd80   : > { %v9260_v56 = vadd.f32 %v10695_v26, %v9259_v20  ;;  %v9307_v4 = vmax.f32 %v9257_v18, 0.0 }
 0xd81   : > { %v9310_v60 = vmax.f32 %v9268_v49, 0.0 }
 0xd82   : > { %v9308_v0 = vmax.f32 %v9260_v56, 0.0 }
 0xd83   : > { %v9322_v34 = vpack.c.bf16 %v9310_v60, %v9309_v16 }
 0xd84   : > { %v9321_v55 = vpack.c.bf16 %v9308_v0, %v9307_v4 }
 0xd86   : > { %11838 = vmatprep.mubr.msk.bf16.mxu0 %vm9366_vm0, %v9321_v55 }
 0xd87   : > { %11839 = vmatmul.mubr.msk.bf16.gmra.mrb[76].mxu0 %vm9366_vm0, %v9322_v34 }
 0xd9b   : > { %v11820_v53 = vpop.f32.mrb[80].mxu1 }
 0xd9c   : > { %v9281_v39 = vadd.f32 %v11820_v53, %v10695_v26  ;;  %v9272_v36 = vpop.f32.mrb[81].mxu1 }
 0xd9d   : > { %v9273_v62 = vadd.f32 %v10695_v26, %v9272_v36  ;;  %v11821_v58 = vpop.f32.mrb[82].mxu1 }
 0xd9e   : > { %v9284_v48 = vadd.f32 %v11821_v58, %v10695_v26  ;;  %v9275_v19 = vpop.f32.mrb[83].mxu1  ;;  %v9313_v35 = vmax.f32 %v9281_v39, 0.0 }
 0xd9f   : > { %v9276_v44 = vadd.f32 %v10695_v26, %v9275_v19  ;;  %v9311_v46 = vmax.f32 %v9273_v62, 0.0 }
 0xda0   : > { %v9314_v25 = vmax.f32 %v9284_v48, 0.0 }
 0xda1   : > { %v9312_v11 = vmax.f32 %v9276_v44, 0.0 }
 0xda2   : > { %v9324_v54 = vpack.c.bf16 %v9314_v25, %v9313_v35 }
 0xda3   : > { %v9323_v22 = vpack.c.bf16 %v9312_v11, %v9311_v46 }
 0xda5   : > { %11842 = vmatprep.mubr.msk.bf16.mxu0 %vm9366_vm0, %v9323_v22 }
 0xda6   : > { %11843 = vmatmul.mubr.msk.bf16.gmra.mrb[80].mxu0 %vm9366_vm0, %v9324_v54 }
 0xdb5   : > { %v11824_v13 = vpop.f32.mrb[84].mxu1 }
 0xdb6   : > { %v9297_v21 = vadd.f32 %v11824_v13, %v10695_v26  ;;  %v9288_v59 = vpop.f32.mrb[85].mxu1 }
 0xdb7   : > { %v9289_v28 = vadd.f32 %v10695_v26, %v9288_v59  ;;  %v11825_v2 = vpop.f32.mrb[86].mxu1 }
 0xdb8   : > { %v9300_v23 = vadd.f32 %v11825_v2, %v10695_v26  ;;  %v9291_v43 = vpop.f32.mrb[87].mxu1  ;;  %v9317_v15 = vmax.f32 %v9297_v21, 0.0 }
 0xdb9   : > { %v9292_v12 = vadd.f32 %v10695_v26, %v9291_v43  ;;  %v9315_v47 = vmax.f32 %v9289_v28, 0.0 }
 0xdba   : > { %v9318_v5 = vmax.f32 %v9300_v23, 0.0 }
 0xdbb   : > { %v9316_v57 = vmax.f32 %v9292_v12, 0.0 }
 0xdbc   : > { %v9326_v40 = vpack.c.bf16 %v9318_v5, %v9317_v15 }
 0xdbd   : > { %v9325_v33 = vpack.c.bf16 %v9316_v57, %v9315_v47 }
 0xdbf   : > { %11846 = vmatprep.mubr.msk.bf16.mxu0 %vm9366_vm0, %v9325_v33 }
 0xdc0   : > { %11847 = vmatmul.mubr.msk.bf16.gmra.mrb[84].mxu0 %vm9366_vm0, %v9326_v40 }
 0xe21   : > { %v11836_v17 = vpop.f32.mrb[72].mxu0 }
 0xe22   : > { %v9434_v6 = vadd.f32 %v11836_v17, %v19791_v8  ;;  %v9425_v24 = vpop.f32.mrb[73].mxu0 }
 0xe23   : > { %v9426_v10 = vadd.f32 %v19791_v8, %v9425_v24  ;;  %v11837_v42 = vpop.f32.mrb[74].mxu0 }
 0xe24   : > { %v9437_v26 = vadd.f32 %v11837_v42, %v19791_v8  ;;  %v9428_v31 = vpop.f32.mrb[75].mxu0  ;;  %v19797_v32 = vadd.f32 %v9434_v6, %v19697_v7 }
 0xe25   : > { %v9429_v18 = vadd.f32 %v19791_v8, %v9428_v31  ;;  %v19801_v30 = vadd.f32 %v9426_v10, %v19685_v1 }
 0xe26   : > { %v19804_v49 = vadd.f32 %v9437_v26, %v19700_v9  ;;  %v9512_v20 = vsel %vm8758_vm12, %v19797_v32, 0.0 }
 0xe27   : > { %9513 = vadd.xlane.f32.xlu0 %v9512_v20  ;;  %v19809_v56 = vadd.f32 %v9429_v18, %v19688_v63  ;;  %v9506_v7 = vsel %vm8758_vm12, %v19801_v30, 0.0 }
 0xe28   : > { %v9515_v16 = vsel %vm8758_vm12, %v19804_v49, 0.0 }
 0xe29   : > { %9516 = vadd.xlane.f32.xlu1 %v9515_v16  ;;  %v9509_v1 = vsel %vm8758_vm12, %v19809_v56, 0.0 }
 0xe2b   : > { %9507 = vadd.xlane.f32.xlu0 %v9506_v7 }
 0xe2d   : > { %9510 = vadd.xlane.f32.xlu1 %v9509_v1 }
 0xe5a   : > { %v11840_v9 = vpop.f32.mrb[76].mxu0 }
 0xe5b   : > { %v9450_v60 = vadd.f32 %v11840_v9, %v19791_v8  ;;  %v9441_v4 = vpop.f32.mrb[77].mxu0 }
 0xe5c   : > { %v9442_v0 = vadd.f32 %v19791_v8, %v9441_v4  ;;  %v11841_v63 = vpop.f32.mrb[78].mxu0 }
 0xe5d   : > { %v19820_v34 = vadd.f32 %v9450_v60, %v19723_v41  ;;  %v9453_v55 = vadd.f32 %v11841_v63, %v19791_v8  ;;  %v9444_v53 = vpop.f32.mrb[79].mxu0 }
 0xe5e   : > { %v9445_v39 = vadd.f32 %v19791_v8, %v9444_v53  ;;  %v19825_v36 = vadd.f32 %v9442_v0, %v19712_v3 }
 0xe5f   : > { %v19828_v62 = vadd.f32 %v9453_v55, %v19726_v45  ;;  %v9524_v58 = vsel %vm8758_vm12, %v19820_v34, 0.0 }
 0xe60   : > { %9525 = vadd.xlane.f32.xlu0 %v9524_v58  ;;  %v19833_v48 = vadd.f32 %v9445_v39, %v19715_v14  ;;  %v9518_v19 = vsel %vm8758_vm12, %v19825_v36, 0.0 }
 0xe61   : > { %v9527_v41 = vsel %vm8758_vm12, %v19828_v62, 0.0 }
 0xe62   : > { %9528 = vadd.xlane.f32.xlu1 %v9527_v41  ;;  %v9521_v3 = vsel %vm8758_vm12, %v19833_v48, 0.0 }
 0xe64   : > { %9519 = vadd.xlane.f32.xlu0 %v9518_v19 }
 0xe66   : > { %9522 = vadd.xlane.f32.xlu1 %v9521_v3 }
 0xe79   : > { %v11844_v45 = vpop.f32.mrb[80].mxu0 }
 0xe7a   : > { %v9466_v44 = vadd.f32 %v11844_v45, %v19791_v8  ;;  %v9457_v35 = vpop.f32.mrb[81].mxu0 }
 0xe7b   : > { %v9458_v25 = vadd.f32 %v19791_v8, %v9457_v35  ;;  %v11845_v14 = vpop.f32.mrb[82].mxu0 }
 0xe7c   : > { %v19844_v46 = vadd.f32 %v9466_v44, %v19749_v37  ;;  %v9469_v11 = vadd.f32 %v11845_v14, %v19791_v8  ;;  %v9460_v54 = vpop.f32.mrb[83].mxu0 }
 0xe7d   : > { %v9461_v22 = vadd.f32 %v19791_v8, %v9460_v54  ;;  %v19849_v13 = vadd.f32 %v9458_v25, %v19738_v52 }
 0xe7e   : > { %v19852_v21 = vadd.f32 %v9469_v11, %v19752_v27  ;;  %v9536_v59 = vsel %vm8758_vm12, %v19844_v46, 0.0 }
 0xe7f   : > { %9537 = vadd.xlane.f32.xlu0 %v9536_v59  ;;  %v19857_v28 = vadd.f32 %v9461_v22, %v19741_v51  ;;  %v9530_v2 = vsel %vm8758_vm12, %v19849_v13, 0.0 }
 0xe80   : > { %v9539_v37 = vsel %vm8758_vm12, %v19852_v21, 0.0 }
 0xe81   : > { %9540 = vadd.xlane.f32.xlu1 %v9539_v37  ;;  %v9533_v52 = vsel %vm8758_vm12, %v19857_v28, 0.0 }
 0xe83   : > { %9531 = vadd.xlane.f32.xlu0 %v9530_v2 }
 0xe85   : > { %9534 = vadd.xlane.f32.xlu1 %v9533_v52 }
 0xe93   : > { %v11848_v27 = vpop.f32.mrb[84].mxu0 }
 0xe94   : > { %v9473_v23 = vpop.f32.mrb[85].mxu0  ;;  %v9482_v43 = vadd.f32 %v11848_v27, %v19791_v8 }
 0xe95   : > { %v9474_v12 = vadd.f32 %v19791_v8, %v9473_v23  ;;  %v11849_v51 = vpop.f32.mrb[86].mxu0 }
 0xe96   : > { %v9476_v15 = vpop.f32.mrb[87].mxu0  ;;  %v9485_v47 = vadd.f32 %v11849_v51, %v19791_v8  ;;  %v19873_v40 = vadd.f32 %v9482_v43, %v19775_v38 }
 0xe97   : > { %v19868_v5 = vadd.f32 %v9474_v12, %v19764_v50  ;;  %v9477_v57 = vadd.f32 %v19791_v8, %v9476_v15 }
 0xe98   : > { %v19881_v6 = vadd.f32 %v9485_v47, %v19778_v29  ;;  %v9548_v8 = vsel %vm8758_vm12, %v19873_v40, 0.0 }
 0xe99   : > { %v19876_v33 = vadd.f32 %v9477_v57, %v19767_v61  ;;  %v9542_v17 = vsel %vm8758_vm12, %v19868_v5, 0.0 }
 0xe9a   : > { %9543 = vadd.xlane.f32.xlu0 %v9542_v17  ;;  %v9551_v38 = vsel %vm8758_vm12, %v19881_v6, 0.0 }
 0xe9b   : > { %v9545_v50 = vsel %vm8758_vm12, %v19876_v33, 0.0 }
 0xe9c   : > { %9546 = vadd.xlane.f32.xlu1 %v9545_v50 }
 0xe9e   : > { %9549 = vadd.xlane.f32.xlu0 %v9548_v8 }
 0xea0   : > { %9552 = vadd.xlane.f32.xlu1 %v9551_v38 }
 0xeb4   : > { %v9514_v61 = vpop.xlane.xlu0 %9513 }
 0xeb5   : > { %v9556_v24 = vmul.f32 0.03125, %v9514_v61 }
 0xeb6   : > { %v9517_v10 = vpop.xlane.xlu1 %9516 }
 0xeb7   : > { %v19890_v42 = vsub.f32 %v19797_v32, %v9556_v24  ;;  %v9557_v29 = vmul.f32 0.03125, %v9517_v10 }
 0xeb8   : > { %v9508_v26 = vpop.xlane.xlu0 %9507 }
 0xeb9   : > { %v19893_v31 = vsub.f32 %v19804_v49, %v9557_v29  ;;  %v9554_v18 = vmul.f32 0.03125, %v9508_v26  ;;  %v9588_v20 = vmul.f32 %v19890_v42, %v19890_v42 }
 0xeba   : > { %v9511_v16 = vpop.xlane.xlu1 %9510 }
 0xebb   : > { %v19898_v7 = vsub.f32 %v19801_v30, %v9554_v18  ;;  %v9555_v1 = vmul.f32 0.03125, %v9511_v16  ;;  %v9608_v9 = vsel %vm8758_vm12, %v9588_v20, 0.0  ;;  %v9589_v32 = vmul.f32 %v19893_v31, %v19893_v31 }
 0xebc   : > { %9609 = vadd.xlane.f32.xlu0 %v9608_v9 }
 0xebd   : > { %v19904_v60 = vsub.f32 %v19809_v56, %v9555_v1  ;;  %v9611_v49 = vsel %vm8758_vm12, %v9589_v32, 0.0  ;;  %v9586_v4 = vmul.f32 %v19898_v7, %v19898_v7 }
 0xebe   : > { %9612 = vadd.xlane.f32.xlu1 %v9611_v49 }
 0xebf   : > { %v9602_v0 = vsel %vm8758_vm12, %v9586_v4, 0.0  ;;  %v9587_v30 = vmul.f32 %v19904_v60, %v19904_v60 }
 0xec0   : > { %9603 = vadd.xlane.f32.xlu0 %v9602_v0 }
 0xec1   : > { %v9605_v63 = vsel %vm8758_vm12, %v9587_v30, 0.0 }
 0xec2   : > { %9606 = vadd.xlane.f32.xlu1 %v9605_v63 }
 0xeed   : > { %v9526_v55 = vpop.xlane.xlu0 %9525 }
 0xeee   : > { %v9560_v53 = vmul.f32 0.03125, %v9526_v55 }
 0xeef   : > { %v9529_v39 = vpop.xlane.xlu1 %9528 }
 0xef0   : > { %v19914_v56 = vsub.f32 %v19820_v34, %v9560_v53  ;;  %v9561_v58 = vmul.f32 0.03125, %v9529_v39 }
 0xef1   : > { %v9520_v41 = vpop.xlane.xlu0 %9519 }
 0xef2   : > { %v19917_v19 = vsub.f32 %v19828_v62, %v9561_v58  ;;  %v9558_v3 = vmul.f32 0.03125, %v9520_v41  ;;  %v9592_v45 = vmul.f32 %v19914_v56, %v19914_v56 }
 0xef3   : > { %v9523_v44 = vpop.xlane.xlu1 %9522 }
 0xef4   : > { %v19922_v35 = vsub.f32 %v19825_v36, %v9558_v3  ;;  %v9559_v25 = vmul.f32 0.03125, %v9523_v44  ;;  %v9620_v14 = vsel %vm8758_vm12, %v9592_v45, 0.0  ;;  %v9593_v34 = vmul.f32 %v19917_v19, %v19917_v19 }
 0xef5   : > { %9621 = vadd.xlane.f32.xlu0 %v9620_v14 }
 0xef6   : > { %v19928_v11 = vsub.f32 %v19833_v48, %v9559_v25  ;;  %v9623_v62 = vsel %vm8758_vm12, %v9593_v34, 0.0  ;;  %v9590_v54 = vmul.f32 %v19922_v35, %v19922_v35 }
 0xef7   : > { %9624 = vadd.xlane.f32.xlu1 %v9623_v62 }
 0xef8   : > { %v9614_v22 = vsel %vm8758_vm12, %v9590_v54, 0.0  ;;  %v9591_v36 = vmul.f32 %v19928_v11, %v19928_v11 }
 0xef9   : > { %9615 = vadd.xlane.f32.xlu0 %v9614_v22  ;;  %v19985_v22 = vld [vmem:[#allocation23] ss:$0 sm:$0xff] }
 0xefa   : > { %v9617_v59 = vsel %vm8758_vm12, %v9591_v36, 0.0 }
 0xefb   : > { %9618 = vadd.xlane.f32.xlu1 %v9617_v59 }
 0xf0c   : > { %v9538_v37 = vpop.xlane.xlu0 %9537 }
 0xf0d   : > { %v9564_v2 = vmul.f32 0.03125, %v9538_v37  ;;  %v19988_v37 = vld [vmem:[#allocation24] ss:$0 sm:$0xff] }
 0xf0e   : > { %v9541_v52 = vpop.xlane.xlu1 %9540 }
 0xf0f   : > { %v19938_v48 = vsub.f32 %v19844_v46, %v9564_v2  ;;  %v9565_v27 = vmul.f32 0.03125, %v9541_v52 }
 0xf10   : > { %v9532_v23 = vpop.xlane.xlu0 %9531 }
 0xf11   : > { %v19941_v43 = vsub.f32 %v19852_v21, %v9565_v27  ;;  %v9562_v12 = vmul.f32 0.03125, %v9532_v23  ;;  %v9596_v51 = vmul.f32 %v19938_v48, %v19938_v48 }
 0xf12   : > { %v9535_v15 = vpop.xlane.xlu1 %9534 }
 0xf13   : > { %v19946_v47 = vsub.f32 %v19849_v13, %v9562_v12  ;;  %v9563_v57 = vmul.f32 0.03125, %v9535_v15  ;;  %v9632_v17 = vsel %vm8758_vm12, %v9596_v51, 0.0  ;;  %v9597_v46 = vmul.f32 %v19941_v43, %v19941_v43 }
 0xf14   : > { %9633 = vadd.xlane.f32.xlu0 %v9632_v17 }
 0xf15   : > { %v19952_v50 = vsub.f32 %v19857_v28, %v9563_v57  ;;  %v9635_v21 = vsel %vm8758_vm12, %v9597_v46, 0.0  ;;  %v9594_v8 = vmul.f32 %v19946_v47, %v19946_v47 }
 0xf16   : > { %9636 = vadd.xlane.f32.xlu1 %v9635_v21 }
 0xf17   : > { %v9626_v38 = vsel %vm8758_vm12, %v9594_v8, 0.0  ;;  %v9595_v13 = vmul.f32 %v19952_v50, %v19952_v50 }
 0xf18   : > { %9627 = vadd.xlane.f32.xlu0 %v9626_v38 }
 0xf19   : > { %v9629_v61 = vsel %vm8758_vm12, %v9595_v13, 0.0 }
 0xf1a   : > { %9630 = vadd.xlane.f32.xlu1 %v9629_v61 }
 0xf27   : > { %v9544_v24 = vpop.xlane.xlu0 %9543 }
 0xf28   : > { %v9566_v10 = vmul.f32 0.03125, %v9544_v24 }
 0xf29   : > { %v9547_v29 = vpop.xlane.xlu1 %9546 }
 0xf2a   : > { %v19962_v28 = vsub.f32 %v19868_v5, %v9566_v10  ;;  %v9567_v26 = vmul.f32 0.03125, %v9547_v29 }
 0xf2b   : > { %v9550_v18 = vpop.xlane.xlu0 %9549 }
 0xf2c   : > { %v19965_v20 = vsub.f32 %v19876_v33, %v9567_v26  ;;  %v9568_v16 = vmul.f32 0.03125, %v9550_v18  ;;  %v9598_v1 = vmul.f32 %v19962_v28, %v19962_v28 }
 0xf2d   : > { %v9553_v9 = vpop.xlane.xlu1 %9552 }
 0xf2e   : > { %v19970_v32 = vsub.f32 %v19873_v40, %v9568_v16  ;;  %v9569_v49 = vmul.f32 0.03125, %v9553_v9  ;;  %v9638_v4 = vsel %vm8758_vm12, %v9598_v1, 0.0  ;;  %v9599_v5 = vmul.f32 %v19965_v20, %v19965_v20 }
 0xf2f   : > { %9639 = vadd.xlane.f32.xlu0 %v9638_v4 }
 0xf30   : > { %v19976_v0 = vsub.f32 %v19881_v6, %v9569_v49  ;;  %v9641_v33 = vsel %vm8758_vm12, %v9599_v5, 0.0  ;;  %v9600_v30 = vmul.f32 %v19970_v32, %v19970_v32 }
 0xf31   : > { %9642 = vadd.xlane.f32.xlu1 %v9641_v33 }
 0xf32   : > { %v9644_v63 = vsel %vm8758_vm12, %v9600_v30, 0.0  ;;  %v9601_v40 = vmul.f32 %v19976_v0, %v19976_v0 }
 0xf33   : > { %9645 = vadd.xlane.f32.xlu0 %v9644_v63 }
 0xf34   : > { %v9647_v55 = vsel %vm8758_vm12, %v9601_v40, 0.0 }
 0xf35   : > { %9648 = vadd.xlane.f32.xlu1 %v9647_v55 }
 0xf49   : > { %v9610_v53 = vpop.xlane.xlu0 %9609 }
 0xf4a   : > { %v9652_v39 = vmul.f32 0.03125, %v9610_v53 }
 0xf4b   : > { %v9613_v58 = vpop.xlane.xlu1 %9612 }
 0xf4c   : > { %v9668_v6 = vadd.f32 1e-05, %v9652_v39  ;;  %v9653_v41 = vmul.f32 0.03125, %v9613_v58 }
 0xf4d   : > { %v9604_v3 = vpop.xlane.xlu0 %9603 }
 0xf4e   : > { %13711 = vrsqrt.f32 %v9668_v6  ;;  %v9669_v45 = vadd.f32 1e-05, %v9653_v41  ;;  %v9650_v44 = vmul.f32 0.03125, %v9604_v3 }
 0xf4f   : > { %v9607_v25 = vpop.xlane.xlu1 %9606 }
 0xf50   : > { %13713 = vrsqrt.f32 %v9669_v45  ;;  %v9666_v14 = vadd.f32 1e-05, %v9650_v44  ;;  %v9651_v34 = vmul.f32 0.03125, %v9607_v25 }
 0xf52   : > { %13715 = vrsqrt.f32 %v9666_v14  ;;  %v9667_v62 = vadd.f32 1e-05, %v9651_v34 }
 0xf54   : > { %13717 = vrsqrt.f32 %v9667_v62 }
 0xf58   : > { %v13712_v54 = vpop.eup %13711 }
 0xf59   : > { %v9700_v36 = vmul.f32 %v13712_v54, %v19890_v42 }
 0xf5a   : > { %v13714_v59 = vpop.eup %13713 }
 0xf5b   : > { %v9722_v2 = vmul.f32 %v19985_v22, %v9700_v36  ;;  %v9701_v52 = vmul.f32 %v13714_v59, %v19893_v31 }
 0xf5c   : > { %v13716_v27 = vpop.eup %13715 }
 0xf5d   : > { %v9744_v23 = vadd.f32 %v19988_v37, %v9722_v2  ;;  %v9723_v12 = vmul.f32 %v19985_v22, %v9701_v52  ;;  %v9698_v51 = vmul.f32 %v13716_v27, %v19898_v7 }
 0xf5e   : > { %v13718_v15 = vpop.eup %13717 }
 0xf5f   : > { %9760 = vst.msk [vmem:[%s16280_s19 + $0x10] sm:$0xff] %vm8758_vm12, %v9744_v23  ;;  %v9745_v42 = vadd.f32 %v19988_v37, %v9723_v12  ;;  %v9720_v57 = vmul.f32 %v19985_v22, %v9698_v51  ;;  %v9699_v17 = vmul.f32 %v13718_v15, %v19904_v60 }
 0xf61   : > { %9761 = vst.msk [vmem:[%s16280_s19 + $0x18] sm:$0xff] %vm8758_vm12, %v9745_v42  ;;  %v9742_v31 = vadd.f32 %v19988_v37, %v9720_v57  ;;  %v9721_v46 = vmul.f32 %v19985_v22, %v9699_v17 }
 0xf63   : > { %9758 = vst.msk [vmem:[%s16280_s19] sm:$0xff] %vm8758_vm12, %v9742_v31  ;;  %v9743_v21 = vadd.f32 %v19988_v37, %v9721_v46 }
 0xf65   : > { %9759 = vst.msk [vmem:[%s16280_s19 + $0x8] sm:$0xff] %vm8758_vm12, %v9743_v21 }
 0xf82   : > { %v9622_v7 = vpop.xlane.xlu0 %9621 }
 0xf83   : > { %v9656_v8 = vmul.f32 0.03125, %v9622_v7 }
 0xf84   : > { %v9625_v38 = vpop.xlane.xlu1 %9624 }
 0xf85   : > { %v9672_v13 = vadd.f32 1e-05, %v9656_v8  ;;  %v9657_v61 = vmul.f32 0.03125, %v9625_v38 }
 0xf86   : > { %v9616_v24 = vpop.xlane.xlu0 %9615 }
 0xf87   : > { %13719 = vrsqrt.f32 %v9672_v13  ;;  %v9673_v60 = vadd.f32 1e-05, %v9657_v61  ;;  %v9654_v10 = vmul.f32 0.03125, %v9616_v24 }
 0xf88   : > { %v9619_v29 = vpop.xlane.xlu1 %9618 }
 0xf89   : > { %13721 = vrsqrt.f32 %v9673_v60  ;;  %v9670_v26 = vadd.f32 1e-05, %v9654_v10  ;;  %v9655_v18 = vmul.f32 0.03125, %v9619_v29 }
 0xf8b   : > { %13723 = vrsqrt.f32 %v9670_v26  ;;  %v9671_v16 = vadd.f32 1e-05, %v9655_v18 }
 0xf8d   : > { %13725 = vrsqrt.f32 %v9671_v16 }
 0xf91   : > { %v13720_v1 = vpop.eup %13719 }
 0xf92   : > { %v9704_v9 = vmul.f32 %v13720_v1, %v19914_v56 }
 0xf93   : > { %v13722_v49 = vpop.eup %13721 }
 0xf94   : > { %v9726_v4 = vmul.f32 %v19985_v22, %v9704_v9  ;;  %v9705_v5 = vmul.f32 %v13722_v49, %v19917_v19 }
 0xf95   : > { %v13724_v33 = vpop.eup %13723 }
 0xf96   : > { %v9748_v30 = vadd.f32 %v19988_v37, %v9726_v4  ;;  %v9727_v63 = vmul.f32 %v19985_v22, %v9705_v5  ;;  %v9702_v40 = vmul.f32 %v13724_v33, %v19922_v35 }
 0xf97   : > { %v13726_v55 = vpop.eup %13725 }
 0xf98   : > { %9764 = vst.msk [vmem:[%s16280_s19 + $0x30] sm:$0xff] %vm8758_vm12, %v9748_v30  ;;  %v9749_v53 = vadd.f32 %v19988_v37, %v9727_v63  ;;  %v9724_v56 = vmul.f32 %v19985_v22, %v9702_v40  ;;  %v9703_v39 = vmul.f32 %v13726_v55, %v19928_v11 }
 0xf9a   : > { %9765 = vst.msk [vmem:[%s16280_s19 + $0x38] sm:$0xff] %vm8758_vm12, %v9749_v53  ;;  %v9746_v19 = vadd.f32 %v19988_v37, %v9724_v56  ;;  %v9725_v58 = vmul.f32 %v19985_v22, %v9703_v39 }
 0xf9c   : > { %9762 = vst.msk [vmem:[%s16280_s19 + $0x20] sm:$0xff] %vm8758_vm12, %v9746_v19  ;;  %v9747_v6 = vadd.f32 %v19988_v37, %v9725_v58 }
 0xf9e   : > { %9763 = vst.msk [vmem:[%s16280_s19 + $0x28] sm:$0xff] %vm8758_vm12, %v9747_v6 }
 0xfa1   : > { %v9634_v35 = vpop.xlane.xlu0 %9633 }
 0xfa2   : > { %v9660_v41 = vmul.f32 0.03125, %v9634_v35 }
 0xfa3   : > { %v9637_v3 = vpop.xlane.xlu1 %9636 }
 0xfa4   : > { %v9676_v45 = vadd.f32 1e-05, %v9660_v41  ;;  %v9661_v44 = vmul.f32 0.03125, %v9637_v3 }
 0xfa5   : > { %v9628_v25 = vpop.xlane.xlu0 %9627 }
 0xfa6   : > { %13727 = vrsqrt.f32 %v9676_v45  ;;  %v9677_v11 = vadd.f32 1e-05, %v9661_v44  ;;  %v9658_v14 = vmul.f32 0.03125, %v9628_v25 }
 0xfa7   : > { %v9631_v34 = vpop.xlane.xlu1 %9630 }
 0xfa8   : > { %13729 = vrsqrt.f32 %v9677_v11  ;;  %v9674_v62 = vadd.f32 1e-05, %v9658_v14  ;;  %v9659_v54 = vmul.f32 0.03125, %v9631_v34 }
 0xfaa   : > { %13731 = vrsqrt.f32 %v9674_v62  ;;  %v9675_v36 = vadd.f32 1e-05, %v9659_v54 }
 0xfac   : > { %13733 = vrsqrt.f32 %v9675_v36 }
 0xfb0   : > { %v13728_v59 = vpop.eup %13727 }
 0xfb1   : > { %v9708_v2 = vmul.f32 %v13728_v59, %v19938_v48 }
 0xfb2   : > { %v13730_v52 = vpop.eup %13729 }
 0xfb3   : > { %v9730_v27 = vmul.f32 %v19985_v22, %v9708_v2  ;;  %v9709_v23 = vmul.f32 %v13730_v52, %v19941_v43 }
 0xfb4   : > { %v13732_v12 = vpop.eup %13731 }
 0xfb5   : > { %v9752_v51 = vadd.f32 %v19988_v37, %v9730_v27  ;;  %v9731_v15 = vmul.f32 %v19985_v22, %v9709_v23  ;;  %v9706_v42 = vmul.f32 %v13732_v12, %v19946_v47 }
 0xfb6   : > { %v13734_v57 = vpop.eup %13733 }
 0xfb7   : > { %9768 = vst.msk [vmem:[%s16280_s19 + $0x50] sm:$0xff] %vm8758_vm12, %v9752_v51  ;;  %v9753_v17 = vadd.f32 %v19988_v37, %v9731_v15  ;;  %v9728_v48 = vmul.f32 %v19985_v22, %v9706_v42  ;;  %v9707_v31 = vmul.f32 %v13734_v57, %v19952_v50 }
 0xfb9   : > { %9769 = vst.msk [vmem:[%s16280_s19 + $0x58] sm:$0xff] %vm8758_vm12, %v9753_v17  ;;  %v9750_v43 = vadd.f32 %v19988_v37, %v9728_v48  ;;  %v9729_v46 = vmul.f32 %v19985_v22, %v9707_v31 }
 0xfbb   : > { %9766 = vst.msk [vmem:[%s16280_s19 + $0x40] sm:$0xff] %vm8758_vm12, %v9750_v43  ;;  %v9751_v21 = vadd.f32 %v19988_v37, %v9729_v46 }
 0xfbc   : > { %v9640_v47 = vpop.xlane.xlu0 %9639 }
 0xfbd   : > { %9767 = vst.msk [vmem:[%s16280_s19 + $0x48] sm:$0xff] %vm8758_vm12, %v9751_v21  ;;  %v9662_v7 = vmul.f32 0.03125, %v9640_v47 }
 0xfbe   : > { %v9643_v8 = vpop.xlane.xlu1 %9642 }
 0xfbf   : > { %v9678_v38 = vadd.f32 1e-05, %v9662_v7  ;;  %v9663_v13 = vmul.f32 0.03125, %v9643_v8 }
 0xfc0   : > { %v9646_v61 = vpop.xlane.xlu0 %9645 }
 0xfc1   : > { %13735 = vrsqrt.f32 %v9678_v38  ;;  %v9679_v50 = vadd.f32 1e-05, %v9663_v13  ;;  %v9664_v24 = vmul.f32 0.03125, %v9646_v61 }
 0xfc2   : > { %v9649_v60 = vpop.xlane.xlu1 %9648 }
 0xfc3   : > { %13737 = vrsqrt.f32 %v9679_v50  ;;  %v9680_v10 = vadd.f32 1e-05, %v9664_v24  ;;  %v9665_v29 = vmul.f32 0.03125, %v9649_v60 }
 0xfc5   : > { %13739 = vrsqrt.f32 %v9680_v10  ;;  %v9681_v26 = vadd.f32 1e-05, %v9665_v29 }
 0xfc7   : > { %13741 = vrsqrt.f32 %v9681_v26 }
 0xfcb   : > { %v13736_v18 = vpop.eup %13735 }
 0xfcc   : > { %v9710_v16 = vmul.f32 %v13736_v18, %v19962_v28 }
 0xfcd   : > { %v13738_v1 = vpop.eup %13737 }
 0xfce   : > { %v9732_v9 = vmul.f32 %v19985_v22, %v9710_v16  ;;  %v9711_v49 = vmul.f32 %v13738_v1, %v19965_v20 }
 0xfcf   : > { %v13740_v4 = vpop.eup %13739 }
 0xfd0   : > { %v9754_v5 = vadd.f32 %v19988_v37, %v9732_v9  ;;  %v9733_v33 = vmul.f32 %v19985_v22, %v9711_v49  ;;  %v9712_v30 = vmul.f32 %v13740_v4, %v19970_v32 }
 0xfd1   : > { %v13742_v63 = vpop.eup %13741 }
 0xfd2   : > { %9770 = vst.msk [vmem:[%s16280_s19 + $0x60] sm:$0xff] %vm8758_vm12, %v9754_v5  ;;  %v9755_v28 = vadd.f32 %v19988_v37, %v9733_v33  ;;  %v9734_v40 = vmul.f32 %v19985_v22, %v9712_v30  ;;  %v9713_v20 = vmul.f32 %v13742_v63, %v19976_v0 }
 0xfd4   : > { %9771 = vst.msk [vmem:[%s16280_s19 + $0x68] sm:$0xff] %vm8758_vm12, %v9755_v28  ;;  %v9756_v55 = vadd.f32 %v19988_v37, %v9734_v40  ;;  %v9735_v53 = vmul.f32 %v19985_v22, %v9713_v20 }
 0xfd6   : > { %9772 = vst.msk [vmem:[%s16280_s19 + $0x70] sm:$0xff] %vm8758_vm12, %v9756_v55  ;;  %v9757_v32 = vadd.f32 %v19988_v37, %v9735_v53 }
 0xfd8   : > { %9773 = vst.msk [vmem:[%s16280_s19 + $0x78] sm:$0xff] %vm8758_vm12, %v9757_v32 }
 0xfd9   : > { %14156 = shalt.err (!%p14153_p13)
}
 0xfda   : > { %s14157_s19 = scalar_lea.hbm %s20069_s27, 2048  ;;  %s14161_s15 = scalar_lea.hbm %s20863_s26, 4096 }
 0xfdb   : > { %p14158_p5 = scmp.ne.s32.totalorder %s20069_s27, %s14157_s19  ;;  %p14162_p6 = scmp.lt.u32.totalorder %s20069_s27, %s20863_s26 }
 0xfdc   : > { %p14163_p1 = scmp.lt.u32.totalorder %s14161_s15, %s14157_s19  ;;  %p14165_p9 = scmp.lt.u32.totalorder %s14157_s19, %s20069_s27 }
 0xfdd   : > { %p14159_p8 = pnand %p14158_p5, %p20864_p10 }
 0xfde   : > { %p14164_p3 = por %p14163_p1, %p14162_p6 }
 0xfdf   : > { %p14160_p2 = pneg %p14159_p8 }
 0xfe0   : > { %p14166_p0 = por %p14165_p9, %p14164_p3 }
 0xfe2   : > { %p14167_p11 = pnand %p14166_p0, %p14160_p2 }
 0xfe4   : > { %14170 = shalt.err (!%p14167_p11)
}
 0xfe5   : > { %s15376_s28 = smov 128  }
 0xfe6   : > { %12158 = dma.vmem_to_hbm [thread:$0]  (%p20864_p10), %s20074_s0, 2048, %s20069_s27, %s9775_s1, %s15376_s28, %s15376_s28, %s15369_s29  }
 0xfe7 PF: > { %s20865_s16 = sld [smem:[#allocation37_spill]]  ;;  %s20866_s21 = sld [smem:[#allocation44_spill]] }
 0xfe8   : > { %p20868_p7 = scmp.ge.s32.totalorder %s14801_s18, 2 }
 0xfed   : > { %s9805_s22 = sand.u32 1, %s20865_s16   ;;  %p20867_p4 = scmp.ne.s32.totalorder %s20866_s21, 0 }
 0xfee   : > { %s9806_s24 = scalar_lea.sflag [#allocation5], %s9805_s22 }
 0xfef   : > { %p12205_p12 = pnand %p20868_p7, %p20867_p4 }
 0xff1   : > { %14776 = dma.done.wait (!%p12205_p12), %s9806_s24, 2048  }
 0xff2   : > { %14778 = vsyncadd (!%p12205_p12), %s9806_s24, 4294965248  ;;  %s41_s18 = sadd.s32 1, %s14801_s18   ;;  %s20869_s13 = sld [smem:[#allocation38_spill]] }
 0xff3   : > { %p38_p13 = scmp.ge.s32.totalorder %s41_s18, 4   ;;  %s20870_s15 = sld [smem:[#allocation43_spill]] }
 0xff4   : > { %s20871_s4 = sld [smem:[#allocation41_spill]]  ;;  %s20872_s29 = smov %s14785_s30 }
 0xff5   : > { %s20874_s16 = smov %s14797_s17  ;;  %40 = sbr.rel (!%p38_p13) target bundleno = 29 (0x1d), region = 366 }
 0xff8   : > { %s20873_s30 = smov %s20869_s13 }
 0xffa   : > { %s20875_s17 = smov %s20871_s4 }
 0xffc   :  { %9811 = vsyncpa [#allocation4], 1 }
 0xffd   :  { %9813 = vsyncpa [#allocation4 + $0x1], 1 }
 0xffe   :  { %9814 = vsyncpa [#allocation7], 1 }
 0xfff   :  { %9816 = vsyncpa [#allocation7 + $0x1], 1 }
0x1000   :  { %9817 = vsyncpa [#allocation10], 1 }
0x1001   :  { %9819 = vsyncpa [#allocation10 + $0x1], 1 }
0x1002   :  { %9820 = vsyncpa [#allocation13], 1 }
0x1003   :  { %9821 = vsyncpa [#allocation16], 1 }
0x1004   :  { %9822 = vsyncpa [#allocation19], 1 }
0x1005   :  { %9823 = vsyncpa [#allocation22], 1 }
0x1006   :  { %9824 = vsyncpa [#allocation25], 1 }
0x1007   :  { %9825 = vsyncpa [#allocation5], 1 }
0x1008   :  { %9827 = vsyncpa [#allocation5 + $0x1], 1 }

</bundles_post_ra>
